<compile_context>
chip_gen: v7x
topology: tpu7x:2x2x1
jax: 0.10.0
libtpu: 0.0.40
codegen_flags: <defaults>
</compile_context>

<pallas_src>
import jax
import jax.numpy as jnp
import numpy as np
from jax.experimental import pallas as pl
from jax.experimental.pallas import tpu as pltpu


# ----------------------------------------------------------------------------
# Fused kernel: one batch element per grid step.
# ----------------------------------------------------------------------------
def basic_cbam_kernel(x_ref, w1_ref, w2_ref, s1_ref, b1_ref, s2_ref, b2_ref,
                      wfc1t_ref, wfc2_ref, wsam_ref,
                      o_ref,
                      pad_ref, spa_ref, spm_ref):
    # x_ref    : (1, H, W, C)   f32   input (also the residual)
    # w1/w2    : (9, C, C)      bf16  conv weights, tap-major (dy*3+dx, Cin, Cout)
    # s*/b*    : (1, C)         f32   folded BN scale / bias
    # wfc1t    : (Chid, C)      f32   CAM MLP layer-1 weight, transposed
    # wfc2     : (Chid, C)      f32   CAM MLP layer-2 weight
    # wsam     : (98,)          f32   SAM 7x7 weights, flat [(dy*7+dx)*2 + {avg,max}] (SMEM)
    # o_ref    : (1, H, W, C)   f32   output
    # pad_ref  : (H+2, W+2, C)  f32   zero-halo conv-input scratch
    # spa/spm  : (H+6, W+6)     f32   zero-padded SAM channel-avg / channel-max maps
    H, W, C = o_ref.shape[1], o_ref.shape[2], o_ref.shape[3]
    Chid = wfc2_ref.shape[0]
    HW = H * W

    # ---- per-step scratch prep (megacore-safe: runs every step) ----------
    zrow = jnp.zeros((1, W + 2, C), jnp.float32)
    zcol = jnp.zeros((H + 2, 1, C), jnp.float32)
    pad_ref[0:1, :, :] = zrow
    pad_ref[H + 1:H + 2, :, :] = zrow
    pad_ref[:, 0:1, :] = zcol
    pad_ref[:, W + 1:W + 2, :] = zcol
    spa_ref[...] = jnp.zeros((H + 6, W + 6), jnp.float32)
    spm_ref[...] = jnp.zeros((H + 6, W + 6), jnp.float32)

    # ---- exact layout-permutation helpers (iota-built 0/1 matrices) ------
    # mask[n, w] = 1 iff (n mod W) == w        (HW, W)
    # ah[h, n]   = 1 iff (n div W) == h        (H, HW)
    # aht[n, h]  = 1 iff (n div W) == h        (HW, H)
    eye_w = jnp.where(
        jax.lax.broadcasted_iota(jnp.int32, (W, W), 0) ==
        jax.lax.broadcasted_iota(jnp.int32, (W, W), 1), 1.0, 0.0)
    mask = jnp.broadcast_to(eye_w[None], (H, W, W)).reshape(HW, W)
    n_i = jax.lax.broadcasted_iota(jnp.int32, (H, HW), 1)
    h_i = jax.lax.broadcasted_iota(jnp.int32, (H, HW), 0)
    ah = jnp.where((n_i >= h_i * W) & (n_i < (h_i + 1) * W), 1.0, 0.0)
    n_j = jax.lax.broadcasted_iota(jnp.int32, (HW, H), 0)
    h_j = jax.lax.broadcasted_iota(jnp.int32, (HW, H), 1)
    aht = jnp.where((n_j >= h_j * W) & (n_j < (h_j + 1) * W), 1.0, 0.0)

    def col_to_map(col):            # (HW, 1) -> (H, W), W on lanes (exact gather)
        return jnp.dot(ah, col * mask, preferred_element_type=jnp.float32)

    def map_to_col(m):              # (H, W) -> (HW, 1) (exact gather)
        rep = jnp.dot(aht, m, preferred_element_type=jnp.float32)   # (HW, W)
        return jnp.sum(rep * mask, axis=-1, keepdims=True)

    def conv3x3_bn(w_ref, scale, bias):
        # Nine K=C bf16 matmuls straight from the padded scratch, f32 accumulation.
        acc = None
        for k in range(9):
            dy, dx = divmod(k, 3)
            tap = pad_ref[dy:dy + H, dx:dx + W, :].reshape(HW, C).astype(jnp.bfloat16)
            r = jnp.dot(tap, w_ref[k], preferred_element_type=jnp.float32)
            acc = r if acc is None else acc + r
        return acc * scale + bias                    # (HW, C) f32

    # ---- conv1 -> bn1 -> relu ---------------------------------------------
    pad_ref[1:H + 1, 1:W + 1, :] = x_ref[0]
    h1 = jnp.maximum(conv3x3_bn(w1_ref, s1_ref[...], b1_ref[...]), 0.0)

    # ---- conv2 -> bn2 (reuses pad scratch; halo stays zero) ---------------
    pad_ref[1:H + 1, 1:W + 1, :] = h1.reshape(H, W, C)
    y = conv3x3_bn(w2_ref, s2_ref[...], b2_ref[...])  # (HW, C)

    # ---- CAM: global avg/max pool -> shared MLP (VPU) -> sigmoid ----------
    avg = jnp.mean(y, axis=0, keepdims=True)          # (1, C)
    mx = jnp.max(y, axis=0, keepdims=True)            # (1, C)
    fc_sum = jnp.zeros((1, C), jnp.float32)
    for j in range(Chid):                             # fc2 is linear & bias-free, so
        w1j = wfc1t_ref[j:j + 1, :]                   # fc(relu(avg)) + fc(relu(max))
        h_a = jnp.maximum(jnp.sum(avg * w1j, axis=-1, keepdims=True), 0.0)
        h_m = jnp.maximum(jnp.sum(mx * w1j, axis=-1, keepdims=True), 0.0)
        fc_sum = fc_sum + (h_a + h_m) * wfc2_ref[j:j + 1, :]
    ca = jax.nn.sigmoid(fc_sum)                       # (1, C)
    z = ca * y                                        # channel-gated, (HW, C)

    # ---- SAM: channel mean/max maps -> 7x7 conv (VPU, W on lanes) ---------
    spa_ref[3:3 + H, 3:3 + W] = col_to_map(jnp.mean(z, axis=-1, keepdims=True))
    spm_ref[3:3 + H, 3:3 + W] = col_to_map(jnp.max(z, axis=-1, keepdims=True))
    spa = spa_ref[...]                                # (H+6, W+6)
    spm = spm_ref[...]
    sam = jnp.zeros((H, W), jnp.float32)
    for t in range(49):                               # scalar weights from SMEM
        dy, dx = divmod(t, 7)
        sam = sam + (spa[dy:dy + H, dx:dx + W] * wsam_ref[2 * t]
                     + spm[dy:dy + H, dx:dx + W] * wsam_ref[2 * t + 1])
    gate = map_to_col(jax.nn.sigmoid(sam))            # (HW, 1)

    # ---- spatial gating + residual + relu ----------------------------------
    out = jnp.maximum(gate * z + x_ref[0].reshape(HW, C), 0.0)
    o_ref[...] = out.reshape(1, H, W, C).astype(o_ref.dtype)


# ----------------------------------------------------------------------------
# Wrapper
# ----------------------------------------------------------------------------
def fold_bn(gamma, beta, mean, var, eps=1e-5):
    scale = gamma / jnp.sqrt(var + eps)
    bias = beta - mean * scale
    return scale[None, :].astype(jnp.float32), bias[None, :].astype(jnp.float32)


@jax.jit
def basic_cbam_forward(x_nhwc, params):
    """Fused BasicCBAM forward (NHWC layout, stride=1, inplanes==planes)."""
    N, H, W, C = x_nhwc.shape
    Chid = params["fc1_w"].shape[1]

    s1, b1 = fold_bn(params["bn1_g"], params["bn1_b"],
                     params["bn1_m"], params["bn1_v"])
    s2, b2 = fold_bn(params["bn2_g"], params["bn2_b"],
                     params["bn2_m"], params["bn2_v"])

    # HWIO (3,3,C,C) -> (9, Cin, Cout); bf16 MXU operands, f32 accumulation.
    w1 = params["conv1_w"].reshape(9, C, C).astype(jnp.bfloat16)
    w2 = params["conv2_w"].reshape(9, C, C).astype(jnp.bfloat16)
    wfc1t = jnp.transpose(params["fc1_w"]).astype(jnp.float32)     # (Chid, C)
    wfc2 = params["fc2_w"].astype(jnp.float32)                     # (Chid, C)
    wsam = params["sam_w"].reshape(7 * 7 * 2).astype(jnp.float32)

    flops = int(N * (2 * 2 * 9 * H * W * C * C        # two 3x3 convs
                     + 2 * 98 * H * W                 # SAM 7x7 conv (2 in-ch)
                     + 3 * 2 * H * W * W * H          # layout gather matmuls
                     + 2 * 2 * 2 * C * Chid           # CAM MLP
                     + 12 * H * W * C))               # elementwise epilogue
    bytes_accessed = int(N * 2 * H * W * C * 4        # input + output
                         + 2 * 9 * C * C * 2          # conv weights (bf16)
                         + (4 * C + 2 * C * Chid + 98) * 4)
    transcendentals = int(N * (H * W + C))            # sigmoids

    return pl.pallas_call(
        basic_cbam_kernel,
        out_shape=jax.ShapeDtypeStruct((N, H, W, C), jnp.float32),
        grid=(N,),
        in_specs=[
            pl.BlockSpec((1, H, W, C), lambda n: (n, 0, 0, 0)),   # x
            pl.BlockSpec((9, C, C), lambda n: (0, 0, 0)),         # conv1 weight
            pl.BlockSpec((9, C, C), lambda n: (0, 0, 0)),         # conv2 weight
            pl.BlockSpec((1, C), lambda n: (0, 0)),               # bn1 scale
            pl.BlockSpec((1, C), lambda n: (0, 0)),               # bn1 bias
            pl.BlockSpec((1, C), lambda n: (0, 0)),               # bn2 scale
            pl.BlockSpec((1, C), lambda n: (0, 0)),               # bn2 bias
            pl.BlockSpec((Chid, C), lambda n: (0, 0)),            # CAM fc1 (transposed)
            pl.BlockSpec((Chid, C), lambda n: (0, 0)),            # CAM fc2
            pl.BlockSpec(memory_space=pltpu.MemorySpace.SMEM),    # SAM 7x7 weights
        ],
        out_specs=pl.BlockSpec((1, H, W, C), lambda n: (n, 0, 0, 0)),
        scratch_shapes=[
            pltpu.VMEM((H + 2, W + 2, C), jnp.float32),           # conv pad scratch
            pltpu.VMEM((H + 6, W + 6), jnp.float32),              # SAM avg map (padded, 2-D)
            pltpu.VMEM((H + 6, W + 6), jnp.float32),              # SAM max map (padded, 2-D)
        ],
        compiler_params=pltpu.CompilerParams(
            dimension_semantics=("parallel",)),
        cost_estimate=pl.CostEstimate(flops=flops,
                                      transcendentals=transcendentals,
                                      bytes_accessed=bytes_accessed),
    )(x_nhwc, w1, w2, s1, b1, s2, b2, wfc1t, wfc2, wsam)


# ----------------------------------------------------------------------------
# Pure-JAX reference (same NHWC layout) for verification
# ----------------------------------------------------------------------------
def reference_forward(x, params):
    dn = ("NHWC", "HWIO", "NHWC")
    hi = jax.lax.Precision.HIGHEST

    def conv(t, w):
        return jax.lax.conv_general_dilated(t, w, (1, 1), "SAME",
                                            dimension_numbers=dn, precision=hi)

    def bn(t, g, b, m, v, eps=1e-5):
        return (t - m) / jnp.sqrt(v + eps) * g + b

    h = jax.nn.relu(bn(conv(x, params["conv1_w"]),
                       params["bn1_g"], params["bn1_b"],
                       params["bn1_m"], params["bn1_v"]))
    y = bn(conv(h, params["conv2_w"]),
           params["bn2_g"], params["bn2_b"],
           params["bn2_m"], params["bn2_v"])

    # CAM
    avg = jnp.mean(y, axis=(1, 2))
    mx = jnp.max(y, axis=(1, 2))

    def fc(v):
        return jax.nn.relu(v @ params["fc1_w"]) @ params["fc2_w"]

    ca = jax.nn.sigmoid(fc(avg) + fc(mx))[:, None, None, :]
    z = ca * y

    # SAM
    sm = jnp.concatenate([jnp.mean(z, axis=-1, keepdims=True),
                          jnp.max(z, axis=-1, keepdims=True)], axis=-1)
    sa = jax.nn.sigmoid(conv(sm, params["sam_w"][..., None]))
    return jax.nn.relu(sa * z + x)


# ----------------------------------------------------------------------------
if __name__ == "__main__":
    N, H, W, C = 2, 16, 16, 32      # stride=1, inplanes == planes (no downsample)
    ratio = 16
    Chid = C // ratio               # 2

    keys = jax.random.split(jax.random.PRNGKey(0), 14)
    params = {
        "conv1_w": 0.1 * jax.random.normal(keys[0], (3, 3, C, C), jnp.float32),
        "conv2_w": 0.1 * jax.random.normal(keys[1], (3, 3, C, C), jnp.float32),
        "bn1_g": 1.0 + 0.1 * jax.random.normal(keys[2], (C,), jnp.float32),
        "bn1_b": 0.1 * jax.random.normal(keys[3], (C,), jnp.float32),
        "bn1_m": 0.05 * jax.random.normal(keys[4], (C,), jnp.float32),
        "bn1_v": 1.0 + 0.1 * jax.random.uniform(keys[5], (C,), jnp.float32),
        "bn2_g": 1.0 + 0.1 * jax.random.normal(keys[6], (C,), jnp.float32),
        "bn2_b": 0.1 * jax.random.normal(keys[7], (C,), jnp.float32),
        "bn2_m": 0.05 * jax.random.normal(keys[8], (C,), jnp.float32),
        "bn2_v": 1.0 + 0.1 * jax.random.uniform(keys[9], (C,), jnp.float32),
        # CAM 1x1 convs (bias=False), stored directly as matmul weights
        "fc1_w": 0.2 * jax.random.normal(keys[10], (C, Chid), jnp.float32),
        "fc2_w": 0.2 * jax.random.normal(keys[11], (Chid, C), jnp.float32),
        # SAM 7x7 conv weight (HWI layout, in-channels = [avg, max], out-ch = 1)
        "sam_w": 0.1 * jax.random.normal(keys[12], (7, 7, 2), jnp.float32),
    }
    x = jax.random.normal(keys[13], (N, H, W, C), jnp.float32)

    out = jax.block_until_ready(basic_cbam_forward(x, params))
    ref = jax.block_until_ready(reference_forward(x, params))
    # bf16 MXU operands vs f32 HIGHEST reference -> ~1e-2-level differences expected.
    np.testing.assert_allclose(np.asarray(out), np.asarray(ref),
                               rtol=5e-2, atol=5e-2)
    print("KERNEL_OK")
</pallas_src>

<mosaic_0001>
module attributes {stable_mosaic.version = 11 : i64} {
  func.func @basic_cbam_kernel(%arg0: i32, %arg1: memref<1x16x16x32xf32, #tpu.memory_space<vmem>>, %arg2: memref<9x32x32xbf16, #tpu.memory_space<vmem>>, %arg3: memref<9x32x32xbf16, #tpu.memory_space<vmem>>, %arg4: memref<1x32xf32, #tpu.memory_space<vmem>>, %arg5: memref<1x32xf32, #tpu.memory_space<vmem>>, %arg6: memref<1x32xf32, #tpu.memory_space<vmem>>, %arg7: memref<1x32xf32, #tpu.memory_space<vmem>>, %arg8: memref<2x32xf32, #tpu.memory_space<vmem>>, %arg9: memref<2x32xf32, #tpu.memory_space<vmem>>, %arg10: memref<98xf32, #tpu.memory_space<smem>>, %arg11: memref<1x16x16x32xf32, #tpu.memory_space<vmem>>, %arg12: memref<18x18x32xf32, #tpu.memory_space<vmem>>, %arg13: memref<22x22xf32, #tpu.memory_space<vmem>>, %arg14: memref<22x22xf32, #tpu.memory_space<vmem>>) attributes {dimension_semantics = [#tpu.dimension_semantics<parallel>], iteration_bounds = array<i64: 2>, scalar_prefetch = 0 : i64, scratch_operands = 3 : i64, tpu.core_type = #tpu.core_type<tc>, window_params = [{transform_indices = @transform_0, window_bounds = array<i64: 1, 16, 16, 32>}, {pipeline_mode = #tpu.pipeline_mode<synchronous>, transform_indices = @transform_1, window_bounds = array<i64: 9, 32, 32>}, {pipeline_mode = #tpu.pipeline_mode<synchronous>, transform_indices = @transform_2, window_bounds = array<i64: 9, 32, 32>}, {pipeline_mode = #tpu.pipeline_mode<synchronous>, transform_indices = @transform_3, window_bounds = array<i64: 1, 32>}, {pipeline_mode = #tpu.pipeline_mode<synchronous>, transform_indices = @transform_4, window_bounds = array<i64: 1, 32>}, {pipeline_mode = #tpu.pipeline_mode<synchronous>, transform_indices = @transform_5, window_bounds = array<i64: 1, 32>}, {pipeline_mode = #tpu.pipeline_mode<synchronous>, transform_indices = @transform_6, window_bounds = array<i64: 1, 32>}, {pipeline_mode = #tpu.pipeline_mode<synchronous>, transform_indices = @transform_7, window_bounds = array<i64: 2, 32>}, {pipeline_mode = #tpu.pipeline_mode<synchronous>, transform_indices = @transform_8, window_bounds = array<i64: 2, 32>}, {transform_indices = @transform_9, window_bounds = array<i64: 98>}, {transform_indices = @transform_10, window_bounds = array<i64: 1, 16, 16, 32>}]} {
    %cst = arith.constant 0.000000e+00 : f32
    %0 = vector.broadcast %cst : f32 to vector<1x18x32xf32>
    %cst_0 = arith.constant 0.000000e+00 : f32
    %1 = vector.broadcast %cst_0 : f32 to vector<18x1x32xf32>
    %c0 = arith.constant 0 : index
    %c0_1 = arith.constant 0 : index
    %c0_2 = arith.constant 0 : index
    %2 = vector.load %arg12[%c0, %c0_1, %c0_2] : memref<18x18x32xf32, #tpu.memory_space<vmem>>, vector<1x18x32xf32>
    tpu.vector_store %arg12[%c0, %c0_1, %c0_2], %0 {strides = array<i32>} : memref<18x18x32xf32, #tpu.memory_space<vmem>>, vector<1x18x32xf32>,
    %c17 = arith.constant 17 : index
    %c0_3 = arith.constant 0 : index
    %c0_4 = arith.constant 0 : index
    %3 = vector.load %arg12[%c17, %c0_3, %c0_4] : memref<18x18x32xf32, #tpu.memory_space<vmem>>, vector<1x18x32xf32>
    tpu.vector_store %arg12[%c17, %c0_3, %c0_4], %0 {strides = array<i32>} : memref<18x18x32xf32, #tpu.memory_space<vmem>>, vector<1x18x32xf32>,
    %c0_5 = arith.constant 0 : index
    %c0_6 = arith.constant 0 : index
    %c0_7 = arith.constant 0 : index
    %4 = vector.load %arg12[%c0_5, %c0_6, %c0_7] : memref<18x18x32xf32, #tpu.memory_space<vmem>>, vector<18x1x32xf32>
    tpu.vector_store %arg12[%c0_5, %c0_6, %c0_7], %1 {strides = array<i32>} : memref<18x18x32xf32, #tpu.memory_space<vmem>>, vector<18x1x32xf32>,
    %c0_8 = arith.constant 0 : index
    %c17_9 = arith.constant 17 : index
    %c0_10 = arith.constant 0 : index
    %5 = vector.load %arg12[%c0_8, %c17_9, %c0_10] : memref<18x18x32xf32, #tpu.memory_space<vmem>>, vector<18x1x32xf32>
    tpu.vector_store %arg12[%c0_8, %c17_9, %c0_10], %1 {strides = array<i32>} : memref<18x18x32xf32, #tpu.memory_space<vmem>>, vector<18x1x32xf32>,
    %cst_11 = arith.constant 0.000000e+00 : f32
    %6 = vector.broadcast %cst_11 : f32 to vector<22x22xf32>
    %c0_12 = arith.constant 0 : index
    %c0_13 = arith.constant 0 : index
    %7 = vector.load %arg13[%c0_12, %c0_13] : memref<22x22xf32, #tpu.memory_space<vmem>>, vector<22x22xf32>
    tpu.vector_store %arg13[%c0_12, %c0_13], %6 {strides = array<i32>} : memref<22x22xf32, #tpu.memory_space<vmem>>, vector<22x22xf32>,
    %cst_14 = arith.constant 0.000000e+00 : f32
    %8 = vector.broadcast %cst_14 : f32 to vector<22x22xf32>
    %c0_15 = arith.constant 0 : index
    %c0_16 = arith.constant 0 : index
    %9 = vector.load %arg14[%c0_15, %c0_16] : memref<22x22xf32, #tpu.memory_space<vmem>>, vector<22x22xf32>
    tpu.vector_store %arg14[%c0_15, %c0_16], %8 {strides = array<i32>} : memref<22x22xf32, #tpu.memory_space<vmem>>, vector<22x22xf32>,
    %10 = tpu.iota {dimensions = array<i32: 0>} : vector<16x16xi32>
    %11 = tpu.iota {dimensions = array<i32: 1>} : vector<16x16xi32>
    %12 = arith.cmpi eq, %10, %11 : vector<16x16xi32>
    %cst_17 = arith.constant 1.000000e+00 : f32
    %cst_18 = arith.constant 0.000000e+00 : f32
    %13 = vector.broadcast %cst_17 : f32 to vector<16x16xf32>
    %14 = vector.broadcast %cst_18 : f32 to vector<16x16xf32>
    %15 = arith.select %12, %13, %14 : vector<16x16xi1>, vector<16x16xf32>
    %16 = vector.shape_cast %15 : vector<16x16xf32> to vector<1x16x16xf32>
    %17 = vector.shape_cast %16 : vector<1x16x16xf32> to vector<1x16x16xf32>
    %18 = vector.broadcast %17 : vector<1x16x16xf32> to vector<16x16x16xf32>
    %19 = vector.shape_cast %18 : vector<16x16x16xf32> to vector<256x16xf32>
    %20 = tpu.iota {dimensions = array<i32: 1>} : vector<16x256xi32>
    %21 = tpu.iota {dimensions = array<i32: 0>} : vector<16x256xi32>
    %c16_i32 = arith.constant 16 : i32
    %22 = vector.broadcast %c16_i32 : i32 to vector<16x256xi32>
    %23 = arith.muli %21, %22 : vector<16x256xi32>
    %24 = arith.cmpi sge, %20, %23 : vector<16x256xi32>
    %c1_i32 = arith.constant 1 : i32
    %25 = vector.broadcast %c1_i32 : i32 to vector<16x256xi32>
    %26 = arith.addi %21, %25 : vector<16x256xi32>
    %c16_i32_19 = arith.constant 16 : i32
    %27 = vector.broadcast %c16_i32_19 : i32 to vector<16x256xi32>
    %28 = arith.muli %26, %27 : vector<16x256xi32>
    %29 = arith.cmpi slt, %20, %28 : vector<16x256xi32>
    %30 = arith.andi %24, %29 : vector<16x256xi1>
    %cst_20 = arith.constant 1.000000e+00 : f32
    %cst_21 = arith.constant 0.000000e+00 : f32
    %31 = vector.broadcast %cst_20 : f32 to vector<16x256xf32>
    %32 = vector.broadcast %cst_21 : f32 to vector<16x256xf32>
    %33 = arith.select %30, %31, %32 : vector<16x256xi1>, vector<16x256xf32>
    %34 = tpu.iota {dimensions = array<i32: 0>} : vector<256x16xi32>
    %35 = tpu.iota {dimensions = array<i32: 1>} : vector<256x16xi32>
    %c16_i32_22 = arith.constant 16 : i32
    %36 = vector.broadcast %c16_i32_22 : i32 to vector<256x16xi32>
    %37 = arith.muli %35, %36 : vector<256x16xi32>
    %38 = arith.cmpi sge, %34, %37 : vector<256x16xi32>
    %c1_i32_23 = arith.constant 1 : i32
    %39 = vector.broadcast %c1_i32_23 : i32 to vector<256x16xi32>
    %40 = arith.addi %35, %39 : vector<256x16xi32>
    %c16_i32_24 = arith.constant 16 : i32
    %41 = vector.broadcast %c16_i32_24 : i32 to vector<256x16xi32>
    %42 = arith.muli %40, %41 : vector<256x16xi32>
    %43 = arith.cmpi slt, %34, %42 : vector<256x16xi32>
    %44 = arith.andi %38, %43 : vector<256x16xi1>
    %cst_25 = arith.constant 1.000000e+00 : f32
    %cst_26 = arith.constant 0.000000e+00 : f32
    %45 = vector.broadcast %cst_25 : f32 to vector<256x16xf32>
    %46 = vector.broadcast %cst_26 : f32 to vector<256x16xf32>
    %47 = arith.select %44, %45, %46 : vector<256x16xi1>, vector<256x16xf32>
    %c0_27 = arith.constant 0 : index
    %c0_28 = arith.constant 0 : index
    %c0_29 = arith.constant 0 : index
    %c0_30 = arith.constant 0 : index
    %48 = vector.load %arg1[%c0_27, %c0_28, %c0_29, %c0_30] : memref<1x16x16x32xf32, #tpu.memory_space<vmem>>, vector<1x16x16x32xf32>
    %49 = vector.shape_cast %48 : vector<1x16x16x32xf32> to vector<16x16x32xf32>
    %c1 = arith.constant 1 : index
    %c1_31 = arith.constant 1 : index
    %c0_32 = arith.constant 0 : index
    %50 = vector.load %arg12[%c1, %c1_31, %c0_32] : memref<18x18x32xf32, #tpu.memory_space<vmem>>, vector<16x16x32xf32>
    tpu.vector_store %arg12[%c1, %c1_31, %c0_32], %49 {strides = array<i32>} : memref<18x18x32xf32, #tpu.memory_space<vmem>>, vector<16x16x32xf32>,
    %c0_33 = arith.constant 0 : index
    %c0_34 = arith.constant 0 : index
    %51 = vector.load %arg4[%c0_33, %c0_34] : memref<1x32xf32, #tpu.memory_space<vmem>>, vector<1x32xf32>
    %c0_35 = arith.constant 0 : index
    %c0_36 = arith.constant 0 : index
    %52 = vector.load %arg5[%c0_35, %c0_36] : memref<1x32xf32, #tpu.memory_space<vmem>>, vector<1x32xf32>
    %c0_37 = arith.constant 0 : index
    %c0_38 = arith.constant 0 : index
    %c0_39 = arith.constant 0 : index
    %53 = vector.load %arg12[%c0_37, %c0_38, %c0_39] : memref<18x18x32xf32, #tpu.memory_space<vmem>>, vector<16x16x32xf32>
    %54 = vector.shape_cast %53 : vector<16x16x32xf32> to vector<256x32xf32>
    %55 = arith.truncf %54 : vector<256x32xf32> to vector<256x32xbf16>
    %c0_40 = arith.constant 0 : index
    %c0_41 = arith.constant 0 : index
    %c0_42 = arith.constant 0 : index
    %56 = vector.load %arg2[%c0_40, %c0_41, %c0_42] : memref<9x32x32xbf16, #tpu.memory_space<vmem>>, vector<1x32x32xbf16>
    %57 = vector.shape_cast %56 : vector<1x32x32xbf16> to vector<32x32xbf16>
    %cst_43 = arith.constant dense<0.000000e+00> : vector<256x32xf32>
    %58 = tpu.matmul %55, %57, %cst_43 {dimension_numbers = #tpu.dot_dimension_numbers<[1], [0], [0], [1], [0, 0, 1, 1], [], []>} : vector<256x32xbf16>, vector<32x32xbf16>, vector<256x32xf32> -> vector<256x32xf32>
    %c0_44 = arith.constant 0 : index
    %c1_45 = arith.constant 1 : index
    %c0_46 = arith.constant 0 : index
    %59 = vector.load %arg12[%c0_44, %c1_45, %c0_46] : memref<18x18x32xf32, #tpu.memory_space<vmem>>, vector<16x16x32xf32>
    %60 = vector.shape_cast %59 : vector<16x16x32xf32> to vector<256x32xf32>
    %61 = arith.truncf %60 : vector<256x32xf32> to vector<256x32xbf16>
    %c1_47 = arith.constant 1 : index
    %c0_48 = arith.constant 0 : index
    %c0_49 = arith.constant 0 : index
    %62 = vector.load %arg2[%c1_47, %c0_48, %c0_49] : memref<9x32x32xbf16, #tpu.memory_space<vmem>>, vector<1x32x32xbf16>
    %63 = vector.shape_cast %62 : vector<1x32x32xbf16> to vector<32x32xbf16>
    %cst_50 = arith.constant dense<0.000000e+00> : vector<256x32xf32>
    %64 = tpu.matmul %61, %63, %cst_50 {dimension_numbers = #tpu.dot_dimension_numbers<[1], [0], [0], [1], [0, 0, 1, 1], [], []>} : vector<256x32xbf16>, vector<32x32xbf16>, vector<256x32xf32> -> vector<256x32xf32>
    %65 = arith.addf %58, %64 : vector<256x32xf32>
    %c0_51 = arith.constant 0 : index
    %c2 = arith.constant 2 : index
    %c0_52 = arith.constant 0 : index
    %66 = vector.load %arg12[%c0_51, %c2, %c0_52] : memref<18x18x32xf32, #tpu.memory_space<vmem>>, vector<16x16x32xf32>
    %67 = vector.shape_cast %66 : vector<16x16x32xf32> to vector<256x32xf32>
    %68 = arith.truncf %67 : vector<256x32xf32> to vector<256x32xbf16>
    %c2_53 = arith.constant 2 : index
    %c0_54 = arith.constant 0 : index
    %c0_55 = arith.constant 0 : index
    %69 = vector.load %arg2[%c2_53, %c0_54, %c0_55] : memref<9x32x32xbf16, #tpu.memory_space<vmem>>, vector<1x32x32xbf16>
    %70 = vector.shape_cast %69 : vector<1x32x32xbf16> to vector<32x32xbf16>
    %cst_56 = arith.constant dense<0.000000e+00> : vector<256x32xf32>
    %71 = tpu.matmul %68, %70, %cst_56 {dimension_numbers = #tpu.dot_dimension_numbers<[1], [0], [0], [1], [0, 0, 1, 1], [], []>} : vector<256x32xbf16>, vector<32x32xbf16>, vector<256x32xf32> -> vector<256x32xf32>
    %72 = arith.addf %65, %71 : vector<256x32xf32>
    %c1_57 = arith.constant 1 : index
    %c0_58 = arith.constant 0 : index
    %c0_59 = arith.constant 0 : index
    %73 = vector.load %arg12[%c1_57, %c0_58, %c0_59] : memref<18x18x32xf32, #tpu.memory_space<vmem>>, vector<16x16x32xf32>
    %74 = vector.shape_cast %73 : vector<16x16x32xf32> to vector<256x32xf32>
    %75 = arith.truncf %74 : vector<256x32xf32> to vector<256x32xbf16>
    %c3 = arith.constant 3 : index
    %c0_60 = arith.constant 0 : index
    %c0_61 = arith.constant 0 : index
    %76 = vector.load %arg2[%c3, %c0_60, %c0_61] : memref<9x32x32xbf16, #tpu.memory_space<vmem>>, vector<1x32x32xbf16>
    %77 = vector.shape_cast %76 : vector<1x32x32xbf16> to vector<32x32xbf16>
    %cst_62 = arith.constant dense<0.000000e+00> : vector<256x32xf32>
    %78 = tpu.matmul %75, %77, %cst_62 {dimension_numbers = #tpu.dot_dimension_numbers<[1], [0], [0], [1], [0, 0, 1, 1], [], []>} : vector<256x32xbf16>, vector<32x32xbf16>, vector<256x32xf32> -> vector<256x32xf32>
    %79 = arith.addf %72, %78 : vector<256x32xf32>
    %c1_63 = arith.constant 1 : index
    %c1_64 = arith.constant 1 : index
    %c0_65 = arith.constant 0 : index
    %80 = vector.load %arg12[%c1_63, %c1_64, %c0_65] : memref<18x18x32xf32, #tpu.memory_space<vmem>>, vector<16x16x32xf32>
    %81 = vector.shape_cast %80 : vector<16x16x32xf32> to vector<256x32xf32>
    %82 = arith.truncf %81 : vector<256x32xf32> to vector<256x32xbf16>
    %c4 = arith.constant 4 : index
    %c0_66 = arith.constant 0 : index
    %c0_67 = arith.constant 0 : index
    %83 = vector.load %arg2[%c4, %c0_66, %c0_67] : memref<9x32x32xbf16, #tpu.memory_space<vmem>>, vector<1x32x32xbf16>
    %84 = vector.shape_cast %83 : vector<1x32x32xbf16> to vector<32x32xbf16>
    %cst_68 = arith.constant dense<0.000000e+00> : vector<256x32xf32>
    %85 = tpu.matmul %82, %84, %cst_68 {dimension_numbers = #tpu.dot_dimension_numbers<[1], [0], [0], [1], [0, 0, 1, 1], [], []>} : vector<256x32xbf16>, vector<32x32xbf16>, vector<256x32xf32> -> vector<256x32xf32>
    %86 = arith.addf %79, %85 : vector<256x32xf32>
    %c1_69 = arith.constant 1 : index
    %c2_70 = arith.constant 2 : index
    %c0_71 = arith.constant 0 : index
    %87 = vector.load %arg12[%c1_69, %c2_70, %c0_71] : memref<18x18x32xf32, #tpu.memory_space<vmem>>, vector<16x16x32xf32>
    %88 = vector.shape_cast %87 : vector<16x16x32xf32> to vector<256x32xf32>
    %89 = arith.truncf %88 : vector<256x32xf32> to vector<256x32xbf16>
    %c5 = arith.constant 5 : index
    %c0_72 = arith.constant 0 : index
    %c0_73 = arith.constant 0 : index
    %90 = vector.load %arg2[%c5, %c0_72, %c0_73] : memref<9x32x32xbf16, #tpu.memory_space<vmem>>, vector<1x32x32xbf16>
    %91 = vector.shape_cast %90 : vector<1x32x32xbf16> to vector<32x32xbf16>
    %cst_74 = arith.constant dense<0.000000e+00> : vector<256x32xf32>
    %92 = tpu.matmul %89, %91, %cst_74 {dimension_numbers = #tpu.dot_dimension_numbers<[1], [0], [0], [1], [0, 0, 1, 1], [], []>} : vector<256x32xbf16>, vector<32x32xbf16>, vector<256x32xf32> -> vector<256x32xf32>
    %93 = arith.addf %86, %92 : vector<256x32xf32>
    %c2_75 = arith.constant 2 : index
    %c0_76 = arith.constant 0 : index
    %c0_77 = arith.constant 0 : index
    %94 = vector.load %arg12[%c2_75, %c0_76, %c0_77] : memref<18x18x32xf32, #tpu.memory_space<vmem>>, vector<16x16x32xf32>
    %95 = vector.shape_cast %94 : vector<16x16x32xf32> to vector<256x32xf32>
    %96 = arith.truncf %95 : vector<256x32xf32> to vector<256x32xbf16>
    %c6 = arith.constant 6 : index
    %c0_78 = arith.constant 0 : index
    %c0_79 = arith.constant 0 : index
    %97 = vector.load %arg2[%c6, %c0_78, %c0_79] : memref<9x32x32xbf16, #tpu.memory_space<vmem>>, vector<1x32x32xbf16>
    %98 = vector.shape_cast %97 : vector<1x32x32xbf16> to vector<32x32xbf16>
    %cst_80 = arith.constant dense<0.000000e+00> : vector<256x32xf32>
    %99 = tpu.matmul %96, %98, %cst_80 {dimension_numbers = #tpu.dot_dimension_numbers<[1], [0], [0], [1], [0, 0, 1, 1], [], []>} : vector<256x32xbf16>, vector<32x32xbf16>, vector<256x32xf32> -> vector<256x32xf32>
    %100 = arith.addf %93, %99 : vector<256x32xf32>
    %c2_81 = arith.constant 2 : index
    %c1_82 = arith.constant 1 : index
    %c0_83 = arith.constant 0 : index
    %101 = vector.load %arg12[%c2_81, %c1_82, %c0_83] : memref<18x18x32xf32, #tpu.memory_space<vmem>>, vector<16x16x32xf32>
    %102 = vector.shape_cast %101 : vector<16x16x32xf32> to vector<256x32xf32>
    %103 = arith.truncf %102 : vector<256x32xf32> to vector<256x32xbf16>
    %c7 = arith.constant 7 : index
    %c0_84 = arith.constant 0 : index
    %c0_85 = arith.constant 0 : index
    %104 = vector.load %arg2[%c7, %c0_84, %c0_85] : memref<9x32x32xbf16, #tpu.memory_space<vmem>>, vector<1x32x32xbf16>
    %105 = vector.shape_cast %104 : vector<1x32x32xbf16> to vector<32x32xbf16>
    %cst_86 = arith.constant dense<0.000000e+00> : vector<256x32xf32>
    %106 = tpu.matmul %103, %105, %cst_86 {dimension_numbers = #tpu.dot_dimension_numbers<[1], [0], [0], [1], [0, 0, 1, 1], [], []>} : vector<256x32xbf16>, vector<32x32xbf16>, vector<256x32xf32> -> vector<256x32xf32>
    %107 = arith.addf %100, %106 : vector<256x32xf32>
    %c2_87 = arith.constant 2 : index
    %c2_88 = arith.constant 2 : index
    %c0_89 = arith.constant 0 : index
    %108 = vector.load %arg12[%c2_87, %c2_88, %c0_89] : memref<18x18x32xf32, #tpu.memory_space<vmem>>, vector<16x16x32xf32>
    %109 = vector.shape_cast %108 : vector<16x16x32xf32> to vector<256x32xf32>
    %110 = arith.truncf %109 : vector<256x32xf32> to vector<256x32xbf16>
    %c8 = arith.constant 8 : index
    %c0_90 = arith.constant 0 : index
    %c0_91 = arith.constant 0 : index
    %111 = vector.load %arg2[%c8, %c0_90, %c0_91] : memref<9x32x32xbf16, #tpu.memory_space<vmem>>, vector<1x32x32xbf16>
    %112 = vector.shape_cast %111 : vector<1x32x32xbf16> to vector<32x32xbf16>
    %cst_92 = arith.constant dense<0.000000e+00> : vector<256x32xf32>
    %113 = tpu.matmul %110, %112, %cst_92 {dimension_numbers = #tpu.dot_dimension_numbers<[1], [0], [0], [1], [0, 0, 1, 1], [], []>} : vector<256x32xbf16>, vector<32x32xbf16>, vector<256x32xf32> -> vector<256x32xf32>
    %114 = arith.addf %107, %113 : vector<256x32xf32>
    %115 = vector.broadcast %51 : vector<1x32xf32> to vector<256x32xf32>
    %116 = arith.mulf %114, %115 : vector<256x32xf32>
    %117 = vector.broadcast %52 : vector<1x32xf32> to vector<256x32xf32>
    %118 = arith.addf %116, %117 : vector<256x32xf32>
    %cst_93 = arith.constant 0.000000e+00 : f32
    %119 = vector.broadcast %cst_93 : f32 to vector<256x32xf32>
    %120 = arith.maximumf %118, %119 : vector<256x32xf32>
    %121 = vector.shape_cast %120 : vector<256x32xf32> to vector<16x16x32xf32>
    %c1_94 = arith.constant 1 : index
    %c1_95 = arith.constant 1 : index
    %c0_96 = arith.constant 0 : index
    %122 = vector.load %arg12[%c1_94, %c1_95, %c0_96] : memref<18x18x32xf32, #tpu.memory_space<vmem>>, vector<16x16x32xf32>
    tpu.vector_store %arg12[%c1_94, %c1_95, %c0_96], %121 {strides = array<i32>} : memref<18x18x32xf32, #tpu.memory_space<vmem>>, vector<16x16x32xf32>,
    %c0_97 = arith.constant 0 : index
    %c0_98 = arith.constant 0 : index
    %123 = vector.load %arg6[%c0_97, %c0_98] : memref<1x32xf32, #tpu.memory_space<vmem>>, vector<1x32xf32>
    %c0_99 = arith.constant 0 : index
    %c0_100 = arith.constant 0 : index
    %124 = vector.load %arg7[%c0_99, %c0_100] : memref<1x32xf32, #tpu.memory_space<vmem>>, vector<1x32xf32>
    %c0_101 = arith.constant 0 : index
    %c0_102 = arith.constant 0 : index
    %c0_103 = arith.constant 0 : index
    %125 = vector.load %arg12[%c0_101, %c0_102, %c0_103] : memref<18x18x32xf32, #tpu.memory_space<vmem>>, vector<16x16x32xf32>
    %126 = vector.shape_cast %125 : vector<16x16x32xf32> to vector<256x32xf32>
    %127 = arith.truncf %126 : vector<256x32xf32> to vector<256x32xbf16>
    %c0_104 = arith.constant 0 : index
    %c0_105 = arith.constant 0 : index
    %c0_106 = arith.constant 0 : index
    %128 = vector.load %arg3[%c0_104, %c0_105, %c0_106] : memref<9x32x32xbf16, #tpu.memory_space<vmem>>, vector<1x32x32xbf16>
    %129 = vector.shape_cast %128 : vector<1x32x32xbf16> to vector<32x32xbf16>
    %cst_107 = arith.constant dense<0.000000e+00> : vector<256x32xf32>
    %130 = tpu.matmul %127, %129, %cst_107 {dimension_numbers = #tpu.dot_dimension_numbers<[1], [0], [0], [1], [0, 0, 1, 1], [], []>} : vector<256x32xbf16>, vector<32x32xbf16>, vector<256x32xf32> -> vector<256x32xf32>
    %c0_108 = arith.constant 0 : index
    %c1_109 = arith.constant 1 : index
    %c0_110 = arith.constant 0 : index
    %131 = vector.load %arg12[%c0_108, %c1_109, %c0_110] : memref<18x18x32xf32, #tpu.memory_space<vmem>>, vector<16x16x32xf32>
    %132 = vector.shape_cast %131 : vector<16x16x32xf32> to vector<256x32xf32>
    %133 = arith.truncf %132 : vector<256x32xf32> to vector<256x32xbf16>
    %c1_111 = arith.constant 1 : index
    %c0_112 = arith.constant 0 : index
    %c0_113 = arith.constant 0 : index
    %134 = vector.load %arg3[%c1_111, %c0_112, %c0_113] : memref<9x32x32xbf16, #tpu.memory_space<vmem>>, vector<1x32x32xbf16>
    %135 = vector.shape_cast %134 : vector<1x32x32xbf16> to vector<32x32xbf16>
    %cst_114 = arith.constant dense<0.000000e+00> : vector<256x32xf32>
    %136 = tpu.matmul %133, %135, %cst_114 {dimension_numbers = #tpu.dot_dimension_numbers<[1], [0], [0], [1], [0, 0, 1, 1], [], []>} : vector<256x32xbf16>, vector<32x32xbf16>, vector<256x32xf32> -> vector<256x32xf32>
    %137 = arith.addf %130, %136 : vector<256x32xf32>
    %c0_115 = arith.constant 0 : index
    %c2_116 = arith.constant 2 : index
    %c0_117 = arith.constant 0 : index
    %138 = vector.load %arg12[%c0_115, %c2_116, %c0_117] : memref<18x18x32xf32, #tpu.memory_space<vmem>>, vector<16x16x32xf32>
    %139 = vector.shape_cast %138 : vector<16x16x32xf32> to vector<256x32xf32>
    %140 = arith.truncf %139 : vector<256x32xf32> to vector<256x32xbf16>
    %c2_118 = arith.constant 2 : index
    %c0_119 = arith.constant 0 : index
    %c0_120 = arith.constant 0 : index
    %141 = vector.load %arg3[%c2_118, %c0_119, %c0_120] : memref<9x32x32xbf16, #tpu.memory_space<vmem>>, vector<1x32x32xbf16>
    %142 = vector.shape_cast %141 : vector<1x32x32xbf16> to vector<32x32xbf16>
    %cst_121 = arith.constant dense<0.000000e+00> : vector<256x32xf32>
    %143 = tpu.matmul %140, %142, %cst_121 {dimension_numbers = #tpu.dot_dimension_numbers<[1], [0], [0], [1], [0, 0, 1, 1], [], []>} : vector<256x32xbf16>, vector<32x32xbf16>, vector<256x32xf32> -> vector<256x32xf32>
    %144 = arith.addf %137, %143 : vector<256x32xf32>
    %c1_122 = arith.constant 1 : index
    %c0_123 = arith.constant 0 : index
    %c0_124 = arith.constant 0 : index
    %145 = vector.load %arg12[%c1_122, %c0_123, %c0_124] : memref<18x18x32xf32, #tpu.memory_space<vmem>>, vector<16x16x32xf32>
    %146 = vector.shape_cast %145 : vector<16x16x32xf32> to vector<256x32xf32>
    %147 = arith.truncf %146 : vector<256x32xf32> to vector<256x32xbf16>
    %c3_125 = arith.constant 3 : index
    %c0_126 = arith.constant 0 : index
    %c0_127 = arith.constant 0 : index
    %148 = vector.load %arg3[%c3_125, %c0_126, %c0_127] : memref<9x32x32xbf16, #tpu.memory_space<vmem>>, vector<1x32x32xbf16>
    %149 = vector.shape_cast %148 : vector<1x32x32xbf16> to vector<32x32xbf16>
    %cst_128 = arith.constant dense<0.000000e+00> : vector<256x32xf32>
    %150 = tpu.matmul %147, %149, %cst_128 {dimension_numbers = #tpu.dot_dimension_numbers<[1], [0], [0], [1], [0, 0, 1, 1], [], []>} : vector<256x32xbf16>, vector<32x32xbf16>, vector<256x32xf32> -> vector<256x32xf32>
    %151 = arith.addf %144, %150 : vector<256x32xf32>
    %c1_129 = arith.constant 1 : index
    %c1_130 = arith.constant 1 : index
    %c0_131 = arith.constant 0 : index
    %152 = vector.load %arg12[%c1_129, %c1_130, %c0_131] : memref<18x18x32xf32, #tpu.memory_space<vmem>>, vector<16x16x32xf32>
    %153 = vector.shape_cast %152 : vector<16x16x32xf32> to vector<256x32xf32>
    %154 = arith.truncf %153 : vector<256x32xf32> to vector<256x32xbf16>
    %c4_132 = arith.constant 4 : index
    %c0_133 = arith.constant 0 : index
    %c0_134 = arith.constant 0 : index
    %155 = vector.load %arg3[%c4_132, %c0_133, %c0_134] : memref<9x32x32xbf16, #tpu.memory_space<vmem>>, vector<1x32x32xbf16>
    %156 = vector.shape_cast %155 : vector<1x32x32xbf16> to vector<32x32xbf16>
    %cst_135 = arith.constant dense<0.000000e+00> : vector<256x32xf32>
    %157 = tpu.matmul %154, %156, %cst_135 {dimension_numbers = #tpu.dot_dimension_numbers<[1], [0], [0], [1], [0, 0, 1, 1], [], []>} : vector<256x32xbf16>, vector<32x32xbf16>, vector<256x32xf32> -> vector<256x32xf32>
    %158 = arith.addf %151, %157 : vector<256x32xf32>
    %c1_136 = arith.constant 1 : index
    %c2_137 = arith.constant 2 : index
    %c0_138 = arith.constant 0 : index
    %159 = vector.load %arg12[%c1_136, %c2_137, %c0_138] : memref<18x18x32xf32, #tpu.memory_space<vmem>>, vector<16x16x32xf32>
    %160 = vector.shape_cast %159 : vector<16x16x32xf32> to vector<256x32xf32>
    %161 = arith.truncf %160 : vector<256x32xf32> to vector<256x32xbf16>
    %c5_139 = arith.constant 5 : index
    %c0_140 = arith.constant 0 : index
    %c0_141 = arith.constant 0 : index
    %162 = vector.load %arg3[%c5_139, %c0_140, %c0_141] : memref<9x32x32xbf16, #tpu.memory_space<vmem>>, vector<1x32x32xbf16>
    %163 = vector.shape_cast %162 : vector<1x32x32xbf16> to vector<32x32xbf16>
    %cst_142 = arith.constant dense<0.000000e+00> : vector<256x32xf32>
    %164 = tpu.matmul %161, %163, %cst_142 {dimension_numbers = #tpu.dot_dimension_numbers<[1], [0], [0], [1], [0, 0, 1, 1], [], []>} : vector<256x32xbf16>, vector<32x32xbf16>, vector<256x32xf32> -> vector<256x32xf32>
    %165 = arith.addf %158, %164 : vector<256x32xf32>
    %c2_143 = arith.constant 2 : index
    %c0_144 = arith.constant 0 : index
    %c0_145 = arith.constant 0 : index
    %166 = vector.load %arg12[%c2_143, %c0_144, %c0_145] : memref<18x18x32xf32, #tpu.memory_space<vmem>>, vector<16x16x32xf32>
    %167 = vector.shape_cast %166 : vector<16x16x32xf32> to vector<256x32xf32>
    %168 = arith.truncf %167 : vector<256x32xf32> to vector<256x32xbf16>
    %c6_146 = arith.constant 6 : index
    %c0_147 = arith.constant 0 : index
    %c0_148 = arith.constant 0 : index
    %169 = vector.load %arg3[%c6_146, %c0_147, %c0_148] : memref<9x32x32xbf16, #tpu.memory_space<vmem>>, vector<1x32x32xbf16>
    %170 = vector.shape_cast %169 : vector<1x32x32xbf16> to vector<32x32xbf16>
    %cst_149 = arith.constant dense<0.000000e+00> : vector<256x32xf32>
    %171 = tpu.matmul %168, %170, %cst_149 {dimension_numbers = #tpu.dot_dimension_numbers<[1], [0], [0], [1], [0, 0, 1, 1], [], []>} : vector<256x32xbf16>, vector<32x32xbf16>, vector<256x32xf32> -> vector<256x32xf32>
    %172 = arith.addf %165, %171 : vector<256x32xf32>
    %c2_150 = arith.constant 2 : index
    %c1_151 = arith.constant 1 : index
    %c0_152 = arith.constant 0 : index
    %173 = vector.load %arg12[%c2_150, %c1_151, %c0_152] : memref<18x18x32xf32, #tpu.memory_space<vmem>>, vector<16x16x32xf32>
    %174 = vector.shape_cast %173 : vector<16x16x32xf32> to vector<256x32xf32>
    %175 = arith.truncf %174 : vector<256x32xf32> to vector<256x32xbf16>
    %c7_153 = arith.constant 7 : index
    %c0_154 = arith.constant 0 : index
    %c0_155 = arith.constant 0 : index
    %176 = vector.load %arg3[%c7_153, %c0_154, %c0_155] : memref<9x32x32xbf16, #tpu.memory_space<vmem>>, vector<1x32x32xbf16>
    %177 = vector.shape_cast %176 : vector<1x32x32xbf16> to vector<32x32xbf16>
    %cst_156 = arith.constant dense<0.000000e+00> : vector<256x32xf32>
    %178 = tpu.matmul %175, %177, %cst_156 {dimension_numbers = #tpu.dot_dimension_numbers<[1], [0], [0], [1], [0, 0, 1, 1], [], []>} : vector<256x32xbf16>, vector<32x32xbf16>, vector<256x32xf32> -> vector<256x32xf32>
    %179 = arith.addf %172, %178 : vector<256x32xf32>
    %c2_157 = arith.constant 2 : index
    %c2_158 = arith.constant 2 : index
    %c0_159 = arith.constant 0 : index
    %180 = vector.load %arg12[%c2_157, %c2_158, %c0_159] : memref<18x18x32xf32, #tpu.memory_space<vmem>>, vector<16x16x32xf32>
    %181 = vector.shape_cast %180 : vector<16x16x32xf32> to vector<256x32xf32>
    %182 = arith.truncf %181 : vector<256x32xf32> to vector<256x32xbf16>
    %c8_160 = arith.constant 8 : index
    %c0_161 = arith.constant 0 : index
    %c0_162 = arith.constant 0 : index
    %183 = vector.load %arg3[%c8_160, %c0_161, %c0_162] : memref<9x32x32xbf16, #tpu.memory_space<vmem>>, vector<1x32x32xbf16>
    %184 = vector.shape_cast %183 : vector<1x32x32xbf16> to vector<32x32xbf16>
    %cst_163 = arith.constant dense<0.000000e+00> : vector<256x32xf32>
    %185 = tpu.matmul %182, %184, %cst_163 {dimension_numbers = #tpu.dot_dimension_numbers<[1], [0], [0], [1], [0, 0, 1, 1], [], []>} : vector<256x32xbf16>, vector<32x32xbf16>, vector<256x32xf32> -> vector<256x32xf32>
    %186 = arith.addf %179, %185 : vector<256x32xf32>
    %187 = vector.broadcast %123 : vector<1x32xf32> to vector<256x32xf32>
    %188 = arith.mulf %186, %187 : vector<256x32xf32>
    %189 = vector.broadcast %124 : vector<1x32xf32> to vector<256x32xf32>
    %190 = arith.addf %188, %189 : vector<256x32xf32>
    %cst_164 = arith.constant dense<0.000000e+00> : vector<32xf32>
    %191 = vector.multi_reduction <add>, %190, %cst_164 [0] : vector<256x32xf32> to vector<32xf32>
    %192 = vector.shape_cast %191 : vector<32xf32> to vector<1x32xf32>
    %cst_165 = arith.constant 2.560000e+02 : f32
    %193 = vector.broadcast %cst_165 : f32 to vector<1x32xf32>
    %194 = arith.divf %192, %193 : vector<1x32xf32>
    %cst_166 = arith.constant dense<0xFF800000> : vector<32xf32>
    %195 = vector.multi_reduction <maximumf>, %190, %cst_166 [0] : vector<256x32xf32> to vector<32xf32>
    %196 = vector.shape_cast %195 : vector<32xf32> to vector<1x32xf32>
    %cst_167 = arith.constant 0.000000e+00 : f32
    %197 = vector.broadcast %cst_167 : f32 to vector<1x32xf32>
    %c0_168 = arith.constant 0 : index
    %c0_169 = arith.constant 0 : index
    %198 = vector.load %arg8[%c0_168, %c0_169] : memref<2x32xf32, #tpu.memory_space<vmem>>, vector<1x32xf32>
    %199 = arith.mulf %194, %198 : vector<1x32xf32>
    %cst_170 = arith.constant dense<0.000000e+00> : vector<1xf32>
    %200 = vector.multi_reduction <add>, %199, %cst_170 [1] : vector<1x32xf32> to vector<1xf32>
    %201 = vector.shape_cast %200 : vector<1xf32> to vector<1x1xf32>
    %cst_171 = arith.constant 0.000000e+00 : f32
    %202 = vector.broadcast %cst_171 : f32 to vector<1x1xf32>
    %203 = arith.maximumf %201, %202 : vector<1x1xf32>
    %204 = arith.mulf %196, %198 : vector<1x32xf32>
    %cst_172 = arith.constant dense<0.000000e+00> : vector<1xf32>
    %205 = vector.multi_reduction <add>, %204, %cst_172 [1] : vector<1x32xf32> to vector<1xf32>
    %206 = vector.shape_cast %205 : vector<1xf32> to vector<1x1xf32>
    %cst_173 = arith.constant 0.000000e+00 : f32
    %207 = vector.broadcast %cst_173 : f32 to vector<1x1xf32>
    %208 = arith.maximumf %206, %207 : vector<1x1xf32>
    %209 = arith.addf %203, %208 : vector<1x1xf32>
    %c0_174 = arith.constant 0 : index
    %c0_175 = arith.constant 0 : index
    %210 = vector.load %arg9[%c0_174, %c0_175] : memref<2x32xf32, #tpu.memory_space<vmem>>, vector<1x32xf32>
    %211 = vector.broadcast %209 : vector<1x1xf32> to vector<1x32xf32>
    %212 = arith.mulf %211, %210 : vector<1x32xf32>
    %213 = arith.addf %197, %212 : vector<1x32xf32>
    %c1_176 = arith.constant 1 : index
    %c0_177 = arith.constant 0 : index
    %214 = vector.load %arg8[%c1_176, %c0_177] : memref<2x32xf32, #tpu.memory_space<vmem>>, vector<1x32xf32>
    %215 = arith.mulf %194, %214 : vector<1x32xf32>
    %cst_178 = arith.constant dense<0.000000e+00> : vector<1xf32>
    %216 = vector.multi_reduction <add>, %215, %cst_178 [1] : vector<1x32xf32> to vector<1xf32>
    %217 = vector.shape_cast %216 : vector<1xf32> to vector<1x1xf32>
    %cst_179 = arith.constant 0.000000e+00 : f32
    %218 = vector.broadcast %cst_179 : f32 to vector<1x1xf32>
    %219 = arith.maximumf %217, %218 : vector<1x1xf32>
    %220 = arith.mulf %196, %214 : vector<1x32xf32>
    %cst_180 = arith.constant dense<0.000000e+00> : vector<1xf32>
    %221 = vector.multi_reduction <add>, %220, %cst_180 [1] : vector<1x32xf32> to vector<1xf32>
    %222 = vector.shape_cast %221 : vector<1xf32> to vector<1x1xf32>
    %cst_181 = arith.constant 0.000000e+00 : f32
    %223 = vector.broadcast %cst_181 : f32 to vector<1x1xf32>
    %224 = arith.maximumf %222, %223 : vector<1x1xf32>
    %225 = arith.addf %219, %224 : vector<1x1xf32>
    %c1_182 = arith.constant 1 : index
    %c0_183 = arith.constant 0 : index
    %226 = vector.load %arg9[%c1_182, %c0_183] : memref<2x32xf32, #tpu.memory_space<vmem>>, vector<1x32xf32>
    %227 = vector.broadcast %225 : vector<1x1xf32> to vector<1x32xf32>
    %228 = arith.mulf %227, %226 : vector<1x32xf32>
    %229 = arith.addf %213, %228 : vector<1x32xf32>
    %230 = arith.negf %229 : vector<1x32xf32>
    %231 = math.exp %230 : vector<1x32xf32>
    %cst_184 = arith.constant 1.000000e+00 : f32
    %232 = vector.broadcast %cst_184 : f32 to vector<1x32xf32>
    %233 = arith.addf %232, %231 : vector<1x32xf32>
    %234 = arith.divf %232, %233 : vector<1x32xf32>
    %235 = vector.broadcast %234 : vector<1x32xf32> to vector<256x32xf32>
    %236 = arith.mulf %235, %190 : vector<256x32xf32>
    %cst_185 = arith.constant dense<0.000000e+00> : vector<256xf32>
    %237 = vector.multi_reduction <add>, %236, %cst_185 [1] : vector<256x32xf32> to vector<256xf32>
    %238 = vector.shape_cast %237 : vector<256xf32> to vector<256x1xf32>
    %cst_186 = arith.constant 3.200000e+01 : f32
    %239 = vector.broadcast %cst_186 : f32 to vector<256x1xf32>
    %240 = arith.divf %238, %239 : vector<256x1xf32>
    %241 = vector.broadcast %240 : vector<256x1xf32> to vector<256x16xf32>
    %242 = arith.mulf %241, %19 : vector<256x16xf32>
    %cst_187 = arith.constant dense<0.000000e+00> : vector<16x16xf32>
    %243 = tpu.matmul %33, %242, %cst_187 {dimension_numbers = #tpu.dot_dimension_numbers<[1], [0], [0], [1], [0, 0, 1, 1], [], []>} : vector<16x256xf32>, vector<256x16xf32>, vector<16x16xf32> -> vector<16x16xf32>
    %c3_188 = arith.constant 3 : index
    %c3_189 = arith.constant 3 : index
    %244 = vector.load %arg13[%c3_188, %c3_189] : memref<22x22xf32, #tpu.memory_space<vmem>>, vector<16x16xf32>
    tpu.vector_store %arg13[%c3_188, %c3_189], %243 {strides = array<i32>} : memref<22x22xf32, #tpu.memory_space<vmem>>, vector<16x16xf32>,
    %cst_190 = arith.constant dense<0xFF800000> : vector<256xf32>
    %245 = vector.multi_reduction <maximumf>, %236, %cst_190 [1] : vector<256x32xf32> to vector<256xf32>
    %246 = vector.shape_cast %245 : vector<256xf32> to vector<256x1xf32>
    %247 = vector.broadcast %246 : vector<256x1xf32> to vector<256x16xf32>
    %248 = arith.mulf %247, %19 : vector<256x16xf32>
    %cst_191 = arith.constant dense<0.000000e+00> : vector<16x16xf32>
    %249 = tpu.matmul %33, %248, %cst_191 {dimension_numbers = #tpu.dot_dimension_numbers<[1], [0], [0], [1], [0, 0, 1, 1], [], []>} : vector<16x256xf32>, vector<256x16xf32>, vector<16x16xf32> -> vector<16x16xf32>
    %c3_192 = arith.constant 3 : index
    %c3_193 = arith.constant 3 : index
    %250 = vector.load %arg14[%c3_192, %c3_193] : memref<22x22xf32, #tpu.memory_space<vmem>>, vector<16x16xf32>
    tpu.vector_store %arg14[%c3_192, %c3_193], %249 {strides = array<i32>} : memref<22x22xf32, #tpu.memory_space<vmem>>, vector<16x16xf32>,
    %c0_194 = arith.constant 0 : index
    %c0_195 = arith.constant 0 : index
    %251 = vector.load %arg13[%c0_194, %c0_195] : memref<22x22xf32, #tpu.memory_space<vmem>>, vector<22x22xf32>
    %c0_196 = arith.constant 0 : index
    %c0_197 = arith.constant 0 : index
    %252 = vector.load %arg14[%c0_196, %c0_197] : memref<22x22xf32, #tpu.memory_space<vmem>>, vector<22x22xf32>
    %cst_198 = arith.constant 0.000000e+00 : f32
    %253 = vector.broadcast %cst_198 : f32 to vector<16x16xf32>
    %254 = vector.extract_strided_slice %251 {offsets = [0, 0], sizes = [16, 16], strides = [1, 1]} : vector<22x22xf32> to vector<16x16xf32>
    %c0_199 = arith.constant 0 : index
    %255 = memref.load %arg10[%c0_199] : memref<98xf32, #tpu.memory_space<smem>>
    %256 = vector.broadcast %255 : f32 to vector<16x16xf32>
    %257 = arith.mulf %254, %256 : vector<16x16xf32>
    %258 = vector.extract_strided_slice %252 {offsets = [0, 0], sizes = [16, 16], strides = [1, 1]} : vector<22x22xf32> to vector<16x16xf32>
    %c1_200 = arith.constant 1 : index
    %259 = memref.load %arg10[%c1_200] : memref<98xf32, #tpu.memory_space<smem>>
    %260 = vector.broadcast %259 : f32 to vector<16x16xf32>
    %261 = arith.mulf %258, %260 : vector<16x16xf32>
    %262 = arith.addf %257, %261 : vector<16x16xf32>
    %263 = arith.addf %253, %262 : vector<16x16xf32>
    %264 = vector.extract_strided_slice %251 {offsets = [0, 1], sizes = [16, 16], strides = [1, 1]} : vector<22x22xf32> to vector<16x16xf32>
    %c2_201 = arith.constant 2 : index
    %265 = memref.load %arg10[%c2_201] : memref<98xf32, #tpu.memory_space<smem>>
    %266 = vector.broadcast %265 : f32 to vector<16x16xf32>
    %267 = arith.mulf %264, %266 : vector<16x16xf32>
    %268 = vector.extract_strided_slice %252 {offsets = [0, 1], sizes = [16, 16], strides = [1, 1]} : vector<22x22xf32> to vector<16x16xf32>
    %c3_202 = arith.constant 3 : index
    %269 = memref.load %arg10[%c3_202] : memref<98xf32, #tpu.memory_space<smem>>
    %270 = vector.broadcast %269 : f32 to vector<16x16xf32>
    %271 = arith.mulf %268, %270 : vector<16x16xf32>
    %272 = arith.addf %267, %271 : vector<16x16xf32>
    %273 = arith.addf %263, %272 : vector<16x16xf32>
    %274 = vector.extract_strided_slice %251 {offsets = [0, 2], sizes = [16, 16], strides = [1, 1]} : vector<22x22xf32> to vector<16x16xf32>
    %c4_203 = arith.constant 4 : index
    %275 = memref.load %arg10[%c4_203] : memref<98xf32, #tpu.memory_space<smem>>
    %276 = vector.broadcast %275 : f32 to vector<16x16xf32>
    %277 = arith.mulf %274, %276 : vector<16x16xf32>
    %278 = vector.extract_strided_slice %252 {offsets = [0, 2], sizes = [16, 16], strides = [1, 1]} : vector<22x22xf32> to vector<16x16xf32>
    %c5_204 = arith.constant 5 : index
    %279 = memref.load %arg10[%c5_204] : memref<98xf32, #tpu.memory_space<smem>>
    %280 = vector.broadcast %279 : f32 to vector<16x16xf32>
    %281 = arith.mulf %278, %280 : vector<16x16xf32>
    %282 = arith.addf %277, %281 : vector<16x16xf32>
    %283 = arith.addf %273, %282 : vector<16x16xf32>
    %284 = vector.extract_strided_slice %251 {offsets = [0, 3], sizes = [16, 16], strides = [1, 1]} : vector<22x22xf32> to vector<16x16xf32>
    %c6_205 = arith.constant 6 : index
    %285 = memref.load %arg10[%c6_205] : memref<98xf32, #tpu.memory_space<smem>>
    %286 = vector.broadcast %285 : f32 to vector<16x16xf32>
    %287 = arith.mulf %284, %286 : vector<16x16xf32>
    %288 = vector.extract_strided_slice %252 {offsets = [0, 3], sizes = [16, 16], strides = [1, 1]} : vector<22x22xf32> to vector<16x16xf32>
    %c7_206 = arith.constant 7 : index
    %289 = memref.load %arg10[%c7_206] : memref<98xf32, #tpu.memory_space<smem>>
    %290 = vector.broadcast %289 : f32 to vector<16x16xf32>
    %291 = arith.mulf %288, %290 : vector<16x16xf32>
    %292 = arith.addf %287, %291 : vector<16x16xf32>
    %293 = arith.addf %283, %292 : vector<16x16xf32>
    %294 = vector.extract_strided_slice %251 {offsets = [0, 4], sizes = [16, 16], strides = [1, 1]} : vector<22x22xf32> to vector<16x16xf32>
    %c8_207 = arith.constant 8 : index
    %295 = memref.load %arg10[%c8_207] : memref<98xf32, #tpu.memory_space<smem>>
    %296 = vector.broadcast %295 : f32 to vector<16x16xf32>
    %297 = arith.mulf %294, %296 : vector<16x16xf32>
    %298 = vector.extract_strided_slice %252 {offsets = [0, 4], sizes = [16, 16], strides = [1, 1]} : vector<22x22xf32> to vector<16x16xf32>
    %c9 = arith.constant 9 : index
    %299 = memref.load %arg10[%c9] : memref<98xf32, #tpu.memory_space<smem>>
    %300 = vector.broadcast %299 : f32 to vector<16x16xf32>
    %301 = arith.mulf %298, %300 : vector<16x16xf32>
    %302 = arith.addf %297, %301 : vector<16x16xf32>
    %303 = arith.addf %293, %302 : vector<16x16xf32>
    %304 = vector.extract_strided_slice %251 {offsets = [0, 5], sizes = [16, 16], strides = [1, 1]} : vector<22x22xf32> to vector<16x16xf32>
    %c10 = arith.constant 10 : index
    %305 = memref.load %arg10[%c10] : memref<98xf32, #tpu.memory_space<smem>>
    %306 = vector.broadcast %305 : f32 to vector<16x16xf32>
    %307 = arith.mulf %304, %306 : vector<16x16xf32>
    %308 = vector.extract_strided_slice %252 {offsets = [0, 5], sizes = [16, 16], strides = [1, 1]} : vector<22x22xf32> to vector<16x16xf32>
    %c11 = arith.constant 11 : index
    %309 = memref.load %arg10[%c11] : memref<98xf32, #tpu.memory_space<smem>>
    %310 = vector.broadcast %309 : f32 to vector<16x16xf32>
    %311 = arith.mulf %308, %310 : vector<16x16xf32>
    %312 = arith.addf %307, %311 : vector<16x16xf32>
    %313 = arith.addf %303, %312 : vector<16x16xf32>
    %314 = vector.extract_strided_slice %251 {offsets = [0, 6], sizes = [16, 16], strides = [1, 1]} : vector<22x22xf32> to vector<16x16xf32>
    %c12 = arith.constant 12 : index
    %315 = memref.load %arg10[%c12] : memref<98xf32, #tpu.memory_space<smem>>
    %316 = vector.broadcast %315 : f32 to vector<16x16xf32>
    %317 = arith.mulf %314, %316 : vector<16x16xf32>
    %318 = vector.extract_strided_slice %252 {offsets = [0, 6], sizes = [16, 16], strides = [1, 1]} : vector<22x22xf32> to vector<16x16xf32>
    %c13 = arith.constant 13 : index
    %319 = memref.load %arg10[%c13] : memref<98xf32, #tpu.memory_space<smem>>
    %320 = vector.broadcast %319 : f32 to vector<16x16xf32>
    %321 = arith.mulf %318, %320 : vector<16x16xf32>
    %322 = arith.addf %317, %321 : vector<16x16xf32>
    %323 = arith.addf %313, %322 : vector<16x16xf32>
    %324 = vector.extract_strided_slice %251 {offsets = [1, 0], sizes = [16, 16], strides = [1, 1]} : vector<22x22xf32> to vector<16x16xf32>
    %c14 = arith.constant 14 : index
    %325 = memref.load %arg10[%c14] : memref<98xf32, #tpu.memory_space<smem>>
    %326 = vector.broadcast %325 : f32 to vector<16x16xf32>
    %327 = arith.mulf %324, %326 : vector<16x16xf32>
    %328 = vector.extract_strided_slice %252 {offsets = [1, 0], sizes = [16, 16], strides = [1, 1]} : vector<22x22xf32> to vector<16x16xf32>
    %c15 = arith.constant 15 : index
    %329 = memref.load %arg10[%c15] : memref<98xf32, #tpu.memory_space<smem>>
    %330 = vector.broadcast %329 : f32 to vector<16x16xf32>
    %331 = arith.mulf %328, %330 : vector<16x16xf32>
    %332 = arith.addf %327, %331 : vector<16x16xf32>
    %333 = arith.addf %323, %332 : vector<16x16xf32>
    %334 = vector.extract_strided_slice %251 {offsets = [1, 1], sizes = [16, 16], strides = [1, 1]} : vector<22x22xf32> to vector<16x16xf32>
    %c16 = arith.constant 16 : index
    %335 = memref.load %arg10[%c16] : memref<98xf32, #tpu.memory_space<smem>>
    %336 = vector.broadcast %335 : f32 to vector<16x16xf32>
    %337 = arith.mulf %334, %336 : vector<16x16xf32>
    %338 = vector.extract_strided_slice %252 {offsets = [1, 1], sizes = [16, 16], strides = [1, 1]} : vector<22x22xf32> to vector<16x16xf32>
    %c17_208 = arith.constant 17 : index
    %339 = memref.load %arg10[%c17_208] : memref<98xf32, #tpu.memory_space<smem>>
    %340 = vector.broadcast %339 : f32 to vector<16x16xf32>
    %341 = arith.mulf %338, %340 : vector<16x16xf32>
    %342 = arith.addf %337, %341 : vector<16x16xf32>
    %343 = arith.addf %333, %342 : vector<16x16xf32>
    %344 = vector.extract_strided_slice %251 {offsets = [1, 2], sizes = [16, 16], strides = [1, 1]} : vector<22x22xf32> to vector<16x16xf32>
    %c18 = arith.constant 18 : index
    %345 = memref.load %arg10[%c18] : memref<98xf32, #tpu.memory_space<smem>>
    %346 = vector.broadcast %345 : f32 to vector<16x16xf32>
    %347 = arith.mulf %344, %346 : vector<16x16xf32>
    %348 = vector.extract_strided_slice %252 {offsets = [1, 2], sizes = [16, 16], strides = [1, 1]} : vector<22x22xf32> to vector<16x16xf32>
    %c19 = arith.constant 19 : index
    %349 = memref.load %arg10[%c19] : memref<98xf32, #tpu.memory_space<smem>>
    %350 = vector.broadcast %349 : f32 to vector<16x16xf32>
    %351 = arith.mulf %348, %350 : vector<16x16xf32>
    %352 = arith.addf %347, %351 : vector<16x16xf32>
    %353 = arith.addf %343, %352 : vector<16x16xf32>
    %354 = vector.extract_strided_slice %251 {offsets = [1, 3], sizes = [16, 16], strides = [1, 1]} : vector<22x22xf32> to vector<16x16xf32>
    %c20 = arith.constant 20 : index
    %355 = memref.load %arg10[%c20] : memref<98xf32, #tpu.memory_space<smem>>
    %356 = vector.broadcast %355 : f32 to vector<16x16xf32>
    %357 = arith.mulf %354, %356 : vector<16x16xf32>
    %358 = vector.extract_strided_slice %252 {offsets = [1, 3], sizes = [16, 16], strides = [1, 1]} : vector<22x22xf32> to vector<16x16xf32>
    %c21 = arith.constant 21 : index
    %359 = memref.load %arg10[%c21] : memref<98xf32, #tpu.memory_space<smem>>
    %360 = vector.broadcast %359 : f32 to vector<16x16xf32>
    %361 = arith.mulf %358, %360 : vector<16x16xf32>
    %362 = arith.addf %357, %361 : vector<16x16xf32>
    %363 = arith.addf %353, %362 : vector<16x16xf32>
    %364 = vector.extract_strided_slice %251 {offsets = [1, 4], sizes = [16, 16], strides = [1, 1]} : vector<22x22xf32> to vector<16x16xf32>
    %c22 = arith.constant 22 : index
    %365 = memref.load %arg10[%c22] : memref<98xf32, #tpu.memory_space<smem>>
    %366 = vector.broadcast %365 : f32 to vector<16x16xf32>
    %367 = arith.mulf %364, %366 : vector<16x16xf32>
    %368 = vector.extract_strided_slice %252 {offsets = [1, 4], sizes = [16, 16], strides = [1, 1]} : vector<22x22xf32> to vector<16x16xf32>
    %c23 = arith.constant 23 : index
    %369 = memref.load %arg10[%c23] : memref<98xf32, #tpu.memory_space<smem>>
    %370 = vector.broadcast %369 : f32 to vector<16x16xf32>
    %371 = arith.mulf %368, %370 : vector<16x16xf32>
    %372 = arith.addf %367, %371 : vector<16x16xf32>
    %373 = arith.addf %363, %372 : vector<16x16xf32>
    %374 = vector.extract_strided_slice %251 {offsets = [1, 5], sizes = [16, 16], strides = [1, 1]} : vector<22x22xf32> to vector<16x16xf32>
    %c24 = arith.constant 24 : index
    %375 = memref.load %arg10[%c24] : memref<98xf32, #tpu.memory_space<smem>>
    %376 = vector.broadcast %375 : f32 to vector<16x16xf32>
    %377 = arith.mulf %374, %376 : vector<16x16xf32>
    %378 = vector.extract_strided_slice %252 {offsets = [1, 5], sizes = [16, 16], strides = [1, 1]} : vector<22x22xf32> to vector<16x16xf32>
    %c25 = arith.constant 25 : index
    %379 = memref.load %arg10[%c25] : memref<98xf32, #tpu.memory_space<smem>>
    %380 = vector.broadcast %379 : f32 to vector<16x16xf32>
    %381 = arith.mulf %378, %380 : vector<16x16xf32>
    %382 = arith.addf %377, %381 : vector<16x16xf32>
    %383 = arith.addf %373, %382 : vector<16x16xf32>
    %384 = vector.extract_strided_slice %251 {offsets = [1, 6], sizes = [16, 16], strides = [1, 1]} : vector<22x22xf32> to vector<16x16xf32>
    %c26 = arith.constant 26 : index
    %385 = memref.load %arg10[%c26] : memref<98xf32, #tpu.memory_space<smem>>
    %386 = vector.broadcast %385 : f32 to vector<16x16xf32>
    %387 = arith.mulf %384, %386 : vector<16x16xf32>
    %388 = vector.extract_strided_slice %252 {offsets = [1, 6], sizes = [16, 16], strides = [1, 1]} : vector<22x22xf32> to vector<16x16xf32>
    %c27 = arith.constant 27 : index
    %389 = memref.load %arg10[%c27] : memref<98xf32, #tpu.memory_space<smem>>
    %390 = vector.broadcast %389 : f32 to vector<16x16xf32>
    %391 = arith.mulf %388, %390 : vector<16x16xf32>
    %392 = arith.addf %387, %391 : vector<16x16xf32>
    %393 = arith.addf %383, %392 : vector<16x16xf32>
    %394 = vector.extract_strided_slice %251 {offsets = [2, 0], sizes = [16, 16], strides = [1, 1]} : vector<22x22xf32> to vector<16x16xf32>
    %c28 = arith.constant 28 : index
    %395 = memref.load %arg10[%c28] : memref<98xf32, #tpu.memory_space<smem>>
    %396 = vector.broadcast %395 : f32 to vector<16x16xf32>
    %397 = arith.mulf %394, %396 : vector<16x16xf32>
    %398 = vector.extract_strided_slice %252 {offsets = [2, 0], sizes = [16, 16], strides = [1, 1]} : vector<22x22xf32> to vector<16x16xf32>
    %c29 = arith.constant 29 : index
    %399 = memref.load %arg10[%c29] : memref<98xf32, #tpu.memory_space<smem>>
    %400 = vector.broadcast %399 : f32 to vector<16x16xf32>
    %401 = arith.mulf %398, %400 : vector<16x16xf32>
    %402 = arith.addf %397, %401 : vector<16x16xf32>
    %403 = arith.addf %393, %402 : vector<16x16xf32>
    %404 = vector.extract_strided_slice %251 {offsets = [2, 1], sizes = [16, 16], strides = [1, 1]} : vector<22x22xf32> to vector<16x16xf32>
    %c30 = arith.constant 30 : index
    %405 = memref.load %arg10[%c30] : memref<98xf32, #tpu.memory_space<smem>>
    %406 = vector.broadcast %405 : f32 to vector<16x16xf32>
    %407 = arith.mulf %404, %406 : vector<16x16xf32>
    %408 = vector.extract_strided_slice %252 {offsets = [2, 1], sizes = [16, 16], strides = [1, 1]} : vector<22x22xf32> to vector<16x16xf32>
    %c31 = arith.constant 31 : index
    %409 = memref.load %arg10[%c31] : memref<98xf32, #tpu.memory_space<smem>>
    %410 = vector.broadcast %409 : f32 to vector<16x16xf32>
    %411 = arith.mulf %408, %410 : vector<16x16xf32>
    %412 = arith.addf %407, %411 : vector<16x16xf32>
    %413 = arith.addf %403, %412 : vector<16x16xf32>
    %414 = vector.extract_strided_slice %251 {offsets = [2, 2], sizes = [16, 16], strides = [1, 1]} : vector<22x22xf32> to vector<16x16xf32>
    %c32 = arith.constant 32 : index
    %415 = memref.load %arg10[%c32] : memref<98xf32, #tpu.memory_space<smem>>
    %416 = vector.broadcast %415 : f32 to vector<16x16xf32>
    %417 = arith.mulf %414, %416 : vector<16x16xf32>
    %418 = vector.extract_strided_slice %252 {offsets = [2, 2], sizes = [16, 16], strides = [1, 1]} : vector<22x22xf32> to vector<16x16xf32>
    %c33 = arith.constant 33 : index
    %419 = memref.load %arg10[%c33] : memref<98xf32, #tpu.memory_space<smem>>
    %420 = vector.broadcast %419 : f32 to vector<16x16xf32>
    %421 = arith.mulf %418, %420 : vector<16x16xf32>
    %422 = arith.addf %417, %421 : vector<16x16xf32>
    %423 = arith.addf %413, %422 : vector<16x16xf32>
    %424 = vector.extract_strided_slice %251 {offsets = [2, 3], sizes = [16, 16], strides = [1, 1]} : vector<22x22xf32> to vector<16x16xf32>
    %c34 = arith.constant 34 : index
    %425 = memref.load %arg10[%c34] : memref<98xf32, #tpu.memory_space<smem>>
    %426 = vector.broadcast %425 : f32 to vector<16x16xf32>
    %427 = arith.mulf %424, %426 : vector<16x16xf32>
    %428 = vector.extract_strided_slice %252 {offsets = [2, 3], sizes = [16, 16], strides = [1, 1]} : vector<22x22xf32> to vector<16x16xf32>
    %c35 = arith.constant 35 : index
    %429 = memref.load %arg10[%c35] : memref<98xf32, #tpu.memory_space<smem>>
    %430 = vector.broadcast %429 : f32 to vector<16x16xf32>
    %431 = arith.mulf %428, %430 : vector<16x16xf32>
    %432 = arith.addf %427, %431 : vector<16x16xf32>
    %433 = arith.addf %423, %432 : vector<16x16xf32>
    %434 = vector.extract_strided_slice %251 {offsets = [2, 4], sizes = [16, 16], strides = [1, 1]} : vector<22x22xf32> to vector<16x16xf32>
    %c36 = arith.constant 36 : index
    %435 = memref.load %arg10[%c36] : memref<98xf32, #tpu.memory_space<smem>>
    %436 = vector.broadcast %435 : f32 to vector<16x16xf32>
    %437 = arith.mulf %434, %436 : vector<16x16xf32>
    %438 = vector.extract_strided_slice %252 {offsets = [2, 4], sizes = [16, 16], strides = [1, 1]} : vector<22x22xf32> to vector<16x16xf32>
    %c37 = arith.constant 37 : index
    %439 = memref.load %arg10[%c37] : memref<98xf32, #tpu.memory_space<smem>>
    %440 = vector.broadcast %439 : f32 to vector<16x16xf32>
    %441 = arith.mulf %438, %440 : vector<16x16xf32>
    %442 = arith.addf %437, %441 : vector<16x16xf32>
    %443 = arith.addf %433, %442 : vector<16x16xf32>
    %444 = vector.extract_strided_slice %251 {offsets = [2, 5], sizes = [16, 16], strides = [1, 1]} : vector<22x22xf32> to vector<16x16xf32>
    %c38 = arith.constant 38 : index
    %445 = memref.load %arg10[%c38] : memref<98xf32, #tpu.memory_space<smem>>
    %446 = vector.broadcast %445 : f32 to vector<16x16xf32>
    %447 = arith.mulf %444, %446 : vector<16x16xf32>
    %448 = vector.extract_strided_slice %252 {offsets = [2, 5], sizes = [16, 16], strides = [1, 1]} : vector<22x22xf32> to vector<16x16xf32>
    %c39 = arith.constant 39 : index
    %449 = memref.load %arg10[%c39] : memref<98xf32, #tpu.memory_space<smem>>
    %450 = vector.broadcast %449 : f32 to vector<16x16xf32>
    %451 = arith.mulf %448, %450 : vector<16x16xf32>
    %452 = arith.addf %447, %451 : vector<16x16xf32>
    %453 = arith.addf %443, %452 : vector<16x16xf32>
    %454 = vector.extract_strided_slice %251 {offsets = [2, 6], sizes = [16, 16], strides = [1, 1]} : vector<22x22xf32> to vector<16x16xf32>
    %c40 = arith.constant 40 : index
    %455 = memref.load %arg10[%c40] : memref<98xf32, #tpu.memory_space<smem>>
    %456 = vector.broadcast %455 : f32 to vector<16x16xf32>
    %457 = arith.mulf %454, %456 : vector<16x16xf32>
    %458 = vector.extract_strided_slice %252 {offsets = [2, 6], sizes = [16, 16], strides = [1, 1]} : vector<22x22xf32> to vector<16x16xf32>
    %c41 = arith.constant 41 : index
    %459 = memref.load %arg10[%c41] : memref<98xf32, #tpu.memory_space<smem>>
    %460 = vector.broadcast %459 : f32 to vector<16x16xf32>
    %461 = arith.mulf %458, %460 : vector<16x16xf32>
    %462 = arith.addf %457, %461 : vector<16x16xf32>
    %463 = arith.addf %453, %462 : vector<16x16xf32>
    %464 = vector.extract_strided_slice %251 {offsets = [3, 0], sizes = [16, 16], strides = [1, 1]} : vector<22x22xf32> to vector<16x16xf32>
    %c42 = arith.constant 42 : index
    %465 = memref.load %arg10[%c42] : memref<98xf32, #tpu.memory_space<smem>>
    %466 = vector.broadcast %465 : f32 to vector<16x16xf32>
    %467 = arith.mulf %464, %466 : vector<16x16xf32>
    %468 = vector.extract_strided_slice %252 {offsets = [3, 0], sizes = [16, 16], strides = [1, 1]} : vector<22x22xf32> to vector<16x16xf32>
    %c43 = arith.constant 43 : index
    %469 = memref.load %arg10[%c43] : memref<98xf32, #tpu.memory_space<smem>>
    %470 = vector.broadcast %469 : f32 to vector<16x16xf32>
    %471 = arith.mulf %468, %470 : vector<16x16xf32>
    %472 = arith.addf %467, %471 : vector<16x16xf32>
    %473 = arith.addf %463, %472 : vector<16x16xf32>
    %474 = vector.extract_strided_slice %251 {offsets = [3, 1], sizes = [16, 16], strides = [1, 1]} : vector<22x22xf32> to vector<16x16xf32>
    %c44 = arith.constant 44 : index
    %475 = memref.load %arg10[%c44] : memref<98xf32, #tpu.memory_space<smem>>
    %476 = vector.broadcast %475 : f32 to vector<16x16xf32>
    %477 = arith.mulf %474, %476 : vector<16x16xf32>
    %478 = vector.extract_strided_slice %252 {offsets = [3, 1], sizes = [16, 16], strides = [1, 1]} : vector<22x22xf32> to vector<16x16xf32>
    %c45 = arith.constant 45 : index
    %479 = memref.load %arg10[%c45] : memref<98xf32, #tpu.memory_space<smem>>
    %480 = vector.broadcast %479 : f32 to vector<16x16xf32>
    %481 = arith.mulf %478, %480 : vector<16x16xf32>
    %482 = arith.addf %477, %481 : vector<16x16xf32>
    %483 = arith.addf %473, %482 : vector<16x16xf32>
    %484 = vector.extract_strided_slice %251 {offsets = [3, 2], sizes = [16, 16], strides = [1, 1]} : vector<22x22xf32> to vector<16x16xf32>
    %c46 = arith.constant 46 : index
    %485 = memref.load %arg10[%c46] : memref<98xf32, #tpu.memory_space<smem>>
    %486 = vector.broadcast %485 : f32 to vector<16x16xf32>
    %487 = arith.mulf %484, %486 : vector<16x16xf32>
    %488 = vector.extract_strided_slice %252 {offsets = [3, 2], sizes = [16, 16], strides = [1, 1]} : vector<22x22xf32> to vector<16x16xf32>
    %c47 = arith.constant 47 : index
    %489 = memref.load %arg10[%c47] : memref<98xf32, #tpu.memory_space<smem>>
    %490 = vector.broadcast %489 : f32 to vector<16x16xf32>
    %491 = arith.mulf %488, %490 : vector<16x16xf32>
    %492 = arith.addf %487, %491 : vector<16x16xf32>
    %493 = arith.addf %483, %492 : vector<16x16xf32>
    %494 = vector.extract_strided_slice %251 {offsets = [3, 3], sizes = [16, 16], strides = [1, 1]} : vector<22x22xf32> to vector<16x16xf32>
    %c48 = arith.constant 48 : index
    %495 = memref.load %arg10[%c48] : memref<98xf32, #tpu.memory_space<smem>>
    %496 = vector.broadcast %495 : f32 to vector<16x16xf32>
    %497 = arith.mulf %494, %496 : vector<16x16xf32>
    %498 = vector.extract_strided_slice %252 {offsets = [3, 3], sizes = [16, 16], strides = [1, 1]} : vector<22x22xf32> to vector<16x16xf32>
    %c49 = arith.constant 49 : index
    %499 = memref.load %arg10[%c49] : memref<98xf32, #tpu.memory_space<smem>>
    %500 = vector.broadcast %499 : f32 to vector<16x16xf32>
    %501 = arith.mulf %498, %500 : vector<16x16xf32>
    %502 = arith.addf %497, %501 : vector<16x16xf32>
    %503 = arith.addf %493, %502 : vector<16x16xf32>
    %504 = vector.extract_strided_slice %251 {offsets = [3, 4], sizes = [16, 16], strides = [1, 1]} : vector<22x22xf32> to vector<16x16xf32>
    %c50 = arith.constant 50 : index
    %505 = memref.load %arg10[%c50] : memref<98xf32, #tpu.memory_space<smem>>
    %506 = vector.broadcast %505 : f32 to vector<16x16xf32>
    %507 = arith.mulf %504, %506 : vector<16x16xf32>
    %508 = vector.extract_strided_slice %252 {offsets = [3, 4], sizes = [16, 16], strides = [1, 1]} : vector<22x22xf32> to vector<16x16xf32>
    %c51 = arith.constant 51 : index
    %509 = memref.load %arg10[%c51] : memref<98xf32, #tpu.memory_space<smem>>
    %510 = vector.broadcast %509 : f32 to vector<16x16xf32>
    %511 = arith.mulf %508, %510 : vector<16x16xf32>
    %512 = arith.addf %507, %511 : vector<16x16xf32>
    %513 = arith.addf %503, %512 : vector<16x16xf32>
    %514 = vector.extract_strided_slice %251 {offsets = [3, 5], sizes = [16, 16], strides = [1, 1]} : vector<22x22xf32> to vector<16x16xf32>
    %c52 = arith.constant 52 : index
    %515 = memref.load %arg10[%c52] : memref<98xf32, #tpu.memory_space<smem>>
    %516 = vector.broadcast %515 : f32 to vector<16x16xf32>
    %517 = arith.mulf %514, %516 : vector<16x16xf32>
    %518 = vector.extract_strided_slice %252 {offsets = [3, 5], sizes = [16, 16], strides = [1, 1]} : vector<22x22xf32> to vector<16x16xf32>
    %c53 = arith.constant 53 : index
    %519 = memref.load %arg10[%c53] : memref<98xf32, #tpu.memory_space<smem>>
    %520 = vector.broadcast %519 : f32 to vector<16x16xf32>
    %521 = arith.mulf %518, %520 : vector<16x16xf32>
    %522 = arith.addf %517, %521 : vector<16x16xf32>
    %523 = arith.addf %513, %522 : vector<16x16xf32>
    %524 = vector.extract_strided_slice %251 {offsets = [3, 6], sizes = [16, 16], strides = [1, 1]} : vector<22x22xf32> to vector<16x16xf32>
    %c54 = arith.constant 54 : index
    %525 = memref.load %arg10[%c54] : memref<98xf32, #tpu.memory_space<smem>>
    %526 = vector.broadcast %525 : f32 to vector<16x16xf32>
    %527 = arith.mulf %524, %526 : vector<16x16xf32>
    %528 = vector.extract_strided_slice %252 {offsets = [3, 6], sizes = [16, 16], strides = [1, 1]} : vector<22x22xf32> to vector<16x16xf32>
    %c55 = arith.constant 55 : index
    %529 = memref.load %arg10[%c55] : memref<98xf32, #tpu.memory_space<smem>>
    %530 = vector.broadcast %529 : f32 to vector<16x16xf32>
    %531 = arith.mulf %528, %530 : vector<16x16xf32>
    %532 = arith.addf %527, %531 : vector<16x16xf32>
    %533 = arith.addf %523, %532 : vector<16x16xf32>
    %534 = vector.extract_strided_slice %251 {offsets = [4, 0], sizes = [16, 16], strides = [1, 1]} : vector<22x22xf32> to vector<16x16xf32>
    %c56 = arith.constant 56 : index
    %535 = memref.load %arg10[%c56] : memref<98xf32, #tpu.memory_space<smem>>
    %536 = vector.broadcast %535 : f32 to vector<16x16xf32>
    %537 = arith.mulf %534, %536 : vector<16x16xf32>
    %538 = vector.extract_strided_slice %252 {offsets = [4, 0], sizes = [16, 16], strides = [1, 1]} : vector<22x22xf32> to vector<16x16xf32>
    %c57 = arith.constant 57 : index
    %539 = memref.load %arg10[%c57] : memref<98xf32, #tpu.memory_space<smem>>
    %540 = vector.broadcast %539 : f32 to vector<16x16xf32>
    %541 = arith.mulf %538, %540 : vector<16x16xf32>
    %542 = arith.addf %537, %541 : vector<16x16xf32>
    %543 = arith.addf %533, %542 : vector<16x16xf32>
    %544 = vector.extract_strided_slice %251 {offsets = [4, 1], sizes = [16, 16], strides = [1, 1]} : vector<22x22xf32> to vector<16x16xf32>
    %c58 = arith.constant 58 : index
    %545 = memref.load %arg10[%c58] : memref<98xf32, #tpu.memory_space<smem>>
    %546 = vector.broadcast %545 : f32 to vector<16x16xf32>
    %547 = arith.mulf %544, %546 : vector<16x16xf32>
    %548 = vector.extract_strided_slice %252 {offsets = [4, 1], sizes = [16, 16], strides = [1, 1]} : vector<22x22xf32> to vector<16x16xf32>
    %c59 = arith.constant 59 : index
    %549 = memref.load %arg10[%c59] : memref<98xf32, #tpu.memory_space<smem>>
    %550 = vector.broadcast %549 : f32 to vector<16x16xf32>
    %551 = arith.mulf %548, %550 : vector<16x16xf32>
    %552 = arith.addf %547, %551 : vector<16x16xf32>
    %553 = arith.addf %543, %552 : vector<16x16xf32>
    %554 = vector.extract_strided_slice %251 {offsets = [4, 2], sizes = [16, 16], strides = [1, 1]} : vector<22x22xf32> to vector<16x16xf32>
    %c60 = arith.constant 60 : index
    %555 = memref.load %arg10[%c60] : memref<98xf32, #tpu.memory_space<smem>>
    %556 = vector.broadcast %555 : f32 to vector<16x16xf32>
    %557 = arith.mulf %554, %556 : vector<16x16xf32>
    %558 = vector.extract_strided_slice %252 {offsets = [4, 2], sizes = [16, 16], strides = [1, 1]} : vector<22x22xf32> to vector<16x16xf32>
    %c61 = arith.constant 61 : index
    %559 = memref.load %arg10[%c61] : memref<98xf32, #tpu.memory_space<smem>>
    %560 = vector.broadcast %559 : f32 to vector<16x16xf32>
    %561 = arith.mulf %558, %560 : vector<16x16xf32>
    %562 = arith.addf %557, %561 : vector<16x16xf32>
    %563 = arith.addf %553, %562 : vector<16x16xf32>
    %564 = vector.extract_strided_slice %251 {offsets = [4, 3], sizes = [16, 16], strides = [1, 1]} : vector<22x22xf32> to vector<16x16xf32>
    %c62 = arith.constant 62 : index
    %565 = memref.load %arg10[%c62] : memref<98xf32, #tpu.memory_space<smem>>
    %566 = vector.broadcast %565 : f32 to vector<16x16xf32>
    %567 = arith.mulf %564, %566 : vector<16x16xf32>
    %568 = vector.extract_strided_slice %252 {offsets = [4, 3], sizes = [16, 16], strides = [1, 1]} : vector<22x22xf32> to vector<16x16xf32>
    %c63 = arith.constant 63 : index
    %569 = memref.load %arg10[%c63] : memref<98xf32, #tpu.memory_space<smem>>
    %570 = vector.broadcast %569 : f32 to vector<16x16xf32>
    %571 = arith.mulf %568, %570 : vector<16x16xf32>
    %572 = arith.addf %567, %571 : vector<16x16xf32>
    %573 = arith.addf %563, %572 : vector<16x16xf32>
    %574 = vector.extract_strided_slice %251 {offsets = [4, 4], sizes = [16, 16], strides = [1, 1]} : vector<22x22xf32> to vector<16x16xf32>
    %c64 = arith.constant 64 : index
    %575 = memref.load %arg10[%c64] : memref<98xf32, #tpu.memory_space<smem>>
    %576 = vector.broadcast %575 : f32 to vector<16x16xf32>
    %577 = arith.mulf %574, %576 : vector<16x16xf32>
    %578 = vector.extract_strided_slice %252 {offsets = [4, 4], sizes = [16, 16], strides = [1, 1]} : vector<22x22xf32> to vector<16x16xf32>
    %c65 = arith.constant 65 : index
    %579 = memref.load %arg10[%c65] : memref<98xf32, #tpu.memory_space<smem>>
    %580 = vector.broadcast %579 : f32 to vector<16x16xf32>
    %581 = arith.mulf %578, %580 : vector<16x16xf32>
    %582 = arith.addf %577, %581 : vector<16x16xf32>
    %583 = arith.addf %573, %582 : vector<16x16xf32>
    %584 = vector.extract_strided_slice %251 {offsets = [4, 5], sizes = [16, 16], strides = [1, 1]} : vector<22x22xf32> to vector<16x16xf32>
    %c66 = arith.constant 66 : index
    %585 = memref.load %arg10[%c66] : memref<98xf32, #tpu.memory_space<smem>>
    %586 = vector.broadcast %585 : f32 to vector<16x16xf32>
    %587 = arith.mulf %584, %586 : vector<16x16xf32>
    %588 = vector.extract_strided_slice %252 {offsets = [4, 5], sizes = [16, 16], strides = [1, 1]} : vector<22x22xf32> to vector<16x16xf32>
    %c67 = arith.constant 67 : index
    %589 = memref.load %arg10[%c67] : memref<98xf32, #tpu.memory_space<smem>>
    %590 = vector.broadcast %589 : f32 to vector<16x16xf32>
    %591 = arith.mulf %588, %590 : vector<16x16xf32>
    %592 = arith.addf %587, %591 : vector<16x16xf32>
    %593 = arith.addf %583, %592 : vector<16x16xf32>
    %594 = vector.extract_strided_slice %251 {offsets = [4, 6], sizes = [16, 16], strides = [1, 1]} : vector<22x22xf32> to vector<16x16xf32>
    %c68 = arith.constant 68 : index
    %595 = memref.load %arg10[%c68] : memref<98xf32, #tpu.memory_space<smem>>
    %596 = vector.broadcast %595 : f32 to vector<16x16xf32>
    %597 = arith.mulf %594, %596 : vector<16x16xf32>
    %598 = vector.extract_strided_slice %252 {offsets = [4, 6], sizes = [16, 16], strides = [1, 1]} : vector<22x22xf32> to vector<16x16xf32>
    %c69 = arith.constant 69 : index
    %599 = memref.load %arg10[%c69] : memref<98xf32, #tpu.memory_space<smem>>
    %600 = vector.broadcast %599 : f32 to vector<16x16xf32>
    %601 = arith.mulf %598, %600 : vector<16x16xf32>
    %602 = arith.addf %597, %601 : vector<16x16xf32>
    %603 = arith.addf %593, %602 : vector<16x16xf32>
    %604 = vector.extract_strided_slice %251 {offsets = [5, 0], sizes = [16, 16], strides = [1, 1]} : vector<22x22xf32> to vector<16x16xf32>
    %c70 = arith.constant 70 : index
    %605 = memref.load %arg10[%c70] : memref<98xf32, #tpu.memory_space<smem>>
    %606 = vector.broadcast %605 : f32 to vector<16x16xf32>
    %607 = arith.mulf %604, %606 : vector<16x16xf32>
    %608 = vector.extract_strided_slice %252 {offsets = [5, 0], sizes = [16, 16], strides = [1, 1]} : vector<22x22xf32> to vector<16x16xf32>
    %c71 = arith.constant 71 : index
    %609 = memref.load %arg10[%c71] : memref<98xf32, #tpu.memory_space<smem>>
    %610 = vector.broadcast %609 : f32 to vector<16x16xf32>
    %611 = arith.mulf %608, %610 : vector<16x16xf32>
    %612 = arith.addf %607, %611 : vector<16x16xf32>
    %613 = arith.addf %603, %612 : vector<16x16xf32>
    %614 = vector.extract_strided_slice %251 {offsets = [5, 1], sizes = [16, 16], strides = [1, 1]} : vector<22x22xf32> to vector<16x16xf32>
    %c72 = arith.constant 72 : index
    %615 = memref.load %arg10[%c72] : memref<98xf32, #tpu.memory_space<smem>>
    %616 = vector.broadcast %615 : f32 to vector<16x16xf32>
    %617 = arith.mulf %614, %616 : vector<16x16xf32>
    %618 = vector.extract_strided_slice %252 {offsets = [5, 1], sizes = [16, 16], strides = [1, 1]} : vector<22x22xf32> to vector<16x16xf32>
    %c73 = arith.constant 73 : index
    %619 = memref.load %arg10[%c73] : memref<98xf32, #tpu.memory_space<smem>>
    %620 = vector.broadcast %619 : f32 to vector<16x16xf32>
    %621 = arith.mulf %618, %620 : vector<16x16xf32>
    %622 = arith.addf %617, %621 : vector<16x16xf32>
    %623 = arith.addf %613, %622 : vector<16x16xf32>
    %624 = vector.extract_strided_slice %251 {offsets = [5, 2], sizes = [16, 16], strides = [1, 1]} : vector<22x22xf32> to vector<16x16xf32>
    %c74 = arith.constant 74 : index
    %625 = memref.load %arg10[%c74] : memref<98xf32, #tpu.memory_space<smem>>
    %626 = vector.broadcast %625 : f32 to vector<16x16xf32>
    %627 = arith.mulf %624, %626 : vector<16x16xf32>
    %628 = vector.extract_strided_slice %252 {offsets = [5, 2], sizes = [16, 16], strides = [1, 1]} : vector<22x22xf32> to vector<16x16xf32>
    %c75 = arith.constant 75 : index
    %629 = memref.load %arg10[%c75] : memref<98xf32, #tpu.memory_space<smem>>
    %630 = vector.broadcast %629 : f32 to vector<16x16xf32>
    %631 = arith.mulf %628, %630 : vector<16x16xf32>
    %632 = arith.addf %627, %631 : vector<16x16xf32>
    %633 = arith.addf %623, %632 : vector<16x16xf32>
    %634 = vector.extract_strided_slice %251 {offsets = [5, 3], sizes = [16, 16], strides = [1, 1]} : vector<22x22xf32> to vector<16x16xf32>
    %c76 = arith.constant 76 : index
    %635 = memref.load %arg10[%c76] : memref<98xf32, #tpu.memory_space<smem>>
    %636 = vector.broadcast %635 : f32 to vector<16x16xf32>
    %637 = arith.mulf %634, %636 : vector<16x16xf32>
    %638 = vector.extract_strided_slice %252 {offsets = [5, 3], sizes = [16, 16], strides = [1, 1]} : vector<22x22xf32> to vector<16x16xf32>
    %c77 = arith.constant 77 : index
    %639 = memref.load %arg10[%c77] : memref<98xf32, #tpu.memory_space<smem>>
    %640 = vector.broadcast %639 : f32 to vector<16x16xf32>
    %641 = arith.mulf %638, %640 : vector<16x16xf32>
    %642 = arith.addf %637, %641 : vector<16x16xf32>
    %643 = arith.addf %633, %642 : vector<16x16xf32>
    %644 = vector.extract_strided_slice %251 {offsets = [5, 4], sizes = [16, 16], strides = [1, 1]} : vector<22x22xf32> to vector<16x16xf32>
    %c78 = arith.constant 78 : index
    %645 = memref.load %arg10[%c78] : memref<98xf32, #tpu.memory_space<smem>>
    %646 = vector.broadcast %645 : f32 to vector<16x16xf32>
    %647 = arith.mulf %644, %646 : vector<16x16xf32>
    %648 = vector.extract_strided_slice %252 {offsets = [5, 4], sizes = [16, 16], strides = [1, 1]} : vector<22x22xf32> to vector<16x16xf32>
    %c79 = arith.constant 79 : index
    %649 = memref.load %arg10[%c79] : memref<98xf32, #tpu.memory_space<smem>>
    %650 = vector.broadcast %649 : f32 to vector<16x16xf32>
    %651 = arith.mulf %648, %650 : vector<16x16xf32>
    %652 = arith.addf %647, %651 : vector<16x16xf32>
    %653 = arith.addf %643, %652 : vector<16x16xf32>
    %654 = vector.extract_strided_slice %251 {offsets = [5, 5], sizes = [16, 16], strides = [1, 1]} : vector<22x22xf32> to vector<16x16xf32>
    %c80 = arith.constant 80 : index
    %655 = memref.load %arg10[%c80] : memref<98xf32, #tpu.memory_space<smem>>
    %656 = vector.broadcast %655 : f32 to vector<16x16xf32>
    %657 = arith.mulf %654, %656 : vector<16x16xf32>
    %658 = vector.extract_strided_slice %252 {offsets = [5, 5], sizes = [16, 16], strides = [1, 1]} : vector<22x22xf32> to vector<16x16xf32>
    %c81 = arith.constant 81 : index
    %659 = memref.load %arg10[%c81] : memref<98xf32, #tpu.memory_space<smem>>
    %660 = vector.broadcast %659 : f32 to vector<16x16xf32>
    %661 = arith.mulf %658, %660 : vector<16x16xf32>
    %662 = arith.addf %657, %661 : vector<16x16xf32>
    %663 = arith.addf %653, %662 : vector<16x16xf32>
    %664 = vector.extract_strided_slice %251 {offsets = [5, 6], sizes = [16, 16], strides = [1, 1]} : vector<22x22xf32> to vector<16x16xf32>
    %c82 = arith.constant 82 : index
    %665 = memref.load %arg10[%c82] : memref<98xf32, #tpu.memory_space<smem>>
    %666 = vector.broadcast %665 : f32 to vector<16x16xf32>
    %667 = arith.mulf %664, %666 : vector<16x16xf32>
    %668 = vector.extract_strided_slice %252 {offsets = [5, 6], sizes = [16, 16], strides = [1, 1]} : vector<22x22xf32> to vector<16x16xf32>
    %c83 = arith.constant 83 : index
    %669 = memref.load %arg10[%c83] : memref<98xf32, #tpu.memory_space<smem>>
    %670 = vector.broadcast %669 : f32 to vector<16x16xf32>
    %671 = arith.mulf %668, %670 : vector<16x16xf32>
    %672 = arith.addf %667, %671 : vector<16x16xf32>
    %673 = arith.addf %663, %672 : vector<16x16xf32>
    %674 = vector.extract_strided_slice %251 {offsets = [6, 0], sizes = [16, 16], strides = [1, 1]} : vector<22x22xf32> to vector<16x16xf32>
    %c84 = arith.constant 84 : index
    %675 = memref.load %arg10[%c84] : memref<98xf32, #tpu.memory_space<smem>>
    %676 = vector.broadcast %675 : f32 to vector<16x16xf32>
    %677 = arith.mulf %674, %676 : vector<16x16xf32>
    %678 = vector.extract_strided_slice %252 {offsets = [6, 0], sizes = [16, 16], strides = [1, 1]} : vector<22x22xf32> to vector<16x16xf32>
    %c85 = arith.constant 85 : index
    %679 = memref.load %arg10[%c85] : memref<98xf32, #tpu.memory_space<smem>>
    %680 = vector.broadcast %679 : f32 to vector<16x16xf32>
    %681 = arith.mulf %678, %680 : vector<16x16xf32>
    %682 = arith.addf %677, %681 : vector<16x16xf32>
    %683 = arith.addf %673, %682 : vector<16x16xf32>
    %684 = vector.extract_strided_slice %251 {offsets = [6, 1], sizes = [16, 16], strides = [1, 1]} : vector<22x22xf32> to vector<16x16xf32>
    %c86 = arith.constant 86 : index
    %685 = memref.load %arg10[%c86] : memref<98xf32, #tpu.memory_space<smem>>
    %686 = vector.broadcast %685 : f32 to vector<16x16xf32>
    %687 = arith.mulf %684, %686 : vector<16x16xf32>
    %688 = vector.extract_strided_slice %252 {offsets = [6, 1], sizes = [16, 16], strides = [1, 1]} : vector<22x22xf32> to vector<16x16xf32>
    %c87 = arith.constant 87 : index
    %689 = memref.load %arg10[%c87] : memref<98xf32, #tpu.memory_space<smem>>
    %690 = vector.broadcast %689 : f32 to vector<16x16xf32>
    %691 = arith.mulf %688, %690 : vector<16x16xf32>
    %692 = arith.addf %687, %691 : vector<16x16xf32>
    %693 = arith.addf %683, %692 : vector<16x16xf32>
    %694 = vector.extract_strided_slice %251 {offsets = [6, 2], sizes = [16, 16], strides = [1, 1]} : vector<22x22xf32> to vector<16x16xf32>
    %c88 = arith.constant 88 : index
    %695 = memref.load %arg10[%c88] : memref<98xf32, #tpu.memory_space<smem>>
    %696 = vector.broadcast %695 : f32 to vector<16x16xf32>
    %697 = arith.mulf %694, %696 : vector<16x16xf32>
    %698 = vector.extract_strided_slice %252 {offsets = [6, 2], sizes = [16, 16], strides = [1, 1]} : vector<22x22xf32> to vector<16x16xf32>
    %c89 = arith.constant 89 : index
    %699 = memref.load %arg10[%c89] : memref<98xf32, #tpu.memory_space<smem>>
    %700 = vector.broadcast %699 : f32 to vector<16x16xf32>
    %701 = arith.mulf %698, %700 : vector<16x16xf32>
    %702 = arith.addf %697, %701 : vector<16x16xf32>
    %703 = arith.addf %693, %702 : vector<16x16xf32>
    %704 = vector.extract_strided_slice %251 {offsets = [6, 3], sizes = [16, 16], strides = [1, 1]} : vector<22x22xf32> to vector<16x16xf32>
    %c90 = arith.constant 90 : index
    %705 = memref.load %arg10[%c90] : memref<98xf32, #tpu.memory_space<smem>>
    %706 = vector.broadcast %705 : f32 to vector<16x16xf32>
    %707 = arith.mulf %704, %706 : vector<16x16xf32>
    %708 = vector.extract_strided_slice %252 {offsets = [6, 3], sizes = [16, 16], strides = [1, 1]} : vector<22x22xf32> to vector<16x16xf32>
    %c91 = arith.constant 91 : index
    %709 = memref.load %arg10[%c91] : memref<98xf32, #tpu.memory_space<smem>>
    %710 = vector.broadcast %709 : f32 to vector<16x16xf32>
    %711 = arith.mulf %708, %710 : vector<16x16xf32>
    %712 = arith.addf %707, %711 : vector<16x16xf32>
    %713 = arith.addf %703, %712 : vector<16x16xf32>
    %714 = vector.extract_strided_slice %251 {offsets = [6, 4], sizes = [16, 16], strides = [1, 1]} : vector<22x22xf32> to vector<16x16xf32>
    %c92 = arith.constant 92 : index
    %715 = memref.load %arg10[%c92] : memref<98xf32, #tpu.memory_space<smem>>
    %716 = vector.broadcast %715 : f32 to vector<16x16xf32>
    %717 = arith.mulf %714, %716 : vector<16x16xf32>
    %718 = vector.extract_strided_slice %252 {offsets = [6, 4], sizes = [16, 16], strides = [1, 1]} : vector<22x22xf32> to vector<16x16xf32>
    %c93 = arith.constant 93 : index
    %719 = memref.load %arg10[%c93] : memref<98xf32, #tpu.memory_space<smem>>
    %720 = vector.broadcast %719 : f32 to vector<16x16xf32>
    %721 = arith.mulf %718, %720 : vector<16x16xf32>
    %722 = arith.addf %717, %721 : vector<16x16xf32>
    %723 = arith.addf %713, %722 : vector<16x16xf32>
    %724 = vector.extract_strided_slice %251 {offsets = [6, 5], sizes = [16, 16], strides = [1, 1]} : vector<22x22xf32> to vector<16x16xf32>
    %c94 = arith.constant 94 : index
    %725 = memref.load %arg10[%c94] : memref<98xf32, #tpu.memory_space<smem>>
    %726 = vector.broadcast %725 : f32 to vector<16x16xf32>
    %727 = arith.mulf %724, %726 : vector<16x16xf32>
    %728 = vector.extract_strided_slice %252 {offsets = [6, 5], sizes = [16, 16], strides = [1, 1]} : vector<22x22xf32> to vector<16x16xf32>
    %c95 = arith.constant 95 : index
    %729 = memref.load %arg10[%c95] : memref<98xf32, #tpu.memory_space<smem>>
    %730 = vector.broadcast %729 : f32 to vector<16x16xf32>
    %731 = arith.mulf %728, %730 : vector<16x16xf32>
    %732 = arith.addf %727, %731 : vector<16x16xf32>
    %733 = arith.addf %723, %732 : vector<16x16xf32>
    %734 = vector.extract_strided_slice %251 {offsets = [6, 6], sizes = [16, 16], strides = [1, 1]} : vector<22x22xf32> to vector<16x16xf32>
    %c96 = arith.constant 96 : index
    %735 = memref.load %arg10[%c96] : memref<98xf32, #tpu.memory_space<smem>>
    %736 = vector.broadcast %735 : f32 to vector<16x16xf32>
    %737 = arith.mulf %734, %736 : vector<16x16xf32>
    %738 = vector.extract_strided_slice %252 {offsets = [6, 6], sizes = [16, 16], strides = [1, 1]} : vector<22x22xf32> to vector<16x16xf32>
    %c97 = arith.constant 97 : index
    %739 = memref.load %arg10[%c97] : memref<98xf32, #tpu.memory_space<smem>>
    %740 = vector.broadcast %739 : f32 to vector<16x16xf32>
    %741 = arith.mulf %738, %740 : vector<16x16xf32>
    %742 = arith.addf %737, %741 : vector<16x16xf32>
    %743 = arith.addf %733, %742 : vector<16x16xf32>
    %744 = arith.negf %743 : vector<16x16xf32>
    %745 = math.exp %744 : vector<16x16xf32>
    %cst_209 = arith.constant 1.000000e+00 : f32
    %746 = vector.broadcast %cst_209 : f32 to vector<16x16xf32>
    %747 = arith.addf %746, %745 : vector<16x16xf32>
    %748 = arith.divf %746, %747 : vector<16x16xf32>
    %cst_210 = arith.constant dense<0.000000e+00> : vector<256x16xf32>
    %749 = tpu.matmul %47, %748, %cst_210 {dimension_numbers = #tpu.dot_dimension_numbers<[1], [0], [0], [1], [0, 0, 1, 1], [], []>} : vector<256x16xf32>, vector<16x16xf32>, vector<256x16xf32> -> vector<256x16xf32>
    %750 = arith.mulf %749, %19 : vector<256x16xf32>
    %cst_211 = arith.constant dense<0.000000e+00> : vector<256xf32>
    %751 = vector.multi_reduction <add>, %750, %cst_211 [1] : vector<256x16xf32> to vector<256xf32>
    %752 = vector.shape_cast %751 : vector<256xf32> to vector<256x1xf32>
    %753 = vector.broadcast %752 : vector<256x1xf32> to vector<256x32xf32>
    %754 = arith.mulf %753, %236 : vector<256x32xf32>
    %c0_212 = arith.constant 0 : index
    %c0_213 = arith.constant 0 : index
    %c0_214 = arith.constant 0 : index
    %c0_215 = arith.constant 0 : index
    %755 = vector.load %arg1[%c0_212, %c0_213, %c0_214, %c0_215] : memref<1x16x16x32xf32, #tpu.memory_space<vmem>>, vector<1x16x16x32xf32>
    %756 = vector.shape_cast %755 : vector<1x16x16x32xf32> to vector<16x16x32xf32>
    %757 = vector.shape_cast %756 : vector<16x16x32xf32> to vector<256x32xf32>
    %758 = arith.addf %754, %757 : vector<256x32xf32>
    %cst_216 = arith.constant 0.000000e+00 : f32
    %759 = vector.broadcast %cst_216 : f32 to vector<256x32xf32>
    %760 = arith.maximumf %758, %759 : vector<256x32xf32>
    %761 = vector.shape_cast %760 : vector<256x32xf32> to vector<1x16x16x32xf32>
    %c0_217 = arith.constant 0 : index
    %c0_218 = arith.constant 0 : index
    %c0_219 = arith.constant 0 : index
    %c0_220 = arith.constant 0 : index
    %762 = vector.load %arg11[%c0_217, %c0_218, %c0_219, %c0_220] : memref<1x16x16x32xf32, #tpu.memory_space<vmem>>, vector<1x16x16x32xf32>
    tpu.vector_store %arg11[%c0_217, %c0_218, %c0_219, %c0_220], %761 {strides = array<i32>} : memref<1x16x16x32xf32, #tpu.memory_space<vmem>>, vector<1x16x16x32xf32>,
    return
  }
  func.func @transform_0(%arg0: i32) -> (i32, i32, i32, i32) {
    %c0_i32 = arith.constant 0 : i32
    %c0_i32_0 = arith.constant 0 : i32
    %c0_i32_1 = arith.constant 0 : i32
    %c0_i32_2 = arith.constant 0 : i32
    return %arg0, %c0_i32, %c0_i32_0, %c0_i32_1 : i32, i32, i32, i32
  }
  func.func @transform_1(%arg0: i32) -> (i32, i32, i32) {
    %c0_i32 = arith.constant 0 : i32
    %c0_i32_0 = arith.constant 0 : i32
    %c0_i32_1 = arith.constant 0 : i32
    %c0_i32_2 = arith.constant 0 : i32
    return %c0_i32, %c0_i32_0, %c0_i32_1 : i32, i32, i32
  }
  func.func @transform_2(%arg0: i32) -> (i32, i32, i32) {
    %c0_i32 = arith.constant 0 : i32
    %c0_i32_0 = arith.constant 0 : i32
    %c0_i32_1 = arith.constant 0 : i32
    %c0_i32_2 = arith.constant 0 : i32
    return %c0_i32, %c0_i32_0, %c0_i32_1 : i32, i32, i32
  }
  func.func @transform_3(%arg0: i32) -> (i32, i32) {
    %c0_i32 = arith.constant 0 : i32
    %c0_i32_0 = arith.constant 0 : i32
    %c0_i32_1 = arith.constant 0 : i32
    return %c0_i32, %c0_i32_0 : i32, i32
  }
  func.func @transform_4(%arg0: i32) -> (i32, i32) {
    %c0_i32 = arith.constant 0 : i32
    %c0_i32_0 = arith.constant 0 : i32
    %c0_i32_1 = arith.constant 0 : i32
    return %c0_i32, %c0_i32_0 : i32, i32
  }
  func.func @transform_5(%arg0: i32) -> (i32, i32) {
    %c0_i32 = arith.constant 0 : i32
    %c0_i32_0 = arith.constant 0 : i32
    %c0_i32_1 = arith.constant 0 : i32
    return %c0_i32, %c0_i32_0 : i32, i32
  }
  func.func @transform_6(%arg0: i32) -> (i32, i32) {
    %c0_i32 = arith.constant 0 : i32
    %c0_i32_0 = arith.constant 0 : i32
    %c0_i32_1 = arith.constant 0 : i32
    return %c0_i32, %c0_i32_0 : i32, i32
  }
  func.func @transform_7(%arg0: i32) -> (i32, i32) {
    %c0_i32 = arith.constant 0 : i32
    %c0_i32_0 = arith.constant 0 : i32
    %c0_i32_1 = arith.constant 0 : i32
    return %c0_i32, %c0_i32_0 : i32, i32
  }
  func.func @transform_8(%arg0: i32) -> (i32, i32) {
    %c0_i32 = arith.constant 0 : i32
    %c0_i32_0 = arith.constant 0 : i32
    %c0_i32_1 = arith.constant 0 : i32
    return %c0_i32, %c0_i32_0 : i32, i32
  }
  func.func @transform_9(%arg0: i32) -> i32 {
    %c0_i32 = arith.constant 0 : i32
    %c0_i32_0 = arith.constant 0 : i32
    return %c0_i32 : i32
  }
  func.func @transform_10(%arg0: i32) -> (i32, i32, i32, i32) {
    %c0_i32 = arith.constant 0 : i32
    %c0_i32_0 = arith.constant 0 : i32
    %c0_i32_1 = arith.constant 0 : i32
    %c0_i32_2 = arith.constant 0 : i32
    return %arg0, %c0_i32, %c0_i32_0, %c0_i32_1 : i32, i32, i32, i32
  }
}

</mosaic_0001>

<bundles_post_ra>
// kernel: basic_cbam_forward.1
= control target key start
LH: loop header
LB: loop body
LE: loop exit
PB: predicated region body
PF: predicated region fallthrough
CT: control target
= control target key end

     0   :  { %s15506_s0 = inlined_call_operand.vmem [shape: f32[2,16,16,32], index: 0, kind: input, shape index: {}]   ;;  %s15507_s1 = inlined_call_operand.vmem [shape: bf16[9,32,32], index: 1, kind: input, shape index: {}]   ;;  %s15508_s2 = inlined_call_operand.vmem [shape: bf16[9,32,32], index: 2, kind: input, shape index: {}]   ;;  %s15509_s3 = inlined_call_operand.vmem [shape: f32[1,32], index: 3, kind: input, shape index: {}]   ;;  %s15510_s4 = inlined_call_operand.vmem [shape: f32[1,32], index: 4, kind: input, shape index: {}]   ;;  %s15511_s5 = inlined_call_operand.vmem [shape: f32[1,32], index: 5, kind: input, shape index: {}]   ;;  %s15512_s6 = inlined_call_operand.vmem [shape: f32[1,32], index: 6, kind: input, shape index: {}]   ;;  %s15513_s7 = inlined_call_operand.vmem [shape: f32[2,32], index: 7, kind: input, shape index: {}]   ;;  %s15514_s8 = inlined_call_operand.vmem [shape: f32[2,32], index: 8, kind: input, shape index: {}]   ;;  %s15515_s9 = inlined_call_operand.vmem [shape: f32[98], index: 9, kind: input, shape index: {}]   ;;  %s15516_s10 = inlined_call_operand.hbm [shape: f32[2,16,16,32], index: 10, kind: output, shape index: {}]  }
   0x1   :  { %15582 = sst [smem:[#allocation51_spill]] %s15506_s0 }
   0x2   :  { %15583 = sst [smem:[#allocation52_spill]] %s15507_s1 }
   0x3   :  { %15584 = sst [smem:[#allocation53_spill]] %s15508_s2 }
   0x4   :  { %15585 = sst [smem:[#allocation54_spill]] %s15509_s3 }
   0x5   :  { %15586 = sst [smem:[#allocation55_spill]] %s15510_s4 }
   0x6   :  { %15587 = sst [smem:[#allocation56_spill]] %s15511_s5 }
   0x7   :  { %15588 = sst [smem:[#allocation57_spill]] %s15512_s6 }
   0x8   :  { %15589 = sst [smem:[#allocation58_spill]] %s15513_s7 }
   0x9   :  { %15590 = sst [smem:[#allocation59_spill]] %s15514_s8 }
   0xa   :  { %15591 = sst [smem:[#allocation60_spill]] %s15515_s9 }
   0xb   :  { %15 = vsyncpa [#allocation7], 0 }
   0xc   :  { %16 = vsyncpa [#allocation6], 0 }
   0xd   :  { %18 = vsyncpa [#allocation6 + $0x1], 0  ;;  %s11542_s13 = smov 0   ;;  %s11544_s14 = smov 0  }
   0xe   :  { %s11546_s15 = smov 0   ;;  %s11548_s16 = smov 0  }
   0xf LB: > { %s11563_s17 = sadd.s32 4294967295, %s11472_s16   ;;  %s9004_s18 = sadd.s32 4294967294, %s11472_s16   ;;  %s11472_s16 = sphi %s11548_s16, %s15897_s16   ;;  %s11468_s15 = sphi %s11546_s15, %s15896_s15   ;;  %s11464_s14 = sphi %s11544_s14, %s15895_s14   ;;  %s11460_s13 = sphi %s11542_s13, %s15894_s13  }
  0x10   : > { %s11567_s19 = sadd.s32 1, %s11472_s16   ;;  %s246_s20 = sadd.s32 1, %s11468_s15 }
  0x11   : > { %s243_s21 = ssub.s32 %s11472_s16, %s11567_s19  ;;  %p256_p0 = scmp.ne.s32.totalorder %s11468_s15, %s11464_s14 }
  0x12   : > { %p244_p1 = scmp.eq.s32.totalorder %s243_s21, 0  ;;  %p257_p2 = scmp.eq.s32.totalorder %s11563_s17, 1 }
  0x13   : > { %p262_p3 = scmp.ne.s32.totalorder %s11464_s14, %s11460_s13  ;;  %p263_p4 = scmp.eq.s32.totalorder %s9004_s18, 1 }
  0x14   : > { %s11578_s22 = scalar_select %p244_p1, %s11468_s15, %s246_s20  }
  0x15   : > { %p11580_p5 = por %p257_p2, %p256_p0  ;;  %p11584_p6 = por %p263_p4, %p262_p3 }
  0x16   : > { %15592 = sst [smem:[#allocation11_spill]] %s11578_s22  ;;  %p9005_p7 = scmp.ge.s32.totalorder %s11472_s16, 1 }
  0x17   : > { %p270_p8 = scmp.lt.s32.totalorder %s11472_s16, 3  ;;  %p11284_p9 = scmp.eq.s32.totalorder %s11563_s17, 0 }
  0x18   : > { %s15596_s9 = sld [smem:[#allocation60_spill]] }
  0x19   : > { %p11591_p10 = pnand %p9005_p7, %p270_p8 }
  0x1b   : > { %p11276_p11 = pneg %p11591_p10 }
  0x1d   : > { %p11277_p12 = pnand %p11284_p9, %p11276_p11 }
  0x1e   : > { %s307_s28 = sshll.u32 %s15596_s9, 4  ;;  %s308_s28 = int_to_ptr.vmem [resolvable:$true] %s307_s28 }
  0x1f   : > { %s11391_s29 = scalar_lea.vmem %s308_s28, 16  ;;  %p11393_p0 = pneg %p11277_p12 }
  0x20   : > { %p11392_p13 = scmp.ne.s32.totalorder %s308_s28, %s11391_s29  ;;  %p11399_p3 = scmp.lt.s32.totalorder %s308_s28, %s308_s28 }
  0x21   : > { %p11400_p4 = scmp.lt.s32.totalorder %s11391_s29, %s11391_s29 }
  0x22   : > { %p11394_p1 = pnand %p11393_p0, %p11392_p13 }
  0x23   : > { %p11401_p7 = por %p11400_p4, %p11399_p3 }
  0x24   : > { %p11395_p2 = pneg %p11394_p1 }
  0x26   : > { %p11402_p8 = pnand %p11401_p7, %p11395_p2 }
  0x28   : > { %11405 = shalt.err (!%p11402_p8)
}
  0x29   : > { %s11474_s30 = smov [#allocation5]   ;;  %328 = sbr.rel (%p11591_p10) target bundleno = 3172 (0xc64), region = 60 }
  0x2a   : > { %11279 = dma.vmem_to_smem (!%p11277_p12), %s308_s28, 16, %s11474_s30, [#allocation7]  }
  0x30   : > { %11451 = dma.done.wait (%p11284_p9), [#allocation7], 16  }
  0x31   : > { %11453 = vsyncadd (%p11284_p9), [#allocation7], 4294967280 }
  0x32   : > { %334 = sfence }
  0x33   : > { %s15597_s1 = sld [smem:[#allocation52_spill]]  ;;  %vm15564_vm0 = vcmask 261120   ;;  %v15523_v2 = vmov 0.0   ;;  %vm376_vm1 = vcmask 254976   ;;  %p367_p9 = scmp.lt.s32.totalorder %s11563_s17, 1  ;;  %vm382_vm2 = vcmask 253952  }
  0x34   : > { %374 = vst.msk [vmem:[#allocation2] sm:$0xff] %vm15564_vm0, %v15523_v2  ;;  %375 = vst.msk [vmem:[#allocation2 + $0x8] sm:$0xff] %vm15564_vm0, %v15523_v2  ;;  %s15598_s0 = sld [smem:[#allocation51_spill]]  ;;  %s15599_s2 = sld [smem:[#allocation53_spill]] }
  0x35   : > { %379 = vst.msk [vmem:[#allocation2 + $0x198] sm:$0xff] %vm15564_vm0, %v15523_v2  ;;  %380 = vst.msk [vmem:[#allocation2 + $0x1a0] sm:$0xff] %vm15564_vm0, %v15523_v2  ;;  %s11626_s21 = scalar_select %p367_p9, %s11563_s17, 1 }
  0x36   : > { %377 = vst.msk [vmem:[#allocation2 + $0x10] sm:$0x3] %vm376_vm1, %v15523_v2  ;;  %381 = vst.msk [vmem:[#allocation2 + $0x1a8] sm:$0x3] %vm376_vm1, %v15523_v2  ;;  %s15600_s3 = sld [smem:[#allocation54_spill]]  ;;  %s15601_s4 = sld [smem:[#allocation55_spill]] }
  0x37   : > { %383 = vst.msk [vmem:[#allocation2] sm:$0x1] %vm382_vm2, %v15523_v2  ;;  %384 = vst.msk [vmem:[#allocation2 + $0x18] sm:$0x1] %vm382_vm2, %v15523_v2  ;;  %s9550_s27 = sshll.u32 %s11626_s21, 8  ;;  %s15602_s5 = sld [smem:[#allocation56_spill]] }
  0x38   : > { %385 = vst.msk [vmem:[#allocation2 + $0x30] sm:$0x1] %vm382_vm2, %v15523_v2  ;;  %386 = vst.msk [vmem:[#allocation2 + $0x48] sm:$0x1] %vm382_vm2, %v15523_v2  ;;  %s15603_s6 = sld [smem:[#allocation57_spill]]  ;;  %s15604_s7 = sld [smem:[#allocation58_spill]] }
  0x39   : > { %v11331_v0 = vld [vmem:[%s15597_s1 + $0x10] sm:$0xff]   ;;  %v11332_v1 = vld [vmem:[%s15597_s1 + $0x18] sm:$0xff]   ;;  %v11631_v3 = vld [vmem:[%s15597_s1] sm:$0xff]   ;;  %387 = vst.msk [vmem:[#allocation2 + $0x60] sm:$0x1] %vm382_vm2, %v15523_v2  ;;  %s15605_s8 = sld [smem:[#allocation59_spill]] }
  0x3a   : > { %9986 = vmatprep.subr.bf16.mxu0 %v11331_v0  ;;  %10754 = vmatprep.subr.bf16.mxu1 %v11331_v0  ;;  %388 = vst.msk [vmem:[#allocation2 + $0x78] sm:$0x1] %vm382_vm2, %v15523_v2  ;;  %389 = vst.msk [vmem:[#allocation2 + $0x90] sm:$0x1] %vm382_vm2, %v15523_v2  ;;  %s11709_s30 = scalar_lea.vmem %s15598_s0, %s9550_s27  ;;  %v11334_v32 = vld [vmem:[%s15597_s1 + $0x8] sm:$0xff]   ;;  %v11335_v38 = vld [vmem:[%s15597_s1 + $0x20] sm:$0xff]  }
  0x3b   : > { %9987 = vmatpush3.bf16.msra.mxu0 %v11331_v0  ;;  %10756 = vmatpush3.bf16.msra.mxu1 %v11331_v0  ;;  %390 = vst.msk [vmem:[#allocation2 + $0xa8] sm:$0x1] %vm382_vm2, %v15523_v2  ;;  %391 = vst.msk [vmem:[#allocation2 + $0xc0] sm:$0x1] %vm382_vm2, %v15523_v2  ;;  %v620_v4 = vld [vmem:[%s11709_s30] sm:$0xff]  ;;  %v621_v5 = vld [vmem:[%s11709_s30 + $0x8] sm:$0xff] }
  0x3c   : > { %9988 = vmatprep.subr.bf16.mxu0 %v11332_v1  ;;  %392 = vst.msk [vmem:[#allocation2 + $0xd8] sm:$0x1] %vm382_vm2, %v15523_v2  ;;  %393 = vst.msk [vmem:[#allocation2 + $0xf0] sm:$0x1] %vm382_vm2, %v15523_v2  ;;  %10755 = vmatprep.subr.bf16.mxu1 %v11332_v1  ;;  %v622_v6 = vld [vmem:[%s11709_s30 + $0x10] sm:$0xff]  ;;  %v739_v7 = vld [vmem:[#allocation2 + $0x1] sm:$0xff] }
  0x3d   : > { %394 = vst.msk [vmem:[#allocation2 + $0x108] sm:$0x1] %vm382_vm2, %v15523_v2  ;;  %395 = vst.msk [vmem:[#allocation2 + $0x120] sm:$0x1] %vm382_vm2, %v15523_v2  ;;  %v623_v8 = vld [vmem:[%s11709_s30 + $0x18] sm:$0xff]  ;;  %v624_v9 = vld [vmem:[%s11709_s30 + $0x20] sm:$0xff] }
  0x3e   : > { %396 = vst.msk [vmem:[#allocation2 + $0x138] sm:$0x1] %vm382_vm2, %v15523_v2  ;;  %397 = vst.msk [vmem:[#allocation2 + $0x150] sm:$0x1] %vm382_vm2, %v15523_v2  ;;  %v740_v10 = vld [vmem:[#allocation2 + $0x9] sm:$0xff]  ;;  %v627_v14 = vld [vmem:[%s11709_s30 + $0x38] sm:$0xff] }
  0x3f   : > { %398 = vst.msk [vmem:[#allocation2 + $0x168] sm:$0x1] %vm382_vm2, %v15523_v2  ;;  %399 = vst.msk [vmem:[#allocation2 + $0x180] sm:$0x1] %vm382_vm2, %v15523_v2  ;;  %9989 = vmatpush3.bf16.msra.mxu0 %v11332_v1  ;;  %10757 = vmatpush3.bf16.msra.mxu1 %v11332_v1  ;;  %v625_v11 = vld [vmem:[%s11709_s30 + $0x28] sm:$0xff]  ;;  %v626_v12 = vld [vmem:[%s11709_s30 + $0x30] sm:$0xff]  ;;  %v771_v13 = vpack.c.bf16 %v740_v10, %v739_v7 }
  0x40   : > { %400 = vst.msk [vmem:[#allocation2 + $0x198] sm:$0x1] %vm382_vm2, %v15523_v2  ;;  %401 = vst.msk [vmem:[#allocation2 + $0x11] sm:$0x1] %vm382_vm2, %v15523_v2  ;;  %10022 = vmatprep.subr.bf16.mxu0 %v11631_v3  ;;  %v628_v15 = vld [vmem:[%s11709_s30 + $0x40] sm:$0xff]  ;;  %v629_v16 = vld [vmem:[%s11709_s30 + $0x48] sm:$0xff] }
  0x41   : > { %402 = vst.msk [vmem:[#allocation2 + $0x29] sm:$0x1] %vm382_vm2, %v15523_v2  ;;  %403 = vst.msk [vmem:[#allocation2 + $0x41] sm:$0x1] %vm382_vm2, %v15523_v2  ;;  %v630_v17 = vld [vmem:[%s11709_s30 + $0x50] sm:$0xff]  ;;  %v631_v18 = vld [vmem:[%s11709_s30 + $0x58] sm:$0xff]  ;;  %9990 = vmatprep.mubr.msk.bf16.mxu0 %vm15564_vm0, %v771_v13 }
  0x42   : > { %404 = vst.msk [vmem:[#allocation2 + $0x59] sm:$0x1] %vm382_vm2, %v15523_v2  ;;  %405 = vst.msk [vmem:[#allocation2 + $0x71] sm:$0x1] %vm382_vm2, %v15523_v2  ;;  %v632_v19 = vld [vmem:[%s11709_s30 + $0x60] sm:$0xff]  ;;  %v633_v20 = vld [vmem:[%s11709_s30 + $0x68] sm:$0xff] }
  0x43   : > { %406 = vst.msk [vmem:[#allocation2 + $0x89] sm:$0x1] %vm382_vm2, %v15523_v2  ;;  %407 = vst.msk [vmem:[#allocation2 + $0xa1] sm:$0x1] %vm382_vm2, %v15523_v2  ;;  %v634_v21 = vld [vmem:[%s11709_s30 + $0x70] sm:$0xff]  ;;  %v635_v22 = vld [vmem:[%s11709_s30 + $0x78] sm:$0xff] }
  0x44   : > { %408 = vst.msk [vmem:[#allocation2 + $0xb9] sm:$0x1] %vm382_vm2, %v15523_v2  ;;  %409 = vst.msk [vmem:[#allocation2 + $0xd1] sm:$0x1] %vm382_vm2, %v15523_v2  ;;  %v636_v23 = vld [vmem:[%s11709_s30 + $0x80] sm:$0xff]  ;;  %v637_v24 = vld [vmem:[%s11709_s30 + $0x88] sm:$0xff] }
  0x45   : > { %410 = vst.msk [vmem:[#allocation2 + $0xe9] sm:$0x1] %vm382_vm2, %v15523_v2  ;;  %411 = vst.msk [vmem:[#allocation2 + $0x101] sm:$0x1] %vm382_vm2, %v15523_v2  ;;  %v638_v25 = vld [vmem:[%s11709_s30 + $0x90] sm:$0xff]  ;;  %v639_v26 = vld [vmem:[%s11709_s30 + $0x98] sm:$0xff] }
  0x46   : > { %412 = vst.msk [vmem:[#allocation2 + $0x119] sm:$0x1] %vm382_vm2, %v15523_v2  ;;  %413 = vst.msk [vmem:[#allocation2 + $0x131] sm:$0x1] %vm382_vm2, %v15523_v2  ;;  %v640_v45 = vld [vmem:[%s11709_s30 + $0xa0] sm:$0xff]  ;;  %v641_v46 = vld [vmem:[%s11709_s30 + $0xa8] sm:$0xff] }
  0x47   : > { %414 = vst.msk [vmem:[#allocation2 + $0x149] sm:$0x1] %vm382_vm2, %v15523_v2  ;;  %415 = vst.msk [vmem:[#allocation2 + $0x161] sm:$0x1] %vm382_vm2, %v15523_v2  ;;  %v642_v47 = vld [vmem:[%s11709_s30 + $0xb0] sm:$0xff]  ;;  %v643_v48 = vld [vmem:[%s11709_s30 + $0xb8] sm:$0xff] }
  0x48   : > { %416 = vst.msk [vmem:[#allocation2 + $0x179] sm:$0x1] %vm382_vm2, %v15523_v2  ;;  %417 = vst.msk [vmem:[#allocation2 + $0x191] sm:$0x1] %vm382_vm2, %v15523_v2  ;;  %v644_v49 = vld [vmem:[%s11709_s30 + $0xc0] sm:$0xff]  ;;  %v645_v50 = vld [vmem:[%s11709_s30 + $0xc8] sm:$0xff] }
  0x49   : > { %418 = vst.msk [vmem:[#allocation2 + $0x1a9] sm:$0x1] %vm382_vm2, %v15523_v2  ;;  %v646_v51 = vld [vmem:[%s11709_s30 + $0xd0] sm:$0xff]  ;;  %v647_v52 = vld [vmem:[%s11709_s30 + $0xd8] sm:$0xff]  ;;  %v648_v53 = vld [vmem:[%s11709_s30 + $0xe0] sm:$0xff]  ;;  %s11477_s18 = smov 3  }
  0x4a   : > { %653 = vst.msk [vmem:[#allocation2 + $0x19] sm:$0xff] %vm15564_vm0, %v620_v4  ;;  %654 = vst.msk [vmem:[#allocation2 + $0x21] sm:$0xff] %vm15564_vm0, %v621_v5  ;;  %v649_v54 = vld [vmem:[%s11709_s30 + $0xe8] sm:$0xff]  ;;  %v687_v59 = vld [vmem:[#allocation2] sm:$0xff]  ;;  %s13485_s20 = sld [smem:[#allocation5 + $0x2]]  ;;  %s13487_s21 = sld [smem:[#allocation5 + $0x3]] }
  0x4b   : > { %655 = vst.msk [vmem:[#allocation2 + $0x31] sm:$0xff] %vm15564_vm0, %v622_v6  ;;  %656 = vst.msk [vmem:[#allocation2 + $0x39] sm:$0xff] %vm15564_vm0, %v623_v8  ;;  %v688_v60 = vld [vmem:[#allocation2 + $0x8] sm:$0xff]  ;;  %s13489_s25 = sld [smem:[#allocation5 + $0x4]]  ;;  %s13491_s26 = sld [smem:[#allocation5 + $0x5]] }
  0x4c   : > { %657 = vst.msk [vmem:[#allocation2 + $0x49] sm:$0xff] %vm15564_vm0, %v624_v9  ;;  %658 = vst.msk [vmem:[#allocation2 + $0x51] sm:$0xff] %vm15564_vm0, %v625_v11  ;;  %v719_v62 = vpack.c.bf16 %v688_v60, %v687_v59  ;;  %v11336_v5 = vld [vmem:[%s15597_s1 + $0x28] sm:$0xff]   ;;  %v11821_v11 = vld [vmem:[%s15597_s1 + $0x30] sm:$0xff]   ;;  %s13497_s27 = sld [smem:[#allocation5 + $0x6]]  ;;  %s13499_s28 = sld [smem:[#allocation5 + $0x7]] }
  0x4d   : > { %659 = vst.msk [vmem:[#allocation2 + $0x61] sm:$0xff] %vm15564_vm0, %v626_v12  ;;  %660 = vst.msk [vmem:[#allocation2 + $0x69] sm:$0xff] %vm15564_vm0, %v627_v14  ;;  %s13504_s29 = sld [smem:[#allocation5 + $0x8]]  ;;  %s13510_s11 = sld [smem:[#allocation5 + $0x9]] }
  0x4e   : > { %661 = vst.msk [vmem:[#allocation2 + $0x79] sm:$0xff] %vm15564_vm0, %v628_v15  ;;  %662 = vst.msk [vmem:[#allocation2 + $0x81] sm:$0xff] %vm15564_vm0, %v629_v16  ;;  %s13514_s12 = sld [smem:[#allocation5 + $0xa]]  ;;  %s13529_s0 = sld [smem:[#allocation5 + $0x11]] }
  0x4f   : > { %663 = vst.msk [vmem:[#allocation2 + $0x91] sm:$0xff] %vm15564_vm0, %v630_v17  ;;  %664 = vst.msk [vmem:[#allocation2 + $0x99] sm:$0xff] %vm15564_vm0, %v631_v18  ;;  %s13575_s9 = sld [smem:[#allocation5 + $0x1e]]  ;;  %s13591_s22 = sld [smem:[#allocation5 + $0x20]] }
  0x50   : > { %665 = vst.msk [vmem:[#allocation2 + $0xa9] sm:$0xff] %vm15564_vm0, %v632_v19  ;;  %666 = vst.msk [vmem:[#allocation2 + $0xb1] sm:$0xff] %vm15564_vm0, %v633_v20 }
  0x51   : > { %667 = vst.msk [vmem:[#allocation2 + $0xc1] sm:$0xff] %vm15564_vm0, %v634_v21  ;;  %668 = vst.msk [vmem:[#allocation2 + $0xc9] sm:$0xff] %vm15564_vm0, %v635_v22  ;;  %v741_v27 = vld [vmem:[#allocation2 + $0x19] sm:$0xff]  ;;  %v742_v28 = vld [vmem:[#allocation2 + $0x21] sm:$0xff] }
  0x52   : > { %669 = vst.msk [vmem:[#allocation2 + $0xd9] sm:$0xff] %vm15564_vm0, %v636_v23  ;;  %v743_v29 = vld [vmem:[#allocation2 + $0x31] sm:$0xff]  ;;  %670 = vst.msk [vmem:[#allocation2 + $0xe1] sm:$0xff] %vm15564_vm0, %v637_v24  ;;  %v11753_v30 = vpack.c.bf16 %v742_v28, %v741_v27  ;;  %v744_v31 = vld [vmem:[#allocation2 + $0x39] sm:$0xff] }
  0x53   : > { %671 = vst.msk [vmem:[#allocation2 + $0xf1] sm:$0xff] %vm15564_vm0, %v638_v25  ;;  %672 = vst.msk [vmem:[#allocation2 + $0xf9] sm:$0xff] %vm15564_vm0, %v639_v26  ;;  %v11758_v33 = vpack.c.bf16 %v744_v31, %v743_v29  ;;  %v745_v34 = vld [vmem:[#allocation2 + $0x49] sm:$0xff]  ;;  %v746_v35 = vld [vmem:[#allocation2 + $0x51] sm:$0xff] }
  0x54   : > { %9991 = vmatmul.mubr.msk.bf16.vlgmr.msra.gmra.mrb[0].mxu0 %vm15564_vm0, %v11753_v30  ;;  %v747_v36 = vld [vmem:[#allocation2 + $0x61] sm:$0xff]  ;;  %v748_v37 = vld [vmem:[#allocation2 + $0x69] sm:$0xff]  ;;  %v11768_v39 = vpack.c.bf16 %v746_v35, %v745_v34  ;;  %673 = vst.msk [vmem:[#allocation2 + $0x109] sm:$0xff] %vm15564_vm0, %v640_v45  ;;  %674 = vst.msk [vmem:[#allocation2 + $0x111] sm:$0xff] %vm15564_vm0, %v641_v46 }
  0x55   : > { %10023 = vmatpush3.bf16.msra.mxu0 %v11631_v3  ;;  %9994 = vmatprep.mubr.msk.bf16.mxu0 %vm15564_vm0, %v11758_v33  ;;  %v11770_v40 = vpack.c.bf16 %v748_v37, %v747_v36  ;;  %v749_v41 = vld [vmem:[#allocation2 + $0x79] sm:$0xff]  ;;  %v750_v42 = vld [vmem:[#allocation2 + $0x81] sm:$0xff]  ;;  %675 = vst.msk [vmem:[#allocation2 + $0x121] sm:$0xff] %vm15564_vm0, %v642_v47  ;;  %676 = vst.msk [vmem:[#allocation2 + $0x129] sm:$0xff] %vm15564_vm0, %v643_v48 }
  0x56   : > { %10024 = vmatprep.subr.bf16.mxu0 %v11334_v32  ;;  %v751_v43 = vld [vmem:[#allocation2 + $0x91] sm:$0xff]  ;;  %v752_v44 = vld [vmem:[#allocation2 + $0x99] sm:$0xff]  ;;  %677 = vst.msk [vmem:[#allocation2 + $0x139] sm:$0xff] %vm15564_vm0, %v644_v49  ;;  %678 = vst.msk [vmem:[#allocation2 + $0x141] sm:$0xff] %vm15564_vm0, %v645_v50  ;;  %v11794_v55 = vpack.c.bf16 %v750_v42, %v749_v41 }
  0x57   : > { %679 = vst.msk [vmem:[#allocation2 + $0x151] sm:$0xff] %vm15564_vm0, %v646_v51  ;;  %680 = vst.msk [vmem:[#allocation2 + $0x159] sm:$0xff] %vm15564_vm0, %v647_v52  ;;  %v11798_v56 = vpack.c.bf16 %v752_v44, %v751_v43  ;;  %v753_v57 = vld [vmem:[#allocation2 + $0xa9] sm:$0xff]  ;;  %v754_v58 = vld [vmem:[#allocation2 + $0xb1] sm:$0xff] }
  0x58   : > { %681 = vst.msk [vmem:[#allocation2 + $0x169] sm:$0xff] %vm15564_vm0, %v648_v53  ;;  %682 = vst.msk [vmem:[#allocation2 + $0x171] sm:$0xff] %vm15564_vm0, %v649_v54  ;;  %v11804_v61 = vpack.c.bf16 %v754_v58, %v753_v57  ;;  %v689_v63 = vld [vmem:[#allocation2 + $0x18] sm:$0xff]  ;;  %v690_v0 = vld [vmem:[#allocation2 + $0x20] sm:$0xff] }
  0x59   : > { %10025 = vmatpush3.bf16.msra.mxu0 %v11334_v32  ;;  %v691_v1 = vld [vmem:[#allocation2 + $0x30] sm:$0xff]  ;;  %v692_v3 = vld [vmem:[#allocation2 + $0x38] sm:$0xff]  ;;  %v11809_v4 = vpack.c.bf16 %v690_v0, %v689_v63  ;;  %v693_v7 = vld [vmem:[#allocation2 + $0x48] sm:$0xff] }
  0x5a   : > { %10058 = vmatprep.subr.bf16.mxu0 %v11335_v38  ;;  %v11814_v6 = vpack.c.bf16 %v692_v3, %v691_v1  ;;  %v694_v8 = vld [vmem:[#allocation2 + $0x50] sm:$0xff]  ;;  %v695_v9 = vld [vmem:[#allocation2 + $0x60] sm:$0xff]  ;;  %v696_v10 = vld [vmem:[#allocation2 + $0x68] sm:$0xff] }
  0x5b   : > { %v11825_v12 = vpack.c.bf16 %v694_v8, %v693_v7  ;;  %v11827_v13 = vpack.c.bf16 %v696_v10, %v695_v9  ;;  %v697_v14 = vld [vmem:[#allocation2 + $0x78] sm:$0xff]  ;;  %v698_v15 = vld [vmem:[#allocation2 + $0x80] sm:$0xff]  ;;  %v699_v16 = vld [vmem:[#allocation2 + $0x90] sm:$0xff] }
  0x5c   : > { %9995 = vmatmul.mubr.msk.bf16.gmra.mrb[4].mxu0 %vm15564_vm0, %v11768_v39  ;;  %v700_v17 = vld [vmem:[#allocation2 + $0x98] sm:$0xff]  ;;  %v11834_v18 = vpack.c.bf16 %v698_v15, %v697_v14  ;;  %v701_v20 = vld [vmem:[#allocation2 + $0xa8] sm:$0xff]  ;;  %v702_v21 = vld [vmem:[#allocation2 + $0xb0] sm:$0xff] }
  0x5d   : > { %9998 = vmatprep.mubr.msk.bf16.mxu0 %vm15564_vm0, %v11770_v40  ;;  %v11836_v19 = vpack.c.bf16 %v700_v17, %v699_v16  ;;  %v703_v22 = vld [vmem:[#allocation2 + $0xc0] sm:$0xff]  ;;  %v704_v23 = vld [vmem:[#allocation2 + $0xc8] sm:$0xff]  ;;  %v11842_v24 = vpack.c.bf16 %v702_v21, %v701_v20  ;;  %v705_v26 = vld [vmem:[#allocation2 + $0xd8] sm:$0xff] }
  0x5e   : > { %v11844_v25 = vpack.c.bf16 %v704_v23, %v703_v22  ;;  %v706_v27 = vld [vmem:[#allocation2 + $0xe0] sm:$0xff]  ;;  %v707_v28 = vld [vmem:[#allocation2 + $0xf0] sm:$0xff]  ;;  %v708_v29 = vld [vmem:[#allocation2 + $0xf8] sm:$0xff] }
  0x5f   : > { %v11850_v31 = vpack.c.bf16 %v706_v27, %v705_v26  ;;  %v11852_v32 = vpack.c.bf16 %v708_v29, %v707_v28  ;;  %v709_v34 = vld [vmem:[#allocation2 + $0x108] sm:$0xff]  ;;  %v710_v35 = vld [vmem:[#allocation2 + $0x110] sm:$0xff]  ;;  %v711_v36 = vld [vmem:[#allocation2 + $0x120] sm:$0xff] }
  0x60   : > { %v712_v37 = vld [vmem:[#allocation2 + $0x128] sm:$0xff]  ;;  %v713_v42 = vld [vmem:[#allocation2 + $0x138] sm:$0xff]  ;;  %v714_v43 = vld [vmem:[#allocation2 + $0x140] sm:$0xff] }
  0x61   : > { %v11860_v41 = vpack.c.bf16 %v712_v37, %v711_v36  ;;  %v715_v44 = vld [vmem:[#allocation2 + $0x150] sm:$0xff]  ;;  %v716_v45 = vld [vmem:[#allocation2 + $0x158] sm:$0xff]  ;;  %v11866_v46 = vpack.c.bf16 %v714_v43, %v713_v42  ;;  %v717_v50 = vld [vmem:[#allocation2 + $0x168] sm:$0xff] }
  0x62   : > { %v11868_v47 = vpack.c.bf16 %v716_v45, %v715_v44  ;;  %v650_v48 = vld [vmem:[%s11709_s30 + $0xf0] sm:$0xff]  ;;  %v651_v49 = vld [vmem:[%s11709_s30 + $0xf8] sm:$0xff]  ;;  %v1234_v52 = vld [vmem:[#allocation2 + $0x2] sm:$0xff] }
  0x63   : > { %683 = vst.msk [vmem:[#allocation2 + $0x181] sm:$0xff] %vm15564_vm0, %v650_v48  ;;  %684 = vst.msk [vmem:[#allocation2 + $0x189] sm:$0xff] %vm15564_vm0, %v651_v49  ;;  %v718_v51 = vld [vmem:[#allocation2 + $0x170] sm:$0xff]  ;;  %v1236_v58 = vld [vmem:[#allocation2 + $0x1a] sm:$0xff] }
  0x64   : > { %9999 = vmatmul.mubr.msk.bf16.gmra.mrb[8].mxu0 %vm15564_vm0, %v11794_v55  ;;  %v1235_v53 = vld [vmem:[#allocation2 + $0xa] sm:$0xff]  ;;  %v11878_v54 = vpack.c.bf16 %v718_v51, %v717_v50  ;;  %v1237_v59 = vld [vmem:[#allocation2 + $0x22] sm:$0xff]  ;;  %v1238_v60 = vld [vmem:[#allocation2 + $0x32] sm:$0xff] }
  0x65   : > { %10002 = vmatprep.mubr.msk.bf16.mxu0 %vm15564_vm0, %v11798_v56  ;;  %v1266_v57 = vpack.c.bf16 %v1235_v53, %v1234_v52  ;;  %v11883_v63 = vpack.c.bf16 %v1237_v59, %v1236_v58  ;;  %v11338_v1 = vld [vmem:[%s15597_s1 + $0x38] sm:$0xff]   ;;  %v1240_v3 = vld [vmem:[#allocation2 + $0x4a] sm:$0xff]  ;;  %v1242_v7 = vld [vmem:[#allocation2 + $0x62] sm:$0xff] }
  0x66   : > { %v1243_v8 = vld [vmem:[#allocation2 + $0x6a] sm:$0xff]  ;;  %v11898_v9 = vld [vmem:[%s15597_s1 + $0x40] sm:$0xff]   ;;  %v1246_v16 = vld [vmem:[#allocation2 + $0x92] sm:$0xff] }
  0x67   : > { %v11902_v14 = vpack.c.bf16 %v1243_v8, %v1242_v7  ;;  %v1245_v15 = vld [vmem:[#allocation2 + $0x82] sm:$0xff]  ;;  %v1247_v17 = vld [vmem:[#allocation2 + $0x9a] sm:$0xff]  ;;  %v1248_v22 = vld [vmem:[#allocation2 + $0xaa] sm:$0xff] }
  0x68   : > { %v11911_v21 = vpack.c.bf16 %v1247_v17, %v1246_v16  ;;  %v1249_v23 = vld [vmem:[#allocation2 + $0xb2] sm:$0xff]  ;;  %v1860_v26 = vld [vmem:[#allocation2 + $0xc1] sm:$0xff]  ;;  %v1861_v27 = vld [vmem:[#allocation2 + $0xc9] sm:$0xff] }
  0x69   : > { %v1250_v28 = vld [vmem:[#allocation2 + $0xc2] sm:$0xff]  ;;  %v1251_v29 = vld [vmem:[#allocation2 + $0xca] sm:$0xff]  ;;  %v1252_v37 = vld [vmem:[#allocation2 + $0xda] sm:$0xff] }
  0x6a   : > { %v11923_v36 = vpack.c.bf16 %v1251_v29, %v1250_v28  ;;  %v1862_v42 = vld [vmem:[#allocation2 + $0xd9] sm:$0xff]  ;;  %v1863_v43 = vld [vmem:[#allocation2 + $0xe1] sm:$0xff]  ;;  %v1864_v48 = vld [vmem:[#allocation2 + $0xf1] sm:$0xff] }
  0x6b   : > { %v1253_v44 = vld [vmem:[#allocation2 + $0xe2] sm:$0xff]  ;;  %v11929_v45 = vpack.c.bf16 %v1863_v43, %v1862_v42  ;;  %v1865_v49 = vld [vmem:[#allocation2 + $0xf9] sm:$0xff]  ;;  %v1256_v58 = vld [vmem:[#allocation2 + $0x10a] sm:$0xff] }
  0x6c   : > { %10003 = vmatmul.mubr.msk.bf16.gmra.mrb[12].mxu0 %vm15564_vm0, %v11804_v61  ;;  %v1254_v50 = vld [vmem:[#allocation2 + $0xf2] sm:$0xff]  ;;  %v1255_v51 = vld [vmem:[#allocation2 + $0xfa] sm:$0xff]  ;;  %v11931_v52 = vpack.c.bf16 %v1865_v49, %v1864_v48  ;;  %v11935_v53 = vpack.c.bf16 %v1253_v44, %v1252_v37  ;;  %v1866_v59 = vld [vmem:[#allocation2 + $0x109] sm:$0xff] }
  0x6d   : > { %10026 = vmatprep.mubr.msk.bf16.mxu0 %vm15564_vm0, %v719_v62  ;;  %v1239_v62 = vld [vmem:[#allocation2 + $0x3a] sm:$0xff]  ;;  %v1258_v7 = vld [vmem:[#allocation2 + $0x122] sm:$0xff]  ;;  %v1259_v8 = vld [vmem:[#allocation2 + $0x12a] sm:$0xff] }
  0x6e   : > { %v11885_v0 = vpack.c.bf16 %v1239_v62, %v1238_v60  ;;  %v1867_v60 = vld [vmem:[#allocation2 + $0x111] sm:$0xff]  ;;  %v11955_v16 = vpack.c.bf16 %v1259_v8, %v1258_v7  ;;  %v1260_v17 = vld [vmem:[#allocation2 + $0x13a] sm:$0xff]  ;;  %v1874_v49 = vld [vmem:[#allocation2 + $0x169] sm:$0xff] }
  0x6f   : > { %v1257_v62 = vld [vmem:[#allocation2 + $0x112] sm:$0xff]  ;;  %v1263_v42 = vld [vmem:[#allocation2 + $0x15a] sm:$0xff] }
  0x70   : > { %v1872_v28 = vld [vmem:[#allocation2 + $0x151] sm:$0xff]  ;;  %v1873_v29 = vld [vmem:[#allocation2 + $0x159] sm:$0xff] }
  0x71   : > { %v1262_v37 = vld [vmem:[#allocation2 + $0x152] sm:$0xff]  ;;  %v11963_v43 = vpack.c.bf16 %v1873_v29, %v1872_v28  ;;  %v11343_v8 = vld [vmem:[%s15597_s1 + $0x60] sm:$0xff]  }
  0x72   : > { %v11971_v48 = vpack.c.bf16 %v1263_v42, %v1262_v37  ;;  %v11342_v7 = vld [vmem:[%s15597_s1 + $0x58] sm:$0xff]  }
  0x73   : > { %v2773_v28 = vld [vmem:[#allocation2 + $0x91] sm:$0xff]  ;;  %v2774_v29 = vld [vmem:[#allocation2 + $0x99] sm:$0xff] }
  0x74   : > { %10027 = vmatmul.mubr.msk.bf16.vlgmr.msra.gmra.mrb[0].mxu0 %vm15564_vm0, %v11809_v4  ;;  %v2801_v42 = vpack.c.bf16 %v2774_v29, %v2773_v28 }
  0x75   : > { %10059 = vmatpush3.bf16.msra.mxu0 %v11335_v38  ;;  %10030 = vmatprep.mubr.msk.bf16.mxu0 %vm15564_vm0, %v11814_v6  ;;  %v11858_v38 = vpack.c.bf16 %v710_v35, %v709_v34  ;;  %v11917_v34 = vpack.c.bf16 %v1861_v27, %v1860_v26  ;;  %v11919_v35 = vpack.c.bf16 %v1249_v23, %v1248_v22  ;;  %v1870_v22 = vld [vmem:[#allocation2 + $0x139] sm:$0xff]  ;;  %v1871_v23 = vld [vmem:[#allocation2 + $0x141] sm:$0xff] }
  0x76   : > { %10060 = vmatprep.subr.bf16.mxu0 %v11336_v5  ;;  %v1261_v26 = vld [vmem:[#allocation2 + $0x142] sm:$0xff]  ;;  %v11961_v27 = vpack.c.bf16 %v1871_v23, %v1870_v22  ;;  %v2771_v23 = vld [vmem:[#allocation2 + $0x79] sm:$0xff] }
  0x77   : > { %10006 = vmatprep.mubr.msk.bf16.mxu1 %vm15564_vm0, %v11917_v34  ;;  %v11967_v44 = vpack.c.bf16 %v1261_v26, %v1260_v17  ;;  %v11346_v17 = vld [vmem:[%s15597_s1 + $0x78] sm:$0xff]   ;;  %v11347_v22 = vld [vmem:[%s15597_s1 + $0x80] sm:$0xff]  }
  0x78   : > { %10007 = vmatmul.mubr.msk.bf16.vlgmr.msra.gmra.mrb[0].mxu1 %vm15564_vm0, %v11929_v45  ;;  %v2772_v26 = vld [vmem:[#allocation2 + $0x81] sm:$0xff] }
  0x79   : > { %10061 = vmatpush3.bf16.msra.mxu0 %v11336_v5  ;;  %v1241_v5 = vld [vmem:[#allocation2 + $0x52] sm:$0xff]  ;;  %10010 = vmatprep.mubr.msk.bf16.mxu1 %vm15564_vm0, %v11931_v52  ;;  %v2800_v37 = vpack.c.bf16 %v2772_v26, %v2771_v23 }
  0x7a   : > { %10094 = vmatprep.subr.bf16.mxu0 %v11821_v11  ;;  %v11900_v10 = vpack.c.bf16 %v1241_v5, %v1240_v3  ;;  %v1868_v3 = vld [vmem:[#allocation2 + $0x121] sm:$0xff]  ;;  %v1869_v5 = vld [vmem:[#allocation2 + $0x129] sm:$0xff] }
  0x7c   : > { %10031 = vmatmul.mubr.msk.bf16.gmra.mrb[4].mxu0 %vm15564_vm0, %v11825_v12 }
  0x7d   : > { %10034 = vmatprep.mubr.msk.bf16.mxu0 %vm15564_vm0, %v11827_v13 }
  0x84   : > { %10035 = vmatmul.mubr.msk.bf16.gmra.mrb[8].mxu0 %vm15564_vm0, %v11834_v18 }
  0x85   : > { %10038 = vmatprep.mubr.msk.bf16.mxu0 %vm15564_vm0, %v11836_v19 }
  0x8c   : > { %10039 = vmatmul.mubr.msk.bf16.gmra.mrb[12].mxu0 %vm15564_vm0, %v11842_v24 }
  0x8d   : > { %10042 = vmatprep.mubr.msk.bf16.mxu0 %vm15564_vm0, %v11844_v25 }
  0x94   : > { %10043 = vmatmul.mubr.msk.bf16.gmra.mrb[16].mxu0 %vm15564_vm0, %v11850_v31 }
  0x95   : > { %10046 = vmatprep.mubr.msk.bf16.mxu0 %vm15564_vm0, %v11852_v32 }
  0x9c   : > { %10047 = vmatmul.mubr.msk.bf16.gmra.mrb[20].mxu0 %vm15564_vm0, %v11858_v38 }
  0x9d   : > { %10050 = vmatprep.mubr.msk.bf16.mxu0 %vm15564_vm0, %v11860_v41 }
  0xa4   : > { %10051 = vmatmul.mubr.msk.bf16.gmra.mrb[24].mxu0 %vm15564_vm0, %v11866_v46 }
  0xa5   : > { %10054 = vmatprep.mubr.msk.bf16.mxu0 %vm15564_vm0, %v11868_v47 }
  0xac   : > { %10055 = vmatmul.mubr.msk.bf16.gmra.mrb[28].mxu0 %vm15564_vm0, %v11878_v54 }
  0xad   : > { %10062 = vmatprep.mubr.msk.bf16.mxu0 %vm15564_vm0, %v1266_v57  ;;  %v11939_v57 = vpack.c.bf16 %v1255_v51, %v1254_v50  ;;  %v1875_v50 = vld [vmem:[#allocation2 + $0x171] sm:$0xff] }
  0xae   : > { %v1264_v51 = vld [vmem:[#allocation2 + $0x16a] sm:$0xff] }
  0xb4   : > { %10063 = vmatmul.mubr.msk.bf16.vlgmr.msra.gmra.mrb[0].mxu0 %vm15564_vm0, %v11883_v63 }
  0xb5   : > { %10095 = vmatpush3.bf16.msra.mxu0 %v11821_v11  ;;  %10066 = vmatprep.mubr.msk.bf16.mxu0 %vm15564_vm0, %v11885_v0  ;;  %v1244_v11 = vld [vmem:[#allocation2 + $0x7a] sm:$0xff] }
  0xb6   : > { %10096 = vmatprep.subr.bf16.mxu0 %v11338_v1  ;;  %v11909_v20 = vpack.c.bf16 %v1245_v15, %v1244_v11  ;;  %v11947_v11 = vpack.c.bf16 %v1869_v5, %v1868_v3  ;;  %v11951_v15 = vpack.c.bf16 %v1257_v62, %v1256_v58  ;;  %v1265_v58 = vld [vmem:[#allocation2 + $0x172] sm:$0xff]  ;;  %v11340_v62 = vld [vmem:[%s15597_s1 + $0x48] sm:$0xff]  }
  0xb7   : > { %v11341_v3 = vld [vmem:[%s15597_s1 + $0x50] sm:$0xff]  }
  0xb9   : > { %10097 = vmatpush3.bf16.msra.mxu0 %v11338_v1  ;;  %v11945_v1 = vpack.c.bf16 %v1867_v60, %v1866_v59  ;;  %v11977_v59 = vpack.c.bf16 %v1875_v50, %v1874_v49  ;;  %v11981_v60 = vpack.c.bf16 %v1265_v58, %v1264_v51  ;;  %v2775_v49 = vld [vmem:[#allocation2 + $0xa9] sm:$0xff]  ;;  %v2776_v50 = vld [vmem:[#allocation2 + $0xb1] sm:$0xff] }
  0xba   : > { %10130 = vmatprep.subr.bf16.mxu0 %v11898_v9  ;;  %v2802_v51 = vpack.c.bf16 %v2776_v50, %v2775_v49 }
  0xbb   : > { %10011 = vmatmul.mubr.msk.bf16.gmra.mrb[4].mxu1 %vm15564_vm0, %v11945_v1 }
  0xbc   : > { %10067 = vmatmul.mubr.msk.bf16.gmra.mrb[4].mxu0 %vm15564_vm0, %v11900_v10  ;;  %10014 = vmatprep.mubr.msk.bf16.mxu1 %vm15564_vm0, %v11947_v11 }
  0xbd   : > { %10070 = vmatprep.mubr.msk.bf16.mxu0 %vm15564_vm0, %v11902_v14 }
  0xc3   : > { %10015 = vmatmul.mubr.msk.bf16.gmra.mrb[8].mxu1 %vm15564_vm0, %v11961_v27 }
  0xc4   : > { %10071 = vmatmul.mubr.msk.bf16.gmra.mrb[8].mxu0 %vm15564_vm0, %v11909_v20  ;;  %10018 = vmatprep.mubr.msk.bf16.mxu1 %vm15564_vm0, %v11963_v43 }
  0xc5   : > { %10074 = vmatprep.mubr.msk.bf16.mxu0 %vm15564_vm0, %v11911_v21 }
  0xcb   : > { %10019 = vmatmul.mubr.msk.bf16.gmra.mrb[12].mxu1 %vm15564_vm0, %v11977_v59 }
  0xcc   : > { %10075 = vmatmul.mubr.msk.bf16.gmra.mrb[12].mxu0 %vm15564_vm0, %v11919_v35 }
  0xcd   : > { %10078 = vmatprep.mubr.msk.bf16.mxu0 %vm15564_vm0, %v11923_v36 }
  0xd4   : > { %10079 = vmatmul.mubr.msk.bf16.gmra.mrb[16].mxu0 %vm15564_vm0, %v11935_v53 }
  0xd5   : > { %10082 = vmatprep.mubr.msk.bf16.mxu0 %vm15564_vm0, %v11939_v57 }
  0xdc   : > { %10083 = vmatmul.mubr.msk.bf16.gmra.mrb[20].mxu0 %vm15564_vm0, %v11951_v15 }
  0xdd   : > { %10086 = vmatprep.mubr.msk.bf16.mxu0 %vm15564_vm0, %v11955_v16 }
  0xe4   : > { %10087 = vmatmul.mubr.msk.bf16.gmra.mrb[24].mxu0 %vm15564_vm0, %v11967_v44 }
  0xe5   : > { %10090 = vmatprep.mubr.msk.bf16.mxu0 %vm15564_vm0, %v11971_v48 }
  0xec   : > { %10091 = vmatmul.mubr.msk.bf16.gmra.mrb[28].mxu0 %vm15564_vm0, %v11981_v60 }
  0xed   : > { %10098 = vmatprep.mubr.msk.bf16.mxu0 %vm15564_vm0, %v11809_v4  ;;  %v1570_v4 = vld [vmem:[#allocation2 + $0x180] sm:$0xff] }
  0xf4   : > { %10099 = vmatmul.mubr.msk.bf16.vlgmr.msra.gmra.mrb[0].mxu0 %vm15564_vm0, %v11814_v6 }
  0xf5   : > { %10131 = vmatpush3.bf16.msra.mxu0 %v11898_v9  ;;  %10102 = vmatprep.mubr.msk.bf16.mxu0 %vm15564_vm0, %v11825_v12  ;;  %v1571_v9 = vld [vmem:[#allocation2 + $0x188] sm:$0xff] }
  0xf6   : > { %10132 = vmatprep.subr.bf16.mxu0 %v11340_v62  ;;  %v12022_v5 = vpack.c.bf16 %v1571_v9, %v1570_v4 }
  0xf9   : > { %10133 = vmatpush3.bf16.msra.mxu0 %v11340_v62 }
  0xfa   : > { %10166 = vmatprep.subr.bf16.mxu0 %v11341_v3 }
  0xfc   : > { %10103 = vmatmul.mubr.msk.bf16.gmra.mrb[4].mxu0 %vm15564_vm0, %v11827_v13 }
  0xfd   : > { %10106 = vmatprep.mubr.msk.bf16.mxu0 %vm15564_vm0, %v11834_v18 }
 0x104   : > { %10107 = vmatmul.mubr.msk.bf16.gmra.mrb[8].mxu0 %vm15564_vm0, %v11836_v19 }
 0x105   : > { %10110 = vmatprep.mubr.msk.bf16.mxu0 %vm15564_vm0, %v11842_v24 }
 0x10c   : > { %10111 = vmatmul.mubr.msk.bf16.gmra.mrb[12].mxu0 %vm15564_vm0, %v11844_v25 }
 0x10d   : > { %10114 = vmatprep.mubr.msk.bf16.mxu0 %vm15564_vm0, %v11850_v31 }
 0x114   : > { %10115 = vmatmul.mubr.msk.bf16.gmra.mrb[16].mxu0 %vm15564_vm0, %v11852_v32 }
 0x115   : > { %10118 = vmatprep.mubr.msk.bf16.mxu0 %vm15564_vm0, %v11858_v38 }
 0x11c   : > { %10119 = vmatmul.mubr.msk.bf16.gmra.mrb[20].mxu0 %vm15564_vm0, %v11860_v41 }
 0x11d   : > { %10122 = vmatprep.mubr.msk.bf16.mxu0 %vm15564_vm0, %v11866_v46 }
 0x124   : > { %10123 = vmatmul.mubr.msk.bf16.gmra.mrb[24].mxu0 %vm15564_vm0, %v11868_v47 }
 0x125   : > { %10126 = vmatprep.mubr.msk.bf16.mxu0 %vm15564_vm0, %v11878_v54 }
 0x12c   : > { %10127 = vmatmul.mubr.msk.bf16.gmra.mrb[28].mxu0 %vm15564_vm0, %v12022_v5 }
 0x12d   : > { %10134 = vmatprep.mubr.msk.bf16.mxu0 %vm15564_vm0, %v11753_v30  ;;  %v1876_v30 = vld [vmem:[#allocation2 + $0x181] sm:$0xff] }
 0x134   : > { %10135 = vmatmul.mubr.msk.bf16.vlgmr.msra.gmra.mrb[0].mxu0 %vm15564_vm0, %v11758_v33  ;;  %v1877_v33 = vld [vmem:[#allocation2 + $0x189] sm:$0xff] }
 0x135   : > { %10167 = vmatpush3.bf16.msra.mxu0 %v11341_v3  ;;  %10138 = vmatprep.mubr.msk.bf16.mxu0 %vm15564_vm0, %v11768_v39  ;;  %v12062_v39 = vpack.c.bf16 %v1877_v33, %v1876_v30 }
 0x136   : > { %10168 = vmatprep.subr.bf16.mxu0 %v11342_v7 }
 0x139   : > { %10169 = vmatpush3.bf16.msra.mxu0 %v11342_v7  ;;  %v12255_v7 = vld [vmem:[%s15601_s4] ss:$0 sm:$0xff]  ;;  %s13554_s4 = sld [smem:[#allocation5 + $0x18]] }
 0x13a   : > { %10202 = vmatprep.subr.bf16.mxu0 %v11343_v8 }
 0x13c   : > { %10139 = vmatmul.mubr.msk.bf16.gmra.mrb[4].mxu0 %vm15564_vm0, %v11770_v40  ;;  %v11344_v40 = vld [vmem:[%s15597_s1 + $0x68] sm:$0xff]  }
 0x13d   : > { %10142 = vmatprep.mubr.msk.bf16.mxu0 %vm15564_vm0, %v11794_v55  ;;  %v11345_v55 = vld [vmem:[%s15597_s1 + $0x70] sm:$0xff]  }
 0x144   : > { %10143 = vmatmul.mubr.msk.bf16.gmra.mrb[8].mxu0 %vm15564_vm0, %v11798_v56  ;;  %v2182_v56 = vld [vmem:[#allocation2 + $0x182] sm:$0xff] }
 0x145   : > { %10146 = vmatprep.mubr.msk.bf16.mxu0 %vm15564_vm0, %v11804_v61  ;;  %v2183_v61 = vld [vmem:[#allocation2 + $0x18a] sm:$0xff] }
 0x14c   : > { %10147 = vmatmul.mubr.msk.bf16.gmra.mrb[12].mxu0 %vm15564_vm0, %v11917_v34 }
 0x14d   : > { %10150 = vmatprep.mubr.msk.bf16.mxu0 %vm15564_vm0, %v11929_v45 }
 0x154   : > { %10151 = vmatmul.mubr.msk.bf16.gmra.mrb[16].mxu0 %vm15564_vm0, %v11931_v52 }
 0x155   : > { %10154 = vmatprep.mubr.msk.bf16.mxu0 %vm15564_vm0, %v11945_v1 }
 0x15c   : > { %10155 = vmatmul.mubr.msk.bf16.gmra.mrb[20].mxu0 %vm15564_vm0, %v11947_v11 }
 0x15d   : > { %10158 = vmatprep.mubr.msk.bf16.mxu0 %vm15564_vm0, %v11961_v27 }
 0x164   : > { %10159 = vmatmul.mubr.msk.bf16.gmra.mrb[24].mxu0 %vm15564_vm0, %v11963_v43 }
 0x165   : > { %10162 = vmatprep.mubr.msk.bf16.mxu0 %vm15564_vm0, %v11977_v59 }
 0x16c   : > { %10163 = vmatmul.mubr.msk.bf16.gmra.mrb[28].mxu0 %vm15564_vm0, %v12062_v39 }
 0x16d   : > { %10170 = vmatprep.mubr.msk.bf16.mxu0 %vm15564_vm0, %v11883_v63  ;;  %v12102_v63 = vpack.c.bf16 %v2183_v61, %v2182_v56 }
 0x174   : > { %10171 = vmatmul.mubr.msk.bf16.vlgmr.msra.gmra.mrb[0].mxu0 %vm15564_vm0, %v11885_v0 }
 0x175   : > { %10203 = vmatpush3.bf16.msra.mxu0 %v11343_v8  ;;  %10174 = vmatprep.mubr.msk.bf16.mxu0 %vm15564_vm0, %v11900_v10 }
 0x176   : > { %10204 = vmatprep.subr.bf16.mxu0 %v11344_v40 }
 0x179   : > { %10205 = vmatpush3.bf16.msra.mxu0 %v11344_v40 }
 0x17a   : > { %10238 = vmatprep.subr.bf16.mxu0 %v11345_v55 }
 0x17c   : > { %10175 = vmatmul.mubr.msk.bf16.gmra.mrb[4].mxu0 %vm15564_vm0, %v11902_v14 }
 0x17d   : > { %10178 = vmatprep.mubr.msk.bf16.mxu0 %vm15564_vm0, %v11909_v20 }
 0x184   : > { %10179 = vmatmul.mubr.msk.bf16.gmra.mrb[8].mxu0 %vm15564_vm0, %v11911_v21 }
 0x185   : > { %10182 = vmatprep.mubr.msk.bf16.mxu0 %vm15564_vm0, %v11919_v35 }
 0x18c   : > { %10183 = vmatmul.mubr.msk.bf16.gmra.mrb[12].mxu0 %vm15564_vm0, %v11923_v36 }
 0x18d   : > { %10186 = vmatprep.mubr.msk.bf16.mxu0 %vm15564_vm0, %v11935_v53 }
 0x194   : > { %10187 = vmatmul.mubr.msk.bf16.gmra.mrb[16].mxu0 %vm15564_vm0, %v11939_v57 }
 0x195   : > { %10190 = vmatprep.mubr.msk.bf16.mxu0 %vm15564_vm0, %v11951_v15 }
 0x19c   : > { %10191 = vmatmul.mubr.msk.bf16.gmra.mrb[20].mxu0 %vm15564_vm0, %v11955_v16 }
 0x19d   : > { %10194 = vmatprep.mubr.msk.bf16.mxu0 %vm15564_vm0, %v11967_v44 }
 0x1a4   : > { %10195 = vmatmul.mubr.msk.bf16.gmra.mrb[24].mxu0 %vm15564_vm0, %v11971_v48 }
 0x1a5   : > { %10198 = vmatprep.mubr.msk.bf16.mxu0 %vm15564_vm0, %v11981_v60 }
 0x1ac   : > { %10199 = vmatmul.mubr.msk.bf16.gmra.mrb[28].mxu0 %vm15564_vm0, %v12102_v63 }
 0x1ad   : > { %10206 = vmatprep.mubr.msk.bf16.mxu0 %vm15564_vm0, %v11814_v6  ;;  %v2489_v6 = vld [vmem:[#allocation2 + $0x198] sm:$0xff] }
 0x1b4   : > { %10207 = vmatmul.mubr.msk.bf16.vlgmr.msra.gmra.mrb[0].mxu0 %vm15564_vm0, %v11825_v12  ;;  %v2490_v12 = vld [vmem:[#allocation2 + $0x1a0] sm:$0xff] }
 0x1b5   : > { %10239 = vmatpush3.bf16.msra.mxu0 %v11345_v55  ;;  %10210 = vmatprep.mubr.msk.bf16.mxu0 %vm15564_vm0, %v11827_v13  ;;  %v2765_v13 = vld [vmem:[#allocation2 + $0x31] sm:$0xff] }
 0x1b6   : > { %10240 = vmatprep.subr.bf16.mxu0 %v11346_v17 }
 0x1b9   : > { %10241 = vmatpush3.bf16.msra.mxu0 %v11346_v17 }
 0x1ba   : > { %10274 = vmatprep.subr.bf16.mxu0 %v11347_v22 }
 0x1bc   : > { %10211 = vmatmul.mubr.msk.bf16.gmra.mrb[4].mxu0 %vm15564_vm0, %v11834_v18  ;;  %v2766_v18 = vld [vmem:[#allocation2 + $0x39] sm:$0xff] }
 0x1bd   : > { %10214 = vmatprep.mubr.msk.bf16.mxu0 %vm15564_vm0, %v11836_v19  ;;  %v2506_v19 = vpack.c.bf16 %v2490_v12, %v2489_v6 }
 0x1c4   : > { %10215 = vmatmul.mubr.msk.bf16.gmra.mrb[8].mxu0 %vm15564_vm0, %v11842_v24  ;;  %v2797_v24 = vpack.c.bf16 %v2766_v18, %v2765_v13 }
 0x1c5   : > { %10218 = vmatprep.mubr.msk.bf16.mxu0 %vm15564_vm0, %v11844_v25  ;;  %v11349_v25 = vld [vmem:[%s15599_s2 + $0x10] sm:$0xff]  }
 0x1c6   : > { %10310 = vmatprep.subr.bf16.mxu1 %v11349_v25 }
 0x1c7   : > { %10311 = vmatpush3.bf16.msra.mxu1 %v11349_v25 }
 0x1cc   : > { %10219 = vmatmul.mubr.msk.bf16.gmra.mrb[12].mxu0 %vm15564_vm0, %v11850_v31  ;;  %v2767_v31 = vld [vmem:[#allocation2 + $0x49] sm:$0xff] }
 0x1cd   : > { %10222 = vmatprep.mubr.msk.bf16.mxu0 %vm15564_vm0, %v11852_v32  ;;  %v2768_v32 = vld [vmem:[#allocation2 + $0x51] sm:$0xff] }
 0x1d4   : > { %10223 = vmatmul.mubr.msk.bf16.gmra.mrb[16].mxu0 %vm15564_vm0, %v11858_v38  ;;  %v2769_v38 = vld [vmem:[#allocation2 + $0x61] sm:$0xff] }
 0x1d5   : > { %10226 = vmatprep.mubr.msk.bf16.mxu0 %vm15564_vm0, %v11860_v41  ;;  %v2770_v41 = vld [vmem:[#allocation2 + $0x69] sm:$0xff] }
 0x1dc   : > { %10227 = vmatmul.mubr.msk.bf16.gmra.mrb[20].mxu0 %vm15564_vm0, %v11866_v46  ;;  %v2798_v46 = vpack.c.bf16 %v2768_v32, %v2767_v31 }
 0x1dd   : > { %10230 = vmatprep.mubr.msk.bf16.mxu0 %vm15564_vm0, %v11868_v47  ;;  %v2799_v47 = vpack.c.bf16 %v2770_v41, %v2769_v38 }
 0x1e4   : > { %10231 = vmatmul.mubr.msk.bf16.gmra.mrb[24].mxu0 %vm15564_vm0, %v11878_v54  ;;  %v11348_v54 = vld [vmem:[%s15597_s1 + $0x88] sm:$0xff]   ;;  %s13533_s1 = sld [smem:[#allocation5 + $0x12]] }
 0x1e5   : > { %10234 = vmatprep.mubr.msk.bf16.mxu0 %vm15564_vm0, %v12022_v5  ;;  %v12250_v5 = vld [vmem:[%s15600_s3] ss:$0 sm:$0xff]  ;;  %s15519_s3 = smov 126  }
 0x1ec   : > { %10235 = vmatmul.mubr.msk.bf16.gmra.mrb[28].mxu0 %vm15564_vm0, %v2506_v19 }
 0x1ed   : > { %10242 = vmatprep.mubr.msk.bf16.mxu0 %vm15564_vm0, %v2797_v24 }
 0x1f4   : > { %10243 = vmatmul.mubr.msk.bf16.vlgmr.msra.gmra.mrb[0].mxu0 %vm15564_vm0, %v2798_v46 }
 0x1f5   : > { %10275 = vmatpush3.bf16.msra.mxu0 %v11347_v22  ;;  %10246 = vmatprep.mubr.msk.bf16.mxu0 %vm15564_vm0, %v2799_v47 }
 0x1f6   : > { %10276 = vmatprep.subr.bf16.mxu0 %v11348_v54 }
 0x1f9   : > { %10277 = vmatpush3.bf16.msra.mxu0 %v11348_v54 }
 0x1fc   : > { %10247 = vmatmul.mubr.msk.bf16.gmra.mrb[4].mxu0 %vm15564_vm0, %v2800_v37 }
 0x1fd   : > { %10250 = vmatprep.mubr.msk.bf16.mxu0 %vm15564_vm0, %v2801_v42 }
 0x204   : > { %10251 = vmatmul.mubr.msk.bf16.gmra.mrb[8].mxu0 %vm15564_vm0, %v2802_v51 }
 0x205   : > { %10254 = vmatprep.mubr.msk.bf16.mxu0 %vm15564_vm0, %v11917_v34  ;;  %v2795_v34 = vld [vmem:[#allocation2 + $0x199] sm:$0xff] }
 0x20c   : > { %10255 = vmatmul.mubr.msk.bf16.gmra.mrb[12].mxu0 %vm15564_vm0, %v11929_v45  ;;  %v2796_v45 = vld [vmem:[#allocation2 + $0x1a1] sm:$0xff] }
 0x20d   : > { %10258 = vmatprep.mubr.msk.bf16.mxu0 %vm15564_vm0, %v11931_v52  ;;  %v2812_v52 = vpack.c.bf16 %v2796_v45, %v2795_v34 }
 0x214   : > { %10259 = vmatmul.mubr.msk.bf16.gmra.mrb[16].mxu0 %vm15564_vm0, %v11945_v1 }
 0x215   : > { %10262 = vmatprep.mubr.msk.bf16.mxu0 %vm15564_vm0, %v11947_v11 }
 0x21c   : > { %10263 = vmatmul.mubr.msk.bf16.gmra.mrb[20].mxu0 %vm15564_vm0, %v11961_v27 }
 0x21d   : > { %10266 = vmatprep.mubr.msk.bf16.mxu0 %vm15564_vm0, %v11963_v43 }
 0x224   : > { %10267 = vmatmul.mubr.msk.bf16.gmra.mrb[24].mxu0 %vm15564_vm0, %v11977_v59 }
 0x225   : > { %10270 = vmatprep.mubr.msk.bf16.mxu0 %vm15564_vm0, %v12062_v39 }
 0x22c   : > { %10271 = vmatmul.mubr.msk.bf16.gmra.mrb[28].mxu0 %vm15564_vm0, %v2812_v52 }
 0x22d   : > { %10278 = vmatprep.mubr.msk.bf16.mxu0 %vm15564_vm0, %v11885_v0  ;;  %v3101_v0 = vld [vmem:[#allocation2 + $0x19a] sm:$0xff] }
 0x234   : > { %10279 = vmatmul.mubr.msk.bf16.vlgmr.msra.gmra.mrb[0].mxu0 %vm15564_vm0, %v11900_v10  ;;  %v3102_v10 = vld [vmem:[#allocation2 + $0x1a2] sm:$0xff] }
 0x235   : > { %10282 = vmatprep.mubr.msk.bf16.mxu0 %vm15564_vm0, %v11902_v14  ;;  %v3118_v14 = vpack.c.bf16 %v3102_v10, %v3101_v0 }
 0x23c   : > { %10283 = vmatmul.mubr.msk.bf16.gmra.mrb[4].mxu0 %vm15564_vm0, %v11909_v20  ;;  %v11350_v20 = vld [vmem:[%s15599_s2 + $0x18] sm:$0xff]  }
 0x23d   : > { %10286 = vmatprep.mubr.msk.bf16.mxu0 %vm15564_vm0, %v11911_v21  ;;  %10312 = vmatprep.subr.bf16.mxu1 %v11350_v20  ;;  %v3571_v21 = vld [vmem:[#allocation2 + $0x1] sm:$0xff] }
 0x23e   : > { %10313 = vmatpush3.bf16.msra.mxu1 %v11350_v20 }
 0x244   : > { %10287 = vmatmul.mubr.msk.bf16.gmra.mrb[8].mxu0 %vm15564_vm0, %v11919_v35  ;;  %v3572_v35 = vld [vmem:[#allocation2 + $0x9] sm:$0xff] }
 0x245   : > { %10290 = vmatprep.mubr.msk.bf16.mxu0 %vm15564_vm0, %v11923_v36  ;;  %v3603_v36 = vpack.c.bf16 %v3572_v35, %v3571_v21  ;;  %v11352_v35 = vld [vmem:[%s15599_s2 + $0x8] sm:$0xff]  }
 0x247   : > { %10314 = vmatprep.mubr.msk.bf16.mxu1 %vm15564_vm0, %v3603_v36 }
 0x24c   : > { %10291 = vmatmul.mubr.msk.bf16.gmra.mrb[12].mxu0 %vm15564_vm0, %v11935_v53  ;;  %v12209_v53 = vpop.f32.mrb[0].mxu1 }
 0x24d   : > { %10294 = vmatprep.mubr.msk.bf16.mxu0 %vm15564_vm0, %v11939_v57  ;;  %v12211_v57 = vpop.f32.mrb[1].mxu1 }
 0x24e   : > { %v12213_v1 = vpop.f32.mrb[2].mxu1 }
 0x24f   : > { %v12215_v11 = vpop.f32.mrb[3].mxu1 }
 0x254   : > { %10295 = vmatmul.mubr.msk.bf16.gmra.mrb[16].mxu0 %vm15564_vm0, %v11951_v15  ;;  %v12220_v15 = vld [vmem:[%s15599_s2] sm:$0xff]  }
 0x255   : > { %10298 = vmatprep.mubr.msk.bf16.mxu0 %vm15564_vm0, %v11955_v16  ;;  %10346 = vmatprep.subr.bf16.mxu1 %v12220_v15  ;;  %v12223_v16 = vpop.f32.mrb[4].mxu1 }
 0x256   : > { %v12225_v27 = vpop.f32.mrb[5].mxu1 }
 0x257   : > { %v12227_v43 = vpop.f32.mrb[6].mxu1 }
 0x25c   : > { %10299 = vmatmul.mubr.msk.bf16.gmra.mrb[20].mxu0 %vm15564_vm0, %v11967_v44  ;;  %v12229_v44 = vpop.f32.mrb[7].mxu1 }
 0x25d   : > { %10302 = vmatprep.mubr.msk.bf16.mxu0 %vm15564_vm0, %v11971_v48  ;;  %v12231_v48 = vpop.f32.mrb[8].mxu1 }
 0x25e   : > { %v12233_v58 = vpop.f32.mrb[9].mxu1 }
 0x25f   : > { %v12235_v59 = vpop.f32.mrb[10].mxu1 }
 0x264   : > { %10303 = vmatmul.mubr.msk.bf16.gmra.mrb[24].mxu0 %vm15564_vm0, %v11981_v60  ;;  %v12237_v60 = vpop.f32.mrb[11].mxu1 }
 0x265   : > { %10306 = vmatprep.mubr.msk.bf16.mxu0 %vm15564_vm0, %v12102_v63  ;;  %v12239_v62 = vpop.f32.mrb[12].mxu1 }
 0x266   : > { %v12241_v3 = vpop.f32.mrb[13].mxu1 }
 0x267   : > { %v12243_v4 = vpop.f32.mrb[14].mxu1 }
 0x268   : > { %v12245_v9 = vpop.f32.mrb[15].mxu1 }
 0x26c   : > { %10307 = vmatmul.mubr.msk.bf16.gmra.mrb[28].mxu0 %vm15564_vm0, %v3118_v14 }
 0x307   : > { %v10280_v8 = vpop.f32.mrb[0].mxu0 }
 0x308   : > { %v3385_v30 = vmul.f32 %v10280_v8, %v12250_v5  ;;  %v3218_v33 = vpop.f32.mrb[1].mxu0 }
 0x309   : > { %v3383_v39 = vmul.f32 %v12250_v5, %v3218_v33  ;;  %v10281_v40 = vpop.f32.mrb[2].mxu0 }
 0x30a   : > { %v3423_v55 = vadd.f32 %v12255_v7, %v3385_v30  ;;  %v3386_v56 = vmul.f32 %v10281_v40, %v12250_v5  ;;  %v3221_v61 = vpop.f32.mrb[3].mxu0 }
 0x30b   : > { %v3421_v63 = vadd.f32 %v12255_v7, %v3383_v39  ;;  %v3384_v17 = vmul.f32 %v12250_v5, %v3221_v61 }
 0x30c   : > { %v3455_v22 = vmax.f32 %v3423_v55, 0.0  ;;  %v3424_v6 = vadd.f32 %v12255_v7, %v3386_v56 }
 0x30d   : > { %v3453_v12 = vmax.f32 %v3421_v63, 0.0  ;;  %v3422_v13 = vadd.f32 %v12255_v7, %v3384_v17  ;;  %v12304_v17 = vld [vmem:[%s15599_s2 + $0x20] sm:$0xff]  }
 0x30e   : > { %3487 = vst.msk [vmem:[#allocation2 + $0x31] sm:$0xff] %vm15564_vm0, %v3455_v22  ;;  %v3456_v18 = vmax.f32 %v3424_v6, 0.0 }
 0x30f   : > { %3485 = vst.msk [vmem:[#allocation2 + $0x19] sm:$0xff] %vm15564_vm0, %v3453_v12  ;;  %v3454_v19 = vmax.f32 %v3422_v13, 0.0  ;;  %v10284_v24 = vpop.f32.mrb[4].mxu0 }
 0x310   : > { %3488 = vst.msk [vmem:[#allocation2 + $0x39] sm:$0xff] %vm15564_vm0, %v3456_v18  ;;  %v3389_v25 = vmul.f32 %v10284_v24, %v12250_v5  ;;  %v3234_v31 = vpop.f32.mrb[5].mxu0 }
 0x311   : > { %3486 = vst.msk [vmem:[#allocation2 + $0x21] sm:$0xff] %vm15564_vm0, %v3454_v19  ;;  %v3387_v32 = vmul.f32 %v12250_v5, %v3234_v31  ;;  %v10285_v38 = vpop.f32.mrb[6].mxu0 }
 0x312   : > { %v3427_v41 = vadd.f32 %v12255_v7, %v3389_v25  ;;  %v3390_v46 = vmul.f32 %v10285_v38, %v12250_v5  ;;  %v3237_v47 = vpop.f32.mrb[7].mxu0 }
 0x313   : > { %v3425_v54 = vadd.f32 %v12255_v7, %v3387_v32  ;;  %v3388_v23 = vmul.f32 %v12250_v5, %v3237_v47 }
 0x314   : > { %v3459_v26 = vmax.f32 %v3427_v41, 0.0  ;;  %v3428_v28 = vadd.f32 %v12255_v7, %v3390_v46 }
 0x315   : > { %v3457_v29 = vmax.f32 %v3425_v54, 0.0  ;;  %v3426_v37 = vadd.f32 %v12255_v7, %v3388_v23  ;;  %v3575_v21 = vld [vmem:[#allocation2 + $0x31] sm:$0xff] }
 0x316   : > { %3491 = vst.msk [vmem:[#allocation2 + $0x61] sm:$0xff] %vm15564_vm0, %v3459_v26  ;;  %v3460_v42 = vmax.f32 %v3428_v28, 0.0  ;;  %v3573_v52 = vld [vmem:[#allocation2 + $0x19] sm:$0xff] }
 0x317   : > { %3489 = vst.msk [vmem:[#allocation2 + $0x49] sm:$0xff] %vm15564_vm0, %v3457_v29  ;;  %v3458_v49 = vmax.f32 %v3426_v37, 0.0  ;;  %v10288_v50 = vpop.f32.mrb[8].mxu0  ;;  %v3576_v51 = vld [vmem:[#allocation2 + $0x39] sm:$0xff] }
 0x318   : > { %3492 = vst.msk [vmem:[#allocation2 + $0x69] sm:$0xff] %vm15564_vm0, %v3460_v42  ;;  %v3393_v34 = vmul.f32 %v10288_v50, %v12250_v5  ;;  %v3250_v45 = vpop.f32.mrb[9].mxu0  ;;  %v3574_v0 = vld [vmem:[#allocation2 + $0x21] sm:$0xff]  ;;  %v12290_v33 = vpack.c.bf16 %v3576_v51, %v3575_v21 }
 0x319   : > { %3490 = vst.msk [vmem:[#allocation2 + $0x51] sm:$0xff] %vm15564_vm0, %v3458_v49  ;;  %v3391_v10 = vmul.f32 %v12250_v5, %v3250_v45  ;;  %v10289_v14 = vpop.f32.mrb[10].mxu0  ;;  %v12283_v20 = vpack.c.bf16 %v3574_v0, %v3573_v52 }
 0x31a   : > { %v3431_v36 = vadd.f32 %v12255_v7, %v3393_v34  ;;  %v3394_v8 = vmul.f32 %v10289_v14, %v12250_v5  ;;  %v3253_v30 = vpop.f32.mrb[11].mxu0 }
 0x31b   : > { %v3429_v39 = vadd.f32 %v12255_v7, %v3391_v10  ;;  %v3392_v40 = vmul.f32 %v12250_v5, %v3253_v30  ;;  %10315 = vmatmul.mubr.msk.bf16.vlgmr.msra.gmra.mrb[16].mxu1 %vm15564_vm0, %v12283_v20 }
 0x31c   : > { %v3463_v55 = vmax.f32 %v3431_v36, 0.0  ;;  %v3432_v56 = vadd.f32 %v12255_v7, %v3394_v8  ;;  %10318 = vmatprep.mubr.msk.bf16.mxu1 %vm15564_vm0, %v12290_v33  ;;  %10347 = vmatpush3.bf16.msra.mxu1 %v12220_v15 }
 0x31d   : > { %v3461_v61 = vmax.f32 %v3429_v39, 0.0  ;;  %v3430_v63 = vadd.f32 %v12255_v7, %v3392_v40  ;;  %10348 = vmatprep.subr.bf16.mxu1 %v11352_v35  ;;  %v3579_v38 = vld [vmem:[#allocation2 + $0x61] sm:$0xff] }
 0x31e   : > { %3495 = vst.msk [vmem:[#allocation2 + $0x91] sm:$0xff] %vm15564_vm0, %v3463_v55  ;;  %v3464_v22 = vmax.f32 %v3432_v56, 0.0  ;;  %v3577_v19 = vld [vmem:[#allocation2 + $0x49] sm:$0xff] }
 0x31f   : > { %3493 = vst.msk [vmem:[#allocation2 + $0x79] sm:$0xff] %vm15564_vm0, %v3461_v61  ;;  %v3462_v6 = vmax.f32 %v3430_v63, 0.0  ;;  %v10292_v12 = vpop.f32.mrb[12].mxu0  ;;  %v3580_v13 = vld [vmem:[#allocation2 + $0x69] sm:$0xff] }
 0x320   : > { %3496 = vst.msk [vmem:[#allocation2 + $0x99] sm:$0xff] %vm15564_vm0, %v3464_v22  ;;  %v3397_v15 = vmul.f32 %v10292_v12, %v12250_v5  ;;  %v3266_v18 = vpop.f32.mrb[13].mxu0  ;;  %v3578_v24 = vld [vmem:[#allocation2 + $0x51] sm:$0xff]  ;;  %10349 = vmatpush3.bf16.msra.mxu1 %v11352_v35  ;;  %v12317_v54 = vpack.c.bf16 %v3580_v13, %v3579_v38 }
 0x321   : > { %3494 = vst.msk [vmem:[#allocation2 + $0x81] sm:$0xff] %vm15564_vm0, %v3462_v6  ;;  %v3395_v25 = vmul.f32 %v12250_v5, %v3266_v18  ;;  %v10293_v31 = vpop.f32.mrb[14].mxu0  ;;  %v12312_v32 = vpack.c.bf16 %v3578_v24, %v3577_v19  ;;  %10382 = vmatprep.subr.bf16.mxu1 %v12304_v17 }
 0x322   : > { %v3435_v41 = vadd.f32 %v12255_v7, %v3397_v15  ;;  %v3398_v46 = vmul.f32 %v10293_v31, %v12250_v5  ;;  %v3269_v47 = vpop.f32.mrb[15].mxu0 }
 0x323   : > { %v3433_v23 = vadd.f32 %v12255_v7, %v3395_v25  ;;  %v3396_v26 = vmul.f32 %v12250_v5, %v3269_v47  ;;  %10319 = vmatmul.mubr.msk.bf16.gmra.mrb[20].mxu1 %vm15564_vm0, %v12312_v32 }
 0x324   : > { %v3467_v28 = vmax.f32 %v3435_v41, 0.0  ;;  %v3436_v29 = vadd.f32 %v12255_v7, %v3398_v46  ;;  %10322 = vmatprep.mubr.msk.bf16.mxu1 %vm15564_vm0, %v12317_v54 }
 0x325   : > { %v3465_v37 = vmax.f32 %v3433_v23, 0.0  ;;  %v3434_v42 = vadd.f32 %v12255_v7, %v3396_v26  ;;  %v3583_v36 = vld [vmem:[#allocation2 + $0x91] sm:$0xff] }
 0x326   : > { %3499 = vst.msk [vmem:[#allocation2 + $0xc1] sm:$0xff] %vm15564_vm0, %v3467_v28  ;;  %v3468_v49 = vmax.f32 %v3436_v29, 0.0  ;;  %v3581_v0 = vld [vmem:[#allocation2 + $0x79] sm:$0xff] }
 0x327   : > { %3497 = vst.msk [vmem:[#allocation2 + $0xa9] sm:$0xff] %vm15564_vm0, %v3465_v37  ;;  %v3466_v50 = vmax.f32 %v3434_v42, 0.0  ;;  %v10296_v51 = vpop.f32.mrb[16].mxu0  ;;  %v3584_v34 = vld [vmem:[#allocation2 + $0x99] sm:$0xff] }
 0x328   : > { %3500 = vst.msk [vmem:[#allocation2 + $0xc9] sm:$0xff] %vm15564_vm0, %v3468_v49  ;;  %v10758_v45 = vadd.f32 %v10296_v51, %v12209_v53  ;;  %v3282_v52 = vpop.f32.mrb[17].mxu0  ;;  %v3582_v10 = vld [vmem:[#allocation2 + $0x81] sm:$0xff]  ;;  %v12337_v40 = vpack.c.bf16 %v3584_v34, %v3583_v36 }
 0x329   : > { %3498 = vst.msk [vmem:[#allocation2 + $0xb1] sm:$0xff] %vm15564_vm0, %v3466_v50  ;;  %v10759_v14 = vadd.f32 %v3282_v52, %v12211_v57  ;;  %v10297_v21 = vpop.f32.mrb[18].mxu0  ;;  %v12333_v35 = vpack.c.bf16 %v3582_v10, %v3581_v0 }
 0x32a   : > { %v3401_v8 = vmul.f32 %v10758_v45, %v12250_v5  ;;  %v10760_v30 = vadd.f32 %v10297_v21, %v12213_v1  ;;  %v3285_v39 = vpop.f32.mrb[19].mxu0 }
 0x32b   : > { %v3399_v53 = vmul.f32 %v10759_v14, %v12250_v5  ;;  %v10761_v55 = vadd.f32 %v3285_v39, %v12215_v11  ;;  %10323 = vmatmul.mubr.msk.bf16.gmra.mrb[24].mxu1 %vm15564_vm0, %v12333_v35 }
 0x32c   : > { %v3439_v57 = vadd.f32 %v12255_v7, %v3401_v8  ;;  %v3402_v56 = vmul.f32 %v10760_v30, %v12250_v5  ;;  %10326 = vmatprep.mubr.msk.bf16.mxu1 %vm15564_vm0, %v12337_v40 }
 0x32d   : > { %v3437_v61 = vadd.f32 %v12255_v7, %v3399_v53  ;;  %v3400_v1 = vmul.f32 %v10761_v55, %v12250_v5  ;;  %v3587_v47 = vld [vmem:[#allocation2 + $0xc1] sm:$0xff] }
 0x32e   : > { %v3471_v63 = vmax.f32 %v3439_v57, 0.0  ;;  %v3440_v22 = vadd.f32 %v12255_v7, %v3402_v56  ;;  %v3585_v24 = vld [vmem:[#allocation2 + $0xa9] sm:$0xff] }
 0x32f   : > { %v3469_v6 = vmax.f32 %v3437_v61, 0.0  ;;  %v3438_v11 = vadd.f32 %v12255_v7, %v3400_v1  ;;  %v10300_v12 = vpop.f32.mrb[20].mxu0  ;;  %v3588_v13 = vld [vmem:[#allocation2 + $0xc9] sm:$0xff] }
 0x330   : > { %3503 = vst.msk [vmem:[#allocation2 + $0xf1] sm:$0xff] %vm15564_vm0, %v3471_v63  ;;  %v3472_v15 = vmax.f32 %v3440_v22, 0.0  ;;  %v10762_v18 = vadd.f32 %v10300_v12, %v12223_v16  ;;  %v3298_v19 = vpop.f32.mrb[21].mxu0  ;;  %v3586_v25 = vld [vmem:[#allocation2 + $0xb1] sm:$0xff]  ;;  %v12360_v16 = vpack.c.bf16 %v3588_v13, %v3587_v47 }
 0x331   : > { %3501 = vst.msk [vmem:[#allocation2 + $0xd9] sm:$0xff] %vm15564_vm0, %v3469_v6  ;;  %v3470_v31 = vmax.f32 %v3438_v11, 0.0  ;;  %v10763_v38 = vadd.f32 %v3298_v19, %v12225_v27  ;;  %v10301_v41 = vpop.f32.mrb[22].mxu0  ;;  %v12355_v46 = vpack.c.bf16 %v3586_v25, %v3585_v24 }
 0x332   : > { %3504 = vst.msk [vmem:[#allocation2 + $0xf9] sm:$0xff] %vm15564_vm0, %v3472_v15  ;;  %v3405_v23 = vmul.f32 %v10762_v18, %v12250_v5  ;;  %v10764_v26 = vadd.f32 %v10301_v41, %v12227_v43  ;;  %v3301_v28 = vpop.f32.mrb[23].mxu0 }
 0x333   : > { %3502 = vst.msk [vmem:[#allocation2 + $0xe1] sm:$0xff] %vm15564_vm0, %v3470_v31  ;;  %v3403_v29 = vmul.f32 %v10763_v38, %v12250_v5  ;;  %v10765_v37 = vadd.f32 %v3301_v28, %v12229_v44  ;;  %10327 = vmatmul.mubr.msk.bf16.gmra.mrb[28].mxu1 %vm15564_vm0, %v12355_v46 }
 0x334   : > { %v3443_v27 = vadd.f32 %v12255_v7, %v3405_v23  ;;  %v3406_v42 = vmul.f32 %v10764_v26, %v12250_v5  ;;  %10330 = vmatprep.mubr.msk.bf16.mxu1 %vm15564_vm0, %v12360_v16 }
 0x335   : > { %v3441_v43 = vadd.f32 %v12255_v7, %v3403_v29  ;;  %v3404_v49 = vmul.f32 %v10765_v37, %v12250_v5 }
 0x336   : > { %v3475_v50 = vmax.f32 %v3443_v27, 0.0  ;;  %v3444_v51 = vadd.f32 %v12255_v7, %v3406_v42 }
 0x337   : > { %v3473_v34 = vmax.f32 %v3441_v43, 0.0  ;;  %v3442_v44 = vadd.f32 %v12255_v7, %v3404_v49  ;;  %v10304_v45 = vpop.f32.mrb[24].mxu0 }
 0x338   : > { %3507 = vst.msk [vmem:[#allocation2 + $0x121] sm:$0xff] %vm15564_vm0, %v3475_v50  ;;  %v3476_v52 = vmax.f32 %v3444_v51, 0.0  ;;  %v10766_v0 = vadd.f32 %v10304_v45, %v12231_v48  ;;  %v3314_v10 = vpop.f32.mrb[25].mxu0  ;;  %v3589_v55 = vld [vmem:[#allocation2 + $0xd9] sm:$0xff] }
 0x339   : > { %3505 = vst.msk [vmem:[#allocation2 + $0x109] sm:$0xff] %vm15564_vm0, %v3473_v34  ;;  %v3474_v14 = vmax.f32 %v3442_v44, 0.0  ;;  %v10767_v21 = vadd.f32 %v3314_v10, %v12233_v58  ;;  %v10305_v36 = vpop.f32.mrb[26].mxu0  ;;  %v3592_v8 = vld [vmem:[#allocation2 + $0xf9] sm:$0xff]  ;;  %v3591_v58 = vld [vmem:[#allocation2 + $0xf1] sm:$0xff] }
 0x33a   : > { %3508 = vst.msk [vmem:[#allocation2 + $0x129] sm:$0xff] %vm15564_vm0, %v3476_v52  ;;  %v3409_v30 = vmul.f32 %v10766_v0, %v12250_v5  ;;  %v10768_v39 = vadd.f32 %v10305_v36, %v12235_v59  ;;  %v3317_v53 = vpop.f32.mrb[27].mxu0  ;;  %v3590_v57 = vld [vmem:[#allocation2 + $0xe1] sm:$0xff]  ;;  %v12389_v22 = vpack.c.bf16 %v3592_v8, %v3591_v58 }
 0x33b   : > { %3506 = vst.msk [vmem:[#allocation2 + $0x111] sm:$0xff] %vm15564_vm0, %v3474_v14  ;;  %v3407_v48 = vmul.f32 %v10767_v21, %v12250_v5  ;;  %v10769_v56 = vadd.f32 %v3317_v53, %v12237_v60  ;;  %v12385_v61 = vpack.c.bf16 %v3590_v57, %v3589_v55  ;;  %v3520_v8 = vld [vmem:[#allocation2 + $0x8] sm:$0xff]  ;;  %v3522_v57 = vld [vmem:[#allocation2 + $0x20] sm:$0xff] }
 0x33c   : > { %v3447_v1 = vadd.f32 %v12255_v7, %v3409_v30  ;;  %v3410_v63 = vmul.f32 %v10768_v39, %v12250_v5 }
 0x33d   : > { %v3445_v59 = vadd.f32 %v12255_v7, %v3407_v48  ;;  %v3408_v6 = vmul.f32 %v10769_v56, %v12250_v5  ;;  %10331 = vmatmul.mubr.msk.bf16.gmra.mrb[32].mxu1 %vm15564_vm0, %v12385_v61  ;;  %v3524_v48 = vld [vmem:[#allocation2 + $0x38] sm:$0xff] }
 0x33e   : > { %v3479_v11 = vmax.f32 %v3447_v1, 0.0  ;;  %v3448_v12 = vadd.f32 %v12255_v7, %v3410_v63  ;;  %10334 = vmatprep.mubr.msk.bf16.mxu1 %vm15564_vm0, %v12389_v22  ;;  %v3521_v56 = vld [vmem:[#allocation2 + $0x18] sm:$0xff]  ;;  %v3523_v1 = vld [vmem:[#allocation2 + $0x30] sm:$0xff]  ;;  %v11354_v63 = vld [vmem:[%s15599_s2 + $0x28] sm:$0xff]  }
 0x33f   : > { %v3477_v60 = vmax.f32 %v3445_v59, 0.0  ;;  %v3446_v13 = vadd.f32 %v12255_v7, %v3408_v6  ;;  %v10308_v15 = vpop.f32.mrb[28].mxu0  ;;  %v12440_v58 = vpack.c.bf16 %v3522_v57, %v3521_v56  ;;  %v12445_v59 = vpack.c.bf16 %v3524_v48, %v3523_v1  ;;  %v12455_v6 = vld [vmem:[%s15599_s2 + $0x30] sm:$0xff]   ;;  %v4068_v56 = vld [vmem:[#allocation2 + $0x1a] sm:$0xff]  ;;  %v4069_v1 = vld [vmem:[#allocation2 + $0x22] sm:$0xff] }
 0x340   : > { %3511 = vst.msk [vmem:[#allocation2 + $0x151] sm:$0xff] %vm15564_vm0, %v3479_v11  ;;  %v3480_v18 = vmax.f32 %v3448_v12, 0.0  ;;  %v10770_v19 = vadd.f32 %v10308_v15, %v12239_v62  ;;  %v3330_v24 = vpop.f32.mrb[29].mxu0  ;;  %v3593_v28 = vld [vmem:[#allocation2 + $0x109] sm:$0xff]  ;;  %v3527_v15 = vld [vmem:[#allocation2 + $0x60] sm:$0xff] }
 0x341   : > { %3509 = vst.msk [vmem:[#allocation2 + $0x139] sm:$0xff] %vm15564_vm0, %v3477_v60  ;;  %v3478_v25 = vmax.f32 %v3446_v13, 0.0  ;;  %v10771_v31 = vadd.f32 %v3330_v24, %v12241_v3  ;;  %v10309_v38 = vpop.f32.mrb[30].mxu0  ;;  %v3596_v41 = vld [vmem:[#allocation2 + $0x129] sm:$0xff]  ;;  %v3595_v3 = vld [vmem:[#allocation2 + $0x121] sm:$0xff]  ;;  %v3529_v24 = vld [vmem:[#allocation2 + $0x78] sm:$0xff] }
 0x342   : > { %3512 = vst.msk [vmem:[#allocation2 + $0x159] sm:$0xff] %vm15564_vm0, %v3480_v18  ;;  %v3413_v47 = vmul.f32 %v10770_v19, %v12250_v5  ;;  %v10772_v23 = vadd.f32 %v10309_v38, %v12243_v4  ;;  %v3333_v26 = vpop.f32.mrb[31].mxu0  ;;  %v3594_v29 = vld [vmem:[#allocation2 + $0x111] sm:$0xff]  ;;  %v12413_v49 = vpack.c.bf16 %v3596_v41, %v3595_v3  ;;  %v3528_v12 = vld [vmem:[#allocation2 + $0x68] sm:$0xff] }
 0x343   : > { %3510 = vst.msk [vmem:[#allocation2 + $0x141] sm:$0xff] %vm15564_vm0, %v3478_v25  ;;  %v3411_v62 = vmul.f32 %v10771_v31, %v12250_v5  ;;  %v10773_v37 = vadd.f32 %v3333_v26, %v12245_v9  ;;  %v12409_v27 = vpack.c.bf16 %v3594_v29, %v3593_v28  ;;  %v3526_v11 = vld [vmem:[#allocation2 + $0x50] sm:$0xff]  ;;  %v3525_v60 = vld [vmem:[#allocation2 + $0x48] sm:$0xff]  ;;  %v12460_v18 = vpack.c.bf16 %v3528_v12, %v3527_v15  ;;  %v3532_v19 = vld [vmem:[#allocation2 + $0x98] sm:$0xff] }
 0x344   : > { %v3451_v42 = vadd.f32 %v12255_v7, %v3413_v47  ;;  %v3414_v43 = vmul.f32 %v10772_v23, %v12250_v5  ;;  %v12457_v13 = vpack.c.bf16 %v3526_v11, %v3525_v60  ;;  %v3531_v31 = vld [vmem:[#allocation2 + $0x90] sm:$0xff]  ;;  %v3536_v47 = vld [vmem:[#allocation2 + $0xc8] sm:$0xff]  ;;  %v3535_v28 = vld [vmem:[#allocation2 + $0xc0] sm:$0xff]  ;;  %v12511_v12 = vpack.c.bf16 %v4069_v1, %v4068_v56 }
 0x345   : > { %v3449_v4 = vadd.f32 %v12255_v7, %v3411_v62  ;;  %v3412_v50 = vmul.f32 %v10773_v37, %v12250_v5  ;;  %10335 = vmatmul.mubr.msk.bf16.gmra.mrb[36].mxu1 %vm15564_vm0, %v12409_v27  ;;  %v12468_v38 = vpack.c.bf16 %v3532_v19, %v3531_v31  ;;  %v3534_v41 = vld [vmem:[#allocation2 + $0xb0] sm:$0xff]  ;;  %v3533_v23 = vld [vmem:[#allocation2 + $0xa8] sm:$0xff]  ;;  %v12476_v29 = vpack.c.bf16 %v3536_v47, %v3535_v28  ;;  %v3538_v62 = vld [vmem:[#allocation2 + $0xe0] sm:$0xff] }
 0x346   : > { %v3483_v51 = vmax.f32 %v3451_v42, 0.0  ;;  %v3452_v34 = vadd.f32 %v12255_v7, %v3414_v43  ;;  %10338 = vmatprep.mubr.msk.bf16.mxu1 %vm15564_vm0, %v12413_v49  ;;  %v12474_v26 = vpack.c.bf16 %v3534_v41, %v3533_v23  ;;  %v3540_v37 = vld [vmem:[#allocation2 + $0xf8] sm:$0xff]  ;;  %v3539_v43 = vld [vmem:[#allocation2 + $0xf0] sm:$0xff]  ;;  %v4074_v31 = vld [vmem:[#allocation2 + $0x62] sm:$0xff] }
 0x347   : > { %v3481_v9 = vmax.f32 %v3449_v4, 0.0  ;;  %v3450_v44 = vadd.f32 %v12255_v7, %v3412_v50  ;;  %v3599_v21 = vld [vmem:[#allocation2 + $0x151] sm:$0xff]  ;;  %v3519_v7 = vld [vmem:[#allocation2] sm:$0xff]  ;;  %v12484_v4 = vpack.c.bf16 %v3540_v37, %v3539_v43 }
 0x348   : > { %3515 = vst.msk [vmem:[#allocation2 + $0x181] sm:$0xff] %vm15564_vm0, %v3483_v51  ;;  %v3484_v45 = vmax.f32 %v3452_v34, 0.0  ;;  %v3597_v5 = vld [vmem:[#allocation2 + $0x139] sm:$0xff]  ;;  %v3551_v53 = vpack.c.bf16 %v3520_v8, %v3519_v7  ;;  %v3542_v50 = vld [vmem:[#allocation2 + $0x110] sm:$0xff]  ;;  %v3544_v51 = vld [vmem:[#allocation2 + $0x128] sm:$0xff] }
 0x349   : > { %3513 = vst.msk [vmem:[#allocation2 + $0x169] sm:$0xff] %vm15564_vm0, %v3481_v9  ;;  %v3482_v52 = vmax.f32 %v3450_v44, 0.0  ;;  %v3600_v0 = vld [vmem:[#allocation2 + $0x159] sm:$0xff]  ;;  %v3541_v34 = vld [vmem:[#allocation2 + $0x108] sm:$0xff] }
 0x34a   : > { %3516 = vst.msk [vmem:[#allocation2 + $0x189] sm:$0xff] %vm15564_vm0, %v3484_v45  ;;  %v3598_v10 = vld [vmem:[#allocation2 + $0x141] sm:$0xff]  ;;  %v12429_v36 = vpack.c.bf16 %v3600_v0, %v3599_v21  ;;  %v3537_v3 = vld [vmem:[#allocation2 + $0xd8] sm:$0xff]  ;;  %v12490_v9 = vpack.c.bf16 %v3542_v50, %v3541_v34  ;;  %v3547_v21 = vld [vmem:[#allocation2 + $0x150] sm:$0xff] }
 0x34b   : > { %3514 = vst.msk [vmem:[#allocation2 + $0x171] sm:$0xff] %vm15564_vm0, %v3482_v52  ;;  %v12427_v14 = vpack.c.bf16 %v3598_v10, %v3597_v5  ;;  %v12482_v42 = vpack.c.bf16 %v3538_v62, %v3537_v3  ;;  %v3543_v44 = vld [vmem:[#allocation2 + $0x120] sm:$0xff]  ;;  %v3548_v0 = vld [vmem:[#allocation2 + $0x158] sm:$0xff]  ;;  %v4072_v19 = vld [vmem:[#allocation2 + $0x4a] sm:$0xff] }
 0x34c   : > { %v12492_v45 = vpack.c.bf16 %v3544_v51, %v3543_v44  ;;  %v3546_v52 = vld [vmem:[#allocation2 + $0x140] sm:$0xff]  ;;  %v3545_v5 = vld [vmem:[#allocation2 + $0x138] sm:$0xff]  ;;  %v12500_v7 = vpack.c.bf16 %v3548_v0, %v3547_v21  ;;  %v4075_v41 = vld [vmem:[#allocation2 + $0x6a] sm:$0xff] }
 0x34d   : > { %10339 = vmatmul.mubr.msk.bf16.gmra.mrb[40].mxu1 %vm15564_vm0, %v12427_v14  ;;  %v12498_v10 = vpack.c.bf16 %v3546_v52, %v3545_v5  ;;  %v4066_v8 = vld [vmem:[#allocation2 + $0x2] sm:$0xff]  ;;  %v4071_v11 = vld [vmem:[#allocation2 + $0x3a] sm:$0xff]  ;;  %v12528_v23 = vpack.c.bf16 %v4075_v41, %v4074_v31  ;;  %v4078_v62 = vld [vmem:[#allocation2 + $0x92] sm:$0xff] }
 0x34e   : > { %10342 = vmatprep.mubr.msk.bf16.mxu1 %vm15564_vm0, %v12429_v36  ;;  %v11356_v60 = vld [vmem:[%s15599_s2 + $0x38] sm:$0xff]   ;;  %v4077_v28 = vld [vmem:[#allocation2 + $0x82] sm:$0xff]  ;;  %v4080_v50 = vld [vmem:[#allocation2 + $0xaa] sm:$0xff] }
 0x34f   : > { %v4079_v37 = vld [vmem:[#allocation2 + $0x9a] sm:$0xff]  ;;  %v4081_v51 = vld [vmem:[#allocation2 + $0xb2] sm:$0xff]  ;;  %v4082_v34 = vld [vmem:[#allocation2 + $0xc2] sm:$0xff] }
 0x350   : > { %v3601_v30 = vld [vmem:[#allocation2 + $0x169] sm:$0xff]  ;;  %v12536_v43 = vpack.c.bf16 %v4079_v37, %v4078_v62  ;;  %v12542_v52 = vpack.c.bf16 %v4081_v51, %v4080_v50  ;;  %v4084_v5 = vld [vmem:[#allocation2 + $0xda] sm:$0xff]  ;;  %v4089_v56 = vld [vmem:[#allocation2 + $0x112] sm:$0xff] }
 0x351   : > { %v4083_v44 = vld [vmem:[#allocation2 + $0xca] sm:$0xff]  ;;  %v4085_v21 = vld [vmem:[#allocation2 + $0xe2] sm:$0xff]  ;;  %v4094_v31 = vld [vmem:[#allocation2 + $0x152] sm:$0xff] }
 0x352   : > { %v3602_v39 = vld [vmem:[#allocation2 + $0x171] sm:$0xff]  ;;  %v12544_v0 = vpack.c.bf16 %v4083_v44, %v4082_v34  ;;  %v4090_v1 = vld [vmem:[#allocation2 + $0x122] sm:$0xff]  ;;  %v4095_v41 = vld [vmem:[#allocation2 + $0x15a] sm:$0xff] }
 0x353   : > { %v12435_v55 = vpack.c.bf16 %v3602_v39, %v3601_v30  ;;  %v4067_v30 = vld [vmem:[#allocation2 + $0xa] sm:$0xff]  ;;  %v4097_v37 = vld [vmem:[#allocation2 + $0x172] sm:$0xff] }
 0x354   : > { %v3550_v39 = vld [vmem:[#allocation2 + $0x170] sm:$0xff]  ;;  %v4098_v57 = vpack.c.bf16 %v4067_v30, %v4066_v8  ;;  %v4087_v30 = vld [vmem:[#allocation2 + $0xfa] sm:$0xff]  ;;  %v11358_v51 = vld [vmem:[%s15599_s2 + $0x48] sm:$0xff]  }
 0x355   : > { %10343 = vmatmul.mubr.msk.bf16.gmra.mrb[44].mxu1 %vm15564_vm0, %v12435_v55  ;;  %v4086_v8 = vld [vmem:[#allocation2 + $0xf2] sm:$0xff]  ;;  %v4096_v62 = vld [vmem:[#allocation2 + $0x16a] sm:$0xff] }
 0x356   : > { %10350 = vmatprep.mubr.msk.bf16.mxu1 %vm15564_vm0, %v3551_v53  ;;  %v3549_v53 = vld [vmem:[#allocation2 + $0x168] sm:$0xff]  ;;  %v12574_v50 = vpack.c.bf16 %v4097_v37, %v4096_v62  ;;  %v11359_v34 = vld [vmem:[%s15599_s2 + $0x50] sm:$0xff]   ;;  %v5613_v37 = vld [vmem:[#allocation2 + $0xf9] sm:$0xff] }
 0x357   : > { %v12506_v48 = vpack.c.bf16 %v3550_v39, %v3549_v53  ;;  %v12550_v39 = vpack.c.bf16 %v4085_v21, %v4084_v5  ;;  %v12552_v53 = vpack.c.bf16 %v4087_v30, %v4086_v8  ;;  %v11360_v5 = vld [vmem:[%s15599_s2 + $0x58] sm:$0xff]   ;;  %v11361_v21 = vld [vmem:[%s15599_s2 + $0x60] sm:$0xff]  }
 0x358   : > { %v5602_v8 = vld [vmem:[#allocation2 + $0x79] sm:$0xff]  ;;  %v5611_v62 = vld [vmem:[#allocation2 + $0xe1] sm:$0xff] }
 0x35d   : > { %10351 = vmatmul.mubr.msk.bf16.vlgmr.msra.gmra.mrb[16].mxu1 %vm15564_vm0, %v12440_v58 }
 0x35e   : > { %10354 = vmatprep.mubr.msk.bf16.mxu1 %vm15564_vm0, %v12445_v59  ;;  %10383 = vmatpush3.bf16.msra.mxu1 %v12304_v17  ;;  %v3530_v17 = vld [vmem:[#allocation2 + $0x80] sm:$0xff] }
 0x35f   : > { %10384 = vmatprep.subr.bf16.mxu1 %v11354_v63  ;;  %v12466_v25 = vpack.c.bf16 %v3530_v17, %v3529_v24  ;;  %v11357_v17 = vld [vmem:[%s15599_s2 + $0x40] sm:$0xff]   ;;  %v4073_v24 = vld [vmem:[#allocation2 + $0x52] sm:$0xff] }
 0x360   : > { %v12526_v47 = vpack.c.bf16 %v4073_v24, %v4072_v19  ;;  %v4092_v19 = vld [vmem:[#allocation2 + $0x13a] sm:$0xff]  ;;  %v4093_v24 = vld [vmem:[#allocation2 + $0x142] sm:$0xff] }
 0x362   : > { %10385 = vmatpush3.bf16.msra.mxu1 %v11354_v63  ;;  %v4070_v63 = vld [vmem:[#allocation2 + $0x32] sm:$0xff] }
 0x363   : > { %10418 = vmatprep.subr.bf16.mxu1 %v12455_v6  ;;  %v12516_v15 = vpack.c.bf16 %v4071_v11, %v4070_v63  ;;  %v4091_v63 = vld [vmem:[#allocation2 + $0x12a] sm:$0xff] }
 0x365   : > { %10355 = vmatmul.mubr.msk.bf16.gmra.mrb[20].mxu1 %vm15564_vm0, %v12457_v13 }
 0x366   : > { %10358 = vmatprep.mubr.msk.bf16.mxu1 %vm15564_vm0, %v12460_v18 }
 0x36d   : > { %10359 = vmatmul.mubr.msk.bf16.gmra.mrb[24].mxu1 %vm15564_vm0, %v12466_v25 }
 0x36e   : > { %10362 = vmatprep.mubr.msk.bf16.mxu1 %vm15564_vm0, %v12468_v38 }
 0x375   : > { %10363 = vmatmul.mubr.msk.bf16.gmra.mrb[28].mxu1 %vm15564_vm0, %v12474_v26 }
 0x376   : > { %10366 = vmatprep.mubr.msk.bf16.mxu1 %vm15564_vm0, %v12476_v29 }
 0x37d   : > { %10367 = vmatmul.mubr.msk.bf16.gmra.mrb[32].mxu1 %vm15564_vm0, %v12482_v42 }
 0x37e   : > { %10370 = vmatprep.mubr.msk.bf16.mxu1 %vm15564_vm0, %v12484_v4 }
 0x385   : > { %10371 = vmatmul.mubr.msk.bf16.gmra.mrb[36].mxu1 %vm15564_vm0, %v12490_v9 }
 0x386   : > { %10374 = vmatprep.mubr.msk.bf16.mxu1 %vm15564_vm0, %v12492_v45 }
 0x38d   : > { %10375 = vmatmul.mubr.msk.bf16.gmra.mrb[40].mxu1 %vm15564_vm0, %v12498_v10 }
 0x38e   : > { %10378 = vmatprep.mubr.msk.bf16.mxu1 %vm15564_vm0, %v12500_v7 }
 0x395   : > { %10379 = vmatmul.mubr.msk.bf16.gmra.mrb[44].mxu1 %vm15564_vm0, %v12506_v48 }
 0x396   : > { %10386 = vmatprep.mubr.msk.bf16.mxu1 %vm15564_vm0, %v4098_v57  ;;  %v4088_v57 = vld [vmem:[#allocation2 + $0x10a] sm:$0xff] }
 0x397   : > { %v12558_v11 = vpack.c.bf16 %v4089_v56, %v4088_v57  ;;  %v5604_v57 = vld [vmem:[#allocation2 + $0x91] sm:$0xff] }
 0x39d   : > { %10387 = vmatmul.mubr.msk.bf16.vlgmr.msra.gmra.mrb[16].mxu1 %vm15564_vm0, %v12511_v12 }
 0x39e   : > { %10390 = vmatprep.mubr.msk.bf16.mxu1 %vm15564_vm0, %v12516_v15  ;;  %10419 = vmatpush3.bf16.msra.mxu1 %v12455_v6  ;;  %v4076_v6 = vld [vmem:[#allocation2 + $0x7a] sm:$0xff] }
 0x39f   : > { %10420 = vmatprep.subr.bf16.mxu1 %v11356_v60  ;;  %v12534_v3 = vpack.c.bf16 %v4077_v28, %v4076_v6  ;;  %v12566_v6 = vpack.c.bf16 %v4093_v24, %v4092_v19  ;;  %v12568_v28 = vpack.c.bf16 %v4095_v41, %v4094_v31  ;;  %v5606_v19 = vld [vmem:[#allocation2 + $0xa9] sm:$0xff]  ;;  %v5608_v31 = vld [vmem:[#allocation2 + $0xc1] sm:$0xff] }
 0x3a2   : > { %10421 = vmatpush3.bf16.msra.mxu1 %v11356_v60  ;;  %v12560_v60 = vpack.c.bf16 %v4091_v63, %v4090_v1  ;;  %v5607_v1 = vld [vmem:[#allocation2 + $0xb1] sm:$0xff]  ;;  %v5609_v63 = vld [vmem:[#allocation2 + $0xc9] sm:$0xff] }
 0x3a3   : > { %10454 = vmatprep.subr.bf16.mxu1 %v11357_v17  ;;  %v5633_v24 = vpack.c.bf16 %v5607_v1, %v5606_v19  ;;  %v5634_v41 = vpack.c.bf16 %v5609_v63, %v5608_v31 }
 0x3a5   : > { %10391 = vmatmul.mubr.msk.bf16.gmra.mrb[20].mxu1 %vm15564_vm0, %v12526_v47 }
 0x3a6   : > { %10394 = vmatprep.mubr.msk.bf16.mxu1 %vm15564_vm0, %v12528_v23 }
 0x3ad   : > { %10395 = vmatmul.mubr.msk.bf16.gmra.mrb[24].mxu1 %vm15564_vm0, %v12534_v3 }
 0x3ae   : > { %10398 = vmatprep.mubr.msk.bf16.mxu1 %vm15564_vm0, %v12536_v43 }
 0x3b5   : > { %10399 = vmatmul.mubr.msk.bf16.gmra.mrb[28].mxu1 %vm15564_vm0, %v12542_v52 }
 0x3b6   : > { %10402 = vmatprep.mubr.msk.bf16.mxu1 %vm15564_vm0, %v12544_v0 }
 0x3bd   : > { %10403 = vmatmul.mubr.msk.bf16.gmra.mrb[32].mxu1 %vm15564_vm0, %v12550_v39 }
 0x3be   : > { %10406 = vmatprep.mubr.msk.bf16.mxu1 %vm15564_vm0, %v12552_v53 }
 0x3c5   : > { %10407 = vmatmul.mubr.msk.bf16.gmra.mrb[36].mxu1 %vm15564_vm0, %v12558_v11 }
 0x3c6   : > { %10410 = vmatprep.mubr.msk.bf16.mxu1 %vm15564_vm0, %v12560_v60 }
 0x3cd   : > { %10411 = vmatmul.mubr.msk.bf16.gmra.mrb[40].mxu1 %vm15564_vm0, %v12566_v6 }
 0x3ce   : > { %10414 = vmatprep.mubr.msk.bf16.mxu1 %vm15564_vm0, %v12568_v28 }
 0x3d5   : > { %10415 = vmatmul.mubr.msk.bf16.gmra.mrb[44].mxu1 %vm15564_vm0, %v12574_v50 }
 0x3d6   : > { %10422 = vmatprep.mubr.msk.bf16.mxu1 %vm15564_vm0, %v12440_v58  ;;  %v4403_v58 = vld [vmem:[#allocation2 + $0x188] sm:$0xff] }
 0x3dd   : > { %10423 = vmatmul.mubr.msk.bf16.vlgmr.msra.gmra.mrb[16].mxu1 %vm15564_vm0, %v12445_v59 }
 0x3de   : > { %10426 = vmatprep.mubr.msk.bf16.mxu1 %vm15564_vm0, %v12457_v13  ;;  %10455 = vmatpush3.bf16.msra.mxu1 %v11357_v17  ;;  %v4402_v17 = vld [vmem:[#allocation2 + $0x180] sm:$0xff] }
 0x3df   : > { %10456 = vmatprep.subr.bf16.mxu1 %v11358_v51  ;;  %v12614_v44 = vpack.c.bf16 %v4403_v58, %v4402_v17  ;;  %v5612_v58 = vld [vmem:[#allocation2 + $0xf1] sm:$0xff] }
 0x3e0   : > { %v5636_v17 = vpack.c.bf16 %v5613_v37, %v5612_v58 }
 0x3e2   : > { %10457 = vmatpush3.bf16.msra.mxu1 %v11358_v51  ;;  %v5610_v51 = vld [vmem:[#allocation2 + $0xd9] sm:$0xff] }
 0x3e3   : > { %10490 = vmatprep.subr.bf16.mxu1 %v11359_v34 }
 0x3e5   : > { %10427 = vmatmul.mubr.msk.bf16.gmra.mrb[20].mxu1 %vm15564_vm0, %v12460_v18 }
 0x3e6   : > { %10430 = vmatprep.mubr.msk.bf16.mxu1 %vm15564_vm0, %v12466_v25 }
 0x3ed   : > { %10431 = vmatmul.mubr.msk.bf16.gmra.mrb[24].mxu1 %vm15564_vm0, %v12468_v38 }
 0x3ee   : > { %10434 = vmatprep.mubr.msk.bf16.mxu1 %vm15564_vm0, %v12474_v26 }
 0x3f5   : > { %10435 = vmatmul.mubr.msk.bf16.gmra.mrb[28].mxu1 %vm15564_vm0, %v12476_v29 }
 0x3f6   : > { %10438 = vmatprep.mubr.msk.bf16.mxu1 %vm15564_vm0, %v12482_v42 }
 0x3fd   : > { %10439 = vmatmul.mubr.msk.bf16.gmra.mrb[32].mxu1 %vm15564_vm0, %v12484_v4 }
 0x3fe   : > { %10442 = vmatprep.mubr.msk.bf16.mxu1 %vm15564_vm0, %v12490_v9 }
 0x405   : > { %10443 = vmatmul.mubr.msk.bf16.gmra.mrb[36].mxu1 %vm15564_vm0, %v12492_v45 }
 0x406   : > { %10446 = vmatprep.mubr.msk.bf16.mxu1 %vm15564_vm0, %v12498_v10 }
 0x40d   : > { %10447 = vmatmul.mubr.msk.bf16.gmra.mrb[40].mxu1 %vm15564_vm0, %v12500_v7 }
 0x40e   : > { %10450 = vmatprep.mubr.msk.bf16.mxu1 %vm15564_vm0, %v12506_v48 }
 0x415   : > { %10451 = vmatmul.mubr.msk.bf16.gmra.mrb[44].mxu1 %vm15564_vm0, %v12614_v44 }
 0x416   : > { %10458 = vmatprep.mubr.msk.bf16.mxu1 %vm15564_vm0, %v12283_v20  ;;  %v4709_v20 = vld [vmem:[#allocation2 + $0x189] sm:$0xff] }
 0x41d   : > { %10459 = vmatmul.mubr.msk.bf16.vlgmr.msra.gmra.mrb[16].mxu1 %vm15564_vm0, %v12290_v33  ;;  %v4708_v33 = vld [vmem:[#allocation2 + $0x181] sm:$0xff] }
 0x41e   : > { %10462 = vmatprep.mubr.msk.bf16.mxu1 %vm15564_vm0, %v12312_v32  ;;  %10491 = vmatpush3.bf16.msra.mxu1 %v11359_v34  ;;  %v12654_v32 = vpack.c.bf16 %v4709_v20, %v4708_v33  ;;  %v5635_v34 = vpack.c.bf16 %v5611_v62, %v5610_v51 }
 0x41f   : > { %10492 = vmatprep.subr.bf16.mxu1 %v11360_v5 }
 0x422   : > { %10493 = vmatpush3.bf16.msra.mxu1 %v11360_v5  ;;  %v5627_v5 = vld [vmem:[#allocation2 + $0x1a1] sm:$0xff] }
 0x423   : > { %10526 = vmatprep.subr.bf16.mxu1 %v11361_v21 }
 0x425   : > { %10463 = vmatmul.mubr.msk.bf16.gmra.mrb[20].mxu1 %vm15564_vm0, %v12317_v54  ;;  %v11362_v54 = vld [vmem:[%s15599_s2 + $0x68] sm:$0xff]  }
 0x426   : > { %10466 = vmatprep.mubr.msk.bf16.mxu1 %vm15564_vm0, %v12333_v35  ;;  %v11363_v35 = vld [vmem:[%s15599_s2 + $0x70] sm:$0xff]  }
 0x42d   : > { %10467 = vmatmul.mubr.msk.bf16.gmra.mrb[24].mxu1 %vm15564_vm0, %v12337_v40  ;;  %v5014_v40 = vld [vmem:[#allocation2 + $0x182] sm:$0xff] }
 0x42e   : > { %10470 = vmatprep.mubr.msk.bf16.mxu1 %vm15564_vm0, %v12355_v46  ;;  %v5015_v46 = vld [vmem:[#allocation2 + $0x18a] sm:$0xff] }
 0x435   : > { %10471 = vmatmul.mubr.msk.bf16.gmra.mrb[28].mxu1 %vm15564_vm0, %v12360_v16  ;;  %v12694_v16 = vpack.c.bf16 %v5015_v46, %v5014_v40 }
 0x436   : > { %10474 = vmatprep.mubr.msk.bf16.mxu1 %vm15564_vm0, %v12385_v61  ;;  %v11364_v61 = vld [vmem:[%s15599_s2 + $0x78] sm:$0xff]  }
 0x43d   : > { %10475 = vmatmul.mubr.msk.bf16.gmra.mrb[32].mxu1 %vm15564_vm0, %v12389_v22  ;;  %v11365_v22 = vld [vmem:[%s15599_s2 + $0x80] sm:$0xff]  }
 0x43e   : > { %10478 = vmatprep.mubr.msk.bf16.mxu1 %vm15564_vm0, %v12409_v27 }
 0x445   : > { %10479 = vmatmul.mubr.msk.bf16.gmra.mrb[36].mxu1 %vm15564_vm0, %v12413_v49 }
 0x446   : > { %10482 = vmatprep.mubr.msk.bf16.mxu1 %vm15564_vm0, %v12427_v14 }
 0x44d   : > { %10483 = vmatmul.mubr.msk.bf16.gmra.mrb[40].mxu1 %vm15564_vm0, %v12429_v36 }
 0x44e   : > { %10486 = vmatprep.mubr.msk.bf16.mxu1 %vm15564_vm0, %v12435_v55 }
 0x455   : > { %10487 = vmatmul.mubr.msk.bf16.gmra.mrb[44].mxu1 %vm15564_vm0, %v12654_v32 }
 0x456   : > { %10494 = vmatprep.mubr.msk.bf16.mxu1 %vm15564_vm0, %v12511_v12  ;;  %v5605_v12 = vld [vmem:[#allocation2 + $0x99] sm:$0xff] }
 0x457   : > { %v5632_v56 = vpack.c.bf16 %v5605_v12, %v5604_v57 }
 0x45d   : > { %10495 = vmatmul.mubr.msk.bf16.vlgmr.msra.gmra.mrb[16].mxu1 %vm15564_vm0, %v12516_v15 }
 0x45e   : > { %10498 = vmatprep.mubr.msk.bf16.mxu1 %vm15564_vm0, %v12526_v47  ;;  %10527 = vmatpush3.bf16.msra.mxu1 %v11361_v21 }
 0x45f   : > { %10528 = vmatprep.subr.bf16.mxu1 %v11362_v54 }
 0x462   : > { %10529 = vmatpush3.bf16.msra.mxu1 %v11362_v54 }
 0x463   : > { %10562 = vmatprep.subr.bf16.mxu1 %v11363_v35 }
 0x465   : > { %10499 = vmatmul.mubr.msk.bf16.gmra.mrb[20].mxu1 %vm15564_vm0, %v12528_v23 }
 0x466   : > { %10502 = vmatprep.mubr.msk.bf16.mxu1 %vm15564_vm0, %v12534_v3 }
 0x46d   : > { %10503 = vmatmul.mubr.msk.bf16.gmra.mrb[24].mxu1 %vm15564_vm0, %v12536_v43 }
 0x46e   : > { %10506 = vmatprep.mubr.msk.bf16.mxu1 %vm15564_vm0, %v12542_v52 }
 0x475   : > { %10507 = vmatmul.mubr.msk.bf16.gmra.mrb[28].mxu1 %vm15564_vm0, %v12544_v0 }
 0x476   : > { %10510 = vmatprep.mubr.msk.bf16.mxu1 %vm15564_vm0, %v12550_v39 }
 0x47d   : > { %10511 = vmatmul.mubr.msk.bf16.gmra.mrb[32].mxu1 %vm15564_vm0, %v12552_v53 }
 0x47e   : > { %10514 = vmatprep.mubr.msk.bf16.mxu1 %vm15564_vm0, %v12558_v11 }
 0x485   : > { %10515 = vmatmul.mubr.msk.bf16.gmra.mrb[36].mxu1 %vm15564_vm0, %v12560_v60 }
 0x486   : > { %10518 = vmatprep.mubr.msk.bf16.mxu1 %vm15564_vm0, %v12566_v6 }
 0x48d   : > { %10519 = vmatmul.mubr.msk.bf16.gmra.mrb[40].mxu1 %vm15564_vm0, %v12568_v28 }
 0x48e   : > { %10522 = vmatprep.mubr.msk.bf16.mxu1 %vm15564_vm0, %v12574_v50 }
 0x495   : > { %10523 = vmatmul.mubr.msk.bf16.gmra.mrb[44].mxu1 %vm15564_vm0, %v12694_v16 }
 0x496   : > { %10530 = vmatprep.mubr.msk.bf16.mxu1 %vm15564_vm0, %v12445_v59  ;;  %v5320_v59 = vld [vmem:[#allocation2 + $0x198] sm:$0xff] }
 0x49d   : > { %10531 = vmatmul.mubr.msk.bf16.vlgmr.msra.gmra.mrb[16].mxu1 %vm15564_vm0, %v12457_v13  ;;  %v5321_v13 = vld [vmem:[#allocation2 + $0x1a0] sm:$0xff] }
 0x49e   : > { %10534 = vmatprep.mubr.msk.bf16.mxu1 %vm15564_vm0, %v12460_v18  ;;  %10563 = vmatpush3.bf16.msra.mxu1 %v11363_v35  ;;  %v5337_v18 = vpack.c.bf16 %v5321_v13, %v5320_v59 }
 0x49f   : > { %10564 = vmatprep.subr.bf16.mxu1 %v11364_v61 }
 0x4a2   : > { %10565 = vmatpush3.bf16.msra.mxu1 %v11364_v61 }
 0x4a3   : > { %10598 = vmatprep.subr.bf16.mxu1 %v11365_v22 }
 0x4a5   : > { %10535 = vmatmul.mubr.msk.bf16.gmra.mrb[20].mxu1 %vm15564_vm0, %v12466_v25  ;;  %v5597_v25 = vld [vmem:[#allocation2 + $0x39] sm:$0xff] }
 0x4a6   : > { %10538 = vmatprep.mubr.msk.bf16.mxu1 %vm15564_vm0, %v12468_v38  ;;  %v5596_v38 = vld [vmem:[#allocation2 + $0x31] sm:$0xff] }
 0x4ad   : > { %10539 = vmatmul.mubr.msk.bf16.gmra.mrb[24].mxu1 %vm15564_vm0, %v12474_v26  ;;  %v5628_v26 = vpack.c.bf16 %v5597_v25, %v5596_v38 }
 0x4ae   : > { %10542 = vmatprep.mubr.msk.bf16.mxu1 %vm15564_vm0, %v12476_v29  ;;  %v5599_v29 = vld [vmem:[#allocation2 + $0x51] sm:$0xff] }
 0x4b5   : > { %10543 = vmatmul.mubr.msk.bf16.gmra.mrb[28].mxu1 %vm15564_vm0, %v12482_v42  ;;  %v5601_v42 = vld [vmem:[#allocation2 + $0x69] sm:$0xff] }
 0x4b6   : > { %10546 = vmatprep.mubr.msk.bf16.mxu1 %vm15564_vm0, %v12484_v4  ;;  %v5598_v4 = vld [vmem:[#allocation2 + $0x49] sm:$0xff] }
 0x4bd   : > { %10547 = vmatmul.mubr.msk.bf16.gmra.mrb[32].mxu1 %vm15564_vm0, %v12490_v9  ;;  %v5629_v9 = vpack.c.bf16 %v5599_v29, %v5598_v4 }
 0x4be   : > { %10550 = vmatprep.mubr.msk.bf16.mxu1 %vm15564_vm0, %v12492_v45  ;;  %v5600_v45 = vld [vmem:[#allocation2 + $0x61] sm:$0xff] }
 0x4c5   : > { %10551 = vmatmul.mubr.msk.bf16.gmra.mrb[36].mxu1 %vm15564_vm0, %v12498_v10  ;;  %v11366_v10 = vld [vmem:[%s15599_s2 + $0x88] sm:$0xff]   ;;  %s13535_s2 = sld [smem:[#allocation5 + $0x13]] }
 0x4c6   : > { %10554 = vmatprep.mubr.msk.bf16.mxu1 %vm15564_vm0, %v12500_v7  ;;  %v5630_v7 = vpack.c.bf16 %v5601_v42, %v5600_v45 }
 0x4cd   : > { %10555 = vmatmul.mubr.msk.bf16.gmra.mrb[40].mxu1 %vm15564_vm0, %v12506_v48  ;;  %v5603_v48 = vld [vmem:[#allocation2 + $0x81] sm:$0xff] }
 0x4ce   : > { %10558 = vmatprep.mubr.msk.bf16.mxu1 %vm15564_vm0, %v12614_v44  ;;  %v5631_v30 = vpack.c.bf16 %v5603_v48, %v5602_v8  ;;  %v5626_v44 = vld [vmem:[#allocation2 + $0x199] sm:$0xff] }
 0x4cf   : > { %v5643_v21 = vpack.c.bf16 %v5627_v5, %v5626_v44 }
 0x4d5   : > { %10559 = vmatmul.mubr.msk.bf16.gmra.mrb[44].mxu1 %vm15564_vm0, %v5337_v18 }
 0x4d6   : > { %10566 = vmatprep.mubr.msk.bf16.mxu1 %vm15564_vm0, %v5628_v26 }
 0x4dd   : > { %10567 = vmatmul.mubr.msk.bf16.vlgmr.msra.gmra.mrb[16].mxu1 %vm15564_vm0, %v5629_v9 }
 0x4de   : > { %10570 = vmatprep.mubr.msk.bf16.mxu1 %vm15564_vm0, %v5630_v7  ;;  %10599 = vmatpush3.bf16.msra.mxu1 %v11365_v22 }
 0x4df   : > { %10600 = vmatprep.subr.bf16.mxu1 %v11366_v10 }
 0x4e2   : > { %10601 = vmatpush3.bf16.msra.mxu1 %v11366_v10 }
 0x4e5   : > { %10571 = vmatmul.mubr.msk.bf16.gmra.mrb[20].mxu1 %vm15564_vm0, %v5631_v30 }
 0x4e6   : > { %10574 = vmatprep.mubr.msk.bf16.mxu1 %vm15564_vm0, %v5632_v56 }
 0x4ed   : > { %10575 = vmatmul.mubr.msk.bf16.gmra.mrb[24].mxu1 %vm15564_vm0, %v5633_v24 }
 0x4ee   : > { %10578 = vmatprep.mubr.msk.bf16.mxu1 %vm15564_vm0, %v5634_v41 }
 0x4f5   : > { %10579 = vmatmul.mubr.msk.bf16.gmra.mrb[28].mxu1 %vm15564_vm0, %v5635_v34 }
 0x4f6   : > { %10582 = vmatprep.mubr.msk.bf16.mxu1 %vm15564_vm0, %v5636_v17 }
 0x4fd   : > { %10583 = vmatmul.mubr.msk.bf16.gmra.mrb[32].mxu1 %vm15564_vm0, %v12409_v27  ;;  %v5932_v27 = vld [vmem:[#allocation2 + $0x19a] sm:$0xff] }
 0x4fe   : > { %10586 = vmatprep.mubr.msk.bf16.mxu1 %vm15564_vm0, %v12413_v49  ;;  %v5933_v49 = vld [vmem:[#allocation2 + $0x1a2] sm:$0xff] }
 0x505   : > { %10587 = vmatmul.mubr.msk.bf16.gmra.mrb[36].mxu1 %vm15564_vm0, %v12427_v14  ;;  %v5949_v14 = vpack.c.bf16 %v5933_v49, %v5932_v27 }
 0x506   : > { %10590 = vmatprep.mubr.msk.bf16.mxu1 %vm15564_vm0, %v12429_v36  ;;  %v12794_v36 = vld [vmem:[%s15602_s5] ss:$0 sm:$0xff]  ;;  %s13566_s5 = sld [smem:[#allocation5 + $0x1a]] }
 0x50d   : > { %10591 = vmatmul.mubr.msk.bf16.gmra.mrb[40].mxu1 %vm15564_vm0, %v12435_v55 }
 0x50e   : > { %10594 = vmatprep.mubr.msk.bf16.mxu1 %vm15564_vm0, %v12654_v32 }
 0x515   : > { %10595 = vmatmul.mubr.msk.bf16.gmra.mrb[44].mxu1 %vm15564_vm0, %v5643_v21 }
 0x516   : > { %10602 = vmatprep.mubr.msk.bf16.mxu1 %vm15564_vm0, %v12516_v15  ;;  %v12799_v15 = vld [vmem:[%s15603_s6] ss:$0 sm:$0xff]  ;;  %s15650_s6 = smov 127  }
 0x51d   : > { %10603 = vmatmul.mubr.msk.bf16.vlgmr.msra.gmra.mrb[16].mxu1 %vm15564_vm0, %v12526_v47 }
 0x51e   : > { %10606 = vmatprep.mubr.msk.bf16.mxu1 %vm15564_vm0, %v12528_v23 }
 0x525   : > { %10607 = vmatmul.mubr.msk.bf16.gmra.mrb[20].mxu1 %vm15564_vm0, %v12534_v3 }
 0x526   : > { %10610 = vmatprep.mubr.msk.bf16.mxu1 %vm15564_vm0, %v12536_v43 }
 0x52d   : > { %10611 = vmatmul.mubr.msk.bf16.gmra.mrb[24].mxu1 %vm15564_vm0, %v12542_v52 }
 0x52e   : > { %10614 = vmatprep.mubr.msk.bf16.mxu1 %vm15564_vm0, %v12544_v0 }
 0x535   : > { %10615 = vmatmul.mubr.msk.bf16.gmra.mrb[28].mxu1 %vm15564_vm0, %v12550_v39 }
 0x536   : > { %10618 = vmatprep.mubr.msk.bf16.mxu1 %vm15564_vm0, %v12552_v53 }
 0x53d   : > { %10619 = vmatmul.mubr.msk.bf16.gmra.mrb[32].mxu1 %vm15564_vm0, %v12558_v11 }
 0x53e   : > { %10622 = vmatprep.mubr.msk.bf16.mxu1 %vm15564_vm0, %v12560_v60 }
 0x545   : > { %10623 = vmatmul.mubr.msk.bf16.gmra.mrb[36].mxu1 %vm15564_vm0, %v12566_v6 }
 0x546   : > { %10626 = vmatprep.mubr.msk.bf16.mxu1 %vm15564_vm0, %v12568_v28 }
 0x54d   : > { %10627 = vmatmul.mubr.msk.bf16.gmra.mrb[40].mxu1 %vm15564_vm0, %v12574_v50 }
 0x54e   : > { %10630 = vmatprep.mubr.msk.bf16.mxu1 %vm15564_vm0, %v12694_v16 }
 0x555   : > { %10631 = vmatmul.mubr.msk.bf16.gmra.mrb[44].mxu1 %vm15564_vm0, %v5949_v14 }
 0x5f0   : > { %v10604_v55 = vpop.f32.mrb[16].mxu1 }
 0x5f1   : > { %v6049_v47 = vpop.f32.mrb[17].mxu1  ;;  %v6216_v23 = vmul.f32 %v10604_v55, %v12794_v36 }
 0x5f2   : > { %v6214_v3 = vmul.f32 %v12794_v36, %v6049_v47  ;;  %v10605_v43 = vpop.f32.mrb[18].mxu1 }
 0x5f3   : > { %v6052_v52 = vpop.f32.mrb[19].mxu1  ;;  %v6217_v39 = vmul.f32 %v10605_v43, %v12794_v36  ;;  %v12809_v11 = vadd.f32 %v12799_v15, %v6216_v23 }
 0x5f4   : > { %v12804_v0 = vadd.f32 %v12799_v15, %v6214_v3  ;;  %v6215_v53 = vmul.f32 %v12794_v36, %v6052_v52 }
 0x5f5   : > { %v12817_v28 = vadd.f32 %v12799_v15, %v6217_v39  ;;  %v6287_v54 = vsel %vm15564_vm0, %v12809_v11, 0.0 }
 0x5f6   : > { %v12812_v60 = vadd.f32 %v12799_v15, %v6215_v53  ;;  %v6284_v6 = vsel %vm15564_vm0, %v12804_v0, 0.0 }
 0x5f7   : > { %v6289_v22 = vsel %vm15564_vm0, %v12817_v28, 0.0 }
 0x5f8   : > { %v6285_v50 = vsel %vm15564_vm0, %v12812_v60, 0.0  ;;  %v10608_v20 = vpop.f32.mrb[20].mxu1 }
 0x5f9   : > { %v6286_v33 = vadd.f32 %v6285_v50, %v6284_v6  ;;  %v6065_v32 = vpop.f32.mrb[21].mxu1  ;;  %v6220_v35 = vmul.f32 %v10608_v20, %v12794_v36 }
 0x5fa   : > { %v6218_v40 = vmul.f32 %v12794_v36, %v6065_v32  ;;  %v10609_v46 = vpop.f32.mrb[22].mxu1 }
 0x5fb   : > { %v6288_v16 = vadd.f32 %v6287_v54, %v6286_v33  ;;  %v6068_v61 = vpop.f32.mrb[23].mxu1  ;;  %v6221_v13 = vmul.f32 %v10609_v46, %v12794_v36  ;;  %v12833_v38 = vadd.f32 %v12799_v15, %v6220_v35 }
 0x5fc   : > { %v12828_v59 = vadd.f32 %v12799_v15, %v6218_v40  ;;  %v6219_v18 = vmul.f32 %v12794_v36, %v6068_v61 }
 0x5fd   : > { %v6290_v25 = vadd.f32 %v6289_v22, %v6288_v16  ;;  %v12841_v4 = vadd.f32 %v12799_v15, %v6221_v13  ;;  %v6295_v48 = vsel %vm15564_vm0, %v12833_v38, 0.0  ;;  %v6357_v13 = vsel %vm15564_vm0, %v12809_v11, -inf }
 0x5fe   : > { %v6291_v26 = vsel %vm15564_vm0, %v12828_v59, 0.0  ;;  %v12838_v29 = vadd.f32 %v12799_v15, %v6219_v18  ;;  %v6355_v18 = vsel %vm15564_vm0, %v12804_v0, -inf }
 0x5ff   : > { %v6292_v42 = vadd.f32 %v6291_v26, %v6290_v25  ;;  %v6297_v1 = vsel %vm15564_vm0, %v12841_v4, 0.0 }
 0x600   : > { %v6293_v9 = vsel %vm15564_vm0, %v12838_v29, 0.0  ;;  %v10612_v45 = vpop.f32.mrb[24].mxu1 }
 0x601   : > { %v6294_v10 = vadd.f32 %v6293_v9, %v6292_v42  ;;  %v6081_v7 = vpop.f32.mrb[25].mxu1  ;;  %v6224_v12 = vmul.f32 %v10612_v45, %v12794_v36 }
 0x602   : > { %v6222_v8 = vmul.f32 %v12794_v36, %v6081_v7  ;;  %v10613_v30 = vpop.f32.mrb[26].mxu1  ;;  %v6363_v7 = vsel %vm15564_vm0, %v12833_v38, -inf }
 0x603   : > { %v6296_v57 = vadd.f32 %v6295_v48, %v6294_v10  ;;  %v6084_v56 = vpop.f32.mrb[27].mxu1  ;;  %v6225_v19 = vmul.f32 %v10613_v30, %v12794_v36  ;;  %v12857_v41 = vadd.f32 %v12799_v15, %v6224_v12  ;;  %v6359_v48 = vsel %vm15564_vm0, %v12828_v59, -inf }
 0x604   : > { %v12852_v63 = vadd.f32 %v12799_v15, %v6222_v8  ;;  %v6223_v24 = vmul.f32 %v12794_v36, %v6084_v56  ;;  %v6365_v12 = vsel %vm15564_vm0, %v12841_v4, -inf  ;;  %v6361_v30 = vsel %vm15564_vm0, %v12838_v29, -inf }
 0x605   : > { %v6298_v31 = vadd.f32 %v6297_v1, %v6296_v57  ;;  %v12865_v34 = vadd.f32 %v12799_v15, %v6225_v19  ;;  %v6303_v21 = vsel %vm15564_vm0, %v12857_v41, 0.0  ;;  %v6358_v19 = vsel %vm15564_vm0, %v12817_v28, -inf }
 0x606   : > { %v6299_v62 = vsel %vm15564_vm0, %v12852_v63, 0.0  ;;  %v12862_v37 = vadd.f32 %v12799_v15, %v6223_v24  ;;  %v6356_v24 = vsel %vm15564_vm0, %v12812_v60, -inf }
 0x607   : > { %v6300_v51 = vadd.f32 %v6299_v62, %v6298_v31  ;;  %v6305_v23 = vsel %vm15564_vm0, %v12865_v34, 0.0  ;;  %v6371_v31 = vsel %vm15564_vm0, %v12857_v41, -inf }
 0x608   : > { %v6301_v58 = vsel %vm15564_vm0, %v12862_v37, 0.0  ;;  %v10616_v17 = vpop.f32.mrb[28].mxu1 }
 0x609   : > { %v6302_v44 = vadd.f32 %v6301_v58, %v6300_v51  ;;  %v6097_v5 = vpop.f32.mrb[29].mxu1  ;;  %v6228_v27 = vmul.f32 %v10616_v17, %v12794_v36  ;;  %v6364_v51 = vmax.f32 %v6357_v13, %v6363_v7  ;;  %v6367_v58 = vsel %vm15564_vm0, %v12852_v63, -inf }
 0x60a   : > { %v6226_v49 = vmul.f32 %v12794_v36, %v6097_v5  ;;  %v10617_v14 = vpop.f32.mrb[30].mxu1 }
 0x60b   : > { %v6304_v55 = vadd.f32 %v6303_v21, %v6302_v44  ;;  %v6100_v47 = vpop.f32.mrb[31].mxu1  ;;  %v6229_v43 = vmul.f32 %v10617_v14, %v12794_v36  ;;  %v12881_v53 = vadd.f32 %v12799_v15, %v6228_v27  ;;  %v6360_v21 = vmax.f32 %v6355_v18, %v6359_v48 }
 0x60c   : > { %v12876_v3 = vadd.f32 %v12799_v15, %v6226_v49  ;;  %v6227_v52 = vmul.f32 %v12794_v36, %v6100_v47  ;;  %v6366_v27 = vmax.f32 %v6358_v19, %v6365_v12  ;;  %v6362_v49 = vmax.f32 %v6356_v24, %v6361_v30 }
 0x60d   : > { %v6306_v39 = vadd.f32 %v6305_v23, %v6304_v55  ;;  %v12889_v33 = vadd.f32 %v12799_v15, %v6229_v43  ;;  %v6311_v46 = vsel %vm15564_vm0, %v12881_v53, 0.0  ;;  %v6372_v47 = vmax.f32 %v6364_v51, %v6371_v31 }
 0x60e   : > { %v6307_v6 = vsel %vm15564_vm0, %v12876_v3, 0.0  ;;  %v12886_v50 = vadd.f32 %v12799_v15, %v6227_v52  ;;  %v6375_v13 = vsel %vm15564_vm0, %v12876_v3, -inf }
 0x60f   : > { %v6308_v20 = vadd.f32 %v6307_v6, %v6306_v39  ;;  %v6313_v42 = vsel %vm15564_vm0, %v12889_v33, 0.0  ;;  %v6368_v6 = vmax.f32 %v6360_v21, %v6367_v58  ;;  %v6381_v18 = vsel %vm15564_vm0, %v12889_v33, -inf }
 0x610   : > { %v6309_v32 = vsel %vm15564_vm0, %v12886_v50, 0.0  ;;  %v10620_v54 = vpop.f32.mrb[32].mxu1 }
 0x611   : > { %v6310_v35 = vadd.f32 %v6309_v32, %v6308_v20  ;;  %v6113_v40 = vpop.f32.mrb[33].mxu1  ;;  %v6232_v16 = vmul.f32 %v10620_v54, %v12794_v36  ;;  %v6373_v20 = vsel %vm15564_vm0, %v12865_v34, -inf  ;;  %v6369_v32 = vsel %vm15564_vm0, %v12862_v37, -inf }
 0x612   : > { %v6230_v61 = vmul.f32 %v12794_v36, %v6113_v40  ;;  %v10621_v22 = vpop.f32.mrb[34].mxu1  ;;  %v6374_v7 = vmax.f32 %v6366_v27, %v6373_v20  ;;  %v6370_v48 = vmax.f32 %v6362_v49, %v6369_v32 }
 0x613   : > { %v6312_v25 = vadd.f32 %v6311_v46, %v6310_v35  ;;  %v6116_v26 = vpop.f32.mrb[35].mxu1  ;;  %v6233_v45 = vmul.f32 %v10621_v22, %v12794_v36  ;;  %v12917_v57 = vadd.f32 %v12799_v15, %v6232_v16  ;;  %v6379_v22 = vsel %vm15564_vm0, %v12881_v53, -inf }
 0x614   : > { %v12904_v9 = vadd.f32 %v12799_v15, %v6230_v61  ;;  %v6231_v10 = vmul.f32 %v12794_v36, %v6116_v26  ;;  %v6377_v26 = vsel %vm15564_vm0, %v12886_v50, -inf  ;;  %v6380_v30 = vmax.f32 %v6372_v47, %v6379_v22 }
 0x615   : > { %v6314_v8 = vadd.f32 %v6313_v42, %v6312_v25  ;;  %v12933_v17 = vadd.f32 %v12799_v15, %v6233_v45  ;;  %v6319_v23 = vsel %vm15564_vm0, %v12917_v57, 0.0  ;;  %v6387_v12 = vsel %vm15564_vm0, %v12917_v57, -inf }
 0x616   : > { %v6315_v56 = vsel %vm15564_vm0, %v12904_v9, 0.0  ;;  %v12922_v1 = vadd.f32 %v12799_v15, %v6231_v10  ;;  %v6382_v51 = vmax.f32 %v6374_v7, %v6381_v18  ;;  %v6378_v58 = vmax.f32 %v6370_v48, %v6377_v26 }
 0x617   : > { %v6316_v62 = vadd.f32 %v6315_v56, %v6314_v8  ;;  %v6321_v40 = vsel %vm15564_vm0, %v12933_v17, 0.0  ;;  %v6383_v56 = vsel %vm15564_vm0, %v12904_v9, -inf  ;;  %v6388_v21 = vmax.f32 %v6380_v30, %v6387_v12 }
 0x618   : > { %v6317_v44 = vsel %vm15564_vm0, %v12922_v1, 0.0  ;;  %v10624_v5 = vpop.f32.mrb[36].mxu1 }
 0x619   : > { %v6318_v14 = vadd.f32 %v6317_v44, %v6316_v62  ;;  %v6129_v55 = vpop.f32.mrb[37].mxu1  ;;  %v6236_v43 = vmul.f32 %v10624_v5, %v12794_v36  ;;  %v6376_v62 = vmax.f32 %v6368_v6, %v6375_v13  ;;  %v6385_v6 = vsel %vm15564_vm0, %v12922_v1, -inf }
 0x61a   : > { %v6234_v52 = vmul.f32 %v12794_v36, %v6129_v55  ;;  %v10625_v39 = vpop.f32.mrb[38].mxu1 }
 0x61b   : > { %v6320_v54 = vadd.f32 %v6319_v23, %v6318_v14  ;;  %v6132_v35 = vpop.f32.mrb[39].mxu1  ;;  %v6237_v16 = vmul.f32 %v10625_v39, %v12794_v36  ;;  %v12961_v42 = vadd.f32 %v12799_v15, %v6236_v43  ;;  %v6384_v47 = vmax.f32 %v6376_v62, %v6383_v56 }
 0x61c   : > { %v12948_v46 = vadd.f32 %v12799_v15, %v6234_v52  ;;  %v6235_v61 = vmul.f32 %v12794_v36, %v6132_v35  ;;  %v6389_v23 = vsel %vm15564_vm0, %v12933_v17, -inf }
 0x61d   : > { %v6322_v25 = vadd.f32 %v6321_v40, %v6320_v54  ;;  %v12973_v19 = vadd.f32 %v12799_v15, %v6237_v16  ;;  %v6327_v27 = vsel %vm15564_vm0, %v12961_v42, 0.0  ;;  %v6395_v35 = vsel %vm15564_vm0, %v12961_v42, -inf }
 0x61e   : > { %v6323_v45 = vsel %vm15564_vm0, %v12948_v46, 0.0  ;;  %v12966_v10 = vadd.f32 %v12799_v15, %v6235_v61  ;;  %v6391_v40 = vsel %vm15564_vm0, %v12948_v46, -inf  ;;  %v6390_v26 = vmax.f32 %v6382_v51, %v6389_v23 }
 0x61f   : > { %v6324_v8 = vadd.f32 %v6323_v45, %v6322_v25  ;;  %v6329_v20 = vsel %vm15564_vm0, %v12973_v19, 0.0  ;;  %v6397_v16 = vsel %vm15564_vm0, %v12973_v19, -inf  ;;  %v6386_v45 = vmax.f32 %v6378_v58, %v6385_v6 }
 0x620   : > { %v6325_v24 = vsel %vm15564_vm0, %v12966_v10, 0.0  ;;  %v10628_v31 = vpop.f32.mrb[40].mxu1  ;;  %v6393_v22 = vsel %vm15564_vm0, %v12966_v10, -inf  ;;  %v6396_v12 = vmax.f32 %v6388_v21, %v6395_v35 }
 0x621   : > { %v6326_v44 = vadd.f32 %v6325_v24, %v6324_v8  ;;  %v6145_v5 = vpop.f32.mrb[41].mxu1  ;;  %v6240_v49 = vmul.f32 %v10628_v31, %v12794_v36  ;;  %v6392_v8 = vmax.f32 %v6384_v47, %v6391_v40  ;;  %v6398_v24 = vmax.f32 %v6390_v26, %v6397_v16 }
 0x622   : > { %v6238_v14 = vmul.f32 %v12794_v36, %v6145_v5  ;;  %v10629_v55 = vpop.f32.mrb[42].mxu1  ;;  %v6394_v31 = vmax.f32 %v6386_v45, %v6393_v22 }
 0x623   : > { %v6328_v43 = vadd.f32 %v6327_v27, %v6326_v44  ;;  %v6241_v52 = vmul.f32 %v10629_v55, %v12794_v36  ;;  %v6148_v39 = vpop.f32.mrb[43].mxu1  ;;  %v13001_v13 = vadd.f32 %v12799_v15, %v6240_v49 }
 0x624   : > { %v12989_v32 = vadd.f32 %v12799_v15, %v6238_v14  ;;  %v6239_v54 = vmul.f32 %v12794_v36, %v6148_v39 }
 0x625   : > { %v6330_v61 = vadd.f32 %v6329_v20, %v6328_v43  ;;  %v13009_v48 = vadd.f32 %v12799_v15, %v6241_v52  ;;  %v6335_v51 = vsel %vm15564_vm0, %v13001_v13, 0.0  ;;  %v6403_v58 = vsel %vm15564_vm0, %v13001_v13, -inf }
 0x626   : > { %v6331_v18 = vsel %vm15564_vm0, %v12989_v32, 0.0  ;;  %v13006_v25 = vadd.f32 %v12799_v15, %v6239_v54  ;;  %v6399_v21 = vsel %vm15564_vm0, %v12989_v32, -inf  ;;  %v6404_v54 = vmax.f32 %v6396_v12, %v6403_v58 }
 0x627   : > { %v6332_v7 = vadd.f32 %v6331_v18, %v6330_v61  ;;  %v6405_v14 = vsel %vm15564_vm0, %v13009_v48, -inf  ;;  %v6337_v52 = vsel %vm15564_vm0, %v13009_v48, 0.0  ;;  %v6400_v45 = vmax.f32 %v6392_v8, %v6399_v21 }
 0x628   : > { %v6333_v30 = vsel %vm15564_vm0, %v13006_v25, 0.0  ;;  %v10632_v56 = vpop.f32.mrb[44].mxu1  ;;  %v6401_v39 = vsel %vm15564_vm0, %v13006_v25, -inf  ;;  %v6406_v61 = vmax.f32 %v6398_v24, %v6405_v14 }
 0x629   : > { %v6334_v62 = vadd.f32 %v6333_v30, %v6332_v7  ;;  %v6244_v44 = vmul.f32 %v10632_v56, %v12794_v36  ;;  %v6161_v5 = vpop.f32.mrb[45].mxu1 }
 0x62a   : > { %v6242_v27 = vmul.f32 %v12794_v36, %v6161_v5  ;;  %v10633_v49 = vpop.f32.mrb[46].mxu1 }
 0x62b   : > { %v6336_v55 = vadd.f32 %v6335_v51, %v6334_v62  ;;  %v13024_v47 = vadd.f32 %v12799_v15, %v6244_v44  ;;  %v6245_v23 = vmul.f32 %v10633_v49, %v12794_v36  ;;  %v6164_v43 = vpop.f32.mrb[47].mxu1 }
 0x62c   : > { %v13032_v6 = vadd.f32 %v12799_v15, %v6242_v27  ;;  %v6243_v20 = vmul.f32 %v12794_v36, %v6164_v43  ;;  %v6402_v36 = vmax.f32 %v6394_v31, %v6401_v39 }
 0x62d   : > { %v6411_v35 = vsel %vm15564_vm0, %v13024_v47, -inf  ;;  %v6338_v40 = vadd.f32 %v6337_v52, %v6336_v55  ;;  %v13038_v16 = vadd.f32 %v12799_v15, %v6245_v23 }
 0x62e   : > { %v6339_v22 = vsel %vm15564_vm0, %v13032_v6, 0.0  ;;  %v6407_v18 = vsel %vm15564_vm0, %v13032_v6, -inf  ;;  %v13045_v26 = vadd.f32 %v12799_v15, %v6243_v20  ;;  %v6412_v30 = vmax.f32 %v6404_v54, %v6411_v35 }
 0x62f   : > { %v6340_v7 = vadd.f32 %v6339_v22, %v6338_v40  ;;  %v6413_v12 = vsel %vm15564_vm0, %v13038_v16, -inf  ;;  %v6408_v44 = vmax.f32 %v6400_v45, %v6407_v18  ;;  %v6343_v15 = vsel %vm15564_vm0, %v13024_v47, 0.0  ;;  %v6439_v45 = vld [vmem:[%s15604_s7 + $0x1] sm:$0x1] }
 0x630   : > { %v6414_v56 = vmax.f32 %v6406_v61, %v6413_v12  ;;  %v6341_v24 = vsel %vm15564_vm0, %v13045_v26, 0.0  ;;  %v6409_v62 = vsel %vm15564_vm0, %v13045_v26, -inf  ;;  %v6345_v21 = vsel %vm15564_vm0, %v13038_v16, 0.0 }
 0x631   : > { %v6342_v5 = vadd.f32 %v6341_v24, %v6340_v7  ;;  %v6410_v51 = vmax.f32 %v6402_v36, %v6409_v62  ;;  %v6424_v36 = vld [vmem:[%s15604_s7] sm:$0x1]  ;;  %s15521_s7 = smov 125  }
 0x632   : > { %v6416_v8 = vmax.f32 %v6412_v30, %v6414_v56 }
 0x633   : > { %v6344_v31 = vadd.f32 %v6343_v15, %v6342_v5  ;;  %v6415_v58 = vmax.f32 %v6408_v44, %v6410_v51 }
 0x635   : > { %v6346_v27 = vadd.f32 %v6345_v21, %v6344_v31  ;;  %v6417_v49 = vmax.f32 %v6415_v58, %v6416_v8 }
 0x637   : > { %v6347_v14 = vrot.slane %v6346_v27, 4  ;;  %v6418_v55 = vrot.slane %v6417_v49, 4 }
 0x639   : > { %v6348_v23 = vadd.f32 %v6347_v14, %v6346_v27  ;;  %v6419_v43 = vmax.f32 %v6417_v49, %v6418_v55  ;;  %v6451_v14 = vld [vmem:[%s15605_s8 + $0x1] sm:$0x1]  ;;  %v6436_v55 = vld [vmem:[%s15605_s8] sm:$0x1]  ;;  %s13573_s8 = sld [smem:[#allocation5 + $0x1b]] }
 0x63b   : > { %v6349_v52 = vrot.slane %v6348_v23, 2  ;;  %v6420_v39 = vrot.slane %v6419_v43, 2 }
 0x63d   : > { %v6350_v20 = vadd.f32 %v6349_v52, %v6348_v23  ;;  %v6421_v54 = vmax.f32 %v6419_v43, %v6420_v39 }
 0x63f   : > { %v6351_v35 = vrot.slane %v6350_v20, 1  ;;  %v6422_v40 = vrot.slane %v6421_v54, 1 }
 0x641   : > { %v6352_v61 = vadd.f32 %v6351_v35, %v6350_v20  ;;  %v6423_v18 = vmax.f32 %v6421_v54, %v6422_v40 }
 0x643   : > { %v6354_v22 = vmul.f32 0.00390625, %v6352_v61  ;;  %v6445_v24 = vmul.f32 %v6439_v45, %v6423_v18  ;;  %v6430_v62 = vmul.f32 %v6424_v36, %v6423_v18  ;;  %v427_v61 = vlaneseq }
 0x645   : > { %v6440_v7 = vmul.f32 %v6439_v45, %v6354_v22  ;;  %v6425_v12 = vmul.f32 %v6424_v36, %v6354_v22  ;;  %v6446_v44 = vsel %vm382_vm2, %v6445_v24, 0.0  ;;  %v6431_v5 = vsel %vm382_vm2, %v6430_v62, 0.0 }
 0x646   : > { %v13074_v22 = vshrl.u32 %v427_v61, 7 }
 0x647   : > { %v6441_v30 = vsel %vm382_vm2, %v6440_v7, 0.0  ;;  %v6426_v56 = vsel %vm382_vm2, %v6425_v12, 0.0  ;;  %vm419_vm2 = vcmask 179200  }
 0x648   : > { %6442 = vadd.xlane.f32.xlu1 %v6441_v30  ;;  %6427 = vadd.xlane.f32.xlu0 %v6426_v56  ;;  %v6462_v18 = vsub.s32 0, %v13074_v22  ;;  %424 = vst.msk [vmem:[#allocation4] sm:$0xff] %vm419_vm2, %v15523_v2  ;;  %425 = vst.msk [vmem:[#allocation4 + $0x8] sm:$0xff] %vm419_vm2, %v15523_v2 }
 0x649   : > { %420 = vst.msk [vmem:[#allocation3] sm:$0xff] %vm419_vm2, %v15523_v2  ;;  %421 = vst.msk [vmem:[#allocation3 + $0x8] sm:$0xff] %vm419_vm2, %v15523_v2 }
 0x64c   : > { %6447 = vadd.xlane.f32.xlu1 %v6446_v44  ;;  %6432 = vadd.xlane.f32.xlu0 %v6431_v5 }
 0x6d5   : > { %v6443_v51 = vpop.xlane.xlu1 %6442  ;;  %v6428_v15 = vpop.xlane.xlu0 %6427 }
 0x6d6   : > { %v6444_v58 = vmax.f32 %v6443_v51, 0.0  ;;  %v6429_v21 = vmax.f32 %v6428_v15, 0.0 }
 0x6d9   : > { %v6448_v8 = vpop.xlane.xlu1 %6447  ;;  %v6433_v31 = vpop.xlane.xlu0 %6432 }
 0x6da   : > { %v6449_v27 = vmax.f32 %v6448_v8, 0.0  ;;  %v6434_v49 = vmax.f32 %v6433_v31, 0.0 }
 0x6dc   : > { %v6450_v23 = vadd.f32 %v6449_v27, %v6444_v58  ;;  %v6435_v43 = vadd.f32 %v6434_v49, %v6429_v21 }
 0x6de   : > { %v6452_v52 = vmul.f32 %v6451_v14, %v6450_v23  ;;  %v6437_v39 = vmul.f32 %v6436_v55, %v6435_v43 }
 0x6e0   : > { %v6453_v20 = vadd.f32 %v6452_v52, %v6437_v39 }
 0x6e2   : > { %v9405_v54 = vmul.f32 -1.442695, %v6453_v20 }
 0x6e4   : > { %11367 = vpow2.f32 %v9405_v54 }
 0x6ee   : > { %v11368_v35 = vpop.eup %11367 }
 0x6ef   : > { %v6457_v40 = vadd.f32 1.0, %v11368_v35 }
 0x6f1   : > { %11369 = vrcp.f32 %v6457_v40 }
 0x6fb   : > { %v11370_v45 = vpop.eup %11369 }
 0x6fc   : > { %v13077_v36 = vrot.slane %v11370_v45, %v6462_v18 }
 0x6fe   : > { %v13081_v7 = vmul.f32 %v13077_v36, %v12922_v1  ;;  %v13085_v12 = vmul.f32 %v13077_v36, %v12904_v9  ;;  %v13093_v24 = vmul.f32 %v13077_v36, %v12812_v60  ;;  %v13097_v62 = vmul.f32 %v13077_v36, %v12804_v0 }
 0x6ff   : > { %v13113_v51 = vmul.f32 %v13077_v36, %v12933_v17  ;;  %v13117_v15 = vmul.f32 %v13077_v36, %v12917_v57  ;;  %v13125_v58 = vmul.f32 %v13077_v36, %v12817_v28  ;;  %v13129_v17 = vmul.f32 %v13077_v36, %v12809_v11 }
 0x700   : > { %15606 = vst [vmem:[#allocation12_spill] sm:$0xff] %v13081_v7  ;;  %15607 = vst [vmem:[#allocation13_spill] sm:$0xff] %v13085_v12  ;;  %v6547_v30 = vsel %vm15564_vm0, %v13081_v7, 0.0  ;;  %v6544_v56 = vsel %vm15564_vm0, %v13085_v12, 0.0  ;;  %v6499_v9 = vsel %vm15564_vm0, %v13093_v24, 0.0  ;;  %v6496_v1 = vsel %vm15564_vm0, %v13097_v62, 0.0 }
 0x701   : > { %15608 = vst [vmem:[#allocation14_spill] sm:$0xff] %v13093_v24  ;;  %15609 = vst [vmem:[#allocation15_spill] sm:$0xff] %v13097_v62  ;;  %6548 = vadd.xlane.f32.xlu1 %v6547_v30  ;;  %6545 = vadd.xlane.f32.xlu0 %v6544_v56  ;;  %v6794_v44 = vsel %vm15564_vm0, %v13081_v7, -inf  ;;  %v6791_v60 = vsel %vm15564_vm0, %v13085_v12, -inf  ;;  %v6746_v0 = vsel %vm15564_vm0, %v13093_v24, -inf  ;;  %v6743_v5 = vsel %vm15564_vm0, %v13097_v62, -inf }
 0x702   : > { %15610 = vst [vmem:[#allocation16_spill] sm:$0xff] %v13113_v51  ;;  %15611 = vst [vmem:[#allocation17_spill] sm:$0xff] %v13117_v15  ;;  %v6553_v8 = vsel %vm15564_vm0, %v13113_v51, 0.0  ;;  %v6550_v31 = vsel %vm15564_vm0, %v13117_v15, 0.0  ;;  %v6505_v57 = vsel %vm15564_vm0, %v13125_v58, 0.0  ;;  %v6502_v21 = vsel %vm15564_vm0, %v13129_v17, 0.0 }
 0x703   : > { %15612 = vst [vmem:[#allocation18_spill] sm:$0xff] %v13125_v58  ;;  %15613 = vst [vmem:[#allocation19_spill] sm:$0xff] %v13129_v17  ;;  %v6800_v27 = vsel %vm15564_vm0, %v13113_v51, -inf  ;;  %v6797_v28 = vsel %vm15564_vm0, %v13117_v15, -inf  ;;  %v6752_v11 = vsel %vm15564_vm0, %v13125_v58, -inf  ;;  %v6749_v49 = vsel %vm15564_vm0, %v13129_v17, -inf }
 0x704   : > { %v13145_v14 = vmul.f32 %v13077_v36, %v12966_v10  ;;  %v13149_v55 = vmul.f32 %v13077_v36, %v12948_v46  ;;  %v13157_v52 = vmul.f32 %v13077_v36, %v12838_v29  ;;  %v13161_v10 = vmul.f32 %v13077_v36, %v12828_v59 }
 0x705   : > { %6500 = vadd.xlane.f32.xlu1 %v6499_v9  ;;  %6497 = vadd.xlane.f32.xlu0 %v6496_v1  ;;  %v13177_v35 = vmul.f32 %v13077_v36, %v12973_v19  ;;  %v13181_v40 = vmul.f32 %v13077_v36, %v12961_v42  ;;  %v13189_v30 = vmul.f32 %v13077_v36, %v12841_v4 }
 0x706   : > { %15614 = vst [vmem:[#allocation20_spill] sm:$0xff] %v13145_v14  ;;  %15615 = vst [vmem:[#allocation21_spill] sm:$0xff] %v13149_v55  ;;  %v6559_v23 = vsel %vm15564_vm0, %v13145_v14, 0.0  ;;  %v6556_v43 = vsel %vm15564_vm0, %v13149_v55, 0.0  ;;  %v6511_v46 = vsel %vm15564_vm0, %v13157_v52, 0.0  ;;  %v6508_v39 = vsel %vm15564_vm0, %v13161_v10, 0.0 }
 0x707   : > { %15616 = vst [vmem:[#allocation22_spill] sm:$0xff] %v13157_v52  ;;  %15617 = vst [vmem:[#allocation23_spill] sm:$0xff] %v13161_v10  ;;  %v6806_v20 = vsel %vm15564_vm0, %v13145_v14, -inf  ;;  %v6803_v29 = vsel %vm15564_vm0, %v13149_v55, -inf  ;;  %v6758_v59 = vsel %vm15564_vm0, %v13157_v52, -inf  ;;  %v6755_v54 = vsel %vm15564_vm0, %v13161_v10, -inf }
 0x708   : > { %15618 = vst [vmem:[#allocation24_spill] sm:$0xff] %v13177_v35  ;;  %15619 = vst [vmem:[#allocation25_spill] sm:$0xff] %v13181_v40  ;;  %v6565_v18 = vsel %vm15564_vm0, %v13177_v35, 0.0  ;;  %v6562_v45 = vsel %vm15564_vm0, %v13181_v40, 0.0  ;;  %v13193_v19 = vmul.f32 %v13077_v36, %v12833_v38  ;;  %v6517_v42 = vsel %vm15564_vm0, %v13189_v30, 0.0 }
 0x709   : > { %6795 = vmax.xlane.f32.xlu1 %v6794_v44  ;;  %6792 = vmax.xlane.f32.xlu0 %v6791_v60  ;;  %15620 = vst [vmem:[#allocation26_spill] sm:$0xff] %v13189_v30  ;;  %v6812_v9 = vsel %vm15564_vm0, %v13177_v35, -inf  ;;  %v6809_v4 = vsel %vm15564_vm0, %v13181_v40, -inf  ;;  %v6764_v38 = vsel %vm15564_vm0, %v13189_v30, -inf  ;;  %v13209_v44 = vmul.f32 %v13077_v36, %v13006_v25 }
 0x70a   : > { %15621 = vst [vmem:[#allocation27_spill] sm:$0xff] %v13193_v19  ;;  %v6514_v56 = vsel %vm15564_vm0, %v13193_v19, 0.0  ;;  %v6761_v1 = vsel %vm15564_vm0, %v13193_v19, -inf  ;;  %v13213_v60 = vmul.f32 %v13077_v36, %v12989_v32  ;;  %v13225_v25 = vmul.f32 %v13077_v36, %v12852_v63 }
 0x70b   : > { %15622 = vst [vmem:[#allocation28_spill] sm:$0xff] %v13209_v44 }
 0x70c   : > { %15623 = vst [vmem:[#allocation29_spill] sm:$0xff] %v13213_v60  ;;  %15625 = vst [vmem:[#allocation31_spill] sm:$0xff] %v13225_v25 }
 0x70d   : > { %6747 = vmax.xlane.f32.xlu1 %v6746_v0  ;;  %6744 = vmax.xlane.f32.xlu0 %v6743_v5  ;;  %v6571_v0 = vsel %vm15564_vm0, %v13209_v44, 0.0  ;;  %v6568_v5 = vsel %vm15564_vm0, %v13213_v60, 0.0 }
 0x711   : > { %6554 = vadd.xlane.f32.xlu1 %v6553_v8  ;;  %6551 = vadd.xlane.f32.xlu0 %v6550_v31  ;;  %v13221_v8 = vmul.f32 %v13077_v36, %v12862_v37  ;;  %v6520_v31 = vsel %vm15564_vm0, %v13225_v25, 0.0  ;;  %v6815_v37 = vsel %vm15564_vm0, %v13213_v60, -inf }
 0x713   : > { %15624 = vst [vmem:[#allocation30_spill] sm:$0xff] %v13221_v8  ;;  %v6523_v32 = vsel %vm15564_vm0, %v13221_v8, 0.0  ;;  %v6770_v63 = vsel %vm15564_vm0, %v13221_v8, -inf }
 0x715   : > { %6506 = vadd.xlane.f32.xlu1 %v6505_v57  ;;  %6503 = vadd.xlane.f32.xlu0 %v6502_v21  ;;  %v6818_v57 = vsel %vm15564_vm0, %v13209_v44, -inf  ;;  %v6767_v21 = vsel %vm15564_vm0, %v13225_v25, -inf  ;;  %v15654_v44 = vstv %s13514_s12 }
 0x719   : > { %6801 = vmax.xlane.f32.xlu1 %v6800_v27  ;;  %6798 = vmax.xlane.f32.xlu0 %v6797_v28  ;;  %v13241_v27 = vmul.f32 %v13077_v36, %v13009_v48  ;;  %v13245_v28 = vmul.f32 %v13077_v36, %v13001_v13  ;;  %v13257_v48 = vmul.f32 %v13077_v36, %v12857_v41 }
 0x71b   : > { %15626 = vst [vmem:[#allocation32_spill] sm:$0xff] %v13241_v27  ;;  %15627 = vst [vmem:[#allocation33_spill] sm:$0xff] %v13245_v28 }
 0x71c   : > { %15629 = vst [vmem:[#allocation35_spill] sm:$0xff] %v13257_v48 }
 0x71d   : > { %6753 = vmax.xlane.f32.xlu1 %v6752_v11  ;;  %6750 = vmax.xlane.f32.xlu0 %v6749_v49  ;;  %v6577_v11 = vsel %vm15564_vm0, %v13241_v27, 0.0  ;;  %v6574_v49 = vsel %vm15564_vm0, %v13245_v28, 0.0 }
 0x721   : > { %6560 = vadd.xlane.f32.xlu1 %v6559_v23  ;;  %6557 = vadd.xlane.f32.xlu0 %v6556_v43  ;;  %v13253_v23 = vmul.f32 %v13077_v36, %v12865_v34  ;;  %v6526_v43 = vsel %vm15564_vm0, %v13257_v48, 0.0  ;;  %v6821_v34 = vsel %vm15564_vm0, %v13245_v28, -inf }
 0x723   : > { %15628 = vst [vmem:[#allocation34_spill] sm:$0xff] %v13253_v23  ;;  %v6529_v13 = vsel %vm15564_vm0, %v13253_v23, 0.0  ;;  %v6776_v41 = vsel %vm15564_vm0, %v13253_v23, -inf }
 0x725   : > { %6512 = vadd.xlane.f32.xlu1 %v6511_v46  ;;  %6509 = vadd.xlane.f32.xlu0 %v6508_v39  ;;  %v6824_v46 = vsel %vm15564_vm0, %v13241_v27, -inf  ;;  %v6773_v39 = vsel %vm15564_vm0, %v13257_v48, -inf }
 0x729   : > { %6807 = vmax.xlane.f32.xlu1 %v6806_v20  ;;  %6804 = vmax.xlane.f32.xlu0 %v6803_v29  ;;  %v13273_v20 = vmul.f32 %v13077_v36, %v13045_v26  ;;  %v13277_v29 = vmul.f32 %v13077_v36, %v13032_v6  ;;  %v13289_v26 = vmul.f32 %v13077_v36, %v12876_v3 }
 0x72b   : > { %15630 = vst [vmem:[#allocation36_spill] sm:$0xff] %v13273_v20  ;;  %15631 = vst [vmem:[#allocation37_spill] sm:$0xff] %v13277_v29 }
 0x72c   : > { %15633 = vst [vmem:[#allocation39_spill] sm:$0xff] %v13289_v26 }
 0x72d   : > { %6759 = vmax.xlane.f32.xlu1 %v6758_v59  ;;  %6756 = vmax.xlane.f32.xlu0 %v6755_v54  ;;  %v6583_v59 = vsel %vm15564_vm0, %v13273_v20, 0.0  ;;  %v6580_v54 = vsel %vm15564_vm0, %v13277_v29, 0.0 }
 0x731   : > { %6566 = vadd.xlane.f32.xlu1 %v6565_v18  ;;  %6563 = vadd.xlane.f32.xlu0 %v6562_v45  ;;  %v13285_v18 = vmul.f32 %v13077_v36, %v12886_v50  ;;  %v6532_v45 = vsel %vm15564_vm0, %v13289_v26, 0.0  ;;  %v6827_v50 = vsel %vm15564_vm0, %v13277_v29, -inf }
 0x733   : > { %15632 = vst [vmem:[#allocation38_spill] sm:$0xff] %v13285_v18  ;;  %v6535_v6 = vsel %vm15564_vm0, %v13285_v18, 0.0  ;;  %v6782_v3 = vsel %vm15564_vm0, %v13285_v18, -inf }
 0x735   : > { %6518 = vadd.xlane.f32.xlu1 %v6517_v42  ;;  %6515 = vadd.xlane.f32.xlu0 %v6514_v56  ;;  %v6830_v42 = vsel %vm15564_vm0, %v13273_v20, -inf  ;;  %v6779_v56 = vsel %vm15564_vm0, %v13289_v26, -inf  ;;  %v13640_v20 = vstv %s13566_s5  ;;  %s11483_s5 = smov 122  }
 0x739   : > { %6813 = vmax.xlane.f32.xlu1 %v6812_v9  ;;  %6810 = vmax.xlane.f32.xlu0 %v6809_v4  ;;  %v13305_v9 = vmul.f32 %v13077_v36, %v13038_v16  ;;  %v13309_v4 = vmul.f32 %v13077_v36, %v13024_v47  ;;  %v13321_v16 = vmul.f32 %v13077_v36, %v12881_v53 }
 0x73b   : > { %15634 = vst [vmem:[#allocation40_spill] sm:$0xff] %v13305_v9  ;;  %15635 = vst [vmem:[#allocation41_spill] sm:$0xff] %v13309_v4 }
 0x73c   : > { %15637 = vst [vmem:[#allocation43_spill] sm:$0xff] %v13321_v16 }
 0x73d   : > { %6765 = vmax.xlane.f32.xlu1 %v6764_v38  ;;  %6762 = vmax.xlane.f32.xlu0 %v6761_v1  ;;  %v6589_v38 = vsel %vm15564_vm0, %v13305_v9, 0.0  ;;  %v6586_v1 = vsel %vm15564_vm0, %v13309_v4, 0.0 }
 0x741   : > { %6572 = vadd.xlane.f32.xlu1 %v6571_v0  ;;  %6569 = vadd.xlane.f32.xlu0 %v6568_v5  ;;  %v13317_v0 = vmul.f32 %v13077_v36, %v12889_v33  ;;  %v6538_v5 = vsel %vm15564_vm0, %v13321_v16, 0.0  ;;  %v6833_v33 = vsel %vm15564_vm0, %v13309_v4, -inf  ;;  %v6785_v36 = vsel %vm15564_vm0, %v13321_v16, -inf }
 0x743   : > { %15636 = vst [vmem:[#allocation42_spill] sm:$0xff] %v13317_v0  ;;  %v6541_v47 = vsel %vm15564_vm0, %v13317_v0, 0.0  ;;  %v6788_v53 = vsel %vm15564_vm0, %v13317_v0, -inf }
 0x745   : > { %6524 = vadd.xlane.f32.xlu1 %v6523_v32  ;;  %6521 = vadd.xlane.f32.xlu0 %v6520_v31  ;;  %v6836_v32 = vsel %vm15564_vm0, %v13305_v9, -inf  ;;  %v13336_v31 = vadd.s32 8, %v13074_v22 }
 0x749   : > { %6819 = vmax.xlane.f32.xlu1 %v6818_v57  ;;  %6816 = vmax.xlane.f32.xlu0 %v6815_v37  ;;  %v13339_v57 = vand.u32 127, %v427_v61  ;;  %v437_v61 = vmul.u32 16, %v13074_v22 }
 0x74b   : > { %vm433_vm3 = vcmp.eq.s32.totalorder %v13336_v31, %v13339_v57  ;;  %vm432_vm4 = vcmp.eq.s32.totalorder %v13074_v22, %v13339_v57  ;;  %vm13364_vm6 = vcmp.ge.s32.totalorder %v13339_v57, %v437_v61 }
 0x74c   : > { %v13346_v37 = vsel %vm433_vm3, 1.0, %v15523_v2  ;;  %vm422_vm3 = vcmask 177152  }
 0x74d   : > { %6771 = vmax.xlane.f32.xlu1 %v6770_v63  ;;  %6768 = vmax.xlane.f32.xlu0 %v6767_v21  ;;  %15638 = vst [vmem:[#allocation44_spill] sm:$0xff] %v13346_v37  ;;  %v13349_v21 = vsel %vm432_vm4, 1.0, %v15523_v2  ;;  %426 = vst.msk [vmem:[#allocation4 + $0x10] sm:$0x3f] %vm422_vm3, %v15523_v2  ;;  %vm6740_vm4 = vcmask 154648  }
 0x74e   : > { %15639 = vst [vmem:[#allocation45_spill] sm:$0xff] %v13349_v21  ;;  %423 = vst.msk [vmem:[#allocation3 + $0x10] sm:$0x3f] %vm422_vm3, %v15523_v2 }
 0x751   : > { %6578 = vadd.xlane.f32.xlu1 %v6577_v11  ;;  %6575 = vadd.xlane.f32.xlu0 %v6574_v49 }
 0x755   : > { %6530 = vadd.xlane.f32.xlu1 %v6529_v13  ;;  %6527 = vadd.xlane.f32.xlu0 %v6526_v43  ;;  %v13352_v43 = vadd.s32 128, %v13339_v57 }
 0x757   : > { %vm13359_vm5 = vcmp.ge.s32.totalorder %v13352_v43, %v437_v61 }
 0x759   : > { %6825 = vmax.xlane.f32.xlu1 %v6824_v46  ;;  %6822 = vmax.xlane.f32.xlu0 %v6821_v34  ;;  %v443_v46 = vadd.s32 1, %v13074_v22 }
 0x75d   : > { %6777 = vmax.xlane.f32.xlu1 %v6776_v41  ;;  %6774 = vmax.xlane.f32.xlu0 %v6773_v39 }
 0x761   : > { %6584 = vadd.xlane.f32.xlu1 %v6583_v59  ;;  %6581 = vadd.xlane.f32.xlu0 %v6580_v54 }
 0x765   : > { %6536 = vadd.xlane.f32.xlu1 %v6535_v6  ;;  %6533 = vadd.xlane.f32.xlu0 %v6532_v45  ;;  %v445_v6 = vmul.u32 16, %v443_v46 }
 0x767   : > { %vm13369_vm7 = vcmp.lt.s32.totalorder %v13339_v57, %v445_v6  ;;  %vm448_vm8 = vcmp.lt.s32.totalorder %v13352_v43, %v445_v6 }
 0x768   : > { %vm452_vm9 = vmand %vm13359_vm5, %vm448_vm8  ;;  %vm7110_vm5 = vcmask 1046528   ;;  %vm15568_vm8 = vcmask 1043456  }
 0x769   : > { %6831 = vmax.xlane.f32.xlu1 %v6830_v42  ;;  %6828 = vmax.xlane.f32.xlu0 %v6827_v50  ;;  %vm451_vm10 = vmand %vm13364_vm6, %vm13369_vm7  ;;  %vm7310_vm6 = vcmask 1045504   ;;  %vm15569_vm7 = vcmask 1044480  }
 0x76d   : > { %6783 = vmax.xlane.f32.xlu1 %v6782_v3  ;;  %6780 = vmax.xlane.f32.xlu0 %v6779_v56 }
 0x771   : > { %6590 = vadd.xlane.f32.xlu1 %v6589_v38  ;;  %6587 = vadd.xlane.f32.xlu0 %v6586_v1 }
 0x775   : > { %6542 = vadd.xlane.f32.xlu1 %v6541_v47  ;;  %6539 = vadd.xlane.f32.xlu0 %v6538_v5 }
 0x779   : > { %6837 = vmax.xlane.f32.xlu1 %v6836_v32  ;;  %6834 = vmax.xlane.f32.xlu0 %v6833_v33  ;;  %v11476_v32 = vmov 1.0  }
 0x77a   : > { %9406 = vmatprep.mubr.msk.f32.mxu0 %vm452_vm9, %v11476_v32  ;;  %9410 = vmatprep.mubr.msk.f32.mxu1 %vm452_vm9, %v11476_v32  ;;  %vm15567_vm9 = vcmask 1042432  }
 0x77d   : > { %6789 = vmax.xlane.f32.xlu1 %v6788_v53  ;;  %6786 = vmax.xlane.f32.xlu0 %v6785_v36 }
 0x78e   : > { %v6549_v63 = vpop.xlane.xlu1 %6548  ;;  %v6546_v11 = vpop.xlane.xlu0 %6545 }
 0x78f   : > { %v6610_v49 = vmul.f32 0.03125, %v6549_v63  ;;  %v6609_v13 = vmul.f32 0.03125, %v6546_v11 }
 0x791   : > { %v6642_v34 = vmul.f32 %v6610_v49, %v13346_v37  ;;  %v6641_v41 = vmul.f32 %v6609_v13, %v13349_v21 }
 0x792   : > { %v6501_v39 = vpop.xlane.xlu1 %6500  ;;  %v6498_v59 = vpop.xlane.xlu0 %6497 }
 0x793   : > { %v6594_v45 = vmul.f32 0.03125, %v6501_v39  ;;  %v6593_v42 = vmul.f32 0.03125, %v6498_v59  ;;  %v10686_v50 = vpack.c.bf16 %v6642_v34, %v6641_v41 }
 0x795   : > { %v6626_v38 = vmul.f32 %v6594_v45, %v13346_v37  ;;  %v6625_v1 = vmul.f32 %v6593_v42, %v13349_v21  ;;  %10687 = vmatprep.subr.bf16.mxu0 %v10686_v50 }
 0x796   : > { %v6796_v47 = vpop.xlane.xlu1 %6795  ;;  %v6793_v5 = vpop.xlane.xlu0 %6792 }
 0x797   : > { %v10688_v33 = vpack.c.bf16 %v6626_v38, %v6625_v1  ;;  %v6856_v53 = vmul.f32 %v6796_v47, %v13346_v37  ;;  %v6855_v36 = vmul.f32 %v6793_v5, %v13349_v21 }
 0x799   : > { %v10718_v63 = vpack.c.bf16 %v6856_v53, %v6855_v36  ;;  %10689 = vmatpush3.bf16.msra.mxu0 %v10688_v33 }
 0x79a   : > { %v6748_v11 = vpop.xlane.xlu1 %6747  ;;  %v6745_v49 = vpop.xlane.xlu0 %6744 }
 0x79b   : > { %v6840_v13 = vmul.f32 %v6748_v11, %v13346_v37  ;;  %v6839_v61 = vmul.f32 %v6745_v49, %v13349_v21  ;;  %10719 = vmatprep.subr.bf16.mxu1 %v10718_v63 }
 0x79d   : > { %v10720_v46 = vpack.c.bf16 %v6840_v13, %v6839_v61 }
 0x79e   : > { %v6555_v34 = vpop.xlane.xlu1 %6554  ;;  %v6552_v41 = vpop.xlane.xlu0 %6551 }
 0x79f   : > { %v6612_v39 = vmul.f32 0.03125, %v6555_v34  ;;  %v6611_v59 = vmul.f32 0.03125, %v6552_v41  ;;  %10721 = vmatpush3.bf16.msra.mxu1 %v10720_v46 }
 0x7a1   : > { %v6644_v54 = vmul.f32 %v6612_v39, %v13346_v37  ;;  %v6643_v6 = vmul.f32 %v6611_v59, %v13349_v21 }
 0x7a2   : > { %v6507_v45 = vpop.xlane.xlu1 %6506  ;;  %v6504_v42 = vpop.xlane.xlu0 %6503 }
 0x7a3   : > { %v6596_v50 = vmul.f32 0.03125, %v6507_v45  ;;  %v6595_v38 = vmul.f32 0.03125, %v6504_v42  ;;  %v10690_v1 = vpack.c.bf16 %v6644_v54, %v6643_v6 }
 0x7a5   : > { %v6628_v47 = vmul.f32 %v6596_v50, %v13346_v37  ;;  %v6627_v5 = vmul.f32 %v6595_v38, %v13349_v21  ;;  %10691 = vmatprep.subr.bf16.mxu0 %v10690_v1 }
 0x7a6   : > { %v6802_v33 = vpop.xlane.xlu1 %6801  ;;  %v6799_v53 = vpop.xlane.xlu0 %6798 }
 0x7a7   : > { %v10692_v36 = vpack.c.bf16 %v6628_v47, %v6627_v5  ;;  %v6858_v63 = vmul.f32 %v6802_v33, %v13346_v37  ;;  %v6857_v11 = vmul.f32 %v6799_v53, %v13349_v21 }
 0x7a9   : > { %v10722_v49 = vpack.c.bf16 %v6858_v63, %v6857_v11  ;;  %10693 = vmatpush3.bf16.msra.mxu0 %v10692_v36 }
 0x7aa   : > { %v6754_v13 = vpop.xlane.xlu1 %6753  ;;  %v6751_v61 = vpop.xlane.xlu0 %6750 }
 0x7ab   : > { %v6842_v46 = vmul.f32 %v6754_v13, %v13346_v37  ;;  %v6841_v34 = vmul.f32 %v6751_v61, %v13349_v21  ;;  %10723 = vmatprep.subr.bf16.mxu1 %v10722_v49 }
 0x7ad   : > { %v10724_v41 = vpack.c.bf16 %v6842_v46, %v6841_v34 }
 0x7ae   : > { %v6561_v39 = vpop.xlane.xlu1 %6560  ;;  %v6558_v59 = vpop.xlane.xlu0 %6557 }
 0x7af   : > { %v6614_v54 = vmul.f32 0.03125, %v6561_v39  ;;  %v6613_v6 = vmul.f32 0.03125, %v6558_v59  ;;  %10725 = vmatpush3.bf16.msra.mxu1 %v10724_v41 }
 0x7b1   : > { %v6646_v45 = vmul.f32 %v6614_v54, %v13346_v37  ;;  %v6645_v42 = vmul.f32 %v6613_v6, %v13349_v21 }
 0x7b2   : > { %v6513_v50 = vpop.xlane.xlu1 %6512  ;;  %v6510_v38 = vpop.xlane.xlu0 %6509 }
 0x7b3   : > { %v6598_v1 = vmul.f32 0.03125, %v6513_v50  ;;  %v6597_v47 = vmul.f32 0.03125, %v6510_v38  ;;  %v10694_v5 = vpack.c.bf16 %v6646_v45, %v6645_v42 }
 0x7b5   : > { %v6630_v33 = vmul.f32 %v6598_v1, %v13346_v37  ;;  %v6629_v53 = vmul.f32 %v6597_v47, %v13349_v21  ;;  %10695 = vmatprep.subr.bf16.mxu0 %v10694_v5 }
 0x7b6   : > { %v6808_v36 = vpop.xlane.xlu1 %6807  ;;  %v6805_v63 = vpop.xlane.xlu0 %6804 }
 0x7b7   : > { %v10696_v11 = vpack.c.bf16 %v6630_v33, %v6629_v53  ;;  %v6860_v49 = vmul.f32 %v6808_v36, %v13346_v37  ;;  %v6859_v13 = vmul.f32 %v6805_v63, %v13349_v21 }
 0x7b9   : > { %v10726_v61 = vpack.c.bf16 %v6860_v49, %v6859_v13  ;;  %10697 = vmatpush3.bf16.msra.mxu0 %v10696_v11 }
 0x7ba   : > { %v6760_v46 = vpop.xlane.xlu1 %6759  ;;  %v6757_v34 = vpop.xlane.xlu0 %6756 }
 0x7bb   : > { %v6844_v41 = vmul.f32 %v6760_v46, %v13346_v37  ;;  %v6843_v39 = vmul.f32 %v6757_v34, %v13349_v21  ;;  %10727 = vmatprep.subr.bf16.mxu1 %v10726_v61 }
 0x7bd   : > { %v10728_v59 = vpack.c.bf16 %v6844_v41, %v6843_v39 }
 0x7be   : > { %v6567_v54 = vpop.xlane.xlu1 %6566  ;;  %v6564_v6 = vpop.xlane.xlu0 %6563 }
 0x7bf   : > { %v6616_v45 = vmul.f32 0.03125, %v6567_v54  ;;  %v6615_v42 = vmul.f32 0.03125, %v6564_v6  ;;  %10729 = vmatpush3.bf16.msra.mxu1 %v10728_v59 }
 0x7c1   : > { %v6648_v50 = vmul.f32 %v6616_v45, %v13346_v37  ;;  %v6647_v38 = vmul.f32 %v6615_v42, %v13349_v21 }
 0x7c2   : > { %v6519_v1 = vpop.xlane.xlu1 %6518  ;;  %v6516_v47 = vpop.xlane.xlu0 %6515 }
 0x7c3   : > { %v6600_v5 = vmul.f32 0.03125, %v6519_v1  ;;  %v6599_v33 = vmul.f32 0.03125, %v6516_v47  ;;  %v10698_v53 = vpack.c.bf16 %v6648_v50, %v6647_v38 }
 0x7c5   : > { %v6632_v36 = vmul.f32 %v6600_v5, %v13346_v37  ;;  %v6631_v63 = vmul.f32 %v6599_v33, %v13349_v21  ;;  %10699 = vmatprep.subr.bf16.mxu0 %v10698_v53 }
 0x7c6   : > { %v6814_v11 = vpop.xlane.xlu1 %6813  ;;  %v6811_v49 = vpop.xlane.xlu0 %6810 }
 0x7c7   : > { %v10700_v13 = vpack.c.bf16 %v6632_v36, %v6631_v63  ;;  %v6862_v61 = vmul.f32 %v6814_v11, %v13346_v37  ;;  %v6861_v46 = vmul.f32 %v6811_v49, %v13349_v21 }
 0x7c9   : > { %v10730_v34 = vpack.c.bf16 %v6862_v61, %v6861_v46  ;;  %10701 = vmatpush3.bf16.msra.mxu0 %v10700_v13 }
 0x7ca   : > { %v6766_v41 = vpop.xlane.xlu1 %6765  ;;  %v6763_v39 = vpop.xlane.xlu0 %6762 }
 0x7cb   : > { %v6846_v59 = vmul.f32 %v6766_v41, %v13346_v37  ;;  %v6845_v54 = vmul.f32 %v6763_v39, %v13349_v21  ;;  %10731 = vmatprep.subr.bf16.mxu1 %v10730_v34 }
 0x7cd   : > { %v10732_v6 = vpack.c.bf16 %v6846_v59, %v6845_v54 }
 0x7ce   : > { %v6573_v45 = vpop.xlane.xlu1 %6572  ;;  %v6570_v42 = vpop.xlane.xlu0 %6569 }
 0x7cf   : > { %v6618_v50 = vmul.f32 0.03125, %v6573_v45  ;;  %v6617_v38 = vmul.f32 0.03125, %v6570_v42  ;;  %10733 = vmatpush3.bf16.msra.mxu1 %v10732_v6 }
 0x7d1   : > { %v6650_v1 = vmul.f32 %v6618_v50, %v13346_v37  ;;  %v6649_v47 = vmul.f32 %v6617_v38, %v13349_v21 }
 0x7d2   : > { %v6525_v5 = vpop.xlane.xlu1 %6524  ;;  %v6522_v33 = vpop.xlane.xlu0 %6521 }
 0x7d3   : > { %v6602_v53 = vmul.f32 0.03125, %v6525_v5  ;;  %v6601_v36 = vmul.f32 0.03125, %v6522_v33  ;;  %v10702_v63 = vpack.c.bf16 %v6650_v1, %v6649_v47 }
 0x7d5   : > { %v6634_v11 = vmul.f32 %v6602_v53, %v13346_v37  ;;  %v6633_v49 = vmul.f32 %v6601_v36, %v13349_v21  ;;  %10703 = vmatprep.subr.bf16.mxu0 %v10702_v63 }
 0x7d6   : > { %v6820_v13 = vpop.xlane.xlu1 %6819  ;;  %v6817_v61 = vpop.xlane.xlu0 %6816 }
 0x7d7   : > { %v10704_v46 = vpack.c.bf16 %v6634_v11, %v6633_v49  ;;  %v6864_v34 = vmul.f32 %v6820_v13, %v13346_v37  ;;  %v6863_v41 = vmul.f32 %v6817_v61, %v13349_v21 }
 0x7d9   : > { %v10734_v39 = vpack.c.bf16 %v6864_v34, %v6863_v41  ;;  %10705 = vmatpush3.bf16.msra.mxu0 %v10704_v46 }
 0x7da   : > { %v6772_v59 = vpop.xlane.xlu1 %6771  ;;  %v6769_v54 = vpop.xlane.xlu0 %6768 }
 0x7db   : > { %v6848_v6 = vmul.f32 %v6772_v59, %v13346_v37  ;;  %v6847_v45 = vmul.f32 %v6769_v54, %v13349_v21  ;;  %10735 = vmatprep.subr.bf16.mxu1 %v10734_v39 }
 0x7dd   : > { %v10736_v42 = vpack.c.bf16 %v6848_v6, %v6847_v45 }
 0x7de   : > { %v6579_v50 = vpop.xlane.xlu1 %6578  ;;  %v6576_v38 = vpop.xlane.xlu0 %6575 }
 0x7df   : > { %v6620_v1 = vmul.f32 0.03125, %v6579_v50  ;;  %v6619_v47 = vmul.f32 0.03125, %v6576_v38  ;;  %10737 = vmatpush3.bf16.msra.mxu1 %v10736_v42 }
 0x7e1   : > { %v6652_v5 = vmul.f32 %v6620_v1, %v13346_v37  ;;  %v6651_v33 = vmul.f32 %v6619_v47, %v13349_v21 }
 0x7e2   : > { %v6531_v53 = vpop.xlane.xlu1 %6530  ;;  %v6528_v36 = vpop.xlane.xlu0 %6527 }
 0x7e3   : > { %v6604_v63 = vmul.f32 0.03125, %v6531_v53  ;;  %v6603_v11 = vmul.f32 0.03125, %v6528_v36  ;;  %v10706_v49 = vpack.c.bf16 %v6652_v5, %v6651_v33 }
 0x7e5   : > { %v6636_v13 = vmul.f32 %v6604_v63, %v13346_v37  ;;  %v6635_v61 = vmul.f32 %v6603_v11, %v13349_v21  ;;  %10707 = vmatprep.subr.bf16.mxu0 %v10706_v49 }
 0x7e6   : > { %v6826_v46 = vpop.xlane.xlu1 %6825  ;;  %v6823_v34 = vpop.xlane.xlu0 %6822 }
 0x7e7   : > { %v10708_v41 = vpack.c.bf16 %v6636_v13, %v6635_v61  ;;  %v6866_v39 = vmul.f32 %v6826_v46, %v13346_v37  ;;  %v6865_v59 = vmul.f32 %v6823_v34, %v13349_v21 }
 0x7e9   : > { %v10738_v54 = vpack.c.bf16 %v6866_v39, %v6865_v59  ;;  %10709 = vmatpush3.bf16.msra.mxu0 %v10708_v41 }
 0x7ea   : > { %v6778_v6 = vpop.xlane.xlu1 %6777  ;;  %v6775_v45 = vpop.xlane.xlu0 %6774 }
 0x7eb   : > { %v6850_v42 = vmul.f32 %v6778_v6, %v13346_v37  ;;  %v6849_v50 = vmul.f32 %v6775_v45, %v13349_v21  ;;  %10739 = vmatprep.subr.bf16.mxu1 %v10738_v54 }
 0x7ed   : > { %v10740_v38 = vpack.c.bf16 %v6850_v42, %v6849_v50 }
 0x7ee   : > { %v6585_v1 = vpop.xlane.xlu1 %6584  ;;  %v6582_v47 = vpop.xlane.xlu0 %6581 }
 0x7ef   : > { %v6622_v5 = vmul.f32 0.03125, %v6585_v1  ;;  %v6621_v33 = vmul.f32 0.03125, %v6582_v47  ;;  %10741 = vmatpush3.bf16.msra.mxu1 %v10740_v38 }
 0x7f1   : > { %v6654_v53 = vmul.f32 %v6622_v5, %v13346_v37  ;;  %v6653_v36 = vmul.f32 %v6621_v33, %v13349_v21 }
 0x7f2   : > { %v6537_v63 = vpop.xlane.xlu1 %6536  ;;  %v6534_v11 = vpop.xlane.xlu0 %6533 }
 0x7f3   : > { %v6606_v49 = vmul.f32 0.03125, %v6537_v63  ;;  %v6605_v13 = vmul.f32 0.03125, %v6534_v11  ;;  %v10710_v61 = vpack.c.bf16 %v6654_v53, %v6653_v36 }
 0x7f5   : > { %v6638_v46 = vmul.f32 %v6606_v49, %v13346_v37  ;;  %v6637_v34 = vmul.f32 %v6605_v13, %v13349_v21  ;;  %10711 = vmatprep.subr.bf16.mxu0 %v10710_v61  ;;  %v444_v49 = vadd.s32 1, %v13336_v31 }
 0x7f6   : > { %v6832_v41 = vpop.xlane.xlu1 %6831  ;;  %v6829_v39 = vpop.xlane.xlu0 %6828 }
 0x7f7   : > { %v10712_v59 = vpack.c.bf16 %v6638_v46, %v6637_v34  ;;  %v6868_v54 = vmul.f32 %v6832_v41, %v13346_v37  ;;  %v6867_v6 = vmul.f32 %v6829_v39, %v13349_v21 }
 0x7f9   : > { %v10742_v45 = vpack.c.bf16 %v6868_v54, %v6867_v6  ;;  %10713 = vmatpush3.bf16.msra.mxu0 %v10712_v59  ;;  %v438_v54 = vmul.u32 16, %v13336_v31  ;;  %v446_v6 = vmul.u32 16, %v444_v49 }
 0x7fa   : > { %v6784_v42 = vpop.xlane.xlu1 %6783  ;;  %v6781_v50 = vpop.xlane.xlu0 %6780 }
 0x7fb   : > { %v6852_v38 = vmul.f32 %v6784_v42, %v13346_v37  ;;  %v6851_v1 = vmul.f32 %v6781_v50, %v13349_v21  ;;  %10743 = vmatprep.subr.bf16.mxu1 %v10742_v45  ;;  %vm13445_vm11 = vcmp.ge.s32.totalorder %v13352_v43, %v438_v54  ;;  %vm13450_vm12 = vcmp.lt.s32.totalorder %v13352_v43, %v446_v6 }
 0x7fc   : > { %vm454_vm13 = vmand %vm13445_vm11, %vm13450_vm12  ;;  %vm441_vm14 = vcmp.ge.s32.totalorder %v13339_v57, %v438_v54  ;;  %vm449_vm15 = vcmp.lt.s32.totalorder %v13339_v57, %v446_v6 }
 0x7fd   : > { %v10744_v47 = vpack.c.bf16 %v6852_v38, %v6851_v1  ;;  %vm453_vm1 = vmand %vm441_vm14, %vm449_vm15  ;;  %vm15565_vm14 = vcmask 130048  }
 0x7fe   : > { %v6591_v5 = vpop.xlane.xlu1 %6590  ;;  %v6588_v33 = vpop.xlane.xlu0 %6587 }
 0x7ff   : > { %v6624_v53 = vmul.f32 0.03125, %v6591_v5  ;;  %v6623_v36 = vmul.f32 0.03125, %v6588_v33  ;;  %10745 = vmatpush3.bf16.msra.mxu1 %v10744_v47 }
 0x801   : > { %v6656_v63 = vmul.f32 %v6624_v53, %v13346_v37  ;;  %v6655_v11 = vmul.f32 %v6623_v36, %v13349_v21 }
 0x802   : > { %v6543_v13 = vpop.xlane.xlu1 %6542  ;;  %v6540_v61 = vpop.xlane.xlu0 %6539 }
 0x803   : > { %v6608_v46 = vmul.f32 0.03125, %v6543_v13  ;;  %v6607_v34 = vmul.f32 0.03125, %v6540_v61  ;;  %v10714_v41 = vpack.c.bf16 %v6656_v63, %v6655_v11 }
 0x805   : > { %v6640_v39 = vmul.f32 %v6608_v46, %v13346_v37  ;;  %v6639_v59 = vmul.f32 %v6607_v34, %v13349_v21  ;;  %10715 = vmatprep.subr.bf16.mxu0 %v10714_v41 }
 0x806   : > { %v6838_v45 = vpop.xlane.xlu1 %6837  ;;  %v6835_v42 = vpop.xlane.xlu0 %6834 }
 0x807   : > { %v10716_v50 = vpack.c.bf16 %v6640_v39, %v6639_v59  ;;  %v6870_v38 = vmul.f32 %v6838_v45, %v13346_v37  ;;  %v6869_v1 = vmul.f32 %v6835_v42, %v13349_v21 }
 0x809   : > { %v10746_v47 = vpack.c.bf16 %v6870_v38, %v6869_v1  ;;  %10717 = vmatpush3.bf16.msra.mxu0 %v10716_v50  ;;  %v6975_v38 = vstv %s13485_s20  ;;  %v6979_v1 = vstv %s13487_s21  ;;  %s13522_s20 = sld [smem:[#allocation5 + $0xc]]  ;;  %s13524_s21 = sld [smem:[#allocation5 + $0xd]] }
 0x80a   : > { %v6790_v53 = vpop.xlane.xlu1 %6789  ;;  %v6787_v36 = vpop.xlane.xlu0 %6786 }
 0x80b   : > { %v6854_v63 = vmul.f32 %v6790_v53, %v13346_v37  ;;  %v6853_v11 = vmul.f32 %v6787_v36, %v13349_v21  ;;  %10747 = vmatprep.subr.bf16.mxu1 %v10746_v47  ;;  %v6995_v53 = vstv %s13489_s25  ;;  %v6999_v36 = vstv %s13491_s26  ;;  %s15517_s25 = smov 127   ;;  %s13527_s26 = sld [smem:[#allocation5 + $0x10]] }
 0x80c   : > { %9407 = vmatmul.mubr.msk.f32.vlgmr.msra.gmra.mrb[32].mxu0 %vm451_vm10, %v11476_v32 }
 0x80d   : > { %v10748_v43 = vpack.c.bf16 %v6854_v63, %v6853_v11  ;;  %9408 = vmatprep.mubr.msk.f32.mxu0 %vm454_vm13, %v11476_v32 }
 0x80f   : > { %10749 = vmatpush3.bf16.msra.mxu1 %v10748_v43 }
 0x810   : > { %9409 = vmatmul.mubr.msk.f32.gmra.mrb[34].mxu0 %vm453_vm1, %v11476_v32 }
 0x812   : > { %9411 = vmatmul.mubr.msk.f32.vlgmr.msra.gmra.mrb[48].mxu1 %vm451_vm10, %v11476_v32  ;;  %vm15566_vm10 = vcmask 1041408  }
 0x813   : > { %9412 = vmatprep.mubr.msk.f32.mxu1 %vm454_vm13, %v11476_v32 }
 0x816   : > { %9413 = vmatmul.mubr.msk.f32.gmra.mrb[50].mxu1 %vm453_vm1, %v11476_v32 }
 0x8df   : > { %v9908_v49 = vpop.f32.mrb[32].mxu0 }
 0x8e0   : > { %v9909_v13 = vpop.f32.mrb[33].mxu0 }
 0x8e1   : > { %v9910_v3 = vadd.f32 %v9909_v13, %v9908_v49  ;;  %v7015_v13 = vstv %s13497_s27  ;;  %s13540_s27 = sld [smem:[#allocation5 + $0x14]] }
 0x8e3   : > { %6734 = vrot.lane.b32.xlu0 %v9910_v3, %s11477_s18  ;;  %v9911_v56 = vpop.f32.mrb[34].mxu0  ;;  %v7019_v3 = vstv %s13499_s28  ;;  %s13545_s28 = sld [smem:[#allocation5 + $0x15]] }
 0x8e4   : > { %v9912_v61 = vpop.f32.mrb[35].mxu0 }
 0x8e5   : > { %v9946_v32 = vpop.f32.mrb[48].mxu1  ;;  %v9913_v46 = vadd.f32 %v9912_v61, %v9911_v56 }
 0x8e6   : > { %v9947_v34 = vpop.f32.mrb[49].mxu1 }
 0x8e7   : > { %v9948_v41 = vadd.f32 %v9947_v34, %v9946_v32  ;;  %v7035_v34 = vstv %s13504_s29  ;;  %s13552_s29 = sld [smem:[#allocation5 + $0x17]]  ;;  %v13599_v2 = vstv %s13540_s27 }
 0x8e8   : > { %s13844_s27 = sld [smem:[#allocation5 + $0x2f]] }
 0x8e9   : > { %v9949_v39 = vpop.f32.mrb[50].mxu1  ;;  %6948 = vrot.lane.b32.xlu1 %v9948_v41, %s11477_s18 }
 0x8ea   : > { %v9950_v59 = vpop.f32.mrb[51].mxu1 }
 0x8eb   : > { %v9951_v54 = vadd.f32 %v9950_v59, %v9949_v39  ;;  %v15526_v39 = vstv %s13510_s11 }
 0x8ed   : > { %6950 = vrot.lane.b32.xlu1 %v9951_v54, %s11477_s18 }
 0x8f1   : > { %6736 = vrot.lane.b32.xlu1 %v9913_v46, %s11477_s18  ;;  %s13518_s18 = sld [smem:[#allocation5 + $0xb]] }
 0x955   : > { %v6735_v6 = vpop.permute.xlu0 %6734 }
 0x956   : > { %6741 = vst.msk [vmem:[#allocation3 + $0x3] sm:$0xff] %vm6740_vm4, %v6735_v6 }
 0x95b   : > { %v6949_v45 = vpop.permute.xlu1 %6948 }
 0x95c   : > { %6954 = vst.msk [vmem:[#allocation4 + $0x3] sm:$0xff] %vm6740_vm4, %v6949_v45  ;;  %v15525_v45 = vstv %s13514_s12  ;;  %s13756_s12 = sld [smem:[#allocation5 + $0x28]] }
 0x95d   : > { %v13494_v42 = vld [vmem:[#allocation3] sm:$0xff] }
 0x95e   : > { %v6976_v47 = vmul.f32 %v6975_v38, %v13494_v42  ;;  %v6996_v43 = vmul.f32 %v6995_v53, %v13494_v42  ;;  %v7016_v32 = vmul.f32 %v7015_v13, %v13494_v42  ;;  %v7036_v6 = vmul.f32 %v7035_v34, %v13494_v42 }
 0x95f   : > { %v6951_v50 = vpop.permute.xlu1 %6950 }
 0x960   : > { %6955 = vst.msk [vmem:[#allocation4 + $0xb] sm:$0xff] %vm6740_vm4, %v6951_v50 }
 0x963   : > { %v13506_v5 = vld [vmem:[#allocation4] sm:$0xff]  ;;  %v6737_v33 = vpop.permute.xlu1 %6736 }
 0x964   : > { %6742 = vst.msk [vmem:[#allocation3 + $0xb] sm:$0xff] %vm6740_vm4, %v6737_v33  ;;  %v6980_v63 = vmul.f32 %v6979_v1, %v13506_v5  ;;  %v7000_v49 = vmul.f32 %v6999_v36, %v13506_v5  ;;  %v7020_v46 = vmul.f32 %v7019_v3, %v13506_v5 }
 0x966   : > { %v6982_v11 = vadd.f32 %v6980_v63, %v6976_v47  ;;  %v7002_v61 = vadd.f32 %v7000_v49, %v6996_v43  ;;  %v7022_v47 = vadd.f32 %v7020_v46, %v7016_v32  ;;  %v15527_v63 = vstv %s13522_s20 }
 0x967   : > { %v13531_v56 = vld [vmem:[#allocation4 + $0x8] sm:$0xff]  ;;  %v7121_v43 = vstv %s13527_s26  ;;  %v7056_v49 = vmul.f32 %v15525_v45, %v13494_v42  ;;  %v13584_v32 = vstv %s13533_s1  ;;  %v13587_v46 = vstv %s13535_s2  ;;  %s11481_s1 = smov 124   ;;  %s13619_s2 = sld [smem:[#allocation5 + $0x21]] }
 0x968   : > { %6986 = vrot.lane.b32.xlu0 %v6982_v11, %s15517_s25  ;;  %s13547_s25 = sld [smem:[#allocation5 + $0x16]]  ;;  %v6981_v54 = vmul.f32 %v6979_v1, %v13531_v56  ;;  %v15528_v1 = vstv %s13518_s18  ;;  %v7001_v11 = vmul.f32 %v6999_v36, %v13531_v56  ;;  %v13602_v45 = vstv %s13545_s28  ;;  %s13852_s28 = sld [smem:[#allocation5 + $0x30]] }
 0x969   : > { %v7151_v9 = vmul.f32 %v13584_v32, %v13494_v42  ;;  %s13824_s26 = sld [smem:[#allocation5 + $0x2e]] }
 0x96b   : > { %v13542_v41 = vld [vmem:[#allocation3 + $0x8] sm:$0xff]  ;;  %v13642_v60 = vld [vmem:[#allocation3 + $0x10] sm:$0x3f] }
 0x96c   : > { %7006 = vrot.lane.b32.xlu0 %v7002_v61, %s15519_s3  ;;  %v6977_v59 = vmul.f32 %v6975_v38, %v13542_v41  ;;  %v6997_v33 = vmul.f32 %v6995_v53, %v13542_v41  ;;  %v7040_v38 = vmul.f32 %v15526_v39, %v13506_v5  ;;  %s13564_s3 = sld [smem:[#allocation5 + $0x19]]  ;;  %v15531_v53 = vstv %s13524_s21  ;;  %v11389_v21 = vld [vmem:[#allocation3 + $0x10] sm:$0x3f] }
 0x96d   : > { %v13581_v61 = vstv %s13529_s0  ;;  %s15651_s0 = smov 126   ;;  %v7037_v4 = vmul.f32 %v7035_v34, %v13542_v41  ;;  %v7152_v29 = vmul.f32 %v13584_v32, %v13542_v41  ;;  %v15653_v34 = vstv %s13510_s11  ;;  %s13733_s11 = sld [smem:[#allocation5 + $0x27]] }
 0x96e   : > { %v6983_v50 = vadd.f32 %v6981_v54, %v6977_v59  ;;  %v7003_v36 = vadd.f32 %v7001_v11, %v6997_v33  ;;  %v7042_v59 = vadd.f32 %v7040_v38, %v7036_v6  ;;  %v7017_v54 = vmul.f32 %v7015_v13, %v13542_v41 }
 0x96f   : > { %v13605_v39 = vstv %s13547_s25  ;;  %v7021_v6 = vmul.f32 %v7019_v3, %v13531_v56  ;;  %v7076_v13 = vmul.f32 %v15527_v63, %v13494_v42  ;;  %v13614_v33 = vstv %s13552_s29  ;;  %s11482_s25 = smov 123   ;;  %s13854_s29 = sld [smem:[#allocation5 + $0x31]] }
 0x970   : > { %6988 = vrot.lane.b32.xlu1 %v6983_v50, %s15650_s6  ;;  %7026 = vrot.lane.b32.xlu0 %v7022_v47, %s15521_s7  ;;  %s13589_s7 = sld [smem:[#allocation5 + $0x1f]]  ;;  %v7060_v50 = vmul.f32 %v15528_v1, %v13506_v5  ;;  %v7123_v47 = vmul.f32 %v7121_v43, %v13542_v41  ;;  %v13617_v38 = vstv %s13554_s4  ;;  %v7080_v11 = vmul.f32 %v15531_v53, %v13506_v5  ;;  %s15652_s4 = smov 125  }
 0x971   : > { %v7127_v3 = vmul.f32 %v13581_v61, %v13506_v5  ;;  %v7023_v63 = vadd.f32 %v7021_v6, %v7017_v54  ;;  %v7156_v54 = vmul.f32 %v13587_v46, %v13506_v5  ;;  %v7057_v55 = vmul.f32 %v15654_v44, %v13542_v41 }
 0x972   : > { %v7062_v1 = vadd.f32 %v7060_v50, %v7056_v49  ;;  %v13637_v28 = vstv %s13564_s3  ;;  %v7041_v49 = vmul.f32 %v15653_v34, %v13531_v56  ;;  %v7157_v50 = vmul.f32 %v13587_v46, %v13531_v56  ;;  %s13656_s3 = sld [smem:[#allocation5 + $0x22]]  ;;  %v13667_v34 = vld [vmem:[#allocation4 + $0x10] sm:$0x3f] }
 0x973   : > { %v7082_v40 = vadd.f32 %v7080_v11, %v7076_v13  ;;  %v7181_v14 = vmul.f32 %v13599_v2, %v13542_v41  ;;  %v15655_v44 = vstv %s13518_s18  ;;  %v7209_v13 = vmul.f32 %v13605_v39, %v13494_v42  ;;  %s13763_s18 = sld [smem:[#allocation5 + $0x29]] }
 0x974   : > { %7008 = vrot.lane.b32.xlu1 %v7003_v36, %s15651_s0  ;;  %7046 = vrot.lane.b32.xlu0 %v7042_v59, %s11481_s1  ;;  %v7122_v36 = vmul.f32 %v7121_v43, %v13494_v42  ;;  %v7128_v59 = vmul.f32 %v13581_v61, %v13531_v56  ;;  %v7043_v27 = vadd.f32 %v7041_v49, %v7037_v4 }
 0x975   : > { %v13672_v35 = vadd.f32 %v7157_v50, %v7152_v29  ;;  %v7061_v29 = vmul.f32 %v15655_v44, %v13531_v56  ;;  %v7159_v4 = vadd.f32 %v7156_v54, %v7151_v9  ;;  %v7129_v49 = vmul.f32 %v13581_v61, %v13667_v34 }
 0x976   : > { %v13632_v53 = vadd.f32 %v7128_v59, %v7123_v47  ;;  %v13654_v47 = vstv %s13573_s8  ;;  %v7130_v6 = vadd.f32 %v7127_v3, %v7122_v36  ;;  %v13659_v59 = vstv %s13575_s9  ;;  %s13698_s8 = sld [smem:[#allocation5 + $0x24]]  ;;  %s13725_s9 = sld [smem:[#allocation5 + $0x25]] }
 0x977   : > { %v7124_v36 = vmul.f32 %v7121_v43, %v13642_v60  ;;  %v7180_v3 = vmul.f32 %v13599_v2, %v13494_v42  ;;  %v13688_v43 = vstv %s13619_s2  ;;  %v7063_v9 = vadd.f32 %v7061_v29, %v7057_v55  ;;  %s13876_s2 = sld [smem:[#allocation5 + $0x32]] }
 0x978   : > { %7028 = vrot.lane.b32.xlu1 %v7023_v63, %s15652_s4  ;;  %7066 = vrot.lane.b32.xlu0 %v7062_v1, %s11482_s25  ;;  %v13662_v63 = vstv %s13589_s7  ;;  %v13665_v1 = vstv %s13591_s22  ;;  %v15546_v15 = vrot.slane %v13632_v53, 1  ;;  %s13690_s7 = sld [smem:[#allocation5 + $0x23]]  ;;  %v7136_v11 = vrot.slane %v7130_v6, 1  ;;  %s13731_s22 = sld [smem:[#allocation5 + $0x26]] }
 0x979   : > { %v15656_v54 = vstv %s13522_s20  ;;  %v15547_v44 = vrot.slane %v13672_v35, 1  ;;  %v7153_v6 = vmul.f32 %v13584_v32, %v13642_v60  ;;  %v7132_v12 = vadd.f32 %v7129_v49, %v7124_v36  ;;  %s13785_s20 = sld [smem:[#allocation5 + $0x2c]] }
 0x97a   : > { %v7077_v50 = vmul.f32 %v15656_v54, %v13542_v41  ;;  %v7138_v61 = vsel %vm7110_vm5, %v7136_v11, %v15546_v15  ;;  %v7210_v16 = vmul.f32 %v13605_v39, %v13542_v41  ;;  %v15657_v55 = vstv %s13524_s21  ;;  %s13813_s21 = sld [smem:[#allocation5 + $0x2d]] }
 0x97b   : > { %v7081_v29 = vmul.f32 %v15657_v55, %v13531_v56  ;;  %v7158_v32 = vmul.f32 %v13587_v46, %v13667_v34  ;;  %v7238_v54 = vmul.f32 %v13617_v38, %v13494_v42  ;;  %v13723_v11 = vstv %s13656_s3  ;;  %s13883_s3 = sld [smem:[#allocation5 + $0x33]] }
 0x97c   : > { %7048 = vrot.lane.b32.xlu1 %v7043_v27, %s11481_s1  ;;  %7086 = vrot.lane.b32.xlu0 %v7082_v40, %s11483_s5  ;;  %v7185_v27 = vmul.f32 %v13602_v45, %v13506_v5  ;;  %v7186_v40 = vmul.f32 %v13602_v45, %v13531_v56  ;;  %v7214_v49 = vmul.f32 %v13614_v33, %v13506_v5 }
 0x97d   : > { %v7083_v46 = vadd.f32 %v7081_v29, %v7077_v50  ;;  %v7243_v50 = vmul.f32 %v13637_v28, %v13506_v5 }
 0x97e   : > { %v13709_v51 = vadd.f32 %v7186_v40, %v7181_v14  ;;  %v7165_v14 = vrot.slane %v7159_v4, 1  ;;  %v7188_v36 = vadd.f32 %v7185_v27, %v7180_v3  ;;  %v7215_v40 = vmul.f32 %v13614_v33, %v13531_v56 }
 0x97f   : > { %v7239_v3 = vmul.f32 %v13617_v38, %v13542_v41  ;;  %v7139_v27 = vrot.slane %v7132_v12, 1  ;;  %v13754_v29 = vstv %s13690_s7  ;;  %s13903_s7 = sld [smem:[#allocation5 + $0x34]] }
 0x980   : > { %7068 = vrot.lane.b32.xlu1 %v7063_v9, %s11482_s25  ;;  %7141 = vrot.lane.b32.xlu0 %v7138_v61, %s15650_s6  ;;  %v7161_v9 = vadd.f32 %v7158_v32, %v7153_v6  ;;  %v7182_v61 = vmul.f32 %v13599_v2, %v13642_v60  ;;  %v7167_v4 = vsel %vm7110_vm5, %v7165_v14, %v15547_v44  ;;  %v7195_v55 = vrot.slane %v13709_v51, 1 }
 0x981   : > { %v13743_v15 = vadd.f32 %v7215_v40, %v7210_v16  ;;  %v7187_v2 = vmul.f32 %v13602_v45, %v13667_v34  ;;  %v7244_v6 = vmul.f32 %v13637_v28, %v13531_v56  ;;  %v7194_v12 = vrot.slane %v7188_v36, 1 }
 0x982   : > { %v7217_v51 = vadd.f32 %v7214_v49, %v7209_v13  ;;  %v7267_v16 = vmul.f32 %v13640_v20, %v13494_v42  ;;  %v13761_v32 = vstv %s13698_s8  ;;  %v7168_v45 = vrot.slane %v7161_v9, 1  ;;  %s13929_s8 = sld [smem:[#allocation5 + $0x35]] }
 0x983   : > { %v7190_v14 = vadd.f32 %v7187_v2, %v7182_v61  ;;  %v13765_v40 = vadd.f32 %v7244_v6, %v7239_v3  ;;  %v15658_v36 = vrot.slane %v13632_v53, 1  ;;  %v7196_v49 = vsel %vm7110_vm5, %v7194_v12, %v7195_v55 }
 0x984   : > { %7088 = vrot.lane.b32.xlu1 %v7083_v46, %s11483_s5  ;;  %7170 = vrot.lane.b32.xlu0 %v7167_v4, %s15651_s0  ;;  %v7211_v46 = vmul.f32 %v13605_v39, %v13642_v60  ;;  %v7224_v4 = vrot.slane %v13743_v15, 1  ;;  %v7268_v44 = vmul.f32 %v13640_v20, %v13542_v41  ;;  %v7246_v9 = vadd.f32 %v7243_v50, %v7238_v54 }
 0x985   : > { %v7140_v13 = vsel %vm7110_vm5, %v15658_v36, %v7139_v27  ;;  %v7216_v61 = vmul.f32 %v13614_v33, %v13667_v34  ;;  %v7272_v39 = vmul.f32 %v13654_v47, %v13506_v5  ;;  %v13783_v53 = vstv %s13725_s9  ;;  %s13940_s9 = sld [smem:[#allocation5 + $0x36]] }
 0x986   : > { %v7223_v3 = vrot.slane %v7217_v51, 1  ;;  %v7273_v15 = vmul.f32 %v13654_v47, %v13531_v56  ;;  %v13790_v27 = vstv %s13731_s22  ;;  %v13793_v2 = vstv %s13733_s11  ;;  %s13960_s22 = sld [smem:[#allocation5 + $0x37]]  ;;  %s13962_s11 = sld [smem:[#allocation5 + $0x3a]] }
 0x987   : > { %v7197_v54 = vrot.slane %v7190_v14, 1  ;;  %v7253_v50 = vrot.slane %v13765_v40, 1  ;;  %v7219_v33 = vadd.f32 %v7216_v61, %v7211_v46  ;;  %v7240_v6 = vmul.f32 %v13617_v38, %v13642_v60 }
 0x988   : > { %7143 = vrot.lane.b32.xlu1 %v7140_v13, %s15650_s6  ;;  %7199 = vrot.lane.b32.xlu0 %v7196_v49, %s15652_s4  ;;  %v15659_v12 = vrot.slane %v13672_v35, 1  ;;  %v7225_v36 = vsel %vm7110_vm5, %v7223_v3, %v7224_v4  ;;  %v13802_v13 = vadd.f32 %v7273_v15, %v7268_v44  ;;  %v7323_v49 = vmul.f32 %v13659_v59, %v13542_v41 }
 0x989   : > { %v7252_v14 = vrot.slane %v7246_v9, 1  ;;  %v7275_v40 = vadd.f32 %v7272_v39, %v7267_v16  ;;  %v7245_v38 = vmul.f32 %v13637_v28, %v13667_v34  ;;  %v13811_v35 = vstv %s13756_s12  ;;  %s13990_s12 = sld [smem:[#allocation5 + $0x3b]] }
 0x98a   : > { %v7169_v51 = vsel %vm7110_vm5, %v15659_v12, %v7168_v45  ;;  %v7322_v44 = vmul.f32 %v13659_v59, %v13494_v42  ;;  %v7327_v45 = vmul.f32 %v13662_v63, %v13506_v5  ;;  %v7328_v46 = vmul.f32 %v13662_v63, %v13531_v56 }
 0x98b   : > { %v13822_v9 = vstv %s13763_s18  ;;  %v7198_v28 = vsel %vm7110_vm5, %v7195_v55, %v7197_v54  ;;  %v7254_v16 = vsel %vm7110_vm5, %v7252_v14, %v7253_v50  ;;  %v7226_v61 = vrot.slane %v7219_v33, 1  ;;  %s14014_s18 = sld [smem:[#allocation5 + $0x3c]] }
 0x98c   : > { %7172 = vrot.lane.b32.xlu1 %v7169_v51, %s15651_s0  ;;  %7228 = vrot.lane.b32.xlu0 %v7225_v36, %s11481_s1  ;;  %v7248_v39 = vadd.f32 %v7245_v38, %v7240_v6  ;;  %v7282_v3 = vrot.slane %v13802_v13, 1  ;;  %v13829_v15 = vadd.f32 %v7328_v46, %v7323_v49  ;;  %v7269_v12 = vmul.f32 %v13640_v20, %v13642_v60 }
 0x98d   : > { %v7352_v51 = vmul.f32 %v13665_v1, %v13542_v41  ;;  %v7281_v36 = vrot.slane %v7275_v40, 1  ;;  %v7351_v55 = vmul.f32 %v13665_v1, %v13494_v42  ;;  %v7380_v54 = vmul.f32 %v13723_v11, %v13494_v42 }
 0x98e   : > { %v13842_v33 = vstv %s13785_s20  ;;  %v7330_v6 = vadd.f32 %v7327_v45, %v7322_v44  ;;  %v7274_v20 = vmul.f32 %v13654_v47, %v13667_v34  ;;  %v7356_v13 = vmul.f32 %v13688_v43, %v13506_v5  ;;  %s14016_s20 = sld [smem:[#allocation5 + $0x3d]] }
 0x98f   : > { %v7357_v49 = vmul.f32 %v13688_v43, %v13531_v56  ;;  %v7227_v14 = vsel %vm7110_vm5, %v7224_v4, %v7226_v61  ;;  %v7255_v40 = vrot.slane %v7248_v39, 1  ;;  %v7324_v38 = vmul.f32 %v13659_v59, %v13642_v60 }
 0x990   : > { %7201 = vrot.lane.b32.xlu1 %v7198_v28, %s15652_s4  ;;  %7257 = vrot.lane.b32.xlu0 %v7254_v16, %s11482_s25  ;;  %v7381_v47 = vmul.f32 %v13723_v11, %v13542_v41  ;;  %v7283_v44 = vsel %vm7110_vm5, %v7281_v36, %v7282_v3  ;;  %v7337_v45 = vrot.slane %v13829_v15, 2  ;;  %v7277_v46 = vadd.f32 %v7274_v20, %v7269_v12 }
 0x991   : > { %v13863_v28 = vadd.f32 %v7357_v49, %v7352_v51  ;;  %v7329_v4 = vmul.f32 %v13662_v63, %v13667_v34  ;;  %v7385_v59 = vmul.f32 %v13754_v29, %v13506_v5  ;;  %v7386_v16 = vmul.f32 %v13754_v29, %v13531_v56 }
 0x992   : > { %v13874_v61 = vstv %s13813_s21  ;;  %v7336_v39 = vrot.slane %v7330_v6, 2  ;;  %v7359_v15 = vadd.f32 %v7356_v13, %v7351_v55  ;;  %v7409_v12 = vmul.f32 %v13761_v32, %v13494_v42  ;;  %s14027_s21 = sld [smem:[#allocation5 + $0x3e]] }
 0x993   : > { %v13881_v51 = vstv %s13824_s26  ;;  %v7256_v63 = vsel %vm7110_vm5, %v7253_v50, %v7255_v40  ;;  %v7332_v36 = vadd.f32 %v7329_v4, %v7324_v38  ;;  %v13886_v20 = vadd.f32 %v7386_v16, %v7381_v47  ;;  %s14044_s26 = sld [smem:[#allocation5 + $0x3f]] }
 0x994   : > { %7230 = vrot.lane.b32.xlu1 %v7227_v14, %s11481_s1  ;;  %7286 = vrot.lane.b32.xlu0 %v7283_v44, %s11483_s5  ;;  %v7353_v49 = vmul.f32 %v13665_v1, %v13642_v60  ;;  %v7338_v55 = vsel %vm7310_vm6, %v7336_v39, %v7337_v45  ;;  %v7284_v6 = vrot.slane %v7277_v46, 1  ;;  %v7366_v13 = vrot.slane %v13863_v28, 2 }
 0x995   : > { %v7410_v14 = vmul.f32 %v13761_v32, %v13542_v41  ;;  %v7388_v50 = vadd.f32 %v7385_v59, %v7380_v54  ;;  %v7358_v40 = vmul.f32 %v13688_v43, %v13667_v34  ;;  %v7414_v38 = vmul.f32 %v13783_v53, %v13506_v5 }
 0x996   : > { %v13901_v1 = vstv %s13844_s27  ;;  %v7365_v47 = vrot.slane %v7359_v15, 2  ;;  %v7415_v44 = vmul.f32 %v13783_v53, %v13531_v56  ;;  %v13908_v46 = vstv %s13852_s28  ;;  %s14054_s27 = sld [smem:[#allocation5 + $0x40]]  ;;  %s14098_s28 = sld [smem:[#allocation5 + $0x41]] }
 0x997   : > { %v13911_v28 = vstv %s13854_s29  ;;  %v7339_v54 = vrot.slane %v7332_v36, 2  ;;  %v7395_v4 = vrot.slane %v13886_v20, 2  ;;  %v7361_v43 = vadd.f32 %v7358_v40, %v7353_v49  ;;  %s14104_s29 = sld [smem:[#allocation5 + $0x42]] }
 0x998   : > { %7259 = vrot.lane.b32.xlu1 %v7256_v63, %s11482_s25  ;;  %7341 = vrot.lane.b32.xlu0 %v7338_v55, %s15650_s6  ;;  %v7382_v59 = vmul.f32 %v13723_v11, %v13642_v60  ;;  %v7285_v16 = vsel %vm7110_vm5, %v7282_v3, %v7284_v6  ;;  %v7367_v39 = vsel %vm7310_vm6, %v7365_v47, %v7366_v13  ;;  %v7394_v36 = vrot.slane %v7388_v50, 2 }
 0x999   : > { %v13918_v15 = vadd.f32 %v7415_v44, %v7410_v14  ;;  %v7439_v63 = vmul.f32 %v13790_v27, %v13542_v41  ;;  %v7417_v20 = vadd.f32 %v7414_v38, %v7409_v12  ;;  %v7387_v49 = vmul.f32 %v13754_v29, %v13667_v34 }
 0x99a   : > { %v13927_v55 = vstv %s13876_s2  ;;  %v7438_v11 = vmul.f32 %v13790_v27, %v13494_v42  ;;  %v7443_v3 = vmul.f32 %v13793_v2, %v13506_v5  ;;  %v7444_v6 = vmul.f32 %v13793_v2, %v13531_v56  ;;  %s14131_s2 = sld [smem:[#allocation5 + $0x43]] }
 0x99b   : > { %v13938_v14 = vstv %s13883_s3  ;;  %v7340_v29 = vsel %vm7310_vm6, %v7337_v45, %v7339_v54  ;;  %v7396_v12 = vsel %vm7310_vm6, %v7394_v36, %v7395_v4  ;;  %v7368_v50 = vrot.slane %v7361_v43, 2  ;;  %s14133_s3 = sld [smem:[#allocation5 + $0x44]] }
 0x99c   : > { %7288 = vrot.lane.b32.xlu1 %v7285_v16, %s11483_s5  ;;  %7370 = vrot.lane.b32.xlu0 %v7367_v39, %s15651_s0  ;;  %v7390_v40 = vadd.f32 %v7387_v49, %v7382_v59  ;;  %v7424_v38 = vrot.slane %v13918_v15, 2  ;;  %v13945_v47 = vadd.f32 %v7444_v6, %v7439_v63  ;;  %v7411_v44 = vmul.f32 %v13761_v32, %v13642_v60 }
 0x99d   : > { %v7468_v16 = vmul.f32 %v13811_v35, %v13542_v41  ;;  %v7423_v39 = vrot.slane %v7417_v20, 2  ;;  %v7467_v45 = vmul.f32 %v13811_v35, %v13494_v42  ;;  %v7522_v54 = vmul.f32 %v13842_v33, %v13494_v42 }
 0x99e   : > { %v13958_v43 = vstv %s13903_s7  ;;  %v7446_v32 = vadd.f32 %v7443_v3, %v7438_v11  ;;  %v7416_v59 = vmul.f32 %v13783_v53, %v13667_v34  ;;  %v7472_v15 = vmul.f32 %v13822_v9, %v13506_v5  ;;  %s14174_s7 = sld [smem:[#allocation5 + $0x45]] }
 0x99f   : > { %v7473_v63 = vmul.f32 %v13822_v9, %v13531_v56  ;;  %v7369_v36 = vsel %vm7310_vm6, %v7366_v13, %v7368_v50  ;;  %v7397_v20 = vrot.slane %v7390_v40, 2  ;;  %v7440_v49 = vmul.f32 %v13790_v27, %v13642_v60 }
 0x9a0   : > { %7343 = vrot.lane.b32.xlu1 %v7340_v29, %s15650_s6  ;;  %7399 = vrot.lane.b32.xlu0 %v7396_v12, %s15652_s4  ;;  %v7523_v11 = vmul.f32 %v13842_v33, %v13542_v41  ;;  %v7425_v3 = vsel %vm7310_vm6, %v7423_v39, %v7424_v38  ;;  %v7453_v53 = vrot.slane %v13945_v47, 2  ;;  %v7419_v6 = vadd.f32 %v7416_v59, %v7411_v44 }
 0x9a1   : > { %v13977_v29 = vadd.f32 %v7473_v63, %v7468_v16  ;;  %v7445_v13 = vmul.f32 %v13793_v2, %v13667_v34  ;;  %v7527_v27 = vmul.f32 %v13874_v61, %v13506_v5  ;;  %v7528_v12 = vmul.f32 %v13874_v61, %v13531_v56 }
 0x9a2   : > { %v13988_v50 = vstv %s13929_s8  ;;  %v7452_v40 = vrot.slane %v7446_v32, 2  ;;  %v7475_v47 = vadd.f32 %v7472_v15, %v7467_v45  ;;  %v13993_v44 = vstv %s13940_s9  ;;  %s14184_s8 = sld [smem:[#allocation5 + $0x48]]  ;;  %s14186_s9 = sld [smem:[#allocation5 + $0x49]] }
 0x9a3   : > { %v7398_v16 = vsel %vm7310_vm6, %v7395_v4, %v7397_v20  ;;  %v7448_v2 = vadd.f32 %v7445_v13, %v7440_v49  ;;  %v13996_v39 = vadd.f32 %v7528_v12, %v7523_v11  ;;  %v7469_v59 = vmul.f32 %v13811_v35, %v13642_v60 }
 0x9a4   : > { %7372 = vrot.lane.b32.xlu1 %v7369_v36, %s15651_s0  ;;  %7428 = vrot.lane.b32.xlu0 %v7425_v3, %s11481_s1  ;;  %v7454_v63 = vsel %vm7310_vm6, %v7452_v40, %v7453_v53  ;;  %v7426_v36 = vrot.slane %v7419_v6, 2  ;;  %v7482_v3 = vrot.slane %v13977_v29, 2  ;;  %v7552_v45 = vmul.f32 %v13881_v51, %v13542_v41 }
 0x9a5   : > { %v7530_v32 = vadd.f32 %v7527_v27, %v7522_v54  ;;  %v7474_v4 = vmul.f32 %v13822_v9, %v13667_v34  ;;  %v14009_v15 = vstv %s13960_s22  ;;  %v14012_v20 = vstv %s13962_s11  ;;  %s14192_s22 = sld [smem:[#allocation5 + $0x4a]]  ;;  %s14206_s11 = sld [smem:[#allocation5 + $0x4b]] }
 0x9a6   : > { %v7481_v35 = vrot.slane %v7475_v47, 2  ;;  %v7551_v49 = vmul.f32 %v13881_v51, %v13494_v42  ;;  %v7556_v11 = vmul.f32 %v13901_v1, %v13506_v5  ;;  %v7557_v54 = vmul.f32 %v13901_v1, %v13531_v56 }
 0x9a7   : > { %v7455_v9 = vrot.slane %v7448_v2, 2  ;;  %v7537_v6 = vrot.slane %v13996_v39, 3  ;;  %v7477_v29 = vadd.f32 %v7474_v4, %v7469_v59  ;;  %v7524_v13 = vmul.f32 %v13842_v33, %v13642_v60 }
 0x9a8   : > { %7401 = vrot.lane.b32.xlu1 %v7398_v16, %s15652_s4  ;;  %7457 = vrot.lane.b32.xlu0 %v7454_v63, %s11482_s25  ;;  %v7427_v27 = vsel %vm7310_vm6, %v7424_v38, %v7426_v36  ;;  %v7483_v12 = vsel %vm7310_vm6, %v7481_v35, %v7482_v3  ;;  %v14031_v40 = vadd.f32 %v7557_v54, %v7552_v45  ;;  %v7536_v16 = vrot.slane %v7530_v32, 3 }
 0x9a9   : > { %v7581_v47 = vmul.f32 %v13908_v46, %v13542_v41  ;;  %v7529_v2 = vmul.f32 %v13874_v61, %v13667_v34  ;;  %v7580_v33 = vmul.f32 %v13908_v46, %v13494_v42  ;;  %v14042_v39 = vstv %s13990_s12  ;;  %s14221_s12 = sld [smem:[#allocation5 + $0x4c]] }
 0x9aa   : > { %v7559_v38 = vadd.f32 %v7556_v11, %v7551_v49  ;;  %v7585_v59 = vmul.f32 %v13911_v28, %v13506_v5  ;;  %v7586_v63 = vmul.f32 %v13911_v28, %v13531_v56  ;;  %v7553_v36 = vmul.f32 %v13881_v51, %v13642_v60 }
 0x9ab   : > { %v7456_v61 = vsel %vm7310_vm6, %v7453_v53, %v7455_v9  ;;  %v7538_v45 = vsel %vm15569_vm7, %v7536_v16, %v7537_v6  ;;  %v7484_v32 = vrot.slane %v7477_v29, 2  ;;  %v7532_v4 = vadd.f32 %v7529_v2, %v7524_v13 }
 0x9ac   : > { %7430 = vrot.lane.b32.xlu1 %v7427_v27, %s11481_s1  ;;  %7486 = vrot.lane.b32.xlu0 %v7483_v12, %s11483_s5  ;;  %v7566_v35 = vrot.slane %v14031_v40, 3  ;;  %v14057_v49 = vadd.f32 %v7586_v63, %v7581_v47  ;;  %v7558_v11 = vmul.f32 %v13901_v1, %v13667_v34  ;;  %v7610_v54 = vmul.f32 %v13927_v55, %v13542_v41 }
 0x9ad   : > { %v7609_v51 = vmul.f32 %v13927_v55, %v13494_v42  ;;  %v7614_v53 = vmul.f32 %v13938_v14, %v13506_v5  ;;  %v14070_v9 = vstv %s14014_s18  ;;  %v14073_v29 = vstv %s14016_s20  ;;  %s14223_s18 = sld [smem:[#allocation5 + $0x4d]]  ;;  %s14264_s20 = sld [smem:[#allocation5 + $0x4e]] }
 0x9ae   : > { %v7565_v13 = vrot.slane %v7559_v38, 3  ;;  %v7588_v27 = vadd.f32 %v7585_v59, %v7580_v33  ;;  %v7561_v1 = vadd.f32 %v7558_v11, %v7553_v36  ;;  %v7615_v12 = vmul.f32 %v13938_v14, %v13531_v56 }
 0x9af   : > { %v7485_v40 = vsel %vm7310_vm6, %v7482_v3, %v7484_v32  ;;  %v7539_v47 = vrot.slane %v7532_v4, 3  ;;  %v7582_v16 = vmul.f32 %v13908_v46, %v13642_v60  ;;  %v14081_v2 = vstv %s14027_s21  ;;  %s14276_s21 = sld [smem:[#allocation5 + $0x4f]] }
 0x9b0   : > { %7459 = vrot.lane.b32.xlu1 %v7456_v61, %s11482_s25  ;;  %7541 = vrot.lane.b32.xlu0 %v7538_v45, %s15650_s6  ;;  %v7567_v63 = vsel %vm15569_vm7, %v7565_v13, %v7566_v35  ;;  %v7595_v61 = vrot.slane %v14057_v49, 3  ;;  %v14085_v45 = vadd.f32 %v7615_v12, %v7610_v54  ;;  %v7639_v33 = vmul.f32 %v13958_v43, %v13542_v41 }
 0x9b1   : > { %v7617_v3 = vadd.f32 %v7614_v53, %v7609_v51  ;;  %v7587_v46 = vmul.f32 %v13911_v28, %v13667_v34  ;;  %v7638_v38 = vmul.f32 %v13958_v43, %v13494_v42  ;;  %v14096_v59 = vstv %s14044_s26  ;;  %s14300_s26 = sld [smem:[#allocation5 + $0x50]] }
 0x9b2   : > { %v7594_v36 = vrot.slane %v7588_v27, 3  ;;  %v7568_v32 = vrot.slane %v7561_v1, 3  ;;  %v7643_v4 = vmul.f32 %v13988_v50, %v13506_v5  ;;  %v7644_v49 = vmul.f32 %v13988_v50, %v13531_v56 }
 0x9b3   : > { %v7540_v11 = vsel %vm15569_vm7, %v7537_v6, %v7539_v47  ;;  %v7590_v28 = vadd.f32 %v7587_v46, %v7582_v16  ;;  %v7611_v54 = vmul.f32 %v13927_v55, %v13642_v60  ;;  %v14110_v51 = vstv %s14054_s27  ;;  %s14302_s27 = sld [smem:[#allocation5 + $0x51]] }
 0x9b4   : > { %7488 = vrot.lane.b32.xlu1 %v7485_v40, %s11483_s5  ;;  %7570 = vrot.lane.b32.xlu0 %v7567_v63, %s15651_s0  ;;  %v7596_v53 = vsel %vm15569_vm7, %v7594_v36, %v7595_v61  ;;  %v7624_v13 = vrot.slane %v14085_v45, 3  ;;  %v14114_v27 = vadd.f32 %v7644_v49, %v7639_v33  ;;  %v7668_v1 = vmul.f32 %v13993_v44, %v13542_v41 }
 0x9b5   : > { %v7623_v6 = vrot.slane %v7617_v3, 3  ;;  %v7616_v12 = vmul.f32 %v13938_v14, %v13667_v34  ;;  %v7667_v55 = vmul.f32 %v13993_v44, %v13494_v42  ;;  %v7640_v40 = vmul.f32 %v13958_v43, %v13642_v60 }
 0x9b6   : > { %v7569_v47 = vsel %vm15569_vm7, %v7566_v35, %v7568_v32  ;;  %v7646_v16 = vadd.f32 %v7643_v4, %v7638_v38  ;;  %v7672_v63 = vmul.f32 %v14009_v15, %v13506_v5  ;;  %v7673_v45 = vmul.f32 %v14009_v15, %v13531_v56 }
 0x9b7   : > { %v7597_v14 = vrot.slane %v7590_v28, 3  ;;  %v7619_v33 = vadd.f32 %v7616_v12, %v7611_v54  ;;  %v7645_v43 = vmul.f32 %v13988_v50, %v13667_v34  ;;  %v7723_v35 = vmul.f32 %v14012_v20, %v13542_v41 }
 0x9b8   : > { %7543 = vrot.lane.b32.xlu1 %v7540_v11, %s15650_s6  ;;  %7599 = vrot.lane.b32.xlu0 %v7596_v53, %s15652_s4  ;;  %v7625_v3 = vsel %vm15569_vm7, %v7623_v6, %v7624_v13  ;;  %v7653_v46 = vrot.slane %v14114_v27, 3  ;;  %v14141_v38 = vadd.f32 %v7673_v45, %v7668_v1  ;;  %v7722_v36 = vmul.f32 %v14012_v20, %v13494_v42 }
 0x9b9   : > { %v7648_v32 = vadd.f32 %v7645_v43, %v7640_v40  ;;  %v7727_v50 = vmul.f32 %v14042_v39, %v13506_v5  ;;  %v7728_v4 = vmul.f32 %v14042_v39, %v13531_v56  ;;  %v14152_v49 = vstv %s14098_s28  ;;  %s14388_s28 = sld [smem:[#allocation5 + $0x52]] }
 0x9ba   : > { %v7652_v11 = vrot.slane %v7646_v16, 3  ;;  %v7675_v28 = vadd.f32 %v7672_v63, %v7667_v55  ;;  %v14155_v54 = vstv %s14104_s29  ;;  %v7598_v53 = vsel %vm15569_vm7, %v7595_v61, %v7597_v14  ;;  %s14390_s29 = sld [smem:[#allocation5 + $0x53]] }
 0x9bb   : > { %v7626_v27 = vrot.slane %v7619_v33, 3  ;;  %v14158_v1 = vadd.f32 %v7728_v4, %v7723_v35  ;;  %v7669_v6 = vmul.f32 %v13993_v44, %v13642_v60  ;;  %v7682_v40 = vrot.slane %v14141_v38, 3 }
 0x9bc   : > { %7572 = vrot.lane.b32.xlu1 %v7569_v47, %s15651_s0  ;;  %7628 = vrot.lane.b32.xlu0 %v7625_v3, %s11481_s1  ;;  %v7654_v12 = vsel %vm15569_vm7, %v7652_v11, %v7653_v46  ;;  %v7674_v55 = vmul.f32 %v14009_v15, %v13667_v34  ;;  %v7752_v47 = vmul.f32 %v14070_v9, %v13542_v41  ;;  %v7655_v61 = vrot.slane %v7648_v32, 3 }
 0x9bd   : > { %v7730_v16 = vadd.f32 %v7727_v50, %v7722_v36  ;;  %v7751_v63 = vmul.f32 %v14070_v9, %v13494_v42  ;;  %v7756_v44 = vmul.f32 %v14073_v29, %v13506_v5  ;;  %v7681_v45 = vrot.slane %v7675_v28, 3 }
 0x9be   : > { %v7757_v15 = vmul.f32 %v14073_v29, %v13531_v56  ;;  %v14179_v14 = vstv %s14131_s2  ;;  %v14182_v33 = vstv %s14133_s3  ;;  %v7627_v43 = vsel %vm15569_vm7, %v7624_v13, %v7626_v27  ;;  %s14400_s2 = sld [smem:[#allocation5 + $0x56]]  ;;  %s14402_s3 = sld [smem:[#allocation5 + $0x57]] }
 0x9bf   : > { %v7737_v35 = vrot.slane %v14158_v1, 4  ;;  %v7677_v3 = vadd.f32 %v7674_v55, %v7669_v6  ;;  %v7724_v38 = vmul.f32 %v14012_v20, %v13642_v60  ;;  %v7683_v36 = vsel %vm15569_vm7, %v7681_v45, %v7682_v40 }
 0x9c0   : > { %7601 = vrot.lane.b32.xlu1 %v7598_v53, %s15652_s4  ;;  %7657 = vrot.lane.b32.xlu0 %v7654_v12, %s11482_s25  ;;  %v14195_v32 = vadd.f32 %v7757_v15, %v7752_v47  ;;  %v7781_v50 = vmul.f32 %v14081_v2, %v13542_v41  ;;  %v7753_v4 = vmul.f32 %v14070_v9, %v13642_v60  ;;  %v7736_v11 = vrot.slane %v7730_v16, 4 }
 0x9c1   : > { %v7656_v13 = vsel %vm15569_vm7, %v7653_v46, %v7655_v61  ;;  %v7759_v20 = vadd.f32 %v7756_v44, %v7751_v63  ;;  %v7729_v28 = vmul.f32 %v14042_v39, %v13667_v34  ;;  %v7780_v53 = vmul.f32 %v14081_v2, %v13494_v42 }
 0x9c2   : > { %v7785_v27 = vmul.f32 %v14096_v59, %v13506_v5  ;;  %v7786_v9 = vmul.f32 %v14096_v59, %v13531_v56  ;;  %v7758_v6 = vmul.f32 %v14073_v29, %v13667_v34  ;;  %v7738_v46 = vsel %vm15568_vm8, %v7736_v11, %v7737_v35 }
 0x9c3   : > { %v7684_v39 = vrot.slane %v7677_v3, 3  ;;  %v7732_v12 = vadd.f32 %v7729_v28, %v7724_v38  ;;  %v7810_v55 = vmul.f32 %v14110_v51, %v13542_v41  ;;  %v7766_v47 = vrot.slane %v14195_v32, 4 }
 0x9c4   : > { %7630 = vrot.lane.b32.xlu1 %v7627_v43, %s11481_s1  ;;  %7686 = vrot.lane.b32.xlu0 %v7683_v36, %s11483_s5  ;;  %v14226_v61 = vadd.f32 %v7786_v9, %v7781_v50  ;;  %v7761_v29 = vadd.f32 %v7758_v6, %v7753_v4  ;;  %v7809_v16 = vmul.f32 %v14110_v51, %v13494_v42  ;;  %v14239_v15 = vstv %s14174_s7  ;;  %v14270_v6 = vld [vmem:[#allocation4] sm:$0xff]  ;;  %s14442_s7 = sld [smem:[#allocation5 + $0x58]] }
 0x9c5   : > { %v7814_v63 = vmul.f32 %v14152_v49, %v13506_v5  ;;  %v7815_v44 = vmul.f32 %v14152_v49, %v13531_v56  ;;  %v7782_v45 = vmul.f32 %v14081_v2, %v13642_v60  ;;  %v7765_v43 = vrot.slane %v7759_v20, 4 }
 0x9c6   : > { %v7788_v3 = vadd.f32 %v7785_v27, %v7780_v53  ;;  %v14242_v38 = vstv %s14184_s8  ;;  %v14245_v42 = vstv %s14186_s9  ;;  %v7685_v36 = vsel %vm15569_vm7, %v7682_v40, %v7684_v39  ;;  %v14266_v27 = vld [vmem:[#allocation3] sm:$0xff]  ;;  %s14448_s8 = sld [smem:[#allocation5 + $0x59]]  ;;  %s14471_s9 = sld [smem:[#allocation5 + $0x5a]] }
 0x9c7   : > { %v14248_v32 = vadd.f32 %v7815_v44, %v7810_v55  ;;  %v7787_v5 = vmul.f32 %v14096_v59, %v13667_v34  ;;  %v14253_v50 = vstv %s14192_s22  ;;  %v7767_v2 = vsel %vm15568_vm8, %v7765_v43, %v7766_v47  ;;  %s14477_s22 = sld [smem:[#allocation5 + $0x5b]] }
 0x9c8   : > { %7659 = vrot.lane.b32.xlu1 %v7656_v13, %s11482_s25  ;;  %7741 = vrot.lane.b32.xlu0 %v7738_v46, %s15650_s6  ;;  %v7739_v4 = vrot.slane %v7732_v12, 4  ;;  %v7795_v13 = vrot.slane %v14226_v61, 4  ;;  %v7839_v11 = vmul.f32 %v14155_v54, %v13542_v41  ;;  %v7768_v40 = vrot.slane %v7761_v29, 4 }
 0x9c9   : > { %v7817_v20 = vadd.f32 %v7814_v63, %v7809_v16  ;;  %v7790_v28 = vadd.f32 %v7787_v5, %v7782_v45  ;;  %v14262_v59 = vstv %s14206_s11  ;;  %v7794_v53 = vrot.slane %v7788_v3, 4  ;;  %s14479_s11 = sld [smem:[#allocation5 + $0x5c]] }
 0x9ca   : > { %v7838_v9 = vmul.f32 %v14266_v27, %v14155_v54  ;;  %v7843_v46 = vmul.f32 %v14270_v6, %v14179_v14  ;;  %v7844_v39 = vmul.f32 %v14179_v14, %v13531_v56  ;;  %v7824_v12 = vrot.slane %v14248_v32, 4 }
 0x9cb   : > { %v7811_v55 = vmul.f32 %v14110_v51, %v13642_v60  ;;  %v14282_v61 = vstv %s14221_s12  ;;  %v14285_v29 = vstv %s14223_s18  ;;  %v7740_v16 = vsel %vm15568_vm8, %v7737_v35, %v7739_v4  ;;  %s14504_s12 = sld [smem:[#allocation5 + $0x5d]]  ;;  %s14526_s18 = sld [smem:[#allocation5 + $0x5e]] }
 0x9cc   : > { %7688 = vrot.lane.b32.xlu1 %v7685_v36, %s11483_s5  ;;  %7770 = vrot.lane.b32.xlu0 %v7767_v2, %s15651_s0  ;;  %v7796_v63 = vsel %vm15568_vm8, %v7794_v53, %v7795_v13  ;;  %v14291_v44 = vadd.f32 %v7844_v39, %v7839_v11  ;;  %v7868_v56 = vmul.f32 %v14182_v33, %v13542_v41  ;;  %v7823_v45 = vrot.slane %v7817_v20, 4  ;;  %v14308_v36 = vld [vmem:[#allocation4 + $0x8] sm:$0xff]  ;;  %v14315_v2 = vld [vmem:[#allocation3 + $0x8] sm:$0xff] }
 0x9cd   : > { %v7769_v51 = vsel %vm15568_vm8, %v7766_v47, %v7768_v40  ;;  %v7797_v43 = vrot.slane %v7790_v28, 4  ;;  %v7816_v1 = vmul.f32 %v14152_v49, %v13667_v34  ;;  %v7846_v35 = vadd.f32 %v7843_v46, %v7838_v9 }
 0x9ce   : > { %v7867_v3 = vmul.f32 %v14266_v27, %v14182_v33  ;;  %v7872_v41 = vmul.f32 %v14270_v6, %v14239_v15  ;;  %v7873_v47 = vmul.f32 %v14308_v36, %v14239_v15  ;;  %v7825_v32 = vsel %vm15568_vm8, %v7823_v45, %v7824_v12 }
 0x9cf   : > { %v7819_v49 = vadd.f32 %v7816_v1, %v7811_v55  ;;  %v7840_v5 = vmul.f32 %v14155_v54, %v13642_v60  ;;  %v7923_v4 = vmul.f32 %v14315_v2, %v14242_v38  ;;  %v7853_v11 = vrot.slane %v14291_v44, 4 }
 0x9d0   : > { %7743 = vrot.lane.b32.xlu1 %v7740_v16, %s15650_s6  ;;  %7799 = vrot.lane.b32.xlu0 %v7796_v63, %s15652_s4  ;;  %v14320_v40 = vadd.f32 %v7873_v47, %v7868_v56  ;;  %v7845_v20 = vmul.f32 %v14179_v14, %v13667_v34  ;;  %v7922_v28 = vmul.f32 %v14266_v27, %v14242_v38  ;;  %v14335_v46 = vstv %s14264_s20  ;;  %s14528_s20 = sld [smem:[#allocation5 + $0x5f]] }
 0x9d1   : > { %v7927_v54 = vmul.f32 %v14270_v6, %v14245_v42  ;;  %v7928_v53 = vmul.f32 %v14308_v36, %v14245_v42  ;;  %v7869_v9 = vmul.f32 %v14182_v33, %v13642_v60  ;;  %v7852_v39 = vrot.slane %v7846_v35, 4 }
 0x9d2   : > { %v7875_v14 = vadd.f32 %v7872_v41, %v7867_v3  ;;  %v14338_v55 = vstv %s14276_s21  ;;  %v7826_v16 = vrot.slane %v7819_v49, 4  ;;  %v7848_v63 = vadd.f32 %v7845_v20, %v7840_v5  ;;  %s14549_s21 = sld [smem:[#allocation5]] }
 0x9d3   : > { %v14340_v44 = vadd.f32 %v7928_v53, %v7923_v4  ;;  %v7874_v56 = vmul.f32 %v14239_v15, %v13667_v34  ;;  %v7854_v33 = vsel %vm15568_vm8, %v7852_v39, %v7853_v11  ;;  %v7882_v45 = vrot.slane %v14320_v40, 4 }
 0x9d4   : > { %7772 = vrot.lane.b32.xlu1 %v7769_v51, %s15651_s0  ;;  %7828 = vrot.lane.b32.xlu0 %v7825_v32, %s11481_s1  ;;  %v7798_v51 = vsel %vm15568_vm8, %v7795_v13, %v7797_v43  ;;  %v7952_v1 = vmul.f32 %v14315_v2, %v14253_v50  ;;  %v7930_v35 = vadd.f32 %v7927_v54, %v7922_v28  ;;  %v14352_v41 = vstv %s14300_s26  ;;  %s14551_s26 = sld [smem:[#allocation5 + $0x1]] }
 0x9d5   : > { %v7877_v3 = vadd.f32 %v7874_v56, %v7869_v9  ;;  %v14355_v47 = vstv %s14302_s27  ;;  %v7881_v15 = vrot.slane %v7875_v14, 4  ;;  %v7951_v13 = vmul.f32 %v14266_v27, %v14253_v50  ;;  %s14561_s27 = sld [smem:[#allocation5 + $0x60]] }
 0x9d6   : > { %v7956_v43 = vmul.f32 %v14270_v6, %v14262_v59  ;;  %v7957_v32 = vmul.f32 %v14308_v36, %v14262_v59  ;;  %v7827_v5 = vsel %vm15568_vm8, %v7824_v12, %v7826_v16  ;;  %v7855_v4 = vrot.slane %v7848_v63, 4 }
 0x9d7   : > { %v7937_v40 = vrot.slane %v14340_v44, 5  ;;  %v7924_v20 = vmul.f32 %v14242_v38, %v13642_v60  ;;  %v7883_v28 = vsel %vm15568_vm8, %v7881_v15, %v7882_v45  ;;  %v7981_v53 = vmul.f32 %v14315_v2, %v14282_v61 }
 0x9d8   : > { %7801 = vrot.lane.b32.xlu1 %v7798_v51, %s15652_s4  ;;  %7857 = vrot.lane.b32.xlu0 %v7854_v33, %s11482_s25  ;;  %v14370_v54 = vadd.f32 %v7957_v32, %v7952_v1  ;;  %v7953_v9 = vmul.f32 %v14253_v50, %v13642_v60  ;;  %v7936_v12 = vrot.slane %v7930_v35, 5  ;;  %v7884_v39 = vrot.slane %v7877_v3, 4 }
 0x9d9   : > { %v7929_v14 = vmul.f32 %v14245_v42, %v13667_v34  ;;  %v7980_v38 = vmul.f32 %v14266_v27, %v14282_v61  ;;  %v7959_v16 = vadd.f32 %v7956_v43, %v7951_v13  ;;  %v7985_v63 = vmul.f32 %v14270_v6, %v14285_v29  ;;  %v14415_v13 = vld [vmem:[#allocation3 + $0x10] sm:$0x3f] }
 0x9da   : > { %v14363_v49 = vpop.permute.xlu0 %6986  ;;  %v7986_v56 = vmul.f32 %v14308_v36, %v14285_v29  ;;  %v7958_v60 = vmul.f32 %v14262_v59, %v13667_v34  ;;  %v7856_v42 = vsel %vm15568_vm8, %v7853_v11, %v7855_v4  ;;  %v7938_v51 = vsel %vm15567_vm9, %v7936_v12, %v7937_v40 }
 0x9db   : > { %v7932_v33 = vadd.f32 %v7929_v14, %v7924_v20  ;;  %v8010_v1 = vmul.f32 %v14315_v2, %v14335_v46  ;;  %v7966_v34 = vrot.slane %v14370_v54, 5  ;;  %v8009_v11 = vmul.f32 %v14266_v27, %v14335_v46 }
 0x9dc   : > { %7830 = vrot.lane.b32.xlu1 %v7827_v5, %s11481_s1  ;;  %7886 = vrot.lane.b32.xlu0 %v7883_v28, %s11483_s5  ;;  %v14405_v59 = vadd.f32 %v7986_v56, %v7981_v53  ;;  %v7961_v35 = vadd.f32 %v7958_v60, %v7953_v9  ;;  %v8014_v3 = vmul.f32 %v14270_v6, %v14338_v55  ;;  %v7965_v5 = vrot.slane %v7959_v16, 5  ;;  %v14428_v9 = vld [vmem:[#allocation4 + $0x10] sm:$0x3f] }
 0x9dd   : > { %v8015_v15 = vmul.f32 %v14308_v36, %v14338_v55  ;;  %v7982_v43 = vmul.f32 %v14415_v13, %v14282_v61  ;;  %v7885_v32 = vsel %vm15568_vm8, %v7882_v45, %v7884_v39  ;;  %v7988_v4 = vadd.f32 %v7985_v63, %v7980_v38 }
 0x9de   : > { %v14392_v50 = vpop.permute.xlu0 %7006  ;;  %v8039_v20 = vmul.f32 %v14315_v2, %v14352_v41  ;;  %v7987_v12 = vmul.f32 %v14428_v9, %v14285_v29  ;;  %v8038_v61 = vmul.f32 %v14266_v27, %v14352_v41  ;;  %v8043_v45 = vmul.f32 %v14270_v6, %v14355_v47 }
 0x9df   : > { %v14426_v53 = vadd.f32 %v8015_v15, %v8010_v1  ;;  %v7967_v39 = vsel %vm15567_vm9, %v7965_v5, %v7966_v34  ;;  %v7939_v14 = vrot.slane %v7932_v33, 5  ;;  %v7995_v38 = vrot.slane %v14405_v59, 5 }
 0x9e0   : > { %7859 = vrot.lane.b32.xlu1 %v7856_v42, %s11482_s25  ;;  %7941 = vrot.lane.b32.xlu0 %v7938_v51, %s15650_s6  ;;  %v8044_v16 = vmul.f32 %v14308_v36, %v14355_v47  ;;  %v7968_v29 = vrot.slane %v7961_v35, 5  ;;  %v8017_v63 = vadd.f32 %v8014_v3, %v8009_v11  ;;  %v7990_v56 = vadd.f32 %v7987_v12, %v7982_v43 }
 0x9e1   : > { %v7994_v60 = vrot.slane %v7988_v4, 5  ;;  %v8066_v51 = vstv %s14388_s28  ;;  %v8071_v33 = vstv %s14390_s29  ;;  %v15548_v15 = vrot.slane %v14426_v53, 5  ;;  %s14563_s28 = sld [smem:[#allocation5 + $0x61]]  ;;  %s14632_s29 = sld [smem:[#allocation5 + $0xe]] }
 0x9e2   : > { %v14422_v28 = vpop.permute.xlu1 %6988  ;;  %v14424_v54 = vpop.permute.xlu0 %7026  ;;  %v14444_v42 = vadd.f32 %v8044_v16, %v8039_v20  ;;  %v8121_v5 = vstv %s14400_s2  ;;  %v14457_v35 = vstv %s14402_s3  ;;  %v7940_v11 = vsel %vm15567_vm9, %v7937_v40, %v7939_v14  ;;  %s14634_s2 = sld [smem:[#allocation5 + $0xf]]  ;;  %s14955_s3 = sld [smem:[#allocation5 + $0x46]] }
 0x9e3   : > { %v7996_v3 = vsel %vm15567_vm9, %v7994_v60, %v7995_v38  ;;  %v8011_v43 = vmul.f32 %v14415_v13, %v14335_v46  ;;  %v8068_v4 = vmul.f32 %v14315_v2, %v8066_v51  ;;  %v7969_v20 = vsel %vm15567_vm9, %v7966_v34, %v7968_v29 }
 0x9e4   : > { %7888 = vrot.lane.b32.xlu1 %v7885_v32, %s11483_s5  ;;  %7970 = vrot.lane.b32.xlu0 %v7967_v39, %s15651_s0  ;;  %v8046_v32 = vadd.f32 %v8043_v45, %v8038_v61  ;;  %v8023_v12 = vrot.slane %v8017_v63, 5  ;;  %v7997_v61 = vrot.slane %v7990_v56, 5  ;;  %v8016_v44 = vmul.f32 %v14428_v9, %v14338_v55 }
 0x9e5   : > { %v15551_v40 = vrot.slane %v14444_v42, 5  ;;  %v8067_v45 = vmul.f32 %v14266_v27, %v8066_v51  ;;  %v8072_v46 = vmul.f32 %v14270_v6, %v8071_v33  ;;  %v8073_v39 = vmul.f32 %v14308_v36, %v8071_v33 }
 0x9e6   : > { %v14450_v1 = vpop.permute.xlu1 %7008  ;;  %v14452_v59 = vpop.permute.xlu0 %7046  ;;  %v8025_v55 = vsel %vm15567_vm9, %v8023_v12, %v15548_v15  ;;  %v8052_v16 = vrot.slane %v8046_v32, 5  ;;  %v8040_v29 = vmul.f32 %v14415_v13, %v14352_v41  ;;  %v8123_v63 = vmul.f32 %v14315_v2, %v8121_v5 }
 0x9e7   : > { %v8019_v56 = vadd.f32 %v8016_v44, %v8011_v43  ;;  %v14491_v60 = vadd.f32 %v8073_v39, %v8068_v4  ;;  %v8045_v32 = vmul.f32 %v14428_v9, %v14355_v47  ;;  %v8128_v41 = vmul.f32 %v14308_v36, %v14457_v35 }
 0x9e8   : > { %7943 = vrot.lane.b32.xlu1 %v7940_v11, %s15650_s6  ;;  %7999 = vrot.lane.b32.xlu0 %v7996_v3, %s15652_s4  ;;  %v8122_v11 = vmul.f32 %v14266_v27, %v8121_v5  ;;  %v8127_v3 = vmul.f32 %v14270_v6, %v14457_v35  ;;  %v8069_v12 = vmul.f32 %v14415_v13, %v8066_v51  ;;  %v8150_v43 = vstv %s14442_s7  ;;  %s14957_s7 = sld [smem:[#allocation5 + $0x47]] }
 0x9e9   : > { %v7998_v4 = vsel %vm15567_vm9, %v7995_v38, %v7997_v61  ;;  %v8054_v44 = vsel %vm15567_vm9, %v8052_v16, %v15551_v40  ;;  %v8155_v39 = vstv %s14448_s8  ;;  %v8048_v15 = vadd.f32 %v8045_v32, %v8040_v29  ;;  %s15068_s8 = sld [smem:[#allocation5 + $0x54]] }
 0x9ea   : > { %v14481_v34 = vpop.permute.xlu1 %7028  ;;  %v14483_v14 = vpop.permute.xlu0 %7066  ;;  %v14515_v7 = vadd.f32 %v8128_v41, %v8123_v63  ;;  %v8074_v51 = vmul.f32 %v14428_v9, %v8071_v33  ;;  %v8152_v26 = vmul.f32 %v14315_v2, %v8150_v43  ;;  %v8026_v38 = vrot.slane %v8019_v56, 5 }
 0x9eb   : > { %v8082_v61 = vrot.slane %v14491_v60, 5  ;;  %v8130_v16 = vadd.f32 %v8127_v3, %v8122_v11  ;;  %v8156_v29 = vmul.f32 %v14270_v6, %v8155_v39  ;;  %v8157_v63 = vmul.f32 %v14308_v36, %v8155_v39 }
 0x9ec   : > { %7972 = vrot.lane.b32.xlu1 %v7969_v20, %s15651_s0  ;;  %8028 = vrot.lane.b32.xlu0 %v8025_v55, %s11481_s1  ;;  %v8075_v20 = vadd.f32 %v8072_v46, %v8067_v45  ;;  %v8151_v45 = vmul.f32 %v14266_v27, %v8150_v43  ;;  %v8077_v46 = vadd.f32 %v8074_v51, %v8069_v12  ;;  %v8179_v33 = vstv %s14471_s9  ;;  %s15077_s9 = sld [smem:[#allocation5 + $0x55]] }
 0x9ed   : > { %v8124_v60 = vmul.f32 %v14415_v13, %v8121_v5  ;;  %v8184_v11 = vstv %s14477_s22  ;;  %v14533_v3 = vstv %s14479_s11  ;;  %v8055_v12 = vrot.slane %v8048_v15, 5  ;;  %s364_s22 = sand.u32 1, %s11464_s14  }
 0x9ee   : > { %v14511_v55 = vpop.permute.xlu1 %7048  ;;  %v14513_v47 = vpop.permute.xlu0 %7086  ;;  %v8081_v56 = vrot.slane %v8075_v20, 5  ;;  %v15660_v51 = vrot.slane %v14426_v53, 5  ;;  %v8129_v40 = vmul.f32 %v14428_v9, %v14457_v35  ;;  %v8181_v0 = vmul.f32 %v14315_v2, %v8179_v33  ;;  %s9010_s11 = sshll.u32 %s364_s22, 8 }
 0x9ef   : > { %v8084_v15 = vrot.slane %v8077_v46, 5  ;;  %v8159_v53 = vadd.f32 %v8156_v29, %v8151_v45  ;;  %v8185_v35 = vmul.f32 %v14270_v6, %v8184_v11  ;;  %v15661_v45 = vrot.slane %v14444_v42, 5 }
 0x9f0   : > { %8001 = vrot.lane.b32.xlu1 %v7998_v4, %s15652_s4  ;;  %8057 = vrot.lane.b32.xlu0 %v8054_v44, %s11482_s25  ;;  %v15555_v4 = vrot.slane %v14515_v7, 6  ;;  %v14540_v44 = vadd.f32 %v8157_v63, %v8152_v26  ;;  %v8027_v20 = vsel %vm15567_vm9, %v15660_v51, %v8026_v38  ;;  %v8083_v5 = vsel %vm15567_vm9, %v8081_v56, %v8082_v61 }
 0x9f1   : > { %v8136_v26 = vrot.slane %v8130_v16, 6  ;;  %v14556_v63 = vstv %s14504_s12  ;;  %v8132_v38 = vadd.f32 %v8129_v40, %v8124_v60  ;;  %v8180_v56 = vmul.f32 %v14266_v27, %v8179_v33  ;;  %s15330_s12 = scalar_lea.vmem [#allocation8], %s9010_s11 }
 0x9f2   : > { %v14535_v32 = vpop.permute.xlu1 %7068  ;;  %v14537_v41 = vpop.permute.xlu0 %7141  ;;  %v8186_v51 = vmul.f32 %v14308_v36, %v8184_v11  ;;  %v8056_v40 = vsel %vm15567_vm9, %v15661_v45, %v8055_v12  ;;  %v8166_v29 = vrot.slane %v14540_v44, 6  ;;  %v8153_v60 = vmul.f32 %v14415_v13, %v8150_v43 }
 0x9f3   : > { %v8138_v46 = vsel %vm15566_vm10, %v8136_v26, %v15555_v4  ;;  %v8209_v48 = vmul.f32 %v14266_v27, %v14533_v3  ;;  %v8210_v18 = vmul.f32 %v14315_v2, %v14533_v3  ;;  %v8214_v42 = vmul.f32 %v14270_v6, %v14556_v63 }
 0x9f4   : > { %8030 = vrot.lane.b32.xlu1 %v8027_v20, %s11481_s1  ;;  %8086 = vrot.lane.b32.xlu0 %v8083_v5, %s11483_s5  ;;  %v14577_v5 = vadd.f32 %v8186_v51, %v8181_v0  ;;  %v8165_v12 = vrot.slane %v8159_v53, 6  ;;  %v8158_v44 = vmul.f32 %v14428_v9, %v8155_v39  ;;  %v8237_v26 = vstv %s14526_s18  ;;  %s9551_s18 = sshll.u32 %s11563_s17, 12  ;;  %s15465_s17 = scalar_lea.sflag [#allocation6], %s364_s22 }
 0x9f5   : > { %v8242_v0 = vstv %s14528_s20  ;;  %v8085_v43 = vsel %vm15567_vm9, %v8082_v61, %v8084_v15  ;;  %v8139_v51 = vrot.slane %v8132_v38, 6  ;;  %v8188_v45 = vadd.f32 %v8185_v35, %v8180_v56  ;;  %s8930_s20 = sshll.u32 %s15330_s12, 4  ;;  %s15459_s20 = int_to_ptr.vmem [resolvable:$true] %s8930_s20 }
 0x9f6   : > { %v14565_v20 = vpop.permute.xlu1 %7088  ;;  %v14567_v16 = vpop.permute.xlu0 %7170  ;;  %v8215_v4 = vmul.f32 %v14308_v36, %v14556_v63  ;;  %v8161_v53 = vadd.f32 %v8158_v44, %v8153_v60  ;;  %v8182_v39 = vmul.f32 %v14415_v13, %v8179_v33  ;;  %v8195_v61 = vrot.slane %v14577_v5, 6 }
 0x9f7   : > { %v8217_v15 = vadd.f32 %v8214_v42, %v8209_v48  ;;  %v8187_v56 = vmul.f32 %v14428_v9, %v8184_v11  ;;  %v8243_v60 = vmul.f32 %v14270_v6, %v8242_v0  ;;  %v8244_v33 = vmul.f32 %v14308_v36, %v8242_v0 }
 0x9f8   : > { %8059 = vrot.lane.b32.xlu1 %v8056_v40, %s11482_s25  ;;  %8141 = vrot.lane.b32.xlu0 %v8138_v46, %s15650_s6  ;;  %v8167_v40 = vsel %vm15566_vm10, %v8165_v12, %v8166_v29  ;;  %v8239_v46 = vmul.f32 %v14315_v2, %v8237_v26  ;;  %v14601_v38 = vadd.f32 %v8215_v4, %v8210_v18  ;;  %v8194_v19 = vrot.slane %v8188_v45, 6 }
 0x9f9   : > { %v8238_v12 = vmul.f32 %v14266_v27, %v8237_v26  ;;  %v8266_v5 = vstv %s14561_s27  ;;  %v8271_v48 = vstv %s14563_s28  ;;  %v15662_v11 = vrot.slane %v14515_v7, 6  ;;  %s15457_s27 = scalar_lea.hbm %s15516_s10, %s9551_s18  ;;  %s11484_s28 = smov [#allocation8]  }
 0x9fa   : > { %v14593_v25 = vpop.permute.xlu1 %7143  ;;  %v14595_v23 = vpop.permute.xlu0 %7199  ;;  %v14620_v35 = vadd.f32 %v8244_v33, %v8239_v46  ;;  %v8196_v8 = vsel %vm15566_vm10, %v8194_v19, %v8195_v61  ;;  %v8224_v44 = vrot.slane %v14601_v38, 6  ;;  %v8211_v45 = vmul.f32 %v14415_v13, %v14533_v3 }
 0x9fb   : > { %v8140_v42 = vsel %vm15566_vm10, %v15662_v11, %v8139_v51  ;;  %v8268_v10 = vmul.f32 %v14315_v2, %v8266_v5  ;;  %v15663_v30 = vstv %s14551_s26  ;;  %v8223_v7 = vrot.slane %v8217_v15, 6 }
 0x9fc   : > { %8088 = vrot.lane.b32.xlu1 %v8085_v43, %s11483_s5  ;;  %8170 = vrot.lane.b32.xlu0 %v8167_v40, %s15651_s0  ;;  %v8168_v43 = vrot.slane %v8161_v53, 6  ;;  %v8190_v40 = vadd.f32 %v8187_v56, %v8182_v39  ;;  %v6968_v17 = vmul.f32 %v14270_v6, %v15663_v30  ;;  %v8246_v51 = vadd.f32 %v8243_v60, %v8238_v12 }
 0x9fd   : > { %v8216_v19 = vmul.f32 %v14428_v9, %v14556_v63  ;;  %v8267_v3 = vmul.f32 %v14266_v27, %v8266_v5  ;;  %v8272_v53 = vmul.f32 %v14270_v6, %v8271_v48  ;;  %v8273_v39 = vmul.f32 %v14308_v36, %v8271_v48 }
 0x9fe   : > { %v14613_v18 = vpop.permute.xlu1 %7172  ;;  %v14615_v4 = vpop.permute.xlu0 %7228  ;;  %v15664_v30 = vstv %s14549_s21  ;;  %v8169_v15 = vsel %vm15566_vm10, %v8166_v29, %v8168_v43  ;;  %v8197_v56 = vrot.slane %v8190_v40, 6  ;;  %v8253_v12 = vrot.slane %v14620_v35, 6 }
 0x9ff   : > { %v6964_v46 = vmul.f32 %v14266_v27, %v15664_v30  ;;  %v8225_v63 = vsel %vm15566_vm10, %v8223_v7, %v8224_v44  ;;  %v8219_v60 = vadd.f32 %v8216_v19, %v8211_v45  ;;  %v8276_v33 = vadd.f32 %v8273_v39, %v8268_v10 }
 0xa00   : > { %8143 = vrot.lane.b32.xlu1 %v8140_v42, %s15650_s6  ;;  %8199 = vrot.lane.b32.xlu0 %v8196_v8, %s15652_s4  ;;  %v8240_v11 = vmul.f32 %v14415_v13, %v8237_v26  ;;  %v8252_v42 = vrot.slane %v8246_v51, 6  ;;  %v8275_v30 = vadd.f32 %v8272_v53, %v8267_v3  ;;  %v8245_v52 = vmul.f32 %v14428_v9, %v8242_v0  ;;  %s9441_s6 = sld [smem:[#allocation5 + $0x1c]] }
 0xa01   : > { %v6970_v29 = vadd.f32 %v6968_v17, %v6964_v46  ;;  %v8198_v10 = vsel %vm15566_vm10, %v8195_v61, %v8197_v56  ;;  %v8226_v40 = vrot.slane %v8219_v60, 6  ;;  %v8282_v45 = vrot.slane %v8276_v33, 6 }
 0xa02   : > { %v14644_v38 = vpop.permute.xlu1 %7201  ;;  %v14646_v8 = vpop.permute.xlu0 %7257  ;;  %v8254_v26 = vsel %vm15566_vm10, %v8252_v42, %v8253_v12  ;;  %v8248_v7 = vadd.f32 %v8245_v52, %v8240_v11  ;;  %v8269_v19 = vmul.f32 %v14415_v13, %v8266_v5  ;;  %v7095_v17 = vstv %s14632_s29  ;;  %s11410_s29 = sshll.u32 %s11484_s28, 4  ;;  %s11411_s29 = int_to_ptr.vmem [resolvable:$false] %s11410_s29 }
 0xa03   : > { %v6992_v51 = vadd.f32 %v14363_v49, %v6970_v29  ;;  %v7100_v0 = vstv %s14634_s2  ;;  %v8281_v3 = vrot.slane %v8275_v30, 6  ;;  %v8274_v53 = vmul.f32 %v14428_v9, %v8271_v48  ;;  %s11412_s2 = scalar_lea.vmem %s11411_s29, 8192  ;;  %p11413_p13 = scmp.lt.s32.totalorder %s15459_s20, %s11411_s29 }
 0xa04   : > { %8172 = vrot.lane.b32.xlu1 %v8169_v15, %s15651_s0  ;;  %8228 = vrot.lane.b32.xlu0 %v8225_v63, %s11481_s1  ;;  %v15665_v39 = vstv %s14549_s21  ;;  %v7097_v52 = vmul.f32 %v14315_v2, %v7095_v17  ;;  %v8227_v15 = vsel %vm15566_vm10, %v8224_v44, %v8226_v40  ;;  %v8255_v63 = vrot.slane %v8248_v7, 6  ;;  %s9442_s0 = sld [smem:[#allocation5 + $0x1d]] }
 0xa05   : > { %v7012_v61 = vadd.f32 %v14392_v50, %v6992_v51  ;;  %v6965_v46 = vmul.f32 %v14315_v2, %v15665_v39  ;;  %v8283_v56 = vsel %vm15566_vm10, %v8281_v3, %v8282_v45  ;;  %v8277_v60 = vadd.f32 %v8274_v53, %v8269_v19 }
 0xa06   : > { %v14655_v43 = vpop.permute.xlu1 %7230  ;;  %v14657_v35 = vpop.permute.xlu0 %7286  ;;  %v7096_v33 = vmul.f32 %v14266_v27, %v7095_v17  ;;  %v7101_v48 = vmul.f32 %v14270_v6, %v7100_v0  ;;  %v7102_v50 = vmul.f32 %v14308_v36, %v7100_v0  ;;  %v15666_v11 = vstv %s14551_s26 }
 0xa07   : > { %v6969_v42 = vmul.f32 %v14308_v36, %v15666_v11  ;;  %v7032_v30 = vadd.f32 %v14424_v54, %v7012_v61  ;;  %v8256_v7 = vsel %vm15566_vm10, %v8253_v12, %v8255_v63  ;;  %v8284_v19 = vrot.slane %v8277_v60, 6 }
 0xa08   : > { %8201 = vrot.lane.b32.xlu1 %v8198_v10, %s15652_s4  ;;  %8257 = vrot.lane.b32.xlu0 %v8254_v26, %s11482_s25  ;;  %v7105_v44 = vadd.f32 %v7102_v50, %v7097_v52  ;;  %v7104_v51 = vadd.f32 %v7101_v48, %v7096_v33  ;;  %v7098_v54 = vmul.f32 %v14415_v13, %v7095_v17  ;;  %v7295_v11 = vstv %s9441_s6  ;;  %s9456_s4 = sld [smem:[#allocation5 + $0x2b]] }
 0xa09   : > { %v6971_v26 = vadd.f32 %v6969_v42, %v6965_v46  ;;  %v7052_v40 = vadd.f32 %v14452_v59, %v7032_v30  ;;  %v8285_v12 = vsel %vm15566_vm10, %v8282_v45, %v8284_v19  ;;  %v7297_v30 = vmul.f32 %v14315_v2, %v7295_v11 }
 0xa0a   : > { %v14673_v5 = vpop.permute.xlu1 %7259  ;;  %v14675_v49 = vpop.permute.xlu0 %7341  ;;  %v7112_v39 = vrot.slane %v7105_v44, 1  ;;  %v7300_v42 = vstv %s9442_s0 }
 0xa0b   : > { %v6993_v3 = vadd.f32 %v14422_v28, %v6971_v26  ;;  %v7072_v53 = vadd.f32 %v14483_v14, %v7052_v40  ;;  %v7103_v28 = vmul.f32 %v14428_v9, %v7100_v0  ;;  %v7296_v26 = vmul.f32 %v14266_v27, %v7295_v11 }
 0xa0c   : > { %8230 = vrot.lane.b32.xlu1 %v8227_v15, %s11481_s1  ;;  %8286 = vrot.lane.b32.xlu0 %v8283_v56, %s11483_s5  ;;  %v7111_v15 = vrot.slane %v7104_v51, 1  ;;  %v7302_v40 = vmul.f32 %v14308_v36, %v7300_v42  ;;  %s9455_s1 = sld [smem:[#allocation5 + $0x2a]] }
 0xa0d   : > { %v7013_v46 = vadd.f32 %v14450_v1, %v6993_v3  ;;  %v7092_v59 = vadd.f32 %v14513_v47, %v7072_v53  ;;  %v7106_v56 = vadd.f32 %v7103_v28, %v7098_v54 }
 0xa0e   : > { %v14688_v29 = vpop.permute.xlu1 %7288  ;;  %v14690_v10 = vpop.permute.xlu0 %7370  ;;  %v7113_v17 = vsel %vm7110_vm5, %v7111_v15, %v7112_v39  ;;  %v7305_v51 = vadd.f32 %v7302_v40, %v7297_v30  ;;  %v15667_v30 = vmov 0.0  }
 0xa0f   : > { %v7033_v14 = vadd.f32 %v14481_v34, %v7013_v46  ;;  %v7118_v47 = vadd.f32 %v7113_v17, %v7092_v59  ;;  %v7114_v45 = vrot.slane %v7106_v56, 1  ;;  %v14748_v56 = vmul.u32 16, %v13339_v57 }
 0xa10   : > { %8259 = vrot.lane.b32.xlu1 %v8256_v7, %s11482_s25  ;;  %v7312_v59 = vrot.slane %v7305_v51, 2  ;;  %s14850_s25 = sld [smem:[#allocation5 + $0x38]] }
 0xa11   : > { %v7053_v1 = vadd.f32 %v14511_v55, %v7033_v14  ;;  %v7147_v50 = vadd.f32 %v14537_v41, %v7118_v47  ;;  %v7115_v55 = vsel %vm7110_vm5, %v7112_v39, %v7114_v45  ;;  %vm490_vm11 = vcmp.ge.s32.totalorder %v13074_v22, %v14748_v56 }
 0xa12   : > { %v14698_v61 = vpop.permute.xlu1 %7343  ;;  %v14700_v52 = vpop.permute.xlu0 %7399  ;;  %vm491_vm12 = vcmp.ge.s32.totalorder %v13336_v31, %v14748_v56 }
 0xa13   : > { %v7073_v33 = vadd.f32 %v14535_v32, %v7053_v1  ;;  %v7176_v44 = vadd.f32 %v14567_v16, %v7147_v50  ;;  %v7301_v32 = vmul.f32 %v14270_v6, %v7300_v42  ;;  %v14752_v1 = vstv %s9455_s1 }
 0xa14   : > { %8288 = vrot.lane.b32.xlu1 %v8285_v12, %s11483_s5  ;;  %v7298_v12 = vmul.f32 %v14415_v13, %v7295_v11  ;;  %v7500_v11 = vstv %s9456_s4  ;;  %v7496_v40 = vmul.f32 %v14266_v27, %v14752_v1  ;;  %s14860_s5 = sld [smem:[#allocation5 + $0x39]] }
 0xa15   : > { %v7093_v34 = vadd.f32 %v14565_v20, %v7073_v33  ;;  %v7205_v20 = vadd.f32 %v14595_v23, %v7176_v44  ;;  %v7304_v16 = vadd.f32 %v7301_v32, %v7296_v26 }
 0xa16   : > { %v14709_v63 = vpop.permute.xlu1 %7372  ;;  %v14711_v60 = vpop.permute.xlu0 %7428 }
 0xa17   : > { %v7119_v41 = vadd.f32 %v7115_v55, %v7093_v34  ;;  %v7234_v3 = vadd.f32 %v14615_v4, %v7205_v20  ;;  %v7311_v28 = vrot.slane %v7304_v16, 2  ;;  %v7303_v4 = vmul.f32 %v14428_v9, %v7300_v42 }
 0xa18   : > { %v460_v34 = vadd.s32 24, %v13074_v22  ;;  %v7501_v16 = vmul.f32 %v14270_v6, %v7500_v11 }
 0xa19   : > { %v7148_v54 = vadd.f32 %v14593_v25, %v7119_v41  ;;  %v7263_v46 = vadd.f32 %v14646_v8, %v7234_v3  ;;  %v522_v25 = vadd.s32 1, %v13339_v57  ;;  %v7306_v47 = vadd.f32 %v7303_v4, %v7298_v12 }
 0xa1a   : > { %v14715_v48 = vpop.permute.xlu1 %7401  ;;  %v14717_v0 = vpop.permute.xlu0 %7457  ;;  %v459_v57 = vadd.s32 16, %v13074_v22  ;;  %vm493_vm5 = vcmp.ge.s32.totalorder %v460_v34, %v14748_v56  ;;  %v7497_v41 = vmul.f32 %v14315_v2, %v14752_v1 }
 0xa1b   : > { %v7177_v15 = vadd.f32 %v14613_v18, %v7148_v54  ;;  %v7292_v23 = vadd.f32 %v14657_v35, %v7263_v46  ;;  %v7313_v18 = vsel %vm7310_vm6, %v7311_v28, %v7312_v59  ;;  %v14757_v35 = vmul.u32 16, %v522_v25 }
 0xa1c   : > { %vm492_vm2 = vcmp.ge.s32.totalorder %v459_v57, %v14748_v56  ;;  %v7314_v42 = vrot.slane %v7306_v47, 2  ;;  %v7502_v54 = vmul.f32 %v14308_v36, %v7500_v11 }
 0xa1d   : > { %v7206_v8 = vadd.f32 %v14644_v38, %v7177_v15  ;;  %v7318_v45 = vadd.f32 %v7313_v18, %v7292_v23  ;;  %vm524_vm13 = vcmp.lt.s32.totalorder %v13074_v22, %v14757_v35  ;;  %vm525_vm15 = vcmp.lt.s32.totalorder %v13336_v31, %v14757_v35 }
 0xa1e   : > { %v14727_v7 = vpop.permute.xlu1 %7430  ;;  %v14729_v19 = vpop.permute.xlu0 %7486  ;;  %vm556_vm1 = vmand %vm490_vm11, %vm524_vm13  ;;  %vm526_vm3 = vcmp.lt.s32.totalorder %v459_v57, %v14757_v35  ;;  %vm527_vm0 = vcmp.lt.s32.totalorder %v460_v34, %v14757_v35  ;;  %v461_v31 = vadd.s32 32, %v13074_v22  ;;  %v7315_v46 = vsel %vm7310_vm6, %v7312_v59, %v7314_v42 }
 0xa1f   : > { %v7235_v33 = vadd.f32 %v14655_v43, %v7206_v8  ;;  %v588_v44 = vsel %vm556_vm1, 1.0, %v15667_v30  ;;  %vm14779_vm4 = vmand %vm491_vm12, %vm525_vm15  ;;  %v14820_v28 = vadd.f32 %v7502_v54, %v7497_v41  ;;  %v464_v8 = vadd.s32 56, %v13074_v22 }
 0xa20   : > { %10638 = vmatprep.mubr.msk.f32.mxu0 %vm15565_vm14, %v588_v44  ;;  %vm14788_vm11 = vmand %vm492_vm2, %vm526_vm3  ;;  %vm494_vm13 = vcmp.ge.s32.totalorder %v461_v31, %v14748_v56  ;;  %vm528_vm15 = vcmp.lt.s32.totalorder %v461_v31, %v14757_v35  ;;  %v7504_v18 = vadd.f32 %v7501_v16, %v7496_v40  ;;  %v465_v57 = vadd.s32 64, %v13074_v22 }
 0xa21   : > { %v7264_v43 = vadd.f32 %v14673_v5, %v7235_v33  ;;  %v7347_v5 = vadd.f32 %v14675_v49, %v7318_v45  ;;  %vm14801_vm12 = vmand %vm493_vm5, %vm527_vm0  ;;  %v7498_v34 = vmul.f32 %v14415_v13, %v14752_v1 }
 0xa22   : > { %v14733_v53 = vpop.permute.xlu1 %7459  ;;  %v14735_v39 = vpop.permute.xlu0 %7541  ;;  %vm14815_vm2 = vmand %vm494_vm13, %vm528_vm15  ;;  %vm497_vm13 = vcmp.ge.s32.totalorder %v464_v8, %v14748_v56  ;;  %vm531_vm15 = vcmp.lt.s32.totalorder %v464_v8, %v14757_v35  ;;  %v7511_v1 = vrot.slane %v7504_v18, 3  ;;  %v470_v18 = vadd.s32 104, %v13074_v22 }
 0xa23   : > { %v7293_v26 = vadd.f32 %v14688_v29, %v7264_v43  ;;  %v462_v29 = vadd.s32 40, %v13074_v22  ;;  %v7376_v3 = vadd.f32 %v14690_v10, %v7347_v5  ;;  %v463_v10 = vadd.s32 48, %v13074_v22 }
 0xa25   : > { %vm495_vm1 = vcmp.ge.s32.totalorder %v462_v29, %v14748_v56  ;;  %vm529_vm0 = vcmp.lt.s32.totalorder %v462_v29, %v14757_v35  ;;  %v7319_v12 = vadd.f32 %v7315_v46, %v7293_v26  ;;  %v7405_v15 = vadd.f32 %v14700_v52, %v7376_v3 }
 0xa26   : > { %v14743_v14 = vpop.permute.xlu1 %7488  ;;  %v14745_v17 = vpop.permute.xlu0 %7570  ;;  %vm14826_vm6 = vmand %vm495_vm1, %vm529_vm0  ;;  %vm496_vm3 = vcmp.ge.s32.totalorder %v463_v10, %v14748_v56  ;;  %vm530_vm5 = vcmp.lt.s32.totalorder %v463_v10, %v14757_v35  ;;  %v7503_v26 = vmul.f32 %v14428_v9, %v7500_v11 }
 0xa27   : > { %v7434_v52 = vadd.f32 %v14711_v60, %v7405_v15  ;;  %v7348_v47 = vadd.f32 %v14698_v61, %v7319_v12  ;;  %vm14838_vm1 = vmand %vm496_vm3, %vm530_vm5  ;;  %v7512_v60 = vrot.slane %v14820_v28, 3  ;;  %vm498_vm3 = vcmp.ge.s32.totalorder %v465_v57, %v14748_v56 }
 0xa28   : > { %vm14852_vm0 = vmand %vm497_vm13, %vm531_vm15  ;;  %vm532_vm5 = vcmp.lt.s32.totalorder %v465_v57, %v14757_v35  ;;  %v7506_v11 = vadd.f32 %v7503_v26, %v7498_v34  ;;  %v15686_v12 = vmov 0  ;;  %v469_v15 = vadd.s32 96, %v13074_v22 }
 0xa29   : > { %v7463_v33 = vadd.f32 %v14717_v0, %v7434_v52  ;;  %v466_v0 = vadd.s32 72, %v13074_v22  ;;  %v7377_v44 = vadd.f32 %v14709_v63, %v7348_v47  ;;  %vm14867_vm14 = vmand %vm498_vm3, %vm532_vm5  ;;  %v467_v63 = vadd.s32 80, %v13074_v22 }
 0xa2a   : > { %v14763_v50 = vpop.permute.xlu1 %7543  ;;  %v14765_v38 = vpop.permute.xlu0 %7599  ;;  %v7514_v10 = vrot.slane %v7506_v11, 3  ;;  %v15688_v52 = vmov 0  ;;  %v593_v55 = vsel %vm14826_vm6, 1.0, %v15667_v30  ;;  %v594_v32 = vsel %vm14838_vm1, 1.0, %v15667_v30 }
 0xa2b   : > { %v7492_v5 = vadd.f32 %v14729_v19, %v7463_v33  ;;  %vm499_vm13 = vcmp.ge.s32.totalorder %v466_v0, %v14748_v56  ;;  %vm533_vm15 = vcmp.lt.s32.totalorder %v466_v0, %v14757_v35  ;;  %v7406_v31 = vadd.f32 %v14715_v48, %v7377_v44 }
 0xa2c   : > { %v7513_v19 = vsel %vm15569_vm7, %v7511_v1, %v7512_v60  ;;  %vm14877_vm10 = vmand %vm499_vm13, %vm533_vm15  ;;  %v468_v48 = vadd.s32 88, %v13074_v22  ;;  %vm500_vm3 = vcmp.ge.s32.totalorder %v467_v63, %v14748_v56  ;;  %vm534_vm5 = vcmp.lt.s32.totalorder %v467_v63, %v14757_v35 }
 0xa2d   : > { %v7435_v16 = vadd.f32 %v14727_v7, %v7406_v31  ;;  %v7518_v54 = vadd.f32 %v7513_v19, %v7492_v5  ;;  %vm14888_vm13 = vmand %vm500_vm3, %vm534_vm5  ;;  %v7695_v7 = vstv %s14850_s25  ;;  %v7700_v33 = vstv %s14860_s5 }
 0xa2e   : > { %v14797_v20 = vpop.permute.xlu1 %7572  ;;  %v14799_v51 = vpop.permute.xlu0 %7628  ;;  %vm501_vm9 = vcmp.ge.s32.totalorder %v468_v48, %v14748_v56  ;;  %vm535_vm8 = vcmp.lt.s32.totalorder %v468_v48, %v14757_v35  ;;  %v15687_v12 = vsel %vm14888_vm13, 4294967295, %v15686_v12  ;;  %vm502_vm3 = vcmp.ge.s32.totalorder %v469_v15, %v14748_v56 }
 0xa2f   : > { %v7464_v46 = vadd.f32 %v14733_v53, %v7435_v16  ;;  %vm14898_vm15 = vmand %vm501_vm9, %vm535_vm8  ;;  %v7547_v53 = vadd.f32 %v14735_v39, %v7518_v54  ;;  %v7697_v57 = vmul.f32 %v14315_v2, %v7695_v7  ;;  %vm536_vm5 = vcmp.lt.s32.totalorder %v469_v15, %v14757_v35 }
 0xa30   : > { %v15689_v52 = vsel %vm14898_vm15, 4294967295, %v15688_v52  ;;  %vm503_vm7 = vcmp.ge.s32.totalorder %v470_v18, %v14748_v56  ;;  %vm537_vm8 = vcmp.lt.s32.totalorder %v470_v18, %v14757_v35  ;;  %v7696_v0 = vmul.f32 %v14266_v27, %v7695_v7  ;;  %vm14913_vm9 = vmand %vm502_vm3, %vm536_vm5 }
 0xa31   : > { %v7493_v47 = vadd.f32 %v14743_v14, %v7464_v46  ;;  %v7576_v34 = vadd.f32 %v14745_v17, %v7547_v53  ;;  %v15690_v44 = vmov 0  ;;  %v471_v39 = vadd.s32 112, %v13074_v22  ;;  %vm14925_vm13 = vmand %vm503_vm7, %vm537_vm8 }
 0xa32   : > { %v14822_v4 = vpop.permute.xlu1 %7601  ;;  %v14824_v59 = vpop.permute.xlu0 %7657  ;;  %v15691_v44 = vsel %vm14913_vm9, 4294967295, %v15690_v44  ;;  %vm15692_vm15 = vcmask 1044480   ;;  %v7701_v2 = vmul.f32 %v14270_v6, %v7700_v33  ;;  %v7702_v5 = vmul.f32 %v14308_v36, %v7700_v33 }
 0xa33   : > { %v7515_v14 = vsel %vm15692_vm15, %v7512_v60, %v7514_v10  ;;  %v15693_v17 = vmov 0  ;;  %v472_v27 = vadd.s32 120, %v13074_v22  ;;  %v7605_v63 = vadd.f32 %v14765_v38, %v7576_v34 }
 0xa34   : > { %v15694_v17 = vsel %vm14925_vm13, 4294967295, %v15693_v17  ;;  %v7519_v31 = vadd.f32 %v7515_v14, %v7493_v47  ;;  %vm504_vm3 = vcmp.ge.s32.totalorder %v471_v39, %v14748_v56  ;;  %v14932_v60 = vadd.f32 %v7702_v5, %v7697_v57 }
 0xa35   : > { %vm538_vm15 = vcmp.lt.s32.totalorder %v471_v39, %v14757_v35  ;;  %vm505_vm5 = vcmp.ge.s32.totalorder %v472_v27, %v14748_v56  ;;  %vm539_vm9 = vcmp.lt.s32.totalorder %v472_v27, %v14757_v35  ;;  %v7634_v6 = vadd.f32 %v14799_v51, %v7605_v63 }
 0xa36   : > { %v14846_v43 = vpop.permute.xlu1 %7630  ;;  %v14848_v42 = vpop.permute.xlu0 %7686  ;;  %vm14938_vm7 = vmand %vm504_vm3, %vm538_vm15  ;;  %v15695_v36 = vmov 0  ;;  %v473_v19 = vadd.s32 128, %v13074_v22  ;;  %v7704_v11 = vadd.f32 %v7701_v2, %v7696_v0  ;;  %v15697_v16 = vmov 0 }
 0xa37   : > { %v15696_v36 = vsel %vm14938_vm7, 4294967295, %v15695_v36  ;;  %vm14947_vm8 = vmand %vm505_vm5, %vm539_vm9  ;;  %v474_v54 = vadd.s32 136, %v13074_v22  ;;  %v7548_v46 = vadd.f32 %v14763_v50, %v7519_v31  ;;  %v7663_v51 = vadd.f32 %v14824_v59, %v7634_v6 }
 0xa38   : > { %v15698_v16 = vsel %vm14947_vm8, 4294967295, %v15697_v16  ;;  %v7698_v15 = vmul.f32 %v14415_v13, %v7695_v7  ;;  %vm506_vm3 = vcmp.ge.s32.totalorder %v473_v19, %v14748_v56  ;;  %v7712_v10 = vrot.slane %v14932_v60, 4 }
 0xa39   : > { %vm540_vm9 = vcmp.lt.s32.totalorder %v473_v19, %v14757_v35  ;;  %vm507_vm15 = vcmp.ge.s32.totalorder %v474_v54, %v14748_v56  ;;  %vm541_vm5 = vcmp.lt.s32.totalorder %v474_v54, %v14757_v35  ;;  %v7577_v50 = vadd.f32 %v14797_v20, %v7548_v46 }
 0xa3a   : > { %v14873_v41 = vpop.permute.xlu1 %7659  ;;  %v14875_v29 = vpop.permute.xlu0 %7741  ;;  %v7692_v59 = vadd.f32 %v14848_v42, %v7663_v51  ;;  %v7703_v7 = vmul.f32 %v14428_v9, %v7700_v33  ;;  %vm14967_vm8 = vmand %vm506_vm3, %vm540_vm9  ;;  %v15699_v18 = vmov 0  ;;  %v475_v53 = vadd.s32 144, %v13074_v22 }
 0xa3b   : > { %v15700_v18 = vsel %vm14967_vm8, 4294967295, %v15699_v18  ;;  %v7711_v47 = vrot.slane %v7704_v11, 4  ;;  %vm14976_vm7 = vmand %vm507_vm15, %vm541_vm5  ;;  %v15701_v0 = vmov 0  ;;  %v476_v20 = vadd.s32 152, %v13074_v22 }
 0xa3c   : > { %v15702_v0 = vsel %vm14976_vm7, 4294967295, %v15701_v0  ;;  %v7606_v42 = vadd.f32 %v14822_v4, %v7577_v50  ;;  %v7706_v33 = vadd.f32 %v7703_v7, %v7698_v15  ;;  %vm508_vm3 = vcmp.ge.s32.totalorder %v475_v53, %v14748_v56  ;;  %v15016_v50 = vld [vmem:[#allocation3] sm:$0xff]  ;;  %v15019_v7 = vld [vmem:[#allocation3 + $0x8] sm:$0xff] }
 0xa3d   : > { %vm15703_vm9 = vcmask 1043456   ;;  %vm542_vm8 = vcmp.lt.s32.totalorder %v475_v53, %v14757_v35  ;;  %vm509_vm13 = vcmp.ge.s32.totalorder %v476_v20, %v14748_v56  ;;  %vm543_vm15 = vcmp.lt.s32.totalorder %v476_v20, %v14757_v35 }
 0xa3e   : > { %v14894_v28 = vpop.permute.xlu1 %7688  ;;  %v14896_v8 = vpop.permute.xlu0 %7770  ;;  %v7713_v39 = vsel %vm15703_vm9, %v7711_v47, %v7712_v10  ;;  %v7635_v14 = vadd.f32 %v14846_v43, %v7606_v42  ;;  %vm14988_vm5 = vmand %vm508_vm3, %vm542_vm8  ;;  %v15704_v5 = vmov 0  ;;  %v477_v4 = vadd.s32 160, %v13074_v22  ;;  %v15030_v42 = vld [vmem:[#allocation4] sm:$0xff] }
 0xa3f   : > { %v7718_v2 = vadd.f32 %v7713_v39, %v7692_v59  ;;  %v15705_v5 = vsel %vm14988_vm5, 4294967295, %v15704_v5  ;;  %vm14995_vm7 = vmand %vm509_vm13, %vm543_vm15  ;;  %v15706_v63 = vmov 0  ;;  %v478_v60 = vadd.s32 168, %v13074_v22  ;;  %v15033_v39 = vld [vmem:[#allocation4 + $0x8] sm:$0xff] }
 0xa40   : > { %v15707_v63 = vsel %vm14995_vm7, 4294967295, %v15706_v63  ;;  %v7664_v6 = vadd.f32 %v14873_v41, %v7635_v14  ;;  %v7895_v19 = vstv %s14955_s3  ;;  %v7900_v43 = vstv %s14957_s7 }
 0xa41   : > { %vm510_vm8 = vcmp.ge.s32.totalorder %v477_v4, %v14748_v56  ;;  %v7714_v11 = vrot.slane %v7706_v33, 4  ;;  %vm544_vm3 = vcmp.lt.s32.totalorder %v477_v4, %v14757_v35  ;;  %vm511_vm9 = vcmp.ge.s32.totalorder %v478_v60, %v14748_v56 }
 0xa42   : > { %v14921_v26 = vpop.permute.xlu1 %7743  ;;  %v14923_v1 = vpop.permute.xlu0 %7799  ;;  %vm545_vm5 = vcmp.lt.s32.totalorder %v478_v60, %v14757_v35  ;;  %v7747_v54 = vadd.f32 %v14875_v29, %v7718_v2  ;;  %v7693_v46 = vadd.f32 %v14894_v28, %v7664_v6  ;;  %vm15009_vm13 = vmand %vm510_vm8, %vm544_vm3  ;;  %v15708_v51 = vmov 0 }
 0xa43   : > { %v15709_v51 = vsel %vm15009_vm13, 4294967295, %v15708_v51  ;;  %v479_v41 = vadd.s32 176, %v13074_v22  ;;  %v7896_v59 = vmul.f32 %v15016_v50, %v7895_v19  ;;  %v7897_v53 = vmul.f32 %v15019_v7, %v7895_v19  ;;  %vm15024_vm15 = vmand %vm511_vm9, %vm545_vm5 }
 0xa44   : > { %v15710_v29 = vmov 0  ;;  %v480_v28 = vadd.s32 184, %v13074_v22  ;;  %v7776_v20 = vadd.f32 %v14896_v8, %v7747_v54  ;;  %v7901_v33 = vmul.f32 %v15030_v42, %v7900_v43 }
 0xa45   : > { %v15711_v29 = vsel %vm15024_vm15, 4294967295, %v15710_v29  ;;  %v7902_v14 = vmul.f32 %v15033_v39, %v7900_v43  ;;  %vm512_vm8 = vcmp.ge.s32.totalorder %v479_v41, %v14748_v56  ;;  %vm15712_vm3 = vcmask 1043456  }
 0xa46   : > { %v14943_v38 = vpop.permute.xlu1 %7772  ;;  %v14945_v48 = vpop.permute.xlu0 %7828  ;;  %v7715_v2 = vsel %vm15712_vm3, %v7712_v10, %v7714_v11  ;;  %vm546_vm5 = vcmp.lt.s32.totalorder %v479_v41, %v14757_v35  ;;  %vm513_vm9 = vcmp.ge.s32.totalorder %v480_v28, %v14748_v56  ;;  %vm547_vm15 = vcmp.lt.s32.totalorder %v480_v28, %v14757_v35 }
 0xa47   : > { %v7719_v4 = vadd.f32 %v7715_v2, %v7693_v46  ;;  %v7805_v8 = vadd.f32 %v14923_v1, %v7776_v20  ;;  %vm15042_vm13 = vmand %vm512_vm8, %vm546_vm5  ;;  %v15713_v60 = vmov 0  ;;  %v481_v6 = vadd.s32 192, %v13074_v22 }
 0xa48   : > { %v15714_v60 = vsel %vm15042_vm13, 4294967295, %v15713_v60  ;;  %v15047_v54 = vadd.f32 %v7902_v14, %v7897_v53  ;;  %vm15049_vm3 = vmand %vm513_vm9, %vm547_vm15  ;;  %v15715_v10 = vmov 0  ;;  %v482_v11 = vadd.s32 200, %v13074_v22 }
 0xa49   : > { %v15716_v10 = vsel %vm15049_vm3, 4294967295, %v15715_v10  ;;  %v7834_v46 = vadd.f32 %v14945_v48, %v7805_v8  ;;  %vm514_vm7 = vcmp.ge.s32.totalorder %v481_v6, %v14748_v56  ;;  %v7904_v1 = vadd.f32 %v7901_v33, %v7896_v59 }
 0xa4a   : > { %v14972_v57 = vpop.permute.xlu1 %7801  ;;  %v14974_v34 = vpop.permute.xlu0 %7857  ;;  %vm548_vm8 = vcmp.lt.s32.totalorder %v481_v6, %v14757_v35  ;;  %vm515_vm5 = vcmp.ge.s32.totalorder %v482_v11, %v14748_v56  ;;  %vm549_vm13 = vcmp.lt.s32.totalorder %v482_v11, %v14757_v35  ;;  %v7748_v41 = vadd.f32 %v14921_v26, %v7719_v4 }
 0xa4b   : > { %v7863_v53 = vadd.f32 %v14974_v34, %v7834_v46  ;;  %vm15061_vm15 = vmand %vm514_vm7, %vm548_vm8  ;;  %v15717_v28 = vmov 0  ;;  %v483_v20 = vadd.s32 208, %v13074_v22  ;;  %v7912_v48 = vrot.slane %v15047_v54, 5 }
 0xa4c   : > { %v15718_v28 = vsel %vm15061_vm15, 4294967295, %v15717_v28  ;;  %v7898_v59 = vmul.f32 %v14415_v13, %v7895_v19  ;;  %vm15070_vm9 = vmand %vm515_vm5, %vm549_vm13  ;;  %v15719_v2 = vmov 0  ;;  %v484_v26 = vadd.s32 216, %v13074_v22 }
 0xa4d   : > { %v15720_v2 = vsel %vm15070_vm9, 4294967295, %v15719_v2  ;;  %v7777_v34 = vadd.f32 %v14943_v38, %v7748_v41  ;;  %v7903_v8 = vmul.f32 %v14428_v9, %v7900_v43  ;;  %vm516_vm7 = vcmp.ge.s32.totalorder %v483_v20, %v14748_v56 }
 0xa4e   : > { %v14993_v27 = vpop.permute.xlu1 %7830  ;;  %v7887_v31 = vpop.permute.xlu0 %7886  ;;  %v7911_v13 = vrot.slane %v7904_v1, 5  ;;  %vm550_vm8 = vcmp.lt.s32.totalorder %v483_v20, %v14757_v35  ;;  %vm517_vm15 = vcmp.ge.s32.totalorder %v484_v26, %v14748_v56  ;;  %vm551_vm13 = vcmp.lt.s32.totalorder %v484_v26, %v14757_v35 }
 0xa4f   : > { %v7892_v4 = vadd.f32 %v7887_v31, %v7863_v53  ;;  %v7806_v19 = vadd.f32 %v14972_v57, %v7777_v34  ;;  %vm15084_vm5 = vmand %vm516_vm7, %vm550_vm8  ;;  %v15721_v6 = vmov 0  ;;  %v485_v38 = vadd.s32 224, %v13074_v22 }
 0xa50   : > { %v15722_v6 = vsel %vm15084_vm5, 4294967295, %v15721_v6  ;;  %vm15723_vm9 = vcmask 1042432   ;;  %v7906_v31 = vadd.f32 %v7903_v8, %v7898_v59  ;;  %vm15090_vm3 = vmand %vm517_vm15, %vm551_vm13  ;;  %v15724_v11 = vmov 0 }
 0xa51   : > { %v7913_v9 = vsel %vm15723_vm9, %v7911_v13, %v7912_v48  ;;  %v15725_v11 = vsel %vm15090_vm3, 4294967295, %v15724_v11  ;;  %v486_v46 = vadd.s32 232, %v13074_v22  ;;  %v7835_v57 = vadd.f32 %v14993_v27, %v7806_v19 }
 0xa52   : > { %v15014_v15 = vpop.permute.xlu1 %7859  ;;  %v15022_v47 = vpop.permute.xlu0 %7941  ;;  %15726 = vst [vmem:[#allocation46_spill] sm:$0xff] %v15725_v11  ;;  %v7918_v1 = vadd.f32 %v7913_v9, %v7892_v4  ;;  %vm518_vm7 = vcmp.ge.s32.totalorder %v485_v38, %v14748_v56  ;;  %vm552_vm8 = vcmp.lt.s32.totalorder %v485_v38, %v14757_v35  ;;  %v15727_v53 = vmov 0 }
 0xa53   : > { %vm519_vm9 = vcmp.ge.s32.totalorder %v486_v46, %v14748_v56  ;;  %vm553_vm5 = vcmp.lt.s32.totalorder %v486_v46, %v14757_v35  ;;  %v7864_v41 = vadd.f32 %v15014_v15, %v7835_v57  ;;  %vm15101_vm15 = vmand %vm518_vm7, %vm552_vm8  ;;  %v487_v20 = vadd.s32 240, %v13074_v22 }
 0xa54   : > { %v15728_v53 = vsel %vm15101_vm15, 4294967295, %v15727_v53  ;;  %v7914_v59 = vrot.slane %v7906_v31, 5  ;;  %v8095_v34 = vstv %s15068_s8  ;;  %vm15107_vm13 = vmand %vm519_vm9, %vm553_vm5  ;;  %v15730_v4 = vmov 0 }
 0xa55   : > { %15729 = vst [vmem:[#allocation47_spill] sm:$0xff] %v15728_v53  ;;  %v15731_v4 = vsel %vm15107_vm13, 4294967295, %v15730_v4  ;;  %v488_v8 = vadd.s32 248, %v13074_v22  ;;  %v7947_v13 = vadd.f32 %v15022_v47, %v7918_v1  ;;  %v8100_v15 = vstv %s15077_s9  ;;  %v11390_v53 = vld [vmem:[#allocation4 + $0x10] sm:$0x3f] }
 0xa56   : > { %v7889_v58 = vpop.permute.xlu1 %7888  ;;  %v7971_v62 = vpop.permute.xlu0 %7970  ;;  %15732 = vst [vmem:[#allocation48_spill] sm:$0xff] %v15731_v4  ;;  %vm520_vm7 = vcmp.ge.s32.totalorder %v487_v20, %v14748_v56  ;;  %v8097_v38 = vmul.f32 %v15019_v7, %v8095_v34  ;;  %vm554_vm8 = vcmp.lt.s32.totalorder %v487_v20, %v14757_v35  ;;  %v15733_v31 = vmov 0 }
 0xa57   : > { %v7893_v19 = vadd.f32 %v7889_v58, %v7864_v41  ;;  %vm521_vm15 = vcmp.ge.s32.totalorder %v488_v8, %v14748_v56  ;;  %vm555_vm3 = vcmp.lt.s32.totalorder %v488_v8, %v14757_v35  ;;  %v7976_v9 = vadd.f32 %v7971_v62, %v7947_v13  ;;  %vm15119_vm5 = vmand %vm520_vm7, %vm554_vm8 }
 0xa58   : > { %v15734_v31 = vsel %vm15119_vm5, 4294967295, %v15733_v31  ;;  %vm15736_vm9 = vcmask 1042432   ;;  %v8096_v46 = vmul.f32 %v15016_v50, %v8095_v34  ;;  %v8101_v57 = vmul.f32 %v15030_v42, %v8100_v15  ;;  %vm15127_vm13 = vmand %vm521_vm15, %vm555_vm3 }
 0xa59   : > { %15735 = vst [vmem:[#allocation49_spill] sm:$0xff] %v15734_v31  ;;  %v7915_v22 = vsel %vm15736_vm9, %v7912_v48, %v7914_v59  ;;  %v8102_v7 = vmul.f32 %v15033_v39, %v8100_v15  ;;  %v15737_v1 = vmov 0  ;;  %v8098_v50 = vmul.f32 %v11389_v21, %v8095_v34 }
 0xa5a   : > { %v7944_v33 = vpop.permute.xlu1 %7943  ;;  %v8000_v14 = vpop.permute.xlu0 %7999  ;;  %v15738_v1 = vsel %vm15127_vm13, 4294967295, %v15737_v1  ;;  %v7919_v56 = vadd.f32 %v7915_v22, %v7893_v19  ;;  %v8104_v8 = vadd.f32 %v8101_v57, %v8096_v46  ;;  %v8103_v11 = vmul.f32 %v11390_v53, %v8100_v15 }
 0xa5b   : > { %15739 = vst [vmem:[#allocation50_spill] sm:$0xff] %v15738_v1  ;;  %v8005_v62 = vadd.f32 %v8000_v14, %v7976_v9  ;;  %v8105_v35 = vadd.f32 %v8102_v7, %v8097_v38  ;;  %vm15740_vm3 = vcmask 1041408   ;;  %vm15742_vm7 = vcmask 130048  }
 0xa5c   : > { %v7948_v48 = vadd.f32 %v7944_v33, %v7919_v56  ;;  %v8111_v31 = vrot.slane %v8104_v8, 6  ;;  %v8106_v19 = vadd.f32 %v8103_v11, %v8098_v50  ;;  %vm15741_vm15 = vmmov %vm15740_vm3  ;;  %v595_v49 = vsel %vm14852_vm0, 1.0, %v15667_v30 }
 0xa5d   : > { %v8112_v24 = vrot.slane %v8105_v35, 6  ;;  %vm15743_vm8 = vmmov %vm15742_vm7  ;;  %v596_v23 = vsel %vm14867_vm14, 1.0, %v15667_v30  ;;  %v597_v25 = vsel %vm14877_vm10, 1.0, %v15667_v30  ;;  %vm15750_vm6 = vnez %v15687_v12 }
 0xa5e   : > { %v7973_v43 = vpop.permute.xlu1 %7972  ;;  %v8029_v54 = vpop.permute.xlu0 %8028  ;;  %vm15744_vm9 = vmmov %vm15742_vm7  ;;  %v598_v45 = vsel %vm15750_vm6, 1.0, %v15667_v30  ;;  %vm15753_vm0 = vnez %v15689_v52  ;;  %vm15754_vm14 = vnez %v15691_v44  ;;  %vm15757_vm10 = vnez %v15694_v17 }
 0xa5f   : > { %v8034_v41 = vadd.f32 %v8029_v54, %v8005_v62  ;;  %v7977_v37 = vadd.f32 %v7973_v43, %v7948_v48  ;;  %v8113_v14 = vsel %vm15740_vm3, %v8111_v31, %v8112_v24  ;;  %vm15745_vm3 = vmmov %vm15742_vm7  ;;  %v599_v61 = vsel %vm15753_vm0, 1.0, %v15667_v30 }
 0xa60   : > { %v600_v40 = vsel %vm15754_vm14, 1.0, %v15667_v30  ;;  %v601_v3 = vsel %vm15757_vm10, 1.0, %v15667_v30 }
 0xa62   : > { %v8002_v27 = vpop.permute.xlu1 %8001  ;;  %v8058_v26 = vpop.permute.xlu0 %8057 }
 0xa63   : > { %v8063_v59 = vadd.f32 %v8058_v26, %v8034_v41  ;;  %v8006_v1 = vadd.f32 %v8002_v27, %v7977_v37  ;;  %v8114_v26 = vrot.slane %v8106_v19, 6 }
 0xa66   : > { %v8031_v47 = vpop.permute.xlu1 %8030  ;;  %v8087_v58 = vpop.permute.xlu0 %8086 }
 0xa67   : > { %v8092_v42 = vadd.f32 %v8087_v58, %v8063_v59  ;;  %v8035_v54 = vadd.f32 %v8031_v47, %v8006_v1  ;;  %v8115_v58 = vsel %vm15741_vm15, %v8112_v24, %v8114_v26  ;;  %v15787_v26 = vld [vmem:[#allocation47_spill] sm:$0xff] }
 0xa69   : > { %v8118_v38 = vadd.f32 %v8113_v14, %v8092_v42 }
 0xa6a   : > { %v8060_v20 = vpop.permute.xlu1 %8059  ;;  %v8142_v13 = vpop.permute.xlu0 %8141 }
 0xa6b   : > { %v8064_v33 = vadd.f32 %v8060_v20, %v8035_v54  ;;  %v8147_v46 = vadd.f32 %v8142_v13, %v8118_v38  ;;  %v589_v38 = vsel %vm14779_vm4, 1.0, %v15667_v30  ;;  %vm15746_vm4 = vmmov %vm15745_vm3 }
 0xa6e   : > { %v8089_v39 = vpop.permute.xlu1 %8088  ;;  %v8171_v4 = vpop.permute.xlu0 %8170 }
 0xa6f   : > { %v8093_v57 = vadd.f32 %v8089_v39, %v8064_v33  ;;  %v8176_v34 = vadd.f32 %v8171_v4, %v8147_v46  ;;  %v592_v33 = vsel %vm14815_vm2, 1.0, %v15667_v30  ;;  %vm15749_vm2 = vmmov %vm15745_vm3 }
 0xa70   : > { %vm15751_vm1 = vmmov %vm15749_vm2 }
 0xa71   : > { %v8119_v7 = vadd.f32 %v8115_v58, %v8093_v57  ;;  %vm15752_vm15 = vmmov %vm15751_vm1 }
 0xa72   : > { %v8144_v9 = vpop.permute.xlu1 %8143  ;;  %v8200_v22 = vpop.permute.xlu0 %8199  ;;  %vm15764_vm6 = vmmov %vm15751_vm1 }
 0xa73   : > { %v8205_v56 = vadd.f32 %v8200_v22, %v8176_v34  ;;  %v8148_v15 = vadd.f32 %v8144_v9, %v8119_v7  ;;  %v590_v9 = vsel %vm14788_vm11, 1.0, %v15667_v30  ;;  %v591_v22 = vsel %vm14801_vm12, 1.0, %v15667_v30  ;;  %vm15747_vm11 = vmmov %vm15745_vm3  ;;  %v15798_v7 = vld [vmem:[#allocation44_spill] sm:$0xff] }
 0xa74   : > { %vm15748_vm12 = vmmov %vm15745_vm3  ;;  %v619_v34 = vsel %vm15127_vm13, 1.0, %v15667_v30 }
 0xa76   : > { %v8173_v21 = vpop.permute.xlu1 %8172  ;;  %v8229_v43 = vpop.permute.xlu0 %8228 }
 0xa77   : > { %v8234_v27 = vadd.f32 %v8229_v43, %v8205_v56  ;;  %v8177_v1 = vadd.f32 %v8173_v21, %v8148_v15  ;;  %v618_v21 = vsel %vm15119_vm5, 1.0, %v15667_v30 }
 0xa7a   : > { %v8202_v53 = vpop.permute.xlu1 %8201  ;;  %v8258_v37 = vpop.permute.xlu0 %8257 }
 0xa7b   : > { %v8263_v11 = vadd.f32 %v8258_v37, %v8234_v27  ;;  %v8206_v35 = vadd.f32 %v8202_v53, %v8177_v1  ;;  %v15799_v37 = vld [vmem:[#allocation45_spill] sm:$0xff] }
 0xa7e   : > { %v8231_v31 = vpop.permute.xlu1 %8230  ;;  %v8287_v47 = vpop.permute.xlu0 %8286 }
 0xa7f   : > { %v8292_v62 = vadd.f32 %v8287_v47, %v8263_v11  ;;  %v8235_v8 = vadd.f32 %v8231_v31, %v8206_v35 }
 0xa81   : > { %v9511_v41 = vmul.f32 -1.442695, %v8292_v62 }
 0xa82   : > { %v8260_v20 = vpop.permute.xlu1 %8259 }
 0xa83   : > { %v8264_v13 = vadd.f32 %v8260_v20, %v8235_v8  ;;  %11371 = vpow2.f32 %v9511_v41 }
 0xa86   : > { %v8289_v4 = vpop.permute.xlu1 %8288 }
 0xa87   : > { %v8293_v48 = vadd.f32 %v8289_v4, %v8264_v13 }
 0xa89   : > { %v9512_v24 = vmul.f32 -1.442695, %v8293_v48 }
 0xa8b   : > { %11373 = vpow2.f32 %v9512_v24 }
 0xa8d   : > { %v11372_v59 = vpop.eup %11371 }
 0xa8e   : > { %v8300_v50 = vadd.f32 1.0, %v11372_v59 }
 0xa90   : > { %11375 = vrcp.f32 %v8300_v50 }
 0xa95   : > { %v11374_v42 = vpop.eup %11373 }
 0xa96   : > { %v8301_v39 = vadd.f32 1.0, %v11374_v42 }
 0xa98   : > { %11377 = vrcp.f32 %v8301_v39 }
 0xa9a   : > { %v11376_v14 = vpop.eup %11375 }
 0xaa2   : > { %v11378_v19 = vpop.eup %11377 }
 0xaa3   : > { %v10750_v54 = vpack.c.bf16 %v11378_v19, %v11376_v14 }
 0xaa5   : > { %10751 = vmatprep.subr.bf16.mxu0 %v10750_v54 }
 0xaa6   : > { %10753 = vmatpush3.bf16.msra.mxu0 %v10750_v54 }
 0xaa9   : > { %10639 = vmatmul.mubr.msk.f32.vlgmr.msra.gmra.mrb[36].mxu0 %vm15742_vm7, %v589_v38  ;;  %vm15755_vm7 = vmmov %vm15751_vm1 }
 0xaaa   : > { %10641 = vmatprep.mubr.msk.f32.mxu0 %vm15743_vm8, %v590_v9  ;;  %vm15756_vm8 = vmmov %vm15751_vm1 }
 0xaad   : > { %10642 = vmatmul.mubr.msk.f32.gmra.mrb[38].mxu0 %vm15744_vm9, %v591_v22  ;;  %vm15758_vm9 = vnez %v15696_v36 }
 0xaae   : > { %10644 = vmatprep.mubr.msk.f32.mxu0 %vm15745_vm3, %v592_v33  ;;  %v602_v12 = vsel %vm15758_vm9, 1.0, %v15667_v30  ;;  %vm15759_vm3 = vmmov %vm15751_vm1 }
 0xab1   : > { %10645 = vmatmul.mubr.msk.f32.gmra.mrb[40].mxu0 %vm15746_vm4, %v593_v55  ;;  %vm15760_vm4 = vmmov %vm15751_vm1 }
 0xab2   : > { %10647 = vmatprep.mubr.msk.f32.mxu0 %vm15747_vm11, %v594_v32  ;;  %vm15761_vm11 = vnez %v15698_v16 }
 0xab3   : > { %v603_v52 = vsel %vm15761_vm11, 1.0, %v15667_v30 }
 0xab5   : > { %10648 = vmatmul.mubr.msk.f32.gmra.mrb[42].mxu0 %vm15748_vm12, %v595_v49  ;;  %vm15762_vm12 = vnez %v15700_v18 }
 0xab6   : > { %10650 = vmatprep.mubr.msk.f32.mxu0 %vm15749_vm2, %v596_v23  ;;  %v604_v44 = vsel %vm15762_vm12, 1.0, %v15667_v30  ;;  %vm15763_vm2 = vmmov %vm15751_vm1 }
 0xab7   : > { %vm15767_vm0 = vmmov %vm15763_vm2 }
 0xab8   : > { %vm15768_vm14 = vmmov %vm15767_vm0 }
 0xab9   : > { %10651 = vmatmul.mubr.msk.f32.gmra.mrb[44].mxu0 %vm15751_vm1, %v597_v25  ;;  %vm15765_vm1 = vnez %v15702_v0  ;;  %vm15771_vm10 = vmmov %vm15767_vm0 }
 0xaba   : > { %10653 = vmatprep.mubr.msk.f32.mxu0 %vm15752_vm15, %v598_v45  ;;  %v605_v17 = vsel %vm15765_vm1, 1.0, %v15667_v30  ;;  %vm15766_vm15 = vnez %v15705_v5  ;;  %vm15772_vm9 = vmmov %vm15767_vm0 }
 0xabb   : > { %v606_v36 = vsel %vm15766_vm15, 1.0, %v15667_v30  ;;  %vm15775_vm11 = vmmov %vm15767_vm0 }
 0xabc   : > { %vm15776_vm12 = vmmov %vm15767_vm0 }
 0xabd   : > { %10654 = vmatmul.mubr.msk.f32.gmra.mrb[46].mxu0 %vm15755_vm7, %v599_v61  ;;  %vm15769_vm7 = vnez %v15707_v63  ;;  %vm15779_vm1 = vmmov %vm15767_vm0 }
 0xabe   : > { %10656 = vmatprep.mubr.msk.f32.mxu0 %vm15756_vm8, %v600_v40  ;;  %v607_v16 = vsel %vm15769_vm7, 1.0, %v15667_v30  ;;  %vm15770_vm8 = vnez %v15709_v51  ;;  %vm15780_vm15 = vmmov %vm15767_vm0 }
 0xabf   : > { %v608_v18 = vsel %vm15770_vm8, 1.0, %v15667_v30  ;;  %vm15783_vm7 = vmmov %vm15779_vm1 }
 0xac0   : > { %vm15784_vm8 = vmmov %vm15779_vm1 }
 0xac1   : > { %10657 = vmatmul.mubr.msk.f32.gmra.mrb[48].mxu0 %vm15759_vm3, %v601_v3  ;;  %vm15773_vm3 = vnez %v15711_v29  ;;  %vm15800_vm5 = vmmov %vm15779_vm1 }
 0xac2   : > { %10659 = vmatprep.mubr.msk.f32.mxu0 %vm15760_vm4, %v602_v12  ;;  %v609_v0 = vsel %vm15773_vm3, 1.0, %v15667_v30  ;;  %vm15774_vm4 = vnez %v15714_v60  ;;  %vm15789_vm3 = vmmov %vm15779_vm1 }
 0xac3   : > { %v610_v5 = vsel %vm15774_vm4, 1.0, %v15667_v30  ;;  %vm15790_vm4 = vmmov %vm15779_vm1 }
 0xac4   : > { %vm15802_vm13 = vmmov %vm15779_vm1 }
 0xac5   : > { %10660 = vmatmul.mubr.msk.f32.gmra.mrb[50].mxu0 %vm15763_vm2, %v603_v52  ;;  %vm15777_vm2 = vnez %v15716_v10  ;;  %v15785_v10 = vld [vmem:[#allocation46_spill] sm:$0xff] }
 0xac6   : > { %10662 = vmatprep.mubr.msk.f32.mxu0 %vm15764_vm6, %v604_v44  ;;  %v611_v63 = vsel %vm15777_vm2, 1.0, %v15667_v30  ;;  %vm15778_vm6 = vnez %v15718_v28  ;;  %vm15795_vm2 = vmmov %vm15779_vm1 }
 0xac7   : > { %v612_v51 = vsel %vm15778_vm6, 1.0, %v15667_v30  ;;  %vm15797_vm6 = vmmov %vm15779_vm1 }
 0xac9   : > { %10663 = vmatmul.mubr.msk.f32.gmra.mrb[52].mxu0 %vm15767_vm0, %v605_v17  ;;  %vm15781_vm0 = vnez %v15720_v2  ;;  %v15791_v2 = vld [vmem:[#allocation48_spill] sm:$0xff] }
 0xaca   : > { %10665 = vmatprep.mubr.msk.f32.mxu0 %vm15768_vm14, %v606_v36  ;;  %v613_v29 = vsel %vm15781_vm0, 1.0, %v15667_v30  ;;  %vm15782_vm14 = vnez %v15722_v6  ;;  %vm15803_vm0 = vmmov %vm15779_vm1 }
 0xacb   : > { %v614_v60 = vsel %vm15782_vm14, 1.0, %v15667_v30  ;;  %vm15804_vm14 = vmmov %vm15803_vm0 }
 0xacd   : > { %10666 = vmatmul.mubr.msk.f32.gmra.mrb[54].mxu0 %vm15771_vm10, %v607_v16  ;;  %vm15786_vm10 = vnez %v15785_v10 }
 0xace   : > { %10668 = vmatprep.mubr.msk.f32.mxu0 %vm15772_vm9, %v608_v18  ;;  %v615_v28 = vsel %vm15786_vm10, 1.0, %v15667_v30  ;;  %vm15788_vm9 = vnez %v15787_v26  ;;  %vm15807_vm10 = vmmov %vm15803_vm0 }
 0xacf   : > { %v616_v46 = vsel %vm15788_vm9, 1.0, %v15667_v30  ;;  %vm15808_vm9 = vmmov %vm15803_vm0 }
 0xad1   : > { %10669 = vmatmul.mubr.msk.f32.gmra.mrb[56].mxu0 %vm15775_vm11, %v609_v0  ;;  %vm15792_vm11 = vnez %v15791_v2 }
 0xad2   : > { %10671 = vmatprep.mubr.msk.f32.mxu0 %vm15776_vm12, %v610_v5  ;;  %v617_v6 = vsel %vm15792_vm11, 1.0, %v15667_v30  ;;  %vm15794_vm12 = vmmov %vm15779_vm1 }
 0xad3   : > { %vm15811_vm11 = vmmov %vm15803_vm0 }
 0xad5   : > { %10672 = vmatmul.mubr.msk.f32.gmra.mrb[58].mxu0 %vm15779_vm1, %v611_v63 }
 0xad6   : > { %10674 = vmatprep.mubr.msk.f32.mxu0 %vm15780_vm15, %v612_v51  ;;  %vm15801_vm15 = vmmov %vm15779_vm1 }
 0xad9   : > { %10675 = vmatmul.mubr.msk.f32.gmra.mrb[60].mxu0 %vm15783_vm7, %v613_v29  ;;  %vm15805_vm7 = vmmov %vm15803_vm0 }
 0xada   : > { %10677 = vmatprep.mubr.msk.f32.mxu0 %vm15784_vm8, %v614_v60  ;;  %vm15806_vm8 = vmmov %vm15803_vm0 }
 0xadd   : > { %10678 = vmatmul.mubr.msk.f32.gmra.mrb[62].mxu0 %vm15789_vm3, %v615_v28  ;;  %vm15809_vm3 = vmmov %vm15803_vm0 }
 0xade   : > { %10680 = vmatprep.mubr.msk.f32.mxu0 %vm15790_vm4, %v616_v46  ;;  %vm15810_vm4 = vmmov %vm15803_vm0 }
 0xae1   : > { %10681 = vmatmul.mubr.msk.f32.gmra.mrb[64].mxu0 %vm15794_vm12, %v617_v6  ;;  %vm15812_vm12 = vmmov %vm15803_vm0 }
 0xae2   : > { %10683 = vmatprep.mubr.msk.f32.mxu0 %vm15795_vm2, %v618_v21  ;;  %vm15813_vm2 = vmmov %vm15803_vm0 }
 0xae5   : > { %10684 = vmatmul.mubr.msk.f32.gmra.mrb[66].mxu0 %vm15797_vm6, %v619_v34  ;;  %vm15814_vm6 = vmmov %vm15803_vm0 }
 0xb7c   : > { %v10640_v58 = vpop.f32.mrb[36].mxu0 }
 0xb7d   : > { %v8629_v56 = vmul.f32 %v10640_v58, %v15798_v7  ;;  %v8469_v53 = vpop.f32.mrb[37].mxu0 }
 0xb7e   : > { %v8628_v27 = vmul.f32 %v8469_v53, %v15799_v37 }
 0xb7f   : > { %v8663_v15 = vsel %vm15779_vm1, %v8629_v56, 0.0  ;;  %vm15815_vm1 = vmmov %vm15803_vm0 }
 0xb80   : > { %8664 = vadd.xlane.f32.xlu1 %v8663_v15  ;;  %v8660_v11 = vsel %vm15800_vm5, %v8628_v27, 0.0  ;;  %v10643_v31 = vpop.f32.mrb[38].mxu0  ;;  %vm15816_vm5 = vmmov %vm15803_vm0 }
 0xb81   : > { %8661 = vadd.xlane.f32.xlu0 %v8660_v11  ;;  %v8631_v47 = vmul.f32 %v10643_v31, %v15798_v7  ;;  %v8479_v1 = vpop.f32.mrb[39].mxu0 }
 0xb82   : > { %v8630_v62 = vmul.f32 %v8479_v1, %v15799_v37 }
 0xb83   : > { %v8669_v30 = vsel %vm15801_vm15, %v8631_v47, 0.0  ;;  %vm15817_vm15 = vmmov %vm15803_vm0 }
 0xb84   : > { %v10646_v35 = vpop.f32.mrb[40].mxu0  ;;  %v8666_v48 = vsel %vm15803_vm0, %v8630_v62, 0.0 }
 0xb85   : > { %v8633_v41 = vmul.f32 %v10646_v35, %v15798_v7  ;;  %8670 = vadd.xlane.f32.xlu0 %v8669_v30  ;;  %v8489_v20 = vpop.f32.mrb[41].mxu0 }
 0xb86   : > { %v8632_v8 = vmul.f32 %v8489_v20, %v15799_v37 }
 0xb87   : > { %v8675_v13 = vsel %vm15802_vm13, %v8633_v41, 0.0  ;;  %vm15818_vm13 = vmmov %vm15803_vm0 }
 0xb88   : > { %8676 = vadd.xlane.f32.xlu1 %v8675_v13  ;;  %v10649_v4 = vpop.f32.mrb[42].mxu0  ;;  %v8672_v42 = vsel %vm15804_vm14, %v8632_v8, 0.0  ;;  %vm15819_vm14 = vmmov %vm15803_vm0 }
 0xb89   : > { %v8635_v24 = vmul.f32 %v10649_v4, %v15798_v7  ;;  %8667 = vadd.xlane.f32.xlu0 %v8666_v48  ;;  %v8499_v59 = vpop.f32.mrb[43].mxu0 }
 0xb8a   : > { %v8634_v50 = vmul.f32 %v8499_v59, %v15799_v37 }
 0xb8b   : > { %v8681_v39 = vsel %vm15805_vm7, %v8635_v24, 0.0  ;;  %vm15820_vm7 = vmmov %vm15803_vm0 }
 0xb8c   : > { %8682 = vadd.xlane.f32.xlu1 %v8681_v39  ;;  %v10652_v14 = vpop.f32.mrb[44].mxu0  ;;  %v8678_v9 = vsel %vm15806_vm8, %v8634_v50, 0.0  ;;  %vm15821_vm8 = vmmov %vm15803_vm0 }
 0xb8d   : > { %v8637_v19 = vmul.f32 %v10652_v14, %v15798_v7  ;;  %8673 = vadd.xlane.f32.xlu0 %v8672_v42  ;;  %v8509_v54 = vpop.f32.mrb[45].mxu0 }
 0xb8e   : > { %v8636_v38 = vmul.f32 %v8509_v54, %v15799_v37 }
 0xb8f   : > { %v8687_v22 = vsel %vm15807_vm10, %v8637_v19, 0.0  ;;  %vm15822_vm10 = vmmov %vm15803_vm0 }
 0xb90   : > { %8688 = vadd.xlane.f32.xlu1 %v8687_v22  ;;  %v10655_v33 = vpop.f32.mrb[46].mxu0  ;;  %v8684_v23 = vsel %vm15808_vm9, %v8636_v38, 0.0  ;;  %vm15823_vm9 = vmmov %vm15803_vm0 }
 0xb91   : > { %v8639_v55 = vmul.f32 %v10655_v33, %v15798_v7  ;;  %8679 = vadd.xlane.f32.xlu0 %v8678_v9  ;;  %v8519_v32 = vpop.f32.mrb[47].mxu0 }
 0xb92   : > { %v8638_v49 = vmul.f32 %v8519_v32, %v15799_v37 }
 0xb93   : > { %v8693_v25 = vsel %vm15809_vm3, %v8639_v55, 0.0  ;;  %vm15824_vm3 = vmmov %vm15803_vm0 }
 0xb94   : > { %8694 = vadd.xlane.f32.xlu1 %v8693_v25  ;;  %v10658_v45 = vpop.f32.mrb[48].mxu0  ;;  %v8690_v12 = vsel %vm15810_vm4, %v8638_v49, 0.0  ;;  %vm15825_vm4 = vmmov %vm15803_vm0  ;;  %v8789_v25 = vld [vmem:[%s11709_s30 + $0x8] sm:$0xff] }
 0xb95   : > { %v8641_v61 = vmul.f32 %v10658_v45, %v15798_v7  ;;  %8685 = vadd.xlane.f32.xlu0 %v8684_v23  ;;  %v8529_v40 = vpop.f32.mrb[49].mxu0 }
 0xb96   : > { %v8640_v3 = vmul.f32 %v8529_v40, %v15799_v37  ;;  %v8788_v40 = vld [vmem:[%s11709_s30] sm:$0xff] }
 0xb97   : > { %v8699_v52 = vsel %vm15811_vm11, %v8641_v61, 0.0  ;;  %vm15826_vm11 = vmmov %vm15803_vm0 }
 0xb98   : > { %8700 = vadd.xlane.f32.xlu1 %v8699_v52  ;;  %v10661_v44 = vpop.f32.mrb[50].mxu0  ;;  %v8696_v18 = vsel %vm15812_vm12, %v8640_v3, 0.0  ;;  %vm15827_vm12 = vmmov %vm15803_vm0 }
 0xb99   : > { %v8643_v17 = vmul.f32 %v10661_v44, %v15798_v7  ;;  %8691 = vadd.xlane.f32.xlu0 %v8690_v12  ;;  %v8539_v36 = vpop.f32.mrb[51].mxu0  ;;  %v15831_v12 = vld [vmem:[#allocation15_spill] sm:$0xff] }
 0xb9a   : > { %v8642_v16 = vmul.f32 %v8539_v36, %v15799_v37  ;;  %v8791_v36 = vld [vmem:[%s11709_s30 + $0x18] sm:$0xff] }
 0xb9b   : > { %v8705_v0 = vsel %vm15813_vm2, %v8643_v17, 0.0  ;;  %vm15828_vm2 = vmmov %vm15803_vm0 }
 0xb9c   : > { %8706 = vadd.xlane.f32.xlu1 %v8705_v0  ;;  %v10664_v5 = vpop.f32.mrb[52].mxu0  ;;  %v8702_v60 = vsel %vm15814_vm6, %v8642_v16, 0.0  ;;  %vm15829_vm6 = vmmov %vm15803_vm0  ;;  %v15832_v0 = vld [vmem:[#allocation18_spill] sm:$0xff] }
 0xb9d   : > { %v8645_v63 = vmul.f32 %v10664_v5, %v15798_v7  ;;  %8697 = vadd.xlane.f32.xlu0 %v8696_v18  ;;  %v8549_v51 = vpop.f32.mrb[53].mxu0 }
 0xb9e   : > { %v8644_v29 = vmul.f32 %v8549_v51, %v15799_v37  ;;  %v8793_v51 = vld [vmem:[%s11709_s30 + $0x28] sm:$0xff] }
 0xb9f   : > { %v8711_v10 = vsel %vm15815_vm1, %v8645_v63, 0.0  ;;  %vm15833_vm1 = vcmask 261120  }
 0xba0   : > { %8712 = vadd.xlane.f32.xlu1 %v8711_v10  ;;  %v10667_v28 = vpop.f32.mrb[54].mxu0  ;;  %v8708_v6 = vsel %vm15816_vm5, %v8644_v29, 0.0  ;;  %vm15834_vm5 = vmmov %vm15833_vm1 }
 0xba1   : > { %v8647_v26 = vmul.f32 %v10667_v28, %v15798_v7  ;;  %8703 = vadd.xlane.f32.xlu0 %v8702_v60  ;;  %v8559_v46 = vpop.f32.mrb[55].mxu0  ;;  %v15835_v60 = vld [vmem:[#allocation22_spill] sm:$0xff] }
 0xba2   : > { %v8646_v2 = vmul.f32 %v8559_v46, %v15799_v37  ;;  %v8790_v28 = vld [vmem:[%s11709_s30 + $0x10] sm:$0xff] }
 0xba3   : > { %v8717_v57 = vsel %vm15817_vm15, %v8647_v26, 0.0  ;;  %vm15837_vm15 = vmmov %vm15833_vm1 }
 0xba4   : > { %8718 = vadd.xlane.f32.xlu1 %v8717_v57  ;;  %v10670_v21 = vpop.f32.mrb[56].mxu0  ;;  %v8714_v56 = vsel %vm15818_vm13, %v8646_v2, 0.0  ;;  %v15836_v2 = vld [vmem:[#allocation19_spill] sm:$0xff]  ;;  %vm15840_vm13 = vmmov %vm15833_vm1 }
 0xba5   : > { %v8649_v43 = vmul.f32 %v10670_v21, %v15798_v7  ;;  %8709 = vadd.xlane.f32.xlu0 %v8708_v6  ;;  %v8569_v34 = vpop.f32.mrb[57].mxu0 }
 0xba6   : > { %v8648_v58 = vmul.f32 %v8569_v34, %v15799_v37 }
 0xba7   : > { %v8723_v53 = vsel %vm15803_vm0, %v8649_v43, 0.0  ;;  %v8795_v43 = vld [vmem:[%s11709_s30 + $0x38] sm:$0xff]  ;;  %vm15841_vm0 = vmmov %vm15833_vm1 }
 0xba8   : > { %8724 = vadd.xlane.f32.xlu1 %v8723_v53  ;;  %v10673_v27 = vpop.f32.mrb[58].mxu0  ;;  %v8720_v47 = vsel %vm15819_vm14, %v8648_v58, 0.0  ;;  %vm15844_vm14 = vmmov %vm15841_vm0 }
 0xba9   : > { %v8651_v15 = vmul.f32 %v10673_v27, %v15798_v7  ;;  %8715 = vadd.xlane.f32.xlu0 %v8714_v56  ;;  %v8579_v11 = vpop.f32.mrb[59].mxu0  ;;  %v15838_v56 = vld [vmem:[#allocation26_spill] sm:$0xff]  ;;  %v8792_v27 = vld [vmem:[%s11709_s30 + $0x20] sm:$0xff] }
 0xbaa   : > { %v8650_v31 = vmul.f32 %v8579_v11, %v15799_v37 }
 0xbab   : > { %v8729_v1 = vsel %vm15820_vm7, %v8651_v15, 0.0  ;;  %vm15845_vm7 = vmmov %vm15841_vm0 }
 0xbac   : > { %8730 = vadd.xlane.f32.xlu1 %v8729_v1  ;;  %v10676_v30 = vpop.f32.mrb[60].mxu0  ;;  %v8726_v20 = vsel %vm15821_vm8, %v8650_v31, 0.0  ;;  %v15839_v31 = vld [vmem:[#allocation23_spill] sm:$0xff]  ;;  %vm15848_vm8 = vmmov %vm15841_vm0 }
 0xbad   : > { %v8653_v62 = vmul.f32 %v10676_v30, %v15798_v7  ;;  %8721 = vadd.xlane.f32.xlu0 %v8720_v47  ;;  %v8589_v35 = vpop.f32.mrb[61].mxu0 }
 0xbae   : > { %v8652_v41 = vmul.f32 %v8589_v35, %v15799_v37 }
 0xbaf   : > { %v8735_v8 = vsel %vm15822_vm10, %v8653_v62, 0.0  ;;  %v8797_v62 = vld [vmem:[%s11709_s30 + $0x48] sm:$0xff]  ;;  %vm15849_vm10 = vmmov %vm15841_vm0 }
 0xbb0   : > { %8736 = vadd.xlane.f32.xlu1 %v8735_v8  ;;  %v10679_v13 = vpop.f32.mrb[62].mxu0  ;;  %v8732_v59 = vsel %vm15823_vm9, %v8652_v41, 0.0  ;;  %vm15852_vm9 = vmmov %vm15841_vm0 }
 0xbb1   : > { %v8655_v4 = vmul.f32 %v10679_v13, %v15798_v7  ;;  %8727 = vadd.xlane.f32.xlu0 %v8726_v20  ;;  %v8599_v48 = vpop.f32.mrb[63].mxu0  ;;  %v15842_v20 = vld [vmem:[#allocation30_spill] sm:$0xff] }
 0xbb2   : > { %v8654_v24 = vmul.f32 %v8599_v48, %v15799_v37  ;;  %v8794_v13 = vld [vmem:[%s11709_s30 + $0x30] sm:$0xff] }
 0xbb3   : > { %v8741_v50 = vsel %vm15824_vm3, %v8655_v4, 0.0  ;;  %vm15853_vm3 = vmmov %vm15841_vm0 }
 0xbb4   : > { %8742 = vadd.xlane.f32.xlu1 %v8741_v50  ;;  %v10682_v42 = vpop.f32.mrb[64].mxu0  ;;  %v8738_v54 = vsel %vm15825_vm4, %v8654_v24, 0.0  ;;  %v15843_v24 = vld [vmem:[#allocation27_spill] sm:$0xff]  ;;  %vm15856_vm4 = vmmov %vm15841_vm0 }
 0xbb5   : > { %v8657_v39 = vmul.f32 %v10682_v42, %v15798_v7  ;;  %8733 = vadd.xlane.f32.xlu0 %v8732_v59  ;;  %v8609_v14 = vpop.f32.mrb[65].mxu0 }
 0xbb6   : > { %v8656_v19 = vmul.f32 %v8609_v14, %v15799_v37 }
 0xbb7   : > { %v8747_v38 = vsel %vm15826_vm11, %v8657_v39, 0.0  ;;  %v8799_v39 = vld [vmem:[%s11709_s30 + $0x58] sm:$0xff]  ;;  %vm15857_vm11 = vmmov %vm15841_vm0 }
 0xbb8   : > { %8748 = vadd.xlane.f32.xlu1 %v8747_v38  ;;  %v10685_v9 = vpop.f32.mrb[66].mxu0  ;;  %v8744_v55 = vsel %vm15827_vm12, %v8656_v19, 0.0  ;;  %vm15860_vm12 = vmmov %vm15841_vm0 }
 0xbb9   : > { %v8659_v22 = vmul.f32 %v10685_v9, %v15798_v7  ;;  %8739 = vadd.xlane.f32.xlu0 %v8738_v54  ;;  %v8619_v33 = vpop.f32.mrb[67].mxu0  ;;  %v15830_v7 = vld [vmem:[#allocation14_spill] sm:$0xff]  ;;  %v8796_v9 = vld [vmem:[%s11709_s30 + $0x40] sm:$0xff] }
 0xbba   : > { %v8658_v32 = vmul.f32 %v8619_v33, %v15799_v37  ;;  %v15846_v54 = vld [vmem:[#allocation34_spill] sm:$0xff] }
 0xbbb   : > { %v8753_v49 = vsel %vm15828_vm2, %v8659_v22, 0.0  ;;  %vm15861_vm2 = vmmov %vm15841_vm0 }
 0xbbc   : > { %8754 = vadd.xlane.f32.xlu1 %v8753_v49  ;;  %v8750_v23 = vsel %vm15829_vm6, %v8658_v32, 0.0  ;;  %vm15864_vm6 = vmmov %vm15841_vm0 }
 0xbbd   : > { %8745 = vadd.xlane.f32.xlu0 %v8744_v55  ;;  %v15847_v55 = vld [vmem:[#allocation31_spill] sm:$0xff] }
 0xbc1   : > { %8751 = vadd.xlane.f32.xlu0 %v8750_v23 }
 0xc0d   : > { %v8665_v45 = vpop.xlane.xlu1 %8664 }
 0xc0e   : > { %v8757_v61 = vmul.f32 %v8665_v45, %v15830_v7  ;;  %v8662_v3 = vpop.xlane.xlu0 %8661 }
 0xc0f   : > { %v8756_v37 = vmul.f32 %v8662_v3, %v15831_v12  ;;  %v8798_v3 = vld [vmem:[%s11709_s30 + $0x50] sm:$0xff] }
 0xc10   : > { %v8821_v52 = vadd.f32 %v8789_v25, %v8757_v61  ;;  %v8801_v25 = vld [vmem:[%s11709_s30 + $0x68] sm:$0xff]  ;;  %v15850_v61 = vld [vmem:[#allocation38_spill] sm:$0xff] }
 0xc11   : > { %v8820_v44 = vadd.f32 %v8788_v40, %v8756_v37 }
 0xc12   : > { %v8853_v17 = vmax.f32 %v8821_v52, 0.0  ;;  %v8671_v16 = vpop.xlane.xlu0 %8670  ;;  %v15851_v52 = vld [vmem:[#allocation35_spill] sm:$0xff] }
 0xc13   : > { %v8852_v18 = vmax.f32 %v8820_v44, 0.0  ;;  %v8759_v5 = vmul.f32 %v8671_v16, %v15832_v0  ;;  %v8803_v16 = vld [vmem:[%s11709_s30 + $0x78] sm:$0xff] }
 0xc14   : > { %8885 = vst.msk [vmem:[%s15330_s12 + $0x8] sm:$0xff] %vm15833_vm1, %v8853_v17  ;;  %vm15865_vm1 = vmmov %vm15841_vm0 }
 0xc15   : > { %8884 = vst.msk [vmem:[%s15330_s12] sm:$0xff] %vm15834_vm5, %v8852_v18  ;;  %v8823_v63 = vadd.f32 %v8791_v36, %v8759_v5  ;;  %v8677_v29 = vpop.xlane.xlu1 %8676  ;;  %v15854_v5 = vld [vmem:[#allocation42_spill] sm:$0xff]  ;;  %vm15868_vm5 = vmmov %vm15841_vm0 }
 0xc16   : > { %v8761_v10 = vmul.f32 %v8677_v29, %v15835_v60  ;;  %v8668_v26 = vpop.xlane.xlu0 %8667 }
 0xc17   : > { %v8855_v46 = vmax.f32 %v8823_v63, 0.0  ;;  %v8758_v6 = vmul.f32 %v8668_v26, %v15836_v2  ;;  %v8805_v2 = vld [vmem:[%s11709_s30 + $0x88] sm:$0xff] }
 0xc18   : > { %v8825_v57 = vadd.f32 %v8793_v51, %v8761_v10  ;;  %v8800_v51 = vld [vmem:[%s11709_s30 + $0x60] sm:$0xff]  ;;  %v15855_v10 = vld [vmem:[#allocation39_spill] sm:$0xff] }
 0xc19   : > { %8887 = vst.msk [vmem:[%s15330_s12 + $0x18] sm:$0xff] %vm15837_vm15, %v8855_v46  ;;  %v8822_v21 = vadd.f32 %v8790_v28, %v8758_v6  ;;  %v8683_v34 = vpop.xlane.xlu1 %8682  ;;  %vm15869_vm15 = vmmov %vm15841_vm0 }
 0xc1a   : > { %v8857_v58 = vmax.f32 %v8825_v57, 0.0  ;;  %v8763_v53 = vmul.f32 %v8683_v34, %v15838_v56  ;;  %v8674_v15 = vpop.xlane.xlu0 %8673  ;;  %v8802_v34 = vld [vmem:[%s11709_s30 + $0x70] sm:$0xff] }
 0xc1b   : > { %v8854_v11 = vmax.f32 %v8822_v21, 0.0  ;;  %v8760_v47 = vmul.f32 %v8674_v15, %v15839_v31  ;;  %v15858_v21 = vld [vmem:[#allocation12_spill] sm:$0xff]  ;;  %v8807_v31 = vld [vmem:[%s11709_s30 + $0x98] sm:$0xff] }
 0xc1c   : > { %8889 = vst.msk [vmem:[%s15330_s12 + $0x28] sm:$0xff] %vm15840_vm13, %v8857_v58  ;;  %v8827_v1 = vadd.f32 %v8795_v43, %v8763_v53  ;;  %v15859_v53 = vld [vmem:[#allocation43_spill] sm:$0xff]  ;;  %vm15872_vm13 = vmmov %vm15841_vm0 }
 0xc1d   : > { %8886 = vst.msk [vmem:[%s15330_s12 + $0x10] sm:$0xff] %vm15841_vm0, %v8854_v11  ;;  %v8824_v30 = vadd.f32 %v8792_v27, %v8760_v47  ;;  %v8689_v35 = vpop.xlane.xlu1 %8688 }
 0xc1e   : > { %v8859_v41 = vmax.f32 %v8827_v1, 0.0  ;;  %v8765_v8 = vmul.f32 %v8689_v35, %v15842_v20  ;;  %v8680_v4 = vpop.xlane.xlu0 %8679  ;;  %v8804_v35 = vld [vmem:[%s11709_s30 + $0x80] sm:$0xff] }
 0xc1f   : > { %v8856_v48 = vmax.f32 %v8824_v30, 0.0  ;;  %v8762_v59 = vmul.f32 %v8680_v4, %v15843_v24  ;;  %v15862_v30 = vld [vmem:[#allocation16_spill] sm:$0xff]  ;;  %v8809_v24 = vld [vmem:[%s11709_s30 + $0xa8] sm:$0xff] }
 0xc20   : > { %8891 = vst.msk [vmem:[%s15330_s12 + $0x38] sm:$0xff] %vm15844_vm14, %v8859_v41  ;;  %v8829_v50 = vadd.f32 %v8797_v62, %v8765_v8  ;;  %v15863_v8 = vld [vmem:[#allocation13_spill] sm:$0xff]  ;;  %vm15875_vm14 = vmmov %vm15841_vm0 }
 0xc21   : > { %8888 = vst.msk [vmem:[%s15330_s12 + $0x20] sm:$0xff] %vm15845_vm7, %v8856_v48  ;;  %v8826_v42 = vadd.f32 %v8794_v13, %v8762_v59  ;;  %v8695_v14 = vpop.xlane.xlu1 %8694  ;;  %vm15876_vm7 = vmmov %vm15841_vm0 }
 0xc22   : > { %v8861_v19 = vmax.f32 %v8829_v50, 0.0  ;;  %v8767_v38 = vmul.f32 %v8695_v14, %v15846_v54  ;;  %v8686_v22 = vpop.xlane.xlu0 %8685  ;;  %v8806_v14 = vld [vmem:[%s11709_s30 + $0x90] sm:$0xff] }
 0xc23   : > { %v8858_v33 = vmax.f32 %v8826_v42, 0.0  ;;  %v8764_v32 = vmul.f32 %v8686_v22, %v15847_v55  ;;  %v15866_v42 = vld [vmem:[#allocation20_spill] sm:$0xff]  ;;  %v8811_v55 = vld [vmem:[%s11709_s30 + $0xb8] sm:$0xff] }
 0xc24   : > { %8893 = vst.msk [vmem:[%s15330_s12 + $0x48] sm:$0xff] %vm15848_vm8, %v8861_v19  ;;  %v8831_v49 = vadd.f32 %v8799_v39, %v8767_v38  ;;  %v15867_v38 = vld [vmem:[#allocation17_spill] sm:$0xff]  ;;  %vm15879_vm8 = vmmov %vm15841_vm0 }
 0xc25   : > { %8890 = vst.msk [vmem:[%s15330_s12 + $0x30] sm:$0xff] %vm15849_vm10, %v8858_v33  ;;  %v8828_v23 = vadd.f32 %v8796_v9, %v8764_v32  ;;  %v8701_v45 = vpop.xlane.xlu1 %8700  ;;  %vm15880_vm10 = vmmov %vm15841_vm0 }
 0xc26   : > { %v8863_v7 = vmax.f32 %v8831_v49, 0.0  ;;  %v8769_v40 = vmul.f32 %v8701_v45, %v15850_v61  ;;  %v8692_v12 = vpop.xlane.xlu0 %8691  ;;  %v8808_v45 = vld [vmem:[%s11709_s30 + $0xa0] sm:$0xff] }
 0xc27   : > { %v8860_v37 = vmax.f32 %v8828_v23, 0.0  ;;  %v8766_v44 = vmul.f32 %v8692_v12, %v15851_v52  ;;  %v15870_v23 = vld [vmem:[#allocation24_spill] sm:$0xff]  ;;  %v8813_v52 = vld [vmem:[%s11709_s30 + $0xc8] sm:$0xff] }
 0xc28   : > { %8895 = vst.msk [vmem:[%s15330_s12 + $0x58] sm:$0xff] %vm15852_vm9, %v8863_v7  ;;  %v8833_v17 = vadd.f32 %v8801_v25, %v8769_v40  ;;  %v15871_v40 = vld [vmem:[#allocation21_spill] sm:$0xff]  ;;  %vm15883_vm9 = vmmov %vm15841_vm0 }
 0xc29   : > { %8892 = vst.msk [vmem:[%s15330_s12 + $0x40] sm:$0xff] %vm15853_vm3, %v8860_v37  ;;  %v8830_v36 = vadd.f32 %v8798_v3, %v8766_v44  ;;  %v8707_v18 = vpop.xlane.xlu1 %8706  ;;  %vm15884_vm3 = vmmov %vm15841_vm0 }
 0xc2a   : > { %v8865_v0 = vmax.f32 %v8833_v17, 0.0  ;;  %v8771_v63 = vmul.f32 %v8707_v18, %v15854_v5  ;;  %v8698_v29 = vpop.xlane.xlu0 %8697  ;;  %v8810_v18 = vld [vmem:[%s11709_s30 + $0xb0] sm:$0xff] }
 0xc2b   : > { %v8862_v60 = vmax.f32 %v8830_v36, 0.0  ;;  %v8768_v28 = vmul.f32 %v8698_v29, %v15855_v10  ;;  %v15873_v36 = vld [vmem:[#allocation28_spill] sm:$0xff]  ;;  %v8815_v10 = vld [vmem:[%s11709_s30 + $0xd8] sm:$0xff] }
 0xc2c   : > { %8897 = vst.msk [vmem:[%s15330_s12 + $0x68] sm:$0xff] %vm15856_vm4, %v8865_v0  ;;  %v8835_v26 = vadd.f32 %v8803_v16, %v8771_v63  ;;  %v15874_v63 = vld [vmem:[#allocation25_spill] sm:$0xff]  ;;  %vm15887_vm4 = vmmov %vm15841_vm0 }
 0xc2d   : > { %8894 = vst.msk [vmem:[%s15330_s12 + $0x50] sm:$0xff] %vm15857_vm11, %v8862_v60  ;;  %v8832_v46 = vadd.f32 %v8800_v51, %v8768_v28  ;;  %v8713_v6 = vpop.xlane.xlu1 %8712  ;;  %vm15888_vm11 = vmmov %vm15841_vm0 }
 0xc2e   : > { %v8867_v57 = vmax.f32 %v8835_v26, 0.0  ;;  %v8773_v43 = vmul.f32 %v8713_v6, %v15858_v21  ;;  %v8704_v58 = vpop.xlane.xlu0 %8703  ;;  %v8812_v6 = vld [vmem:[%s11709_s30 + $0xc0] sm:$0xff] }
 0xc2f   : > { %v8864_v56 = vmax.f32 %v8832_v46, 0.0  ;;  %v8770_v27 = vmul.f32 %v8704_v58, %v15859_v53  ;;  %v15877_v46 = vld [vmem:[#allocation32_spill] sm:$0xff]  ;;  %v8817_v53 = vld [vmem:[%s11709_s30 + $0xe8] sm:$0xff] }
 0xc30   : > { %8899 = vst.msk [vmem:[%s15330_s12 + $0x78] sm:$0xff] %vm15860_vm12, %v8867_v57  ;;  %v8837_v15 = vadd.f32 %v8805_v2, %v8773_v43  ;;  %v15878_v43 = vld [vmem:[#allocation29_spill] sm:$0xff]  ;;  %vm15890_vm12 = vmmov %vm15841_vm0 }
 0xc31   : > { %8896 = vst.msk [vmem:[%s15330_s12 + $0x60] sm:$0xff] %vm15861_vm2, %v8864_v56  ;;  %v8834_v11 = vadd.f32 %v8802_v34, %v8770_v27  ;;  %v8719_v47 = vpop.xlane.xlu1 %8718  ;;  %vm15891_vm2 = vmmov %vm15841_vm0 }
 0xc32   : > { %v8869_v1 = vmax.f32 %v8837_v15, 0.0  ;;  %v8775_v62 = vmul.f32 %v8719_v47, %v15862_v30  ;;  %v8710_v41 = vpop.xlane.xlu0 %8709  ;;  %v8814_v47 = vld [vmem:[%s11709_s30 + $0xd0] sm:$0xff] }
 0xc33   : > { %v8866_v20 = vmax.f32 %v8834_v11, 0.0  ;;  %v8772_v13 = vmul.f32 %v8710_v41, %v15863_v8  ;;  %v15881_v11 = vld [vmem:[#allocation36_spill] sm:$0xff]  ;;  %v8819_v8 = vld [vmem:[%s11709_s30 + $0xf8] sm:$0xff] }
 0xc34   : > { %8901 = vst.msk [vmem:[%s15330_s12 + $0x88] sm:$0xff] %vm15864_vm6, %v8869_v1  ;;  %v8839_v4 = vadd.f32 %v8807_v31, %v8775_v62  ;;  %v15882_v62 = vld [vmem:[#allocation33_spill] sm:$0xff]  ;;  %vm15892_vm6 = vmmov %vm15841_vm0 }
 0xc35   : > { %8898 = vst.msk [vmem:[%s15330_s12 + $0x70] sm:$0xff] %vm15865_vm1, %v8866_v20  ;;  %v8836_v48 = vadd.f32 %v8804_v35, %v8772_v13  ;;  %v8725_v59 = vpop.xlane.xlu1 %8724 }
 0xc36   : > { %v8871_v50 = vmax.f32 %v8839_v4, 0.0  ;;  %v8777_v39 = vmul.f32 %v8725_v59, %v15866_v42  ;;  %v8716_v19 = vpop.xlane.xlu0 %8715  ;;  %v8816_v59 = vld [vmem:[%s11709_s30 + $0xe0] sm:$0xff] }
 0xc37   : > { %v8868_v54 = vmax.f32 %v8836_v48, 0.0  ;;  %v8774_v9 = vmul.f32 %v8716_v19, %v15867_v38  ;;  %v15885_v48 = vld [vmem:[#allocation40_spill] sm:$0xff] }
 0xc38   : > { %8903 = vst.msk [vmem:[%s15330_s12 + $0x98] sm:$0xff] %vm15868_vm5, %v8871_v50  ;;  %v8841_v22 = vadd.f32 %v8809_v24, %v8777_v39  ;;  %v15886_v39 = vld [vmem:[#allocation37_spill] sm:$0xff] }
 0xc39   : > { %8900 = vst.msk [vmem:[%s15330_s12 + $0x80] sm:$0xff] %vm15869_vm15, %v8868_v54  ;;  %v8838_v33 = vadd.f32 %v8806_v14, %v8774_v9  ;;  %v8731_v32 = vpop.xlane.xlu1 %8730  ;;  %v8818_v9 = vld [vmem:[%s11709_s30 + $0xf0] sm:$0xff]  ;;  %s11406_s30 = scalar_lea.vmem %s15459_s20, 4096 }
 0xc3a   : > { %v8873_v49 = vmax.f32 %v8841_v22, 0.0  ;;  %v8779_v25 = vmul.f32 %v8731_v32, %v15870_v23  ;;  %v8722_v7 = vpop.xlane.xlu0 %8721  ;;  %p11407_p10 = scmp.ne.s32.totalorder %s15459_s20, %s11406_s30  ;;  %p11414_p0 = scmp.lt.s32.totalorder %s11412_s2, %s11406_s30 }
 0xc3b   : > { %v8870_v61 = vmax.f32 %v8838_v33, 0.0  ;;  %v8776_v3 = vmul.f32 %v8722_v7, %v15871_v40 }
 0xc3c   : > { %8905 = vst.msk [vmem:[%s15330_s12 + $0xa8] sm:$0xff] %vm15872_vm13, %v8873_v49  ;;  %v8843_v12 = vadd.f32 %v8811_v55, %v8779_v25  ;;  %v15889_v55 = vld [vmem:[#allocation41_spill] sm:$0xff]  ;;  %p11408_p11 = pnand %p11407_p10, %p11580_p5  ;;  %p11415_p1 = por %p11414_p0, %p11413_p13 }
 0xc3d   : > { %8902 = vst.msk [vmem:[%s15330_s12 + $0x90] sm:$0xff] %vm15841_vm0, %v8870_v61  ;;  %v8840_v37 = vadd.f32 %v8808_v45, %v8776_v3  ;;  %v8737_v44 = vpop.xlane.xlu1 %8736 }
 0xc3e   : > { %v8875_v17 = vmax.f32 %v8843_v12, 0.0  ;;  %v8781_v16 = vmul.f32 %v8737_v44, %v15873_v36  ;;  %v8728_v0 = vpop.xlane.xlu0 %8727  ;;  %p11409_p12 = pneg %p11408_p11 }
 0xc3f   : > { %v8872_v5 = vmax.f32 %v8840_v37, 0.0  ;;  %v8778_v51 = vmul.f32 %v8728_v0, %v15874_v63 }
 0xc40   : > { %8907 = vst.msk [vmem:[%s15330_s12 + $0xb8] sm:$0xff] %vm15875_vm14, %v8875_v17  ;;  %v8845_v29 = vadd.f32 %v8813_v52, %v8781_v16  ;;  %p11416_p2 = pnand %p11415_p1, %p11409_p12 }
 0xc41   : > { %8904 = vst.msk [vmem:[%s15330_s12 + $0xa0] sm:$0xff] %vm15876_vm7, %v8872_v5  ;;  %v8842_v60 = vadd.f32 %v8810_v18, %v8778_v51  ;;  %v8743_v28 = vpop.xlane.xlu1 %8742 }
 0xc42   : > { %v8877_v26 = vmax.f32 %v8845_v29, 0.0  ;;  %v8783_v2 = vmul.f32 %v8743_v28, %v15877_v46  ;;  %v8734_v57 = vpop.xlane.xlu0 %8733 }
 0xc43   : > { %v8874_v21 = vmax.f32 %v8842_v60, 0.0  ;;  %v8780_v34 = vmul.f32 %v8734_v57, %v15878_v43 }
 0xc44   : > { %8909 = vst.msk [vmem:[%s15330_s12 + $0xc8] sm:$0xff] %vm15879_vm8, %v8877_v26  ;;  %v8847_v58 = vadd.f32 %v8815_v10, %v8783_v2 }
 0xc45   : > { %8906 = vst.msk [vmem:[%s15330_s12 + $0xb0] sm:$0xff] %vm15880_vm10, %v8874_v21  ;;  %v8844_v56 = vadd.f32 %v8812_v6, %v8780_v34  ;;  %v8749_v27 = vpop.xlane.xlu1 %8748 }
 0xc46   : > { %v8879_v15 = vmax.f32 %v8847_v58, 0.0  ;;  %v8785_v31 = vmul.f32 %v8749_v27, %v15881_v11  ;;  %v8740_v1 = vpop.xlane.xlu0 %8739 }
 0xc47   : > { %v8876_v30 = vmax.f32 %v8844_v56, 0.0  ;;  %v8782_v35 = vmul.f32 %v8740_v1, %v15882_v62 }
 0xc48   : > { %8911 = vst.msk [vmem:[%s15330_s12 + $0xd8] sm:$0xff] %vm15883_vm9, %v8879_v15  ;;  %v8849_v41 = vadd.f32 %v8817_v53, %v8785_v31 }
 0xc49   : > { %8908 = vst.msk [vmem:[%s15330_s12 + $0xc0] sm:$0xff] %vm15884_vm3, %v8876_v30  ;;  %v8846_v20 = vadd.f32 %v8814_v47, %v8782_v35  ;;  %v8755_v13 = vpop.xlane.xlu1 %8754 }
 0xc4a   : > { %v8881_v4 = vmax.f32 %v8849_v41, 0.0  ;;  %v8787_v24 = vmul.f32 %v8755_v13, %v15885_v48  ;;  %v8746_v50 = vpop.xlane.xlu0 %8745 }
 0xc4b   : > { %v8878_v42 = vmax.f32 %v8846_v20, 0.0  ;;  %v8784_v14 = vmul.f32 %v8746_v50, %v15886_v39 }
 0xc4c   : > { %8913 = vst.msk [vmem:[%s15330_s12 + $0xe8] sm:$0xff] %vm15887_vm4, %v8881_v4  ;;  %v8851_v19 = vadd.f32 %v8819_v8, %v8787_v24 }
 0xc4d   : > { %8910 = vst.msk [vmem:[%s15330_s12 + $0xd0] sm:$0xff] %vm15888_vm11, %v8878_v42  ;;  %v8848_v54 = vadd.f32 %v8816_v59, %v8784_v14 }
 0xc4e   : > { %v8883_v38 = vmax.f32 %v8851_v19, 0.0  ;;  %v8752_v22 = vpop.xlane.xlu0 %8751 }
 0xc4f   : > { %v8880_v33 = vmax.f32 %v8848_v54, 0.0  ;;  %v8786_v32 = vmul.f32 %v8752_v22, %v15889_v55 }
 0xc50   : > { %8915 = vst.msk [vmem:[%s15330_s12 + $0xf8] sm:$0xff] %vm15890_vm12, %v8883_v38 }
 0xc51   : > { %8912 = vst.msk [vmem:[%s15330_s12 + $0xe0] sm:$0xff] %vm15891_vm2, %v8880_v33  ;;  %v8850_v49 = vadd.f32 %v8818_v9, %v8786_v32 }
 0xc53   : > { %v8882_v23 = vmax.f32 %v8850_v49, 0.0 }
 0xc55   : > { %8914 = vst.msk [vmem:[%s15330_s12 + $0xf0] sm:$0xff] %vm15892_vm6, %v8882_v23 }
 0xc56   : > { %11419 = shalt.err (!%p11416_p2)
}
 0xc57   : > { %s11420_s6 = scalar_lea.hbm %s15457_s27, 4096  ;;  %s11424_s4 = scalar_lea.hbm %s15516_s10, 8192 }
 0xc58   : > { %p11421_p3 = scmp.ne.s32.totalorder %s15457_s27, %s11420_s6  ;;  %p11425_p8 = scmp.lt.u32.totalorder %s15457_s27, %s15516_s10 }
 0xc59   : > { %p11426_p9 = scmp.lt.u32.totalorder %s11424_s4, %s11420_s6  ;;  %p11428_p11 = scmp.lt.u32.totalorder %s11420_s6, %s15457_s27 }
 0xc5a   : > { %p11422_p4 = pnand %p11421_p3, %p11580_p5 }
 0xc5b   : > { %p11427_p10 = por %p11426_p9, %p11425_p8 }
 0xc5c   : > { %p11423_p7 = pneg %p11422_p4 }
 0xc5d   : > { %p11429_p12 = por %p11428_p11, %p11427_p10 }
 0xc5f   : > { %p11430_p13 = pnand %p11429_p12, %p11423_p7 }
 0xc61   : > { %11433 = shalt.err (!%p11430_p13)
}
 0xc62   : > { %s11485_s3 = smov 128   ;;  %s11486_s7 = smov 8  }
 0xc63   : > { %11274 = dma.vmem_to_hbm [thread:$0]  (%p11580_p5), %s15459_s20, 4096, %s15457_s27, %s15465_s17, %s11485_s3, %s11485_s3, %s11486_s7  }
 0xc64 PF: > { %p11286_p0 = scmp.ge.s32.totalorder %s11472_s16, 2  ;;  %s8945_s8 = sand.u32 1, %s11460_s13  }
 0xc65   : > { %s8946_s9 = scalar_lea.sflag [#allocation6], %s8945_s8 }
 0xc66   : > { %p11281_p1 = pnand %p11286_p0, %p11584_p6 }
 0xc68   : > { %11455 = dma.done.wait (!%p11281_p1), %s8946_s9, 4096  }
 0xc69   : > { %11457 = vsyncadd (!%p11281_p1), %s8946_s9, 4294963200  ;;  %s15893_s22 = sld [smem:[#allocation11_spill]]  ;;  %p21_p2 = scmp.ge.s32.totalorder %s11567_s19, 4  }
 0xc6a   : > { %s15894_s13 = smov %s11464_s14  ;;  %s15895_s14 = smov %s11468_s15 }
 0xc6b   : > { %s15897_s16 = smov %s11567_s19  ;;  %23 = sbr.rel (!%p21_p2) target bundleno = 15 (0xf), region = 119 }
 0xc6f   : > { %s15896_s15 = smov %s15893_s22 }
 0xc72   :  { %8951 = vsyncpa [#allocation6], 1 }
 0xc73   :  { %8953 = vsyncpa [#allocation6 + $0x1], 1 }
 0xc74   :  { %8954 = vsyncpa [#allocation7], 1 }
 0xc75   :  { %8956 = vsyncpa [#allocation7 + $0x1], 1 }

</bundles_post_ra>
